<compile_context>
chip_gen: v7x
topology: tpu7x:2x2x1
jax: 0.10.0
libtpu: 0.0.40
codegen_flags: <defaults>
</compile_context>

<pallas_src>
import functools

import numpy as np

import jax
import jax.numpy as jnp
from jax.experimental import pallas as pl
from jax.experimental.pallas import tpu as pltpu

_VMEM = pl.BlockSpec(memory_space=pltpu.MemorySpace.VMEM)
_HI = jax.lax.Precision.HIGHEST


def _gelu_tanh(v):
    # tanh-approximate GELU (shared by kernel and reference so the self-check is tight)
    return 0.5 * v * (1.0 + jnp.tanh(0.7978845608028654 * (v + 0.044715 * v * v * v)))


# ------------------------------ the fused kernel ------------------------------

def _blend_kernel(x_ref, s_ref, m_ref, his_ref, t_ref,
                  vec_ref, m128_ref, tctx1_ref, tctx2_ref,
                  mavg_ref, wkq_ref, msum_ref, msumt_ref, wvexp_ref,
                  wff_ref, wffo_ref, wto_ref,
                  out_ref, hout_ref,
                  *, vidx, midx, inner, scale):
    f32 = jnp.float32

    def V(name):                      # (1, L) row of the packed vector table
        r, L = vidx[name]
        return vec_ref[r:r + 1, :L]

    def M(name):                      # (rows, cols) slab of the packed matrix table
        i, r, c = midx[name]
        return m128_ref[i, :r, :c]

    def mm(a, w):
        return jnp.dot(a, w, preferred_element_type=f32)

    relu = lambda z: jnp.maximum(z, 0.0)

    # ---- x branch: convInit and BN+ReLU+conv1 (Toeplitz matmuls on flat NCHW input) ----
    x_in = x_ref[...]                                              # (B, Cin*8*8)
    xinit = mm(x_in, M("t_init")) + V("b_init")                    # (B, 128) NHWC-flat
    x1 = mm(relu(x_in * V("bnx_sc") + V("bnx_sh")), M("t_conv1")) + V("b_conv1")

    # ---- map / sat context branches (two stride-2 convs each) ----
    m_in = m_ref[...]                                              # (B, Cc*16*16)
    m1 = mm(relu(m_in * V("bnm1_sc") + V("bnm1_sh")), tctx1_ref[0]) + V("b_m1")
    m2 = mm(relu(m1 * V("bnm2_sc") + V("bnm2_sh")), tctx2_ref[0]) + V("b_m2")
    s_in = s_ref[...]
    s1 = mm(relu(s_in * V("bns1_sc") + V("bns1_sh")), tctx1_ref[1]) + V("b_s1")
    s2 = mm(relu(s1 * V("bns2_sc") + V("bns2_sh")), tctx2_ref[1]) + V("b_s2")

    # ---- his branch ----
    h_in = his_ref[...]
    h1 = mm(relu(h_in * V("bnh1_sc") + V("bnh1_sh")), M("t_his1")) + V("b_h1")
    hd = mm(relu(h1 * V("bnh2_sc") + V("bnh2_sh")), M("t_his2")) + V("b_h2")

    # ---- TAMF: the time query is spatially constant, so one query row per batch ----
    q = t_ref[...] * V("wt") + V("bt")                             # (B, inner)

    # tokens of all 4 modalities side-by-side on the lane axis: (B, 4*S*C) = (B, 512)
    tok = jnp.concatenate([x1, hd, s2, m2], axis=1)
    mu = mm(tok, mavg_ref[...])                                    # per-token mean (broadcast)
    d = tok - mu
    var = mm(d * d, mavg_ref[...])                                 # per-token variance (broadcast)
    ln = d * jax.lax.rsqrt(var + 1e-5) * V("ln_g") + V("ln_b")

    # concatenated-key attention: sims (B, 64) == torch's cat([sim_x, sim_h, sim_s, sim_m])
    kq = mm(q, wkq_ref[...])                                       # (B, 512): (Wk_g q) tiled per token
    sims = mm(ln * kq, msum_ref[...]) * scale                      # (B, 4*S)
    mx = jnp.max(sims, axis=-1, keepdims=True)
    e = jnp.exp(sims - mx)
    attn = e / jnp.sum(e, axis=-1, keepdims=True)                  # exact softmax

    attn_x = mm(attn, msumt_ref[...])                              # (B, 512): attn broadcast over channels
    out_sum = mm(attn_x * ln, wvexp_ref[...])                      # (B, inner) = out_x+out_h+out_s+out_m

    # layerNorm_result + GEGLU feed-forward + to_out (GELU computed in-kernel)
    mu2 = jnp.mean(out_sum, axis=-1, keepdims=True)
    var2 = jnp.mean((out_sum - mu2) ** 2, axis=-1, keepdims=True)
    lnr = (out_sum - mu2) * jax.lax.rsqrt(var2 + 1e-5) * V("lnr_g") + V("lnr_b")
    proj = mm(lnr, wff_ref[...]) + V("b_ff")                       # (B, 2*inner)
    hidden = proj[:, :inner] * _gelu_tanh(proj[:, inner:])
    y = mm(hidden, wffo_ref[...]) + V("b_ffo")                     # (B, inner)
    tamf = mm(y, wto_ref[...]) + V("b_to")                         # (B, S*C): to_out tiled over tokens

    # ---- residual, conv2 block, xInit residual ----
    x2 = tamf + x1
    x3 = mm(relu(x2 * V("bn2_sc") + V("bn2_sh")), M("t_conv2")) + V("b_conv2") + xinit

    # ---- gate blend; outputs written directly in NCHW-flat layout ----
    g = mm(x3, M("g_w1")) + mm(hd, M("g_w2")) + V("b_gate")        # (B, C*4*4) NCHW-flat
    feg = jax.nn.sigmoid(g)
    x3_n = mm(x3, M("perm"))                                       # NHWC-flat -> NCHW-flat
    hd_n = mm(hd, M("perm"))
    out_ref[...] = x3_n * feg + hd_n * (1.0 - feg)
    hout_ref[...] = hd_n


# ------------------------------ wrapper (jitted) ------------------------------

def blend_downsampling2_forward(prep, x, s, m, his, t, *, layout):
    f32 = jnp.float32
    B = x.shape[0]
    n_flat = layout["n_flat"]
    kernel = functools.partial(_blend_kernel, vidx=layout["vidx"], midx=layout["midx"],
                               inner=layout["inner"], scale=layout["scale"])
    out_flat, his_flat = pl.pallas_call(
        kernel,
        out_shape=(jax.ShapeDtypeStruct((B, n_flat), f32),
                   jax.ShapeDtypeStruct((B, n_flat), f32)),
        in_specs=[_VMEM] * 17,
        out_specs=(_VMEM, _VMEM),
    )(x.astype(f32).reshape(B, -1), s.astype(f32).reshape(B, -1),
      m.astype(f32).reshape(B, -1), his.astype(f32).reshape(B, -1), t.astype(f32),
      prep["vec"], prep["m128"], prep["tctx1"], prep["tctx2"], prep["mavg"],
      prep["wkq"], prep["msum"], prep["msumT"], prep["wvexp"], prep["wff"],
      prep["wffo"], prep["wto"])
    C, Hs = layout["C_out"], layout["Hs"]
    return out_flat.reshape(B, C, Hs, Hs), his_flat.reshape(B, C, Hs, Hs)


# ------------------------- hoisted weight preprocessing -------------------------

def _conv_toeplitz(w, b, H, W, stride, pad, in_order, out_order):
    """Dense matrix T and bias so that flat_out = flat_in @ T + bias == Conv2d(w,b)."""
    w = np.asarray(w, np.float32)
    bias = np.asarray(b, np.float32)
    O, Cin, kh, kw = w.shape
    Ho = (H + 2 * pad - kh) // stride + 1
    Wo = (W + 2 * pad - kw) // stride + 1

    def iidx(c, i, j):
        return (c * H + i) * W + j if in_order == "chw" else (i * W + j) * Cin + c

    def oidx(o, i, j):
        return (o * Ho + i) * Wo + j if out_order == "chw" else (i * Wo + j) * O + o

    T = np.zeros((Cin * H * W, O * Ho * Wo), np.float32)
    bf = np.zeros((O * Ho * Wo,), np.float32)
    for oi in range(Ho):
        for oj in range(Wo):
            for o in range(O):
                bf[oidx(o, oi, oj)] = bias[o]
            for di in range(kh):
                ii = oi * stride + di - pad
                if not 0 <= ii < H:
                    continue
                for dj in range(kw):
                    jj = oj * stride + dj - pad
                    if not 0 <= jj < W:
                        continue
                    for o in range(O):
                        for c in range(Cin):
                            T[iidx(c, ii, jj), oidx(o, oi, oj)] += w[o, c, di, dj]
    return T, bf


def precompute(p):
    """Runs ONCE: turns every module parameter into the flat-layout matmul operands and
    tiled elementwise vectors the fused kernel consumes."""
    eps = np.float32(1e-5)
    C_out = int(np.asarray(p["conv1"]["w"]).shape[0])
    inner = int(np.asarray(p["tamf"]["ff_out"]["w"]).shape[0])
    Hs = 4                      # TAMF is called with imageWidth=4
    S = Hs * Hs
    Hx, Hc = 2 * Hs, 4 * Hs     # x/his are 8x8, s/m are 16x16

    vecs, mats = {}, {}

    def add(name, v):
        vecs[name] = np.asarray(v, np.float32).reshape(-1)

    def addm(name, mat):
        mats[name] = np.asarray(mat, np.float32)

    def bn_sc_sh(pp):
        g = np.asarray(pp["gamma"], np.float32)
        sc = g / np.sqrt(np.asarray(pp["var"], np.float32) + eps)
        sh = np.asarray(pp["beta"], np.float32) - np.asarray(pp["mean"], np.float32) * sc
        return sc, sh

    # BatchNorm scale/shift tiled to the flat layouts ("chw" for raw inputs, "hwc" after)
    sc, sh = bn_sc_sh(p["conv1_bn"]); add("bnx_sc", np.repeat(sc, Hx * Hx)); add("bnx_sh", np.repeat(sh, Hx * Hx))
    sc, sh = bn_sc_sh(p["map_bn1"]);  add("bnm1_sc", np.repeat(sc, Hc * Hc)); add("bnm1_sh", np.repeat(sh, Hc * Hc))
    sc, sh = bn_sc_sh(p["map_bn2"]);  add("bnm2_sc", np.tile(sc, 4 * S));     add("bnm2_sh", np.tile(sh, 4 * S))
    sc, sh = bn_sc_sh(p["sat_bn1"]);  add("bns1_sc", np.repeat(sc, Hc * Hc)); add("bns1_sh", np.repeat(sh, Hc * Hc))
    sc, sh = bn_sc_sh(p["sat_bn2"]);  add("bns2_sc", np.tile(sc, 4 * S));     add("bns2_sh", np.tile(sh, 4 * S))
    sc, sh = bn_sc_sh(p["his_bn1"]);  add("bnh1_sc", np.repeat(sc, Hx * Hx)); add("bnh1_sh", np.repeat(sh, Hx * Hx))
    sc, sh = bn_sc_sh(p["his_bn2"]);  add("bnh2_sc", np.tile(sc, S));         add("bnh2_sh", np.tile(sh, S))
    sc, sh = bn_sc_sh(p["conv2_bn"]); add("bn2_sc", np.tile(sc, S));          add("bn2_sh", np.tile(sh, S))

    # Toeplitz conv matrices (+ flat biases)
    T, b = _conv_toeplitz(p["convInit"]["w"], p["convInit"]["b"], Hx, Hx, 2, 0, "chw", "hwc")
    addm("t_init", T); add("b_init", b)
    T, b = _conv_toeplitz(p["conv1"]["w"], p["conv1"]["b"], Hx, Hx, 2, 1, "chw", "hwc")
    addm("t_conv1", T); add("b_conv1", b)
    T, b = _conv_toeplitz(p["his_conv1"]["w"], p["his_conv1"]["b"], Hx, Hx, 2, 1, "chw", "hwc")
    addm("t_his1", T); add("b_h1", b)
    T, b = _conv_toeplitz(p["his_conv2"]["w"], p["his_conv2"]["b"], Hs, Hs, 1, 1, "hwc", "hwc")
    addm("t_his2", T); add("b_h2", b)
    T, b = _conv_toeplitz(p["conv2"]["w"], p["conv2"]["b"], Hs, Hs, 1, 1, "hwc", "hwc")
    addm("t_conv2", T); add("b_conv2", b)
    Tm1, bm1 = _conv_toeplitz(p["map_conv1"]["w"], p["map_conv1"]["b"], Hc, Hc, 2, 1, "chw", "hwc")
    Tm2, bm2 = _conv_toeplitz(p["map_conv2"]["w"], p["map_conv2"]["b"], 2 * Hs, 2 * Hs, 2, 1, "hwc", "hwc")
    Ts1, bs1 = _conv_toeplitz(p["sat_conv1"]["w"], p["sat_conv1"]["b"], Hc, Hc, 2, 1, "chw", "hwc")
    Ts2, bs2 = _conv_toeplitz(p["sat_conv2"]["w"], p["sat_conv2"]["b"], 2 * Hs, 2 * Hs, 2, 1, "hwc", "hwc")
    add("b_m1", bm1); add("b_m2", bm2); add("b_s1", bs1); add("b_s2", bs2)

    # TAMF weights, pre-expanded to the flat token layout (modality order: x, h, s, m)
    tp = p["tamf"]
    add("wt", np.asarray(tp["t"]["w"], np.float32)[:, 0]); add("bt", tp["t"]["b"])
    add("ln_g", np.concatenate([np.tile(np.asarray(tp[k]["gamma"], np.float32), S)
                                for k in ("ln_x", "ln_h", "ln_s", "ln_m")]))
    add("ln_b", np.concatenate([np.tile(np.asarray(tp[k]["beta"], np.float32), S)
                                for k in ("ln_x", "ln_h", "ln_s", "ln_m")]))
    add("lnr_g", tp["ln_result"]["gamma"]); add("lnr_b", tp["ln_result"]["beta"])
    add("b_ff", tp["ff_proj"]["b"]); add("b_ffo", tp["ff_out"]["b"])

    n_feat = 4 * S * C_out
    mavg = np.zeros((n_feat, n_feat), np.float32)
    msum = np.zeros((n_feat, 4 * S), np.float32)
    for gj in range(4 * S):
        o = gj * C_out
        mavg[o:o + C_out, o:o + C_out] = 1.0 / C_out
        msum[o:o + C_out, gj] = 1.0
    wk_list = [np.asarray(tp[k]["w"], np.float32) for k in ("k_x", "k_h", "k_s", "k_m")]
    wv_list = [np.asarray(tp[k]["w"], np.float32) for k in ("v_x", "v_h", "v_s", "v_m")]
    wkq = np.zeros((inner, n_feat), np.float32)
    wv_exp = np.zeros((n_feat, inner), np.float32)
    for g in range(4):
        for j in range(S):
            o = (g * S + j) * C_out
            wkq[:, o:o + C_out] = wk_list[g]
            wv_exp[o:o + C_out, :] = wv_list[g].T
    wff = np.asarray(tp["ff_proj"]["w"], np.float32).T
    wffo = np.asarray(tp["ff_out"]["w"], np.float32).T
    wto = np.asarray(tp["to_out"]["w"], np.float32)
    bto = np.asarray(tp["to_out"]["b"], np.float32)
    wto_t = np.zeros((inner, S * C_out), np.float32)
    bto_t = np.zeros((S * C_out,), np.float32)
    for j in range(S):
        wto_t[:, j * C_out:(j + 1) * C_out] = wto.T
        bto_t[j * C_out:(j + 1) * C_out] = bto
    add("b_to", bto_t)

    # gate: per-(b,c) 4x4 spatial matmuls as dense maps NHWC-flat -> NCHW-flat
    C_g = int(np.asarray(p["w1"]).shape[0])

    def gate_mat(w):
        w = np.asarray(w, np.float32)
        Gm = np.zeros((S * C_g, C_g * S), np.float32)
        for c in range(C_g):
            for i in range(Hs):
                for j in range(Hs):
                    for k in range(Hs):
                        Gm[(k * Hs + j) * C_g + c, (c * Hs + i) * Hs + j] = w[c, i, k]
        return Gm

    addm("g_w1", gate_mat(p["w1"])); addm("g_w2", gate_mat(p["w2"]))
    add("b_gate", np.asarray(p["b"], np.float32).reshape(-1))
    perm = np.zeros((S * C_g, C_g * S), np.float32)
    for c in range(C_g):
        for i in range(Hs):
            for j in range(Hs):
                perm[(i * Hs + j) * C_g + c, (c * Hs + i) * Hs + j] = 1.0
    addm("perm", perm)

    # pack vectors / 128x128-class matrices into single tables (fewer kernel operands)
    maxlen = max(v.shape[0] for v in vecs.values())
    vec = np.zeros((len(vecs), maxlen), np.float32)
    vidx = {}
    for i, (k, v) in enumerate(vecs.items()):
        vec[i, :v.shape[0]] = v
        vidx[k] = (i, int(v.shape[0]))
    maxr = max(mt.shape[0] for mt in mats.values())
    maxc = max(mt.shape[1] for mt in mats.values())
    m128 = np.zeros((len(mats), maxr, maxc), np.float32)
    midx = {}
    for i, (k, mt) in enumerate(mats.items()):
        m128[i, :mt.shape[0], :mt.shape[1]] = mt
        midx[k] = (i, int(mt.shape[0]), int(mt.shape[1]))

    prep = {
        "vec": jnp.asarray(vec), "m128": jnp.asarray(m128),
        "tctx1": jnp.asarray(np.stack([Tm1, Ts1])),
        "tctx2": jnp.asarray(np.stack([Tm2, Ts2])),
        "mavg": jnp.asarray(mavg), "wkq": jnp.asarray(wkq),
        "msum": jnp.asarray(msum), "msumT": jnp.asarray(np.ascontiguousarray(msum.T)),
        "wvexp": jnp.asarray(wv_exp), "wff": jnp.asarray(wff),
        "wffo": jnp.asarray(wffo), "wto": jnp.asarray(wto_t),
    }
    layout = {"vidx": vidx, "midx": midx, "inner": inner, "scale": float(inner) ** -0.5,
              "n_flat": int(C_g * S), "C_out": C_g, "Hs": Hs}
    return prep, layout


# --------------------------- pure-JAX reference (self-check) ---------------------------

def _ref_conv(x, w, b, stride, pad):
    y = jax.lax.conv_general_dilated(x, w, window_strides=(stride, stride),
                                     padding=[(pad, pad), (pad, pad)],
                                     dimension_numbers=("NCHW", "OIHW", "NCHW"),
                                     precision=_HI)
    return y + b[None, :, None, None]


def _ref_bn_relu(x, p, eps=1e-5):
    sc = p["gamma"] / jnp.sqrt(p["var"] + eps)
    sh = p["beta"] - p["mean"] * sc
    return jnp.maximum(x * sc[None, :, None, None] + sh[None, :, None, None], 0.0)


def _ref_ln(x, p, eps=1e-5):
    mu = x.mean(-1, keepdims=True)
    var = ((x - mu) ** 2).mean(-1, keepdims=True)
    return (x - mu) * jax.lax.rsqrt(var + eps) * p["gamma"] + p["beta"]


def reference_forward(p, x, s, m, his, t):
    mm = lambda a, b: jnp.matmul(a, b, precision=_HI)
    xinit = _ref_conv(x, p["convInit"]["w"], p["convInit"]["b"], 2, 0)
    x1 = _ref_conv(_ref_bn_relu(x, p["conv1_bn"]), p["conv1"]["w"], p["conv1"]["b"], 2, 1)
    m1 = _ref_conv(_ref_bn_relu(m, p["map_bn1"]), p["map_conv1"]["w"], p["map_conv1"]["b"], 2, 1)
    m2 = _ref_conv(_ref_bn_relu(m1, p["map_bn2"]), p["map_conv2"]["w"], p["map_conv2"]["b"], 2, 1)
    s1 = _ref_conv(_ref_bn_relu(s, p["sat_bn1"]), p["sat_conv1"]["w"], p["sat_conv1"]["b"], 2, 1)
    s2 = _ref_conv(_ref_bn_relu(s1, p["sat_bn2"]), p["sat_conv2"]["w"], p["sat_conv2"]["b"], 2, 1)
    h1 = _ref_conv(_ref_bn_relu(his, p["his_bn1"]), p["his_conv1"]["w"], p["his_conv1"]["b"], 2, 1)
    hd = _ref_conv(_ref_bn_relu(h1, p["his_bn2"]), p["his_conv2"]["w"], p["his_conv2"]["b"], 1, 1)

    tp = p["tamf"]
    B = x.shape[0]
    tok = lambda z: z.reshape(B, z.shape[1], 16).transpose(0, 2, 1)          # b (h w) c
    xt = _ref_ln(tok(x1), tp["ln_x"]); ht = _ref_ln(tok(hd), tp["ln_h"])
    st = _ref_ln(tok(s2), tp["ln_s"]); mt = _ref_ln(tok(m2), tp["ln_m"])
    q = mm(t, tp["t"]["w"].T) + tp["t"]["b"]
    q = jnp.broadcast_to(q[:, None, :], (B, 16, q.shape[-1]))
    k_x, v_x = mm(xt, tp["k_x"]["w"].T), mm(xt, tp["v_x"]["w"].T)
    k_h, v_h = mm(ht, tp["k_h"]["w"].T), mm(ht, tp["v_h"]["w"].T)
    k_s, v_s = mm(st, tp["k_s"]["w"].T), mm(st, tp["v_s"]["w"].T)
    k_m, v_m = mm(mt, tp["k_m"]["w"].T), mm(mt, tp["v_m"]["w"].T)
    scale = float(tp["ff_out"]["w"].shape[0]) ** -0.5
    sim = jnp.concatenate([jnp.einsum("bid,bjd->bij", q, k, precision=_HI) * scale
                           for k in (k_x, k_h, k_s, k_m)], axis=-1)
    att = jax.nn.softmax(sim, axis=-1)
    a_x, a_h, a_s, a_m = jnp.split(att, 4, axis=-1)
    out = (jnp.einsum("bij,bjd->bid", a_x, v_x, precision=_HI)
           + jnp.einsum("bij,bjd->bid", a_h, v_h, precision=_HI)
           + jnp.einsum("bij,bjd->bid", a_s, v_s, precision=_HI)
           + jnp.einsum("bij,bjd->bid", a_m, v_m, precision=_HI))
    outn = _ref_ln(out, tp["ln_result"])
    proj = mm(outn, tp["ff_proj"]["w"].T) + tp["ff_proj"]["b"]
    a_part, gate = jnp.split(proj, 2, axis=-1)
    hidden = a_part * _gelu_tanh(gate)
    y = mm(hidden, tp["ff_out"]["w"].T) + tp["ff_out"]["b"]
    tout = mm(y, tp["to_out"]["w"].T) + tp["to_out"]["b"]
    tamf = tout.transpose(0, 2, 1).reshape(B, -1, 4, 4)

    x2 = tamf + x1
    x3 = _ref_conv(_ref_bn_relu(x2, p["conv2_bn"]), p["conv2"]["w"], p["conv2"]["b"], 1, 1) + xinit
    feg = jax.nn.sigmoid(jnp.einsum("cik,bckj->bcij", p["w1"], x3, precision=_HI)
                         + jnp.einsum("cik,bckj->bcij", p["w2"], hd, precision=_HI) + p["b"])
    return x3 * feg + hd * (1.0 - feg), hd


# ------------------------------ parameters ------------------------------

def init_params(key, in_channels, out_channels, context_channels, his_channel, his_size):
    keys = iter(jax.random.split(key, 64))

    def nrm(shape, scale=0.1):
        return scale * jax.random.normal(next(keys), shape, dtype=jnp.float32)

    def conv_p(o, c, k):
        return {"w": nrm((o, c, k, k)), "b": nrm((o,), 0.05)}

    def lin_p(o, i, bias=True):
        return {"w": nrm((o, i)),
                "b": nrm((o,), 0.05) if bias else jnp.zeros((o,), jnp.float32)}

    def bn_p(c):
        return {"gamma": jnp.ones((c,), jnp.float32), "beta": jnp.zeros((c,), jnp.float32),
                "mean": jnp.zeros((c,), jnp.float32), "var": jnp.ones((c,), jnp.float32)}

    def ln_p(c):
        return {"gamma": jnp.ones((c,), jnp.float32), "beta": jnp.zeros((c,), jnp.float32)}

    inner = 256  # heads=1, dim_head=256 in TimeStepAwareModalityFusion
    return {
        "convInit": conv_p(out_channels, in_channels, 2),
        "conv1_bn": bn_p(in_channels), "conv1": conv_p(out_channels, in_channels, 3),
        "map_bn1": bn_p(context_channels), "map_conv1": conv_p(context_channels, context_channels, 3),
        "map_bn2": bn_p(context_channels), "map_conv2": conv_p(out_channels, context_channels, 3),
        "sat_bn1": bn_p(context_channels), "sat_conv1": conv_p(context_channels, context_channels, 3),
        "sat_bn2": bn_p(context_channels), "sat_conv2": conv_p(out_channels, context_channels, 3),
        "his_bn1": bn_p(in_channels), "his_conv1": conv_p(out_channels, in_channels, 3),
        "his_bn2": bn_p(out_channels), "his_conv2": conv_p(out_channels, out_channels, 3),
        "conv2_bn": bn_p(out_channels), "conv2": conv_p(out_channels, out_channels, 3),
        "tamf": {
            "t": lin_p(inner, 1),
            "ln_x": ln_p(out_channels), "ln_h": ln_p(out_channels),
            "ln_s": ln_p(out_channels), "ln_m": ln_p(out_channels),
            "k_x": lin_p(inner, out_channels, bias=False), "v_x": lin_p(inner, out_channels, bias=False),
            "k_h": lin_p(inner, out_channels, bias=False), "v_h": lin_p(inner, out_channels, bias=False),
            "k_s": lin_p(inner, out_channels, bias=False), "v_s": lin_p(inner, out_channels, bias=False),
            "k_m": lin_p(inner, out_channels, bias=False), "v_m": lin_p(inner, out_channels, bias=False),
            "ln_result": ln_p(inner),
            "ff_proj": lin_p(2 * inner, inner),
            "ff_out": lin_p(inner, inner),
            "to_out": lin_p(out_channels, inner),
        },
        "w1": nrm((his_channel, his_size, his_size), 0.5),
        "w2": nrm((his_channel, his_size, his_size), 0.5),
        "b": nrm((his_channel, his_size, his_size), 0.5),
    }


# --------------------------------- main ---------------------------------

if __name__ == "__main__":
    # TAMF is called with imageWidth=4, so x/his must be 8x8 and s/m must be 16x16;
    # his_size must equal 4 and his_channel must equal out_channels.
    in_channels, out_channels, context_channels = 2, 8, 3
    his_channel, his_size = out_channels, 4
    B = 2

    key = jax.random.PRNGKey(0)
    kp, kx, ks, km, kh, kt = jax.random.split(key, 6)
    params = init_params(kp, in_channels, out_channels, context_channels, his_channel, his_size)

    x = jax.random.normal(kx, (B, in_channels, 8, 8), dtype=jnp.float32)
    s = jax.random.normal(ks, (B, context_channels, 16, 16), dtype=jnp.float32)
    m = jax.random.normal(km, (B, context_channels, 16, 16), dtype=jnp.float32)
    his = jax.random.normal(kh, (B, in_channels, 8, 8), dtype=jnp.float32)
    t = jax.random.normal(kt, (B, 1), dtype=jnp.float32)

    prep, layout = precompute(params)        # hoisted weight preprocessing, runs once
    fwd = jax.jit(functools.partial(blend_downsampling2_forward, layout=layout))
    out, his_out = fwd(prep, x, s, m, his, t)
    jax.block_until_ready((out, his_out))

    assert out.shape == (B, out_channels, 4, 4), out.shape
    assert his_out.shape == (B, out_channels, 4, 4), his_out.shape
    assert bool(jnp.all(jnp.isfinite(out))) and bool(jnp.all(jnp.isfinite(his_out)))

    # pure-JAX reference (same tanh-approx GELU) to validate the fused reformulation
    ref_out, ref_his = reference_forward(params, x, s, m, his, t)
    err = max(float(jnp.max(jnp.abs(out - ref_out))),
              float(jnp.max(jnp.abs(his_out - ref_his))))
    assert err < 2e-2, f"kernel/reference mismatch: max abs err = {err}"
    print("KERNEL_OK")
</pallas_src>

<mosaic_0001>
module attributes {stable_mosaic.version = 11 : i64} {
  func.func @_blend_kernel(%arg0: memref<2x128xf32, #tpu.memory_space<vmem>>, %arg1: memref<2x768xf32, #tpu.memory_space<vmem>>, %arg2: memref<2x768xf32, #tpu.memory_space<vmem>>, %arg3: memref<2x128xf32, #tpu.memory_space<vmem>>, %arg4: memref<2x1xf32, #tpu.memory_space<vmem>>, %arg5: memref<35x768xf32, #tpu.memory_space<vmem>>, %arg6: memref<8x128x128xf32, #tpu.memory_space<vmem>>, %arg7: memref<2x768x192xf32, #tpu.memory_space<vmem>>, %arg8: memref<2x192x128xf32, #tpu.memory_space<vmem>>, %arg9: memref<512x512xf32, #tpu.memory_space<vmem>>, %arg10: memref<256x512xf32, #tpu.memory_space<vmem>>, %arg11: memref<512x64xf32, #tpu.memory_space<vmem>>, %arg12: memref<64x512xf32, #tpu.memory_space<vmem>>, %arg13: memref<512x256xf32, #tpu.memory_space<vmem>>, %arg14: memref<256x512xf32, #tpu.memory_space<vmem>>, %arg15: memref<256x256xf32, #tpu.memory_space<vmem>>, %arg16: memref<256x128xf32, #tpu.memory_space<vmem>>, %arg17: memref<2x128xf32, #tpu.memory_space<vmem>>, %arg18: memref<2x128xf32, #tpu.memory_space<vmem>>) attributes {dimension_semantics = [], scalar_prefetch = 0 : i64, scratch_operands = 0 : i64, tpu.core_type = #tpu.core_type<tc>} {
    %c0 = arith.constant 0 : index
    %c0_0 = arith.constant 0 : index
    %0 = vector.load %arg0[%c0, %c0_0] : memref<2x128xf32, #tpu.memory_space<vmem>>, vector<2x128xf32>
    %c0_1 = arith.constant 0 : index
    %c0_2 = arith.constant 0 : index
    %c0_3 = arith.constant 0 : index
    %1 = vector.load %arg6[%c0_1, %c0_2, %c0_3] : memref<8x128x128xf32, #tpu.memory_space<vmem>>, vector<1x128x128xf32>
    %2 = vector.shape_cast %1 : vector<1x128x128xf32> to vector<128x128xf32>
    %cst = arith.constant dense<0.000000e+00> : vector<2x128xf32>
    %3 = tpu.matmul %0, %2, %cst {dimension_numbers = #tpu.dot_dimension_numbers<[1], [0], [0], [1], [0, 0, 1, 1], [], []>} : vector<2x128xf32>, vector<128x128xf32>, vector<2x128xf32> -> vector<2x128xf32>
    %c16 = arith.constant 16 : index
    %c0_4 = arith.constant 0 : index
    %4 = vector.load %arg5[%c16, %c0_4] : memref<35x768xf32, #tpu.memory_space<vmem>>, vector<1x128xf32>
    %5 = vector.broadcast %4 : vector<1x128xf32> to vector<2x128xf32>
    %6 = arith.addf %3, %5 : vector<2x128xf32>
    %c0_5 = arith.constant 0 : index
    %c0_6 = arith.constant 0 : index
    %7 = vector.load %arg5[%c0_5, %c0_6] : memref<35x768xf32, #tpu.memory_space<vmem>>, vector<1x128xf32>
    %8 = vector.broadcast %7 : vector<1x128xf32> to vector<2x128xf32>
    %9 = arith.mulf %0, %8 : vector<2x128xf32>
    %c1 = arith.constant 1 : index
    %c0_7 = arith.constant 0 : index
    %10 = vector.load %arg5[%c1, %c0_7] : memref<35x768xf32, #tpu.memory_space<vmem>>, vector<1x128xf32>
    %11 = vector.broadcast %10 : vector<1x128xf32> to vector<2x128xf32>
    %12 = arith.addf %9, %11 : vector<2x128xf32>
    %cst_8 = arith.constant 0.000000e+00 : f32
    %13 = vector.broadcast %cst_8 : f32 to vector<2x128xf32>
    %14 = arith.maximumf %12, %13 : vector<2x128xf32>
    %c1_9 = arith.constant 1 : index
    %c0_10 = arith.constant 0 : index
    %c0_11 = arith.constant 0 : index
    %15 = vector.load %arg6[%c1_9, %c0_10, %c0_11] : memref<8x128x128xf32, #tpu.memory_space<vmem>>, vector<1x128x128xf32>
    %16 = vector.shape_cast %15 : vector<1x128x128xf32> to vector<128x128xf32>
    %cst_12 = arith.constant dense<0.000000e+00> : vector<2x128xf32>
    %17 = tpu.matmul %14, %16, %cst_12 {dimension_numbers = #tpu.dot_dimension_numbers<[1], [0], [0], [1], [0, 0, 1, 1], [], []>} : vector<2x128xf32>, vector<128x128xf32>, vector<2x128xf32> -> vector<2x128xf32>
    %c17 = arith.constant 17 : index
    %c0_13 = arith.constant 0 : index
    %18 = vector.load %arg5[%c17, %c0_13] : memref<35x768xf32, #tpu.memory_space<vmem>>, vector<1x128xf32>
    %19 = vector.broadcast %18 : vector<1x128xf32> to vector<2x128xf32>
    %20 = arith.addf %17, %19 : vector<2x128xf32>
    %c0_14 = arith.constant 0 : index
    %c0_15 = arith.constant 0 : index
    %21 = vector.load %arg2[%c0_14, %c0_15] : memref<2x768xf32, #tpu.memory_space<vmem>>, vector<2x768xf32>
    %c2 = arith.constant 2 : index
    %c0_16 = arith.constant 0 : index
    %22 = vector.load %arg5[%c2, %c0_16] : memref<35x768xf32, #tpu.memory_space<vmem>>, vector<1x768xf32>
    %23 = vector.broadcast %22 : vector<1x768xf32> to vector<2x768xf32>
    %24 = arith.mulf %21, %23 : vector<2x768xf32>
    %c3 = arith.constant 3 : index
    %c0_17 = arith.constant 0 : index
    %25 = vector.load %arg5[%c3, %c0_17] : memref<35x768xf32, #tpu.memory_space<vmem>>, vector<1x768xf32>
    %26 = vector.broadcast %25 : vector<1x768xf32> to vector<2x768xf32>
    %27 = arith.addf %24, %26 : vector<2x768xf32>
    %cst_18 = arith.constant 0.000000e+00 : f32
    %28 = vector.broadcast %cst_18 : f32 to vector<2x768xf32>
    %29 = arith.maximumf %27, %28 : vector<2x768xf32>
    %c0_19 = arith.constant 0 : index
    %c0_20 = arith.constant 0 : index
    %c0_21 = arith.constant 0 : index
    %30 = vector.load %arg7[%c0_19, %c0_20, %c0_21] : memref<2x768x192xf32, #tpu.memory_space<vmem>>, vector<1x768x192xf32>
    %31 = vector.shape_cast %30 : vector<1x768x192xf32> to vector<768x192xf32>
    %cst_22 = arith.constant dense<0.000000e+00> : vector<2x192xf32>
    %32 = tpu.matmul %29, %31, %cst_22 {dimension_numbers = #tpu.dot_dimension_numbers<[1], [0], [0], [1], [0, 0, 1, 1], [], []>} : vector<2x768xf32>, vector<768x192xf32>, vector<2x192xf32> -> vector<2x192xf32>
    %c21 = arith.constant 21 : index
    %c0_23 = arith.constant 0 : index
    %33 = vector.load %arg5[%c21, %c0_23] : memref<35x768xf32, #tpu.memory_space<vmem>>, vector<1x192xf32>
    %34 = vector.broadcast %33 : vector<1x192xf32> to vector<2x192xf32>
    %35 = arith.addf %32, %34 : vector<2x192xf32>
    %c4 = arith.constant 4 : index
    %c0_24 = arith.constant 0 : index
    %36 = vector.load %arg5[%c4, %c0_24] : memref<35x768xf32, #tpu.memory_space<vmem>>, vector<1x192xf32>
    %37 = vector.broadcast %36 : vector<1x192xf32> to vector<2x192xf32>
    %38 = arith.mulf %35, %37 : vector<2x192xf32>
    %c5 = arith.constant 5 : index
    %c0_25 = arith.constant 0 : index
    %39 = vector.load %arg5[%c5, %c0_25] : memref<35x768xf32, #tpu.memory_space<vmem>>, vector<1x192xf32>
    %40 = vector.broadcast %39 : vector<1x192xf32> to vector<2x192xf32>
    %41 = arith.addf %38, %40 : vector<2x192xf32>
    %cst_26 = arith.constant 0.000000e+00 : f32
    %42 = vector.broadcast %cst_26 : f32 to vector<2x192xf32>
    %43 = arith.maximumf %41, %42 : vector<2x192xf32>
    %c0_27 = arith.constant 0 : index
    %c0_28 = arith.constant 0 : index
    %c0_29 = arith.constant 0 : index
    %44 = vector.load %arg8[%c0_27, %c0_28, %c0_29] : memref<2x192x128xf32, #tpu.memory_space<vmem>>, vector<1x192x128xf32>
    %45 = vector.shape_cast %44 : vector<1x192x128xf32> to vector<192x128xf32>
    %cst_30 = arith.constant dense<0.000000e+00> : vector<2x128xf32>
    %46 = tpu.matmul %43, %45, %cst_30 {dimension_numbers = #tpu.dot_dimension_numbers<[1], [0], [0], [1], [0, 0, 1, 1], [], []>} : vector<2x192xf32>, vector<192x128xf32>, vector<2x128xf32> -> vector<2x128xf32>
    %c22 = arith.constant 22 : index
    %c0_31 = arith.constant 0 : index
    %47 = vector.load %arg5[%c22, %c0_31] : memref<35x768xf32, #tpu.memory_space<vmem>>, vector<1x128xf32>
    %48 = vector.broadcast %47 : vector<1x128xf32> to vector<2x128xf32>
    %49 = arith.addf %46, %48 : vector<2x128xf32>
    %c0_32 = arith.constant 0 : index
    %c0_33 = arith.constant 0 : index
    %50 = vector.load %arg1[%c0_32, %c0_33] : memref<2x768xf32, #tpu.memory_space<vmem>>, vector<2x768xf32>
    %c6 = arith.constant 6 : index
    %c0_34 = arith.constant 0 : index
    %51 = vector.load %arg5[%c6, %c0_34] : memref<35x768xf32, #tpu.memory_space<vmem>>, vector<1x768xf32>
    %52 = vector.broadcast %51 : vector<1x768xf32> to vector<2x768xf32>
    %53 = arith.mulf %50, %52 : vector<2x768xf32>
    %c7 = arith.constant 7 : index
    %c0_35 = arith.constant 0 : index
    %54 = vector.load %arg5[%c7, %c0_35] : memref<35x768xf32, #tpu.memory_space<vmem>>, vector<1x768xf32>
    %55 = vector.broadcast %54 : vector<1x768xf32> to vector<2x768xf32>
    %56 = arith.addf %53, %55 : vector<2x768xf32>
    %cst_36 = arith.constant 0.000000e+00 : f32
    %57 = vector.broadcast %cst_36 : f32 to vector<2x768xf32>
    %58 = arith.maximumf %56, %57 : vector<2x768xf32>
    %c1_37 = arith.constant 1 : index
    %c0_38 = arith.constant 0 : index
    %c0_39 = arith.constant 0 : index
    %59 = vector.load %arg7[%c1_37, %c0_38, %c0_39] : memref<2x768x192xf32, #tpu.memory_space<vmem>>, vector<1x768x192xf32>
    %60 = vector.shape_cast %59 : vector<1x768x192xf32> to vector<768x192xf32>
    %cst_40 = arith.constant dense<0.000000e+00> : vector<2x192xf32>
    %61 = tpu.matmul %58, %60, %cst_40 {dimension_numbers = #tpu.dot_dimension_numbers<[1], [0], [0], [1], [0, 0, 1, 1], [], []>} : vector<2x768xf32>, vector<768x192xf32>, vector<2x192xf32> -> vector<2x192xf32>
    %c23 = arith.constant 23 : index
    %c0_41 = arith.constant 0 : index
    %62 = vector.load %arg5[%c23, %c0_41] : memref<35x768xf32, #tpu.memory_space<vmem>>, vector<1x192xf32>
    %63 = vector.broadcast %62 : vector<1x192xf32> to vector<2x192xf32>
    %64 = arith.addf %61, %63 : vector<2x192xf32>
    %c8 = arith.constant 8 : index
    %c0_42 = arith.constant 0 : index
    %65 = vector.load %arg5[%c8, %c0_42] : memref<35x768xf32, #tpu.memory_space<vmem>>, vector<1x192xf32>
    %66 = vector.broadcast %65 : vector<1x192xf32> to vector<2x192xf32>
    %67 = arith.mulf %64, %66 : vector<2x192xf32>
    %c9 = arith.constant 9 : index
    %c0_43 = arith.constant 0 : index
    %68 = vector.load %arg5[%c9, %c0_43] : memref<35x768xf32, #tpu.memory_space<vmem>>, vector<1x192xf32>
    %69 = vector.broadcast %68 : vector<1x192xf32> to vector<2x192xf32>
    %70 = arith.addf %67, %69 : vector<2x192xf32>
    %cst_44 = arith.constant 0.000000e+00 : f32
    %71 = vector.broadcast %cst_44 : f32 to vector<2x192xf32>
    %72 = arith.maximumf %70, %71 : vector<2x192xf32>
    %c1_45 = arith.constant 1 : index
    %c0_46 = arith.constant 0 : index
    %c0_47 = arith.constant 0 : index
    %73 = vector.load %arg8[%c1_45, %c0_46, %c0_47] : memref<2x192x128xf32, #tpu.memory_space<vmem>>, vector<1x192x128xf32>
    %74 = vector.shape_cast %73 : vector<1x192x128xf32> to vector<192x128xf32>
    %cst_48 = arith.constant dense<0.000000e+00> : vector<2x128xf32>
    %75 = tpu.matmul %72, %74, %cst_48 {dimension_numbers = #tpu.dot_dimension_numbers<[1], [0], [0], [1], [0, 0, 1, 1], [], []>} : vector<2x192xf32>, vector<192x128xf32>, vector<2x128xf32> -> vector<2x128xf32>
    %c24 = arith.constant 24 : index
    %c0_49 = arith.constant 0 : index
    %76 = vector.load %arg5[%c24, %c0_49] : memref<35x768xf32, #tpu.memory_space<vmem>>, vector<1x128xf32>
    %77 = vector.broadcast %76 : vector<1x128xf32> to vector<2x128xf32>
    %78 = arith.addf %75, %77 : vector<2x128xf32>
    %c0_50 = arith.constant 0 : index
    %c0_51 = arith.constant 0 : index
    %79 = vector.load %arg3[%c0_50, %c0_51] : memref<2x128xf32, #tpu.memory_space<vmem>>, vector<2x128xf32>
    %c10 = arith.constant 10 : index
    %c0_52 = arith.constant 0 : index
    %80 = vector.load %arg5[%c10, %c0_52] : memref<35x768xf32, #tpu.memory_space<vmem>>, vector<1x128xf32>
    %81 = vector.broadcast %80 : vector<1x128xf32> to vector<2x128xf32>
    %82 = arith.mulf %79, %81 : vector<2x128xf32>
    %c11 = arith.constant 11 : index
    %c0_53 = arith.constant 0 : index
    %83 = vector.load %arg5[%c11, %c0_53] : memref<35x768xf32, #tpu.memory_space<vmem>>, vector<1x128xf32>
    %84 = vector.broadcast %83 : vector<1x128xf32> to vector<2x128xf32>
    %85 = arith.addf %82, %84 : vector<2x128xf32>
    %cst_54 = arith.constant 0.000000e+00 : f32
    %86 = vector.broadcast %cst_54 : f32 to vector<2x128xf32>
    %87 = arith.maximumf %85, %86 : vector<2x128xf32>
    %c2_55 = arith.constant 2 : index
    %c0_56 = arith.constant 0 : index
    %c0_57 = arith.constant 0 : index
    %88 = vector.load %arg6[%c2_55, %c0_56, %c0_57] : memref<8x128x128xf32, #tpu.memory_space<vmem>>, vector<1x128x128xf32>
    %89 = vector.shape_cast %88 : vector<1x128x128xf32> to vector<128x128xf32>
    %cst_58 = arith.constant dense<0.000000e+00> : vector<2x128xf32>
    %90 = tpu.matmul %87, %89, %cst_58 {dimension_numbers = #tpu.dot_dimension_numbers<[1], [0], [0], [1], [0, 0, 1, 1], [], []>} : vector<2x128xf32>, vector<128x128xf32>, vector<2x128xf32> -> vector<2x128xf32>
    %c18 = arith.constant 18 : index
    %c0_59 = arith.constant 0 : index
    %91 = vector.load %arg5[%c18, %c0_59] : memref<35x768xf32, #tpu.memory_space<vmem>>, vector<1x128xf32>
    %92 = vector.broadcast %91 : vector<1x128xf32> to vector<2x128xf32>
    %93 = arith.addf %90, %92 : vector<2x128xf32>
    %c12 = arith.constant 12 : index
    %c0_60 = arith.constant 0 : index
    %94 = vector.load %arg5[%c12, %c0_60] : memref<35x768xf32, #tpu.memory_space<vmem>>, vector<1x128xf32>
    %95 = vector.broadcast %94 : vector<1x128xf32> to vector<2x128xf32>
    %96 = arith.mulf %93, %95 : vector<2x128xf32>
    %c13 = arith.constant 13 : index
    %c0_61 = arith.constant 0 : index
    %97 = vector.load %arg5[%c13, %c0_61] : memref<35x768xf32, #tpu.memory_space<vmem>>, vector<1x128xf32>
    %98 = vector.broadcast %97 : vector<1x128xf32> to vector<2x128xf32>
    %99 = arith.addf %96, %98 : vector<2x128xf32>
    %cst_62 = arith.constant 0.000000e+00 : f32
    %100 = vector.broadcast %cst_62 : f32 to vector<2x128xf32>
    %101 = arith.maximumf %99, %100 : vector<2x128xf32>
    %c3_63 = arith.constant 3 : index
    %c0_64 = arith.constant 0 : index
    %c0_65 = arith.constant 0 : index
    %102 = vector.load %arg6[%c3_63, %c0_64, %c0_65] : memref<8x128x128xf32, #tpu.memory_space<vmem>>, vector<1x128x128xf32>
    %103 = vector.shape_cast %102 : vector<1x128x128xf32> to vector<128x128xf32>
    %cst_66 = arith.constant dense<0.000000e+00> : vector<2x128xf32>
    %104 = tpu.matmul %101, %103, %cst_66 {dimension_numbers = #tpu.dot_dimension_numbers<[1], [0], [0], [1], [0, 0, 1, 1], [], []>} : vector<2x128xf32>, vector<128x128xf32>, vector<2x128xf32> -> vector<2x128xf32>
    %c19 = arith.constant 19 : index
    %c0_67 = arith.constant 0 : index
    %105 = vector.load %arg5[%c19, %c0_67] : memref<35x768xf32, #tpu.memory_space<vmem>>, vector<1x128xf32>
    %106 = vector.broadcast %105 : vector<1x128xf32> to vector<2x128xf32>
    %107 = arith.addf %104, %106 : vector<2x128xf32>
    %c0_68 = arith.constant 0 : index
    %c0_69 = arith.constant 0 : index
    %108 = vector.load %arg4[%c0_68, %c0_69] : memref<2x1xf32, #tpu.memory_space<vmem>>, vector<2x1xf32>
    %c25 = arith.constant 25 : index
    %c0_70 = arith.constant 0 : index
    %109 = vector.load %arg5[%c25, %c0_70] : memref<35x768xf32, #tpu.memory_space<vmem>>, vector<1x256xf32>
    %110 = vector.broadcast %108 : vector<2x1xf32> to vector<2x256xf32>
    %111 = vector.broadcast %109 : vector<1x256xf32> to vector<2x256xf32>
    %112 = arith.mulf %110, %111 : vector<2x256xf32>
    %c26 = arith.constant 26 : index
    %c0_71 = arith.constant 0 : index
    %113 = vector.load %arg5[%c26, %c0_71] : memref<35x768xf32, #tpu.memory_space<vmem>>, vector<1x256xf32>
    %114 = vector.broadcast %113 : vector<1x256xf32> to vector<2x256xf32>
    %115 = arith.addf %112, %114 : vector<2x256xf32>
    %116 = tpu.concatenate %20, %107, %78, %49 in 1 : vector<2x128xf32>, vector<2x128xf32>, vector<2x128xf32>, vector<2x128xf32> -> vector<2x512xf32>
    %c0_72 = arith.constant 0 : index
    %c0_73 = arith.constant 0 : index
    %117 = vector.load %arg9[%c0_72, %c0_73] : memref<512x512xf32, #tpu.memory_space<vmem>>, vector<512x512xf32>
    %cst_74 = arith.constant dense<0.000000e+00> : vector<2x512xf32>
    %118 = tpu.matmul %116, %117, %cst_74 {dimension_numbers = #tpu.dot_dimension_numbers<[1], [0], [0], [1], [0, 0, 1, 1], [], []>} : vector<2x512xf32>, vector<512x512xf32>, vector<2x512xf32> -> vector<2x512xf32>
    %119 = arith.subf %116, %118 : vector<2x512xf32>
    %120 = arith.mulf %119, %119 : vector<2x512xf32>
    %c0_75 = arith.constant 0 : index
    %c0_76 = arith.constant 0 : index
    %121 = vector.load %arg9[%c0_75, %c0_76] : memref<512x512xf32, #tpu.memory_space<vmem>>, vector<512x512xf32>
    %cst_77 = arith.constant dense<0.000000e+00> : vector<2x512xf32>
    %122 = tpu.matmul %120, %121, %cst_77 {dimension_numbers = #tpu.dot_dimension_numbers<[1], [0], [0], [1], [0, 0, 1, 1], [], []>} : vector<2x512xf32>, vector<512x512xf32>, vector<2x512xf32> -> vector<2x512xf32>
    %cst_78 = arith.constant 9.99999974E-6 : f32
    %123 = vector.broadcast %cst_78 : f32 to vector<2x512xf32>
    %124 = arith.addf %122, %123 : vector<2x512xf32>
    %125 = math.rsqrt %124 : vector<2x512xf32>
    %126 = arith.mulf %119, %125 : vector<2x512xf32>
    %c27 = arith.constant 27 : index
    %c0_79 = arith.constant 0 : index
    %127 = vector.load %arg5[%c27, %c0_79] : memref<35x768xf32, #tpu.memory_space<vmem>>, vector<1x512xf32>
    %128 = vector.broadcast %127 : vector<1x512xf32> to vector<2x512xf32>
    %129 = arith.mulf %126, %128 : vector<2x512xf32>
    %c28 = arith.constant 28 : index
    %c0_80 = arith.constant 0 : index
    %130 = vector.load %arg5[%c28, %c0_80] : memref<35x768xf32, #tpu.memory_space<vmem>>, vector<1x512xf32>
    %131 = vector.broadcast %130 : vector<1x512xf32> to vector<2x512xf32>
    %132 = arith.addf %129, %131 : vector<2x512xf32>
    %c0_81 = arith.constant 0 : index
    %c0_82 = arith.constant 0 : index
    %133 = vector.load %arg10[%c0_81, %c0_82] : memref<256x512xf32, #tpu.memory_space<vmem>>, vector<256x512xf32>
    %cst_83 = arith.constant dense<0.000000e+00> : vector<2x512xf32>
    %134 = tpu.matmul %115, %133, %cst_83 {dimension_numbers = #tpu.dot_dimension_numbers<[1], [0], [0], [1], [0, 0, 1, 1], [], []>} : vector<2x256xf32>, vector<256x512xf32>, vector<2x512xf32> -> vector<2x512xf32>
    %135 = arith.mulf %132, %134 : vector<2x512xf32>
    %c0_84 = arith.constant 0 : index
    %c0_85 = arith.constant 0 : index
    %136 = vector.load %arg11[%c0_84, %c0_85] : memref<512x64xf32, #tpu.memory_space<vmem>>, vector<512x64xf32>
    %cst_86 = arith.constant dense<0.000000e+00> : vector<2x64xf32>
    %137 = tpu.matmul %135, %136, %cst_86 {dimension_numbers = #tpu.dot_dimension_numbers<[1], [0], [0], [1], [0, 0, 1, 1], [], []>} : vector<2x512xf32>, vector<512x64xf32>, vector<2x64xf32> -> vector<2x64xf32>
    %cst_87 = arith.constant 6.250000e-02 : f32
    %138 = vector.broadcast %cst_87 : f32 to vector<2x64xf32>
    %139 = arith.mulf %137, %138 : vector<2x64xf32>
    %cst_88 = arith.constant dense<0xFF800000> : vector<2xf32>
    %140 = vector.multi_reduction <maximumf>, %139, %cst_88 [1] : vector<2x64xf32> to vector<2xf32>
    %141 = vector.shape_cast %140 : vector<2xf32> to vector<2x1xf32>
    %142 = vector.broadcast %141 : vector<2x1xf32> to vector<2x64xf32>
    %143 = arith.subf %139, %142 : vector<2x64xf32>
    %144 = math.exp %143 : vector<2x64xf32>
    %cst_89 = arith.constant dense<0.000000e+00> : vector<2xf32>
    %145 = vector.multi_reduction <add>, %144, %cst_89 [1] : vector<2x64xf32> to vector<2xf32>
    %146 = vector.shape_cast %145 : vector<2xf32> to vector<2x1xf32>
    %147 = vector.broadcast %146 : vector<2x1xf32> to vector<2x64xf32>
    %148 = arith.divf %144, %147 : vector<2x64xf32>
    %c0_90 = arith.constant 0 : index
    %c0_91 = arith.constant 0 : index
    %149 = vector.load %arg12[%c0_90, %c0_91] : memref<64x512xf32, #tpu.memory_space<vmem>>, vector<64x512xf32>
    %cst_92 = arith.constant dense<0.000000e+00> : vector<2x512xf32>
    %150 = tpu.matmul %148, %149, %cst_92 {dimension_numbers = #tpu.dot_dimension_numbers<[1], [0], [0], [1], [0, 0, 1, 1], [], []>} : vector<2x64xf32>, vector<64x512xf32>, vector<2x512xf32> -> vector<2x512xf32>
    %151 = arith.mulf %150, %132 : vector<2x512xf32>
    %c0_93 = arith.constant 0 : index
    %c0_94 = arith.constant 0 : index
    %152 = vector.load %arg13[%c0_93, %c0_94] : memref<512x256xf32, #tpu.memory_space<vmem>>, vector<512x256xf32>
    %cst_95 = arith.constant dense<0.000000e+00> : vector<2x256xf32>
    %153 = tpu.matmul %151, %152, %cst_95 {dimension_numbers = #tpu.dot_dimension_numbers<[1], [0], [0], [1], [0, 0, 1, 1], [], []>} : vector<2x512xf32>, vector<512x256xf32>, vector<2x256xf32> -> vector<2x256xf32>
    %cst_96 = arith.constant dense<0.000000e+00> : vector<2xf32>
    %154 = vector.multi_reduction <add>, %153, %cst_96 [1] : vector<2x256xf32> to vector<2xf32>
    %155 = vector.shape_cast %154 : vector<2xf32> to vector<2x1xf32>
    %cst_97 = arith.constant 2.560000e+02 : f32
    %156 = vector.broadcast %cst_97 : f32 to vector<2x1xf32>
    %157 = arith.divf %155, %156 : vector<2x1xf32>
    %158 = vector.broadcast %157 : vector<2x1xf32> to vector<2x256xf32>
    %159 = arith.subf %153, %158 : vector<2x256xf32>
    %160 = arith.mulf %159, %159 : vector<2x256xf32>
    %cst_98 = arith.constant dense<0.000000e+00> : vector<2xf32>
    %161 = vector.multi_reduction <add>, %160, %cst_98 [1] : vector<2x256xf32> to vector<2xf32>
    %162 = vector.shape_cast %161 : vector<2xf32> to vector<2x1xf32>
    %cst_99 = arith.constant 2.560000e+02 : f32
    %163 = vector.broadcast %cst_99 : f32 to vector<2x1xf32>
    %164 = arith.divf %162, %163 : vector<2x1xf32>
    %165 = vector.broadcast %157 : vector<2x1xf32> to vector<2x256xf32>
    %166 = arith.subf %153, %165 : vector<2x256xf32>
    %cst_100 = arith.constant 9.99999974E-6 : f32
    %167 = vector.broadcast %cst_100 : f32 to vector<2x1xf32>
    %168 = arith.addf %164, %167 : vector<2x1xf32>
    %169 = math.rsqrt %168 : vector<2x1xf32>
    %170 = vector.broadcast %169 : vector<2x1xf32> to vector<2x256xf32>
    %171 = arith.mulf %166, %170 : vector<2x256xf32>
    %c29 = arith.constant 29 : index
    %c0_101 = arith.constant 0 : index
    %172 = vector.load %arg5[%c29, %c0_101] : memref<35x768xf32, #tpu.memory_space<vmem>>, vector<1x256xf32>
    %173 = vector.broadcast %172 : vector<1x256xf32> to vector<2x256xf32>
    %174 = arith.mulf %171, %173 : vector<2x256xf32>
    %c30 = arith.constant 30 : index
    %c0_102 = arith.constant 0 : index
    %175 = vector.load %arg5[%c30, %c0_102] : memref<35x768xf32, #tpu.memory_space<vmem>>, vector<1x256xf32>
    %176 = vector.broadcast %175 : vector<1x256xf32> to vector<2x256xf32>
    %177 = arith.addf %174, %176 : vector<2x256xf32>
    %c0_103 = arith.constant 0 : index
    %c0_104 = arith.constant 0 : index
    %178 = vector.load %arg14[%c0_103, %c0_104] : memref<256x512xf32, #tpu.memory_space<vmem>>, vector<256x512xf32>
    %cst_105 = arith.constant dense<0.000000e+00> : vector<2x512xf32>
    %179 = tpu.matmul %177, %178, %cst_105 {dimension_numbers = #tpu.dot_dimension_numbers<[1], [0], [0], [1], [0, 0, 1, 1], [], []>} : vector<2x256xf32>, vector<256x512xf32>, vector<2x512xf32> -> vector<2x512xf32>
    %c31 = arith.constant 31 : index
    %c0_106 = arith.constant 0 : index
    %180 = vector.load %arg5[%c31, %c0_106] : memref<35x768xf32, #tpu.memory_space<vmem>>, vector<1x512xf32>
    %181 = vector.broadcast %180 : vector<1x512xf32> to vector<2x512xf32>
    %182 = arith.addf %179, %181 : vector<2x512xf32>
    %183 = vector.extract_strided_slice %182 {offsets = [0, 0], sizes = [2, 256], strides = [1, 1]} : vector<2x512xf32> to vector<2x256xf32>
    %184 = vector.extract_strided_slice %182 {offsets = [0, 256], sizes = [2, 256], strides = [1, 1]} : vector<2x512xf32> to vector<2x256xf32>
    %cst_107 = arith.constant 5.000000e-01 : f32
    %185 = vector.broadcast %cst_107 : f32 to vector<2x256xf32>
    %186 = arith.mulf %185, %184 : vector<2x256xf32>
    %cst_108 = arith.constant 4.471500e-02 : f32
    %187 = vector.broadcast %cst_108 : f32 to vector<2x256xf32>
    %188 = arith.mulf %187, %184 : vector<2x256xf32>
    %189 = arith.mulf %188, %184 : vector<2x256xf32>
    %190 = arith.mulf %189, %184 : vector<2x256xf32>
    %191 = arith.addf %184, %190 : vector<2x256xf32>
    %cst_109 = arith.constant 0.797884583 : f32
    %192 = vector.broadcast %cst_109 : f32 to vector<2x256xf32>
    %193 = arith.mulf %192, %191 : vector<2x256xf32>
    %194 = math.tanh %193 : vector<2x256xf32>
    %cst_110 = arith.constant 1.000000e+00 : f32
    %195 = vector.broadcast %cst_110 : f32 to vector<2x256xf32>
    %196 = arith.addf %195, %194 : vector<2x256xf32>
    %197 = arith.mulf %186, %196 : vector<2x256xf32>
    %198 = arith.mulf %183, %197 : vector<2x256xf32>
    %c0_111 = arith.constant 0 : index
    %c0_112 = arith.constant 0 : index
    %199 = vector.load %arg15[%c0_111, %c0_112] : memref<256x256xf32, #tpu.memory_space<vmem>>, vector<256x256xf32>
    %cst_113 = arith.constant dense<0.000000e+00> : vector<2x256xf32>
    %200 = tpu.matmul %198, %199, %cst_113 {dimension_numbers = #tpu.dot_dimension_numbers<[1], [0], [0], [1], [0, 0, 1, 1], [], []>} : vector<2x256xf32>, vector<256x256xf32>, vector<2x256xf32> -> vector<2x256xf32>
    %c32 = arith.constant 32 : index
    %c0_114 = arith.constant 0 : index
    %201 = vector.load %arg5[%c32, %c0_114] : memref<35x768xf32, #tpu.memory_space<vmem>>, vector<1x256xf32>
    %202 = vector.broadcast %201 : vector<1x256xf32> to vector<2x256xf32>
    %203 = arith.addf %200, %202 : vector<2x256xf32>
    %c0_115 = arith.constant 0 : index
    %c0_116 = arith.constant 0 : index
    %204 = vector.load %arg16[%c0_115, %c0_116] : memref<256x128xf32, #tpu.memory_space<vmem>>, vector<256x128xf32>
    %cst_117 = arith.constant dense<0.000000e+00> : vector<2x128xf32>
    %205 = tpu.matmul %203, %204, %cst_117 {dimension_numbers = #tpu.dot_dimension_numbers<[1], [0], [0], [1], [0, 0, 1, 1], [], []>} : vector<2x256xf32>, vector<256x128xf32>, vector<2x128xf32> -> vector<2x128xf32>
    %c33 = arith.constant 33 : index
    %c0_118 = arith.constant 0 : index
    %206 = vector.load %arg5[%c33, %c0_118] : memref<35x768xf32, #tpu.memory_space<vmem>>, vector<1x128xf32>
    %207 = vector.broadcast %206 : vector<1x128xf32> to vector<2x128xf32>
    %208 = arith.addf %205, %207 : vector<2x128xf32>
    %209 = arith.addf %208, %20 : vector<2x128xf32>
    %c14 = arith.constant 14 : index
    %c0_119 = arith.constant 0 : index
    %210 = vector.load %arg5[%c14, %c0_119] : memref<35x768xf32, #tpu.memory_space<vmem>>, vector<1x128xf32>
    %211 = vector.broadcast %210 : vector<1x128xf32> to vector<2x128xf32>
    %212 = arith.mulf %209, %211 : vector<2x128xf32>
    %c15 = arith.constant 15 : index
    %c0_120 = arith.constant 0 : index
    %213 = vector.load %arg5[%c15, %c0_120] : memref<35x768xf32, #tpu.memory_space<vmem>>, vector<1x128xf32>
    %214 = vector.broadcast %213 : vector<1x128xf32> to vector<2x128xf32>
    %215 = arith.addf %212, %214 : vector<2x128xf32>
    %cst_121 = arith.constant 0.000000e+00 : f32
    %216 = vector.broadcast %cst_121 : f32 to vector<2x128xf32>
    %217 = arith.maximumf %215, %216 : vector<2x128xf32>
    %c4_122 = arith.constant 4 : index
    %c0_123 = arith.constant 0 : index
    %c0_124 = arith.constant 0 : index
    %218 = vector.load %arg6[%c4_122, %c0_123, %c0_124] : memref<8x128x128xf32, #tpu.memory_space<vmem>>, vector<1x128x128xf32>
    %219 = vector.shape_cast %218 : vector<1x128x128xf32> to vector<128x128xf32>
    %cst_125 = arith.constant dense<0.000000e+00> : vector<2x128xf32>
    %220 = tpu.matmul %217, %219, %cst_125 {dimension_numbers = #tpu.dot_dimension_numbers<[1], [0], [0], [1], [0, 0, 1, 1], [], []>} : vector<2x128xf32>, vector<128x128xf32>, vector<2x128xf32> -> vector<2x128xf32>
    %c20 = arith.constant 20 : index
    %c0_126 = arith.constant 0 : index
    %221 = vector.load %arg5[%c20, %c0_126] : memref<35x768xf32, #tpu.memory_space<vmem>>, vector<1x128xf32>
    %222 = vector.broadcast %221 : vector<1x128xf32> to vector<2x128xf32>
    %223 = arith.addf %220, %222 : vector<2x128xf32>
    %224 = arith.addf %223, %6 : vector<2x128xf32>
    %c5_127 = arith.constant 5 : index
    %c0_128 = arith.constant 0 : index
    %c0_129 = arith.constant 0 : index
    %225 = vector.load %arg6[%c5_127, %c0_128, %c0_129] : memref<8x128x128xf32, #tpu.memory_space<vmem>>, vector<1x128x128xf32>
    %226 = vector.shape_cast %225 : vector<1x128x128xf32> to vector<128x128xf32>
    %cst_130 = arith.constant dense<0.000000e+00> : vector<2x128xf32>
    %227 = tpu.matmul %224, %226, %cst_130 {dimension_numbers = #tpu.dot_dimension_numbers<[1], [0], [0], [1], [0, 0, 1, 1], [], []>} : vector<2x128xf32>, vector<128x128xf32>, vector<2x128xf32> -> vector<2x128xf32>
    %c6_131 = arith.constant 6 : index
    %c0_132 = arith.constant 0 : index
    %c0_133 = arith.constant 0 : index
    %228 = vector.load %arg6[%c6_131, %c0_132, %c0_133] : memref<8x128x128xf32, #tpu.memory_space<vmem>>, vector<1x128x128xf32>
    %229 = vector.shape_cast %228 : vector<1x128x128xf32> to vector<128x128xf32>
    %cst_134 = arith.constant dense<0.000000e+00> : vector<2x128xf32>
    %230 = tpu.matmul %107, %229, %cst_134 {dimension_numbers = #tpu.dot_dimension_numbers<[1], [0], [0], [1], [0, 0, 1, 1], [], []>} : vector<2x128xf32>, vector<128x128xf32>, vector<2x128xf32> -> vector<2x128xf32>
    %231 = arith.addf %227, %230 : vector<2x128xf32>
    %c34 = arith.constant 34 : index
    %c0_135 = arith.constant 0 : index
    %232 = vector.load %arg5[%c34, %c0_135] : memref<35x768xf32, #tpu.memory_space<vmem>>, vector<1x128xf32>
    %233 = vector.broadcast %232 : vector<1x128xf32> to vector<2x128xf32>
    %234 = arith.addf %231, %233 : vector<2x128xf32>
    %235 = arith.negf %234 : vector<2x128xf32>
    %236 = math.exp %235 : vector<2x128xf32>
    %cst_136 = arith.constant 1.000000e+00 : f32
    %237 = vector.broadcast %cst_136 : f32 to vector<2x128xf32>
    %238 = arith.addf %237, %236 : vector<2x128xf32>
    %239 = arith.divf %237, %238 : vector<2x128xf32>
    %c7_137 = arith.constant 7 : index
    %c0_138 = arith.constant 0 : index
    %c0_139 = arith.constant 0 : index
    %240 = vector.load %arg6[%c7_137, %c0_138, %c0_139] : memref<8x128x128xf32, #tpu.memory_space<vmem>>, vector<1x128x128xf32>
    %241 = vector.shape_cast %240 : vector<1x128x128xf32> to vector<128x128xf32>
    %cst_140 = arith.constant dense<0.000000e+00> : vector<2x128xf32>
    %242 = tpu.matmul %224, %241, %cst_140 {dimension_numbers = #tpu.dot_dimension_numbers<[1], [0], [0], [1], [0, 0, 1, 1], [], []>} : vector<2x128xf32>, vector<128x128xf32>, vector<2x128xf32> -> vector<2x128xf32>
    %c7_141 = arith.constant 7 : index
    %c0_142 = arith.constant 0 : index
    %c0_143 = arith.constant 0 : index
    %243 = vector.load %arg6[%c7_141, %c0_142, %c0_143] : memref<8x128x128xf32, #tpu.memory_space<vmem>>, vector<1x128x128xf32>
    %244 = vector.shape_cast %243 : vector<1x128x128xf32> to vector<128x128xf32>
    %cst_144 = arith.constant dense<0.000000e+00> : vector<2x128xf32>
    %245 = tpu.matmul %107, %244, %cst_144 {dimension_numbers = #tpu.dot_dimension_numbers<[1], [0], [0], [1], [0, 0, 1, 1], [], []>} : vector<2x128xf32>, vector<128x128xf32>, vector<2x128xf32> -> vector<2x128xf32>
    %246 = arith.mulf %242, %239 : vector<2x128xf32>
    %cst_145 = arith.constant 1.000000e+00 : f32
    %247 = vector.broadcast %cst_145 : f32 to vector<2x128xf32>
    %248 = arith.subf %247, %239 : vector<2x128xf32>
    %249 = arith.mulf %245, %248 : vector<2x128xf32>
    %250 = arith.addf %246, %249 : vector<2x128xf32>
    %c0_146 = arith.constant 0 : index
    %c0_147 = arith.constant 0 : index
    %251 = vector.load %arg17[%c0_146, %c0_147] : memref<2x128xf32, #tpu.memory_space<vmem>>, vector<2x128xf32>
    tpu.vector_store %arg17[%c0_146, %c0_147], %250 {strides = array<i32>} : memref<2x128xf32, #tpu.memory_space<vmem>>, vector<2x128xf32>,
    %c0_148 = arith.constant 0 : index
    %c0_149 = arith.constant 0 : index
    %252 = vector.load %arg18[%c0_148, %c0_149] : memref<2x128xf32, #tpu.memory_space<vmem>>, vector<2x128xf32>
    tpu.vector_store %arg18[%c0_148, %c0_149], %245 {strides = array<i32>} : memref<2x128xf32, #tpu.memory_space<vmem>>, vector<2x128xf32>,
    return
  }
}

</mosaic_0001>

<bundles_post_ra>
// kernel: blend_downsampling2_forward.1
= control target key start
LH: loop header
LB: loop body
LE: loop exit
PB: predicated region body
PF: predicated region fallthrough
CT: control target
= control target key end

     0   :  { %s12487_s0 = inlined_call_operand.vmem [shape: f32[2,128], index: 0, kind: input, shape index: {}]   ;;  %s12488_s1 = inlined_call_operand.vmem [shape: f32[2,768], index: 1, kind: input, shape index: {}]   ;;  %s12489_s2 = inlined_call_operand.vmem [shape: f32[2,768], index: 2, kind: input, shape index: {}]   ;;  %s12490_s3 = inlined_call_operand.vmem [shape: f32[2,128], index: 3, kind: input, shape index: {}]   ;;  %s12491_s4 = inlined_call_operand.vmem [shape: f32[2,1], index: 4, kind: input, shape index: {}]   ;;  %s12492_s5 = inlined_call_operand.hbm [shape: f32[35,768], index: 5, kind: input, shape index: {}]   ;;  %s12493_s6 = inlined_call_operand.vmem [shape: f32[8,128,128], index: 6, kind: input, shape index: {}]   ;;  %s12494_s7 = inlined_call_operand.vmem [shape: f32[2,768,192], index: 7, kind: input, shape index: {}]   ;;  %s12495_s8 = inlined_call_operand.hbm [shape: f32[2,192,128], index: 8, kind: input, shape index: {}]   ;;  %s12496_s9 = inlined_call_operand.vmem [shape: f32[512,512], index: 9, kind: input, shape index: {}]   ;;  %s12497_s10 = inlined_call_operand.vmem [shape: f32[256,512], index: 10, kind: input, shape index: {}]   ;;  %s12498_s11 = inlined_call_operand.vmem [shape: f32[512,64], index: 11, kind: input, shape index: {}]   ;;  %s12499_s12 = inlined_call_operand.vmem [shape: f32[64,512], index: 12, kind: input, shape index: {}]   ;;  %s12500_s13 = inlined_call_operand.vmem [shape: f32[512,256], index: 13, kind: input, shape index: {}]   ;;  %s12501_s14 = inlined_call_operand.vmem [shape: f32[256,512], index: 14, kind: input, shape index: {}]   ;;  %s12502_s15 = inlined_call_operand.hbm [shape: f32[256,256], index: 15, kind: input, shape index: {}]   ;;  %s12503_s16 = inlined_call_operand.hbm [shape: f32[256,128], index: 16, kind: input, shape index: {}]   ;;  %s12504_s17 = inlined_call_operand.vmem [shape: f32[2,128], index: 17, kind: output, shape index: {0}]   ;;  %s12505_s18 = inlined_call_operand.vmem [shape: f32[2,128], index: 18, kind: output, shape index: {1}]  }
   0x1   :  { %12597 = sst [smem:[#allocation92_spill]] %s12487_s0 }
   0x2   :  { %12598 = sst [smem:[#allocation93_spill]] %s12488_s1 }
   0x3   :  { %12599 = sst [smem:[#allocation94_spill]] %s12489_s2 }
   0x4   :  { %24 = vsyncpa [#allocation3], 0 }
   0x5   :  { %25 = vsyncpa [#allocation5], 0 }
   0x6   :  { %26 = vsyncpa [#allocation8], 0  ;;  %s7629_s27 = smov [#allocation4]   ;;  %s7535_s0 = scalar_lea.hbm %s12495_s8, 6144 }
   0x7   :  { %s58_s28 = sshll.u32 %s7629_s27, 4  ;;  %p7536_p0 = scmp.ne.s32.totalorder %s12495_s8, %s7535_s0  ;;  %s59_s28 = int_to_ptr.vmem [resolvable:$true] %s58_s28 }
   0x8   :  { %p7539_p1 = scmp.lt.u32.totalorder %s7535_s0, %s12495_s8 }
   0xa   :  { %p7541_p2 = pnand %p7539_p1, %p7536_p0 }
   0xc   :  { %7544 = shalt.err (!%p7541_p2)
}
   0xd   :  { %s7545_s22 = scalar_lea.vmem %s59_s28, 6144  ;;  %p7550_p4 = scmp.lt.s32.totalorder %s59_s28, %s59_s28 }
   0xe   :  { %p7546_p3 = scmp.ne.s32.totalorder %s59_s28, %s7545_s22  ;;  %p7551_p5 = scmp.lt.s32.totalorder %s7545_s22, %s7545_s22 }
  0x10   :  { %p7552_p6 = por %p7551_p5, %p7550_p4 }
  0x12   :  { %p7553_p7 = pnand %p7552_p6, %p7546_p3 }
  0x14   :  { %7556 = shalt.err (!%p7553_p7)
}
  0x15   :  { %s12508_s2 = smov 128   ;;  %s7631_s23 = smov 8  }
  0x16   :  { %64 = dma.hbm_to_vmem [thread:$0]  %s12495_s8, 6144, %s59_s28, [#allocation5], %s12508_s2, %s12508_s2, %s7631_s23  }
  0x17   :  { %s7632_s26 = smov [#allocation2]   ;;  %s7557_s0 = scalar_lea.hbm %s12492_s5, 3840 }
  0x18   :  { %s42_s27 = sshll.u32 %s7632_s26, 4  ;;  %p7558_p8 = scmp.ne.s32.totalorder %s12492_s5, %s7557_s0  ;;  %s43_s27 = int_to_ptr.vmem [resolvable:$true] %s42_s27 }
  0x19   :  { %p7561_p9 = scmp.lt.u32.totalorder %s7557_s0, %s12492_s5 }
  0x1b   :  { %p7563_p10 = pnand %p7561_p9, %p7558_p8 }
  0x1d   :  { %7566 = shalt.err (!%p7563_p10)
}
  0x1e   :  { %s7567_s22 = scalar_lea.vmem %s43_s27, 3840  ;;  %p7572_p12 = scmp.lt.s32.totalorder %s43_s27, %s43_s27 }
  0x1f   :  { %p7568_p11 = scmp.ne.s32.totalorder %s43_s27, %s7567_s22  ;;  %p7573_p13 = scmp.lt.s32.totalorder %s7567_s22, %s7567_s22 }
  0x21   :  { %p7574_p0 = por %p7573_p13, %p7572_p12 }
  0x23   :  { %p7575_p1 = pnand %p7574_p0, %p7568_p11 }
  0x25   :  { %7578 = shalt.err (!%p7575_p1)
}
  0x26   :  { %s7633_s8 = smov 768   ;;  %s7634_s28 = smov 48  }
  0x27   :  { %48 = dma.hbm_to_vmem [thread:$0]  %s12492_s5, 3840, %s43_s27, [#allocation3], %s7633_s8, %s7633_s8, %s7634_s28  }
  0x28   :  { %s7635_s26 = smov [#allocation6]   ;;  %s7579_s19 = scalar_lea.hbm %s12502_s15, 8192 }
  0x29   :  { %s82_s29 = sshll.u32 %s7635_s26, 4  ;;  %p7580_p2 = scmp.ne.s32.totalorder %s12502_s15, %s7579_s19  ;;  %s83_s29 = int_to_ptr.vmem [resolvable:$true] %s82_s29 }
  0x2a   :  { %p7583_p3 = scmp.lt.u32.totalorder %s7579_s19, %s12502_s15 }
  0x2c   :  { %p7585_p4 = pnand %p7583_p3, %p7580_p2 }
  0x2e   :  { %7588 = shalt.err (!%p7585_p4)
}
  0x2f   :  { %s7589_s2 = scalar_lea.vmem %s83_s29, 8192  ;;  %p7594_p6 = scmp.lt.s32.totalorder %s83_s29, %s83_s29 }
  0x30   :  { %p7590_p5 = scmp.ne.s32.totalorder %s83_s29, %s7589_s2  ;;  %p7595_p7 = scmp.lt.s32.totalorder %s7589_s2, %s7589_s2 }
  0x32   :  { %p7596_p8 = por %p7595_p7, %p7594_p6 }
  0x34   :  { %p7597_p9 = pnand %p7596_p8, %p7590_p5 }
  0x36   :  { %7600 = shalt.err (!%p7597_p9)
}
  0x37   :  { %s7636_s5 = smov 256   ;;  %s7637_s27 = smov 16  }
  0x38   :  { %88 = dma.hbm_to_vmem [thread:$0]  %s12502_s15, 8192, %s83_s29, [#allocation5], %s7636_s5, %s7636_s5, %s7637_s27  }
  0x39   :  { %s7638_s24 = smov [#allocation7]   ;;  %s7601_s0 = scalar_lea.hbm %s12503_s16, 4096 }
  0x3a   :  { %s94_s25 = sshll.u32 %s7638_s24, 4  ;;  %p7602_p10 = scmp.ne.s32.totalorder %s12503_s16, %s7601_s0  ;;  %s95_s25 = int_to_ptr.vmem [resolvable:$true] %s94_s25 }
  0x3b   :  { %p7605_p11 = scmp.lt.u32.totalorder %s7601_s0, %s12503_s16 }
  0x3d   :  { %p7607_p12 = pnand %p7605_p11, %p7602_p10 }
  0x3f   :  { %7610 = shalt.err (!%p7607_p12)
}
  0x40   :  { %s7611_s21 = scalar_lea.vmem %s95_s25, 4096  ;;  %p7616_p0 = scmp.lt.s32.totalorder %s95_s25, %s95_s25 }
  0x41   :  { %p7612_p13 = scmp.ne.s32.totalorder %s95_s25, %s7611_s21  ;;  %p7617_p1 = scmp.lt.s32.totalorder %s7611_s21, %s7611_s21 }
  0x43   :  { %p7618_p2 = por %p7617_p1, %p7616_p0 }
  0x45   :  { %p7619_p3 = pnand %p7618_p2, %p7612_p13 }
  0x47   :  { %7622 = shalt.err (!%p7619_p3)
}
  0x48   :  { %s12600_s15 = smov 128  }
  0x49   :  { %100 = dma.hbm_to_vmem [thread:$0]  %s12503_s16, 4096, %s95_s25, [#allocation8], %s12600_s15, %s12600_s15, %s7631_s23  }
  0x4a   :  { %7623 = dma.done.wait [#allocation3], 3840  }
  0x4b   :  { %7624 = vsyncadd [#allocation3], 4294963456 }
  0x4c   :  { %7625 = dma.done.wait [#allocation5], 14336  }
  0x4d   :  { %7626 = vsyncadd [#allocation5], 4294952960 }
  0x4e   :  { %7627 = dma.done.wait [#allocation8], 4096  }
  0x4f   :  { %7628 = vsyncadd [#allocation8], 4294963200  ;;  %v12509_v0 = vmov 0.0|0.0   ;;  %vm7640_vm0 = vmmov 0   ;;  %v12511_v1 = vmov 0.0   ;;  %v114_v2 = vld [vmem:[%s12493_s6] sm:$0xff]  ;;  %v301_v19 = vlaneseq }
  0x50   :  { %5707 = vmatprep.subr.bf16.mxu0 %v12509_v0  ;;  %5424 = vmatprep.mubr.msk.f32.mxu0 %vm7640_vm0, %v12511_v1  ;;  %v115_v3 = vld [vmem:[%s12493_s6 + $0x8] sm:$0xff]  ;;  %v116_v4 = vld [vmem:[%s12493_s6 + $0x10] sm:$0xff]  ;;  %v117_v6 = vld [vmem:[%s12493_s6 + $0x18] sm:$0xff]  ;;  %v7642_v24 = vmov 1983009808   ;;  %s12605_s26 = sld [smem:[#allocation92_spill]] }
  0x51   :  { %5731 = vmatprep.subr.bf16.mxu1 %v12509_v0  ;;  %5459 = vmatprep.mubr.msk.f32.mxu1 %vm7640_vm0, %v12511_v1  ;;  %v5708_v5 = vpack.c.bf16 %v115_v3, %v114_v2  ;;  %v5711_v7 = vpack.c.bf16 %v117_v6, %v116_v4  ;;  %v118_v8 = vld [vmem:[%s12493_s6 + $0x20] sm:$0xff]  ;;  %v119_v9 = vld [vmem:[%s12493_s6 + $0x28] sm:$0xff]  ;;  %v120_v11 = vld [vmem:[%s12493_s6 + $0x30] sm:$0xff]  ;;  %v7846_v23 = vshrl.u32 %v301_v19, 7  ;;  %v328_v25 = vunpack.c.l.s4 %v7642_v24  ;;  %s12606_s8 = sld [smem:[#allocation94_spill]]  ;;  %s12607_s19 = sld [smem:[#allocation93_spill]] }
  0x52   :  { %v5714_v10 = vpack.c.bf16 %v119_v9, %v118_v8  ;;  %v121_v12 = vld [vmem:[%s12493_s6 + $0x38] sm:$0xff]  ;;  %v122_v14 = vld [vmem:[%s12493_s6 + $0x40] sm:$0xff]  ;;  %v123_v15 = vld [vmem:[%s12493_s6 + $0x48] sm:$0xff]  ;;  %vm922_vm1 = vcmask 523264   ;;  %vm3295_vm2 = vcmask 517120   ;;  %vm3758_vm3 = vcmask 1041408  }
  0x53   :  { %5709 = vmatpush3.bf16.msra.mxu0 %v5708_v5  ;;  %v5717_v13 = vpack.c.bf16 %v121_v12, %v120_v11  ;;  %v5720_v16 = vpack.c.bf16 %v123_v15, %v122_v14  ;;  %v124_v17 = vld [vmem:[%s12493_s6 + $0x50] sm:$0xff]  ;;  %v125_v18 = vld [vmem:[%s12493_s6 + $0x58] sm:$0xff]  ;;  %v126_v21 = vld [vmem:[%s12493_s6 + $0x60] sm:$0xff]  ;;  %v7868_v33 = vsub.s32 0, %v7846_v23  ;;  %v7871_v34 = vsub.s32 1, %v7846_v23 }
  0x54   :  { %5710 = vmatprep.subr.bf16.mxu0 %v12509_v0  ;;  %v5723_v20 = vpack.c.bf16 %v125_v18, %v124_v17  ;;  %v127_v22 = vld [vmem:[%s12493_s6 + $0x68] sm:$0xff]  ;;  %v128_v27 = vld [vmem:[%s12493_s6 + $0x70] sm:$0xff]  ;;  %v129_v28 = vld [vmem:[%s12493_s6 + $0x78] sm:$0xff]  ;;  %v7874_v35 = vsub.s32 2, %v7846_v23  ;;  %v329_v36 = vunpack.c.0.s8 %v328_v25  ;;  %v7883_v41 = vsub.s32 3, %v7846_v23 }
  0x55   :  { %v5726_v26 = vpack.c.bf16 %v127_v22, %v126_v21  ;;  %v415_v29 = vld [vmem:[%s12494_s7 + $0x8] sm:$0xff]  ;;  %v417_v30 = vld [vmem:[%s12494_s7 + $0x18] sm:$0xff]  ;;  %v414_v31 = vld [vmem:[%s12494_s7] sm:$0xff]  ;;  %12601 = vst [vmem:[#allocation12_spill] sm:$0xff] %v7868_v33  ;;  %v5729_v37 = vpack.c.bf16 %v129_v28, %v128_v27 }
  0x56   :  { %v416_v32 = vld [vmem:[%s12494_s7 + $0x10] sm:$0xff]  ;;  %12602 = vst [vmem:[#allocation13_spill] sm:$0xff] %v7871_v34  ;;  %12603 = vst [vmem:[#allocation14_spill] sm:$0xff] %v7874_v35  ;;  %v419_v38 = vld [vmem:[%s12494_s7 + $0x28] sm:$0xff]  ;;  %v5755_v42 = vpack.c.bf16 %v417_v30, %v415_v29  ;;  %v7889_v49 = vsub.s32 %v329_v36, %v7846_v23 }
  0x57   :  { %5712 = vmatpush3.bf16.msra.mxu0 %v5711_v7  ;;  %v421_v39 = vld [vmem:[%s12494_s7 + $0x38] sm:$0xff]  ;;  %12604 = vst [vmem:[#allocation15_spill] sm:$0xff] %v7883_v41  ;;  %v298_v43 = vld [vmem:[#allocation2 + $0x2] ss:$8 sm:$0x30]  ;;  %v5757_v47 = vpack.c.bf16 %v416_v32, %v414_v31  ;;  %v420_v57 = vld [vmem:[%s12494_s7 + $0x30] sm:$0xff] }
  0x58   :  { %5713 = vmatprep.subr.bf16.mxu0 %v12509_v0  ;;  %v297_v40 = vld [vmem:[#allocation2 + $0x2] ss:$8 sm:$0xf]  ;;  %v355_v44 = vld [vmem:[#allocation2 + $0x3] ss:$8 sm:$0xf]  ;;  %v5759_v48 = vpack.c.bf16 %v421_v39, %v419_v38 }
  0x59   :  { %v7886_v45 = vor.u32 %v298_v43, %v297_v40  ;;  %v356_v46 = vld [vmem:[#allocation2 + $0x3] ss:$8 sm:$0x30]  ;;  %v7896_v51 = vld [vmem:[%s12605_s26] sm:$0x3]  ;;  %v425_v63 = vld [vmem:[%s12494_s7 + $0x58] sm:$0xff] }
  0x5a   :  { %v7891_v50 = vor.u32 %v356_v46, %v355_v44  ;;  %v418_v56 = vld [vmem:[%s12494_s7 + $0x20] sm:$0xff]  ;;  %v423_v62 = vld [vmem:[%s12494_s7 + $0x48] sm:$0xff]  ;;  %v424_v11 = vld [vmem:[%s12494_s7 + $0x50] sm:$0xff] }
  0x5b   :  { %5715 = vmatpush3.bf16.msra.mxu0 %v5714_v10  ;;  %v304_v52 = vrot.slane %v7886_v45, %v7868_v33  ;;  %v308_v53 = vrot.slane %v7886_v45, %v7871_v34  ;;  %v312_v54 = vrot.slane %v7886_v45, %v7874_v35  ;;  %v316_v55 = vrot.slane %v7886_v45, %v7883_v41  ;;  %v422_v10 = vld [vmem:[%s12494_s7 + $0x40] sm:$0xff]  ;;  %v427_v15 = vld [vmem:[%s12494_s7 + $0x68] sm:$0xff]  ;;  %v428_v24 = vld [vmem:[%s12494_s7 + $0x70] sm:$0xff] }
  0x5c   :  { %5716 = vmatprep.subr.bf16.mxu0 %v12509_v0  ;;  %v362_v58 = vrot.slane %v7891_v50, %v7868_v33  ;;  %v366_v59 = vrot.slane %v7891_v50, %v7871_v34  ;;  %v370_v60 = vrot.slane %v7891_v50, %v7874_v35  ;;  %v374_v61 = vrot.slane %v7891_v50, %v7883_v41  ;;  %v294_v12 = vld [vmem:[%s12606_s8] sm:$0xff]  ;;  %v431_v25 = vld [vmem:[%s12494_s7 + $0x88] sm:$0xff]  ;;  %v432_v32 = vld [vmem:[%s12494_s7 + $0x90] sm:$0xff] }
  0x5d   :  { %v325_v2 = vcombine.low %v304_v52, %v308_v53  ;;  %v326_v3 = vcombine.low %v312_v54, %v316_v55  ;;  %v5761_v6 = vpack.c.bf16 %v420_v57, %v418_v56  ;;  %v5763_v9 = vpack.c.bf16 %v425_v63, %v423_v62  ;;  %v426_v22 = vld [vmem:[%s12494_s7 + $0x60] sm:$0xff]  ;;  %v435_v36 = vld [vmem:[%s12494_s7 + $0xa8] sm:$0xff]  ;;  %v436_v44 = vld [vmem:[%s12494_s7 + $0xb0] sm:$0xff] }
  0x5e   :  { %v383_v4 = vcombine.low %v362_v58, %v366_v59  ;;  %v384_v5 = vcombine.low %v370_v60, %v374_v61  ;;  %v5765_v19 = vpack.c.bf16 %v424_v11, %v422_v10  ;;  %v5769_v28 = vpack.c.bf16 %v428_v24, %v426_v22  ;;  %v430_v31 = vld [vmem:[%s12494_s7 + $0x80] sm:$0xff]  ;;  %v439_v46 = vld [vmem:[%s12494_s7 + $0xc8] sm:$0xff]  ;;  %v440_v54 = vld [vmem:[%s12494_s7 + $0xd0] sm:$0xff] }
  0x5f   :  { %5718 = vmatpush3.bf16.msra.mxu0 %v5717_v13  ;;  %v333_v7 = vrot.slane %v325_v2, %v7889_v49  ;;  %v340_v8 = vrot.slane %v326_v3, %v7889_v49  ;;  %v5773_v39 = vpack.c.bf16 %v432_v32, %v430_v31  ;;  %v434_v43 = vld [vmem:[%s12494_s7 + $0xa0] sm:$0xff]  ;;  %v443_v55 = vld [vmem:[%s12494_s7 + $0xe8] sm:$0xff]  ;;  %v445_v56 = vld [vmem:[%s12494_s7 + $0xf8] sm:$0xff] }
  0x60   :  { %5719 = vmatprep.subr.bf16.mxu0 %v12509_v0  ;;  %v391_v13 = vrot.slane %v383_v4, %v7889_v49  ;;  %v398_v14 = vrot.slane %v384_v5, %v7889_v49  ;;  %v438_v53 = vld [vmem:[%s12494_s7 + $0xc0] sm:$0xff]  ;;  %v5783_v58 = vpack.c.bf16 %v445_v56, %v443_v55  ;;  %v444_v60 = vld [vmem:[%s12494_s7 + $0xf0] sm:$0xff]  ;;  %v447_v61 = vld [vmem:[%s12494_s7 + $0x108] sm:$0xff] }
  0x61   :  { %v341_v17 = vcombine.low %v333_v7, %v340_v8  ;;  %v5781_v57 = vpack.c.bf16 %v440_v54, %v438_v53  ;;  %v442_v59 = vld [vmem:[%s12494_s7 + $0xe0] sm:$0xff]  ;;  %v449_v62 = vld [vmem:[%s12494_s7 + $0x118] sm:$0xff]  ;;  %v448_v4 = vld [vmem:[%s12494_s7 + $0x110] sm:$0xff] }
  0x62   :  { %v399_v18 = vcombine.low %v391_v13, %v398_v14  ;;  %v5785_v63 = vpack.c.bf16 %v444_v60, %v442_v59  ;;  %v5787_v2 = vpack.c.bf16 %v449_v62, %v447_v61  ;;  %v446_v3 = vld [vmem:[%s12494_s7 + $0x100] sm:$0xff]  ;;  %v451_v5 = vld [vmem:[%s12494_s7 + $0x128] sm:$0xff]  ;;  %v452_v10 = vld [vmem:[%s12494_s7 + $0x130] sm:$0xff] }
  0x63   :  { %5721 = vmatpush3.bf16.msra.mxu0 %v5720_v16  ;;  %v429_v16 = vld [vmem:[%s12494_s7 + $0x78] sm:$0xff]  ;;  %v5789_v7 = vpack.c.bf16 %v448_v4, %v446_v3  ;;  %v455_v11 = vld [vmem:[%s12494_s7 + $0x148] sm:$0xff]  ;;  %v460_v22 = vld [vmem:[%s12494_s7 + $0x170] sm:$0xff] }
  0x64   :  { %5722 = vmatprep.subr.bf16.mxu0 %v12509_v0  ;;  %v5767_v21 = vpack.c.bf16 %v429_v16, %v427_v15  ;;  %v454_v15 = vld [vmem:[%s12494_s7 + $0x140] sm:$0xff]  ;;  %v456_v16 = vld [vmem:[%s12494_s7 + $0x150] sm:$0xff]  ;;  %v463_v24 = vld [vmem:[%s12494_s7 + $0x188] sm:$0xff] }
  0x65   :  { %v467_v31 = vld [vmem:[%s12494_s7 + $0x1a8] sm:$0xff]  ;;  %v469_v32 = vld [vmem:[%s12494_s7 + $0x1b8] sm:$0xff]  ;;  %v470_v56 = vld [vmem:[%s12494_s7 + $0x1c0] sm:$0xff] }
  0x66   :  { %v295_v60 = vld [vmem:[%s12606_s8 + $0x8] sm:$0xf]  ;;  %v474_v4 = vld [vmem:[%s12494_s7 + $0x1e0] sm:$0xff] }
  0x67   :  { %5724 = vmatpush3.bf16.msra.mxu0 %v5723_v20  ;;  %v352_v20 = vmul.f32 %v341_v17, %v294_v12  ;;  %v457_v12 = vld [vmem:[%s12494_s7 + $0x158] sm:$0xff]  ;;  %v459_v17 = vld [vmem:[%s12494_s7 + $0x168] sm:$0xff] }
  0x68   :  { %5725 = vmatprep.subr.bf16.mxu0 %v12509_v0  ;;  %v5795_v14 = vpack.c.bf16 %v457_v12, %v455_v11  ;;  %v478_v11 = vld [vmem:[%s12494_s7 + $0x200] sm:$0xff]  ;;  %v480_v12 = vld [vmem:[%s12494_s7 + $0x210] sm:$0xff] }
  0x69   :  { %v410_v27 = vadd.f32 %v399_v18, %v352_v20  ;;  %v461_v18 = vld [vmem:[%s12494_s7 + $0x178] sm:$0xff] }
  0x6a   :  { %v5799_v20 = vpack.c.bf16 %v461_v18, %v459_v17  ;;  %v482_v18 = vld [vmem:[%s12494_s7 + $0x220] sm:$0xff] }
  0x6b   :  { %5727 = vmatpush3.bf16.msra.mxu0 %v5726_v26  ;;  %v433_v26 = vld [vmem:[%s12494_s7 + $0x98] sm:$0xff]  ;;  %v7958_v29 = vmax.f32 %v410_v27, 0.0 }
  0x6c   :  { %5728 = vmatprep.subr.bf16.mxu0 %v12509_v0  ;;  %v5771_v30 = vpack.c.bf16 %v433_v26, %v431_v25  ;;  %v465_v25 = vld [vmem:[%s12494_s7 + $0x198] sm:$0xff] }
  0x6d   :  { %v7974_v38 = vrot.slane %v7958_v29, %v7889_v49  ;;  %v5803_v27 = vpack.c.bf16 %v465_v25, %v463_v24  ;;  %v621_v62 = vcombine.high %v7958_v29, %v7958_v29  ;;  %v481_v29 = vld [vmem:[%s12494_s7 + $0x218] sm:$0xff]  ;;  %v4826_v24 = vld [vmem:[%s12493_s6 + $0x88] sm:$0xff]  ;;  %v4827_v25 = vld [vmem:[%s12493_s6 + $0x90] sm:$0xff] }
  0x6f   :  { %5730 = vmatpush3.bf16.msra.mxu0 %v5729_v37  ;;  %v437_v37 = vld [vmem:[%s12494_s7 + $0xb8] sm:$0xff]  ;;  %v636_v40 = vcombine.high %v7974_v38, %v7974_v38 }
  0x70   :  { %5756 = vmatprep.subr.bf16.mxu0 %v5755_v42  ;;  %v5775_v42 = vpack.c.bf16 %v437_v37, %v435_v36  ;;  %v8075_v37 = vsub.s32 4, %v7846_v23 }
  0x72   :  { %5425 = vmatmul.mubr.f32.vlgmr.msra.gmra.mrb[0].mxu0 %v7896_v51  ;;  %v378_v53 = vrot.slane %v7891_v50, %v8075_v37 }
  0x73   :  { %5758 = vmatpush1.bf16.msra.mxu0 %v5757_v47  ;;  %v441_v47 = vld [vmem:[%s12494_s7 + $0xd8] sm:$0xff]  ;;  %716 = vmatprep.mubr.f32.mxu0 %v636_v40  ;;  %v5807_v40 = vpack.c.bf16 %v469_v32, %v467_v31  ;;  %v488_v31 = vld [vmem:[%s12494_s7 + $0x250] sm:$0xff]  ;;  %v491_v32 = vld [vmem:[%s12494_s7 + $0x268] sm:$0xff] }
  0x74   :  { %5760 = vmatprep.subr.bf16.mxu0 %v5759_v48  ;;  %v5777_v48 = vpack.c.bf16 %v436_v44, %v434_v43  ;;  %v5779_v52 = vpack.c.bf16 %v441_v47, %v439_v46  ;;  %v468_v43 = vld [vmem:[%s12494_s7 + $0x1b0] sm:$0xff]  ;;  %v471_v44 = vld [vmem:[%s12494_s7 + $0x1c8] sm:$0xff]  ;;  %v473_v46 = vld [vmem:[%s12494_s7 + $0x1d8] sm:$0xff] }
  0x75   :  { %v5811_v55 = vpack.c.bf16 %v473_v46, %v471_v44 }
  0x77   :  { %5762 = vmatpush1.bf16.msra.mxu0 %v5761_v6  ;;  %v453_v6 = vld [vmem:[%s12494_s7 + $0x138] sm:$0xff] }
  0x78   :  { %5764 = vmatprep.subr.bf16.mxu0 %v5763_v9  ;;  %v5791_v8 = vpack.c.bf16 %v453_v6, %v451_v5  ;;  %v450_v9 = vld [vmem:[%s12494_s7 + $0x120] sm:$0xff]  ;;  %v476_v5 = vld [vmem:[%s12494_s7 + $0x1f0] sm:$0xff]  ;;  %v479_v6 = vld [vmem:[%s12494_s7 + $0x208] sm:$0xff] }
  0x79   :  { %v5793_v13 = vpack.c.bf16 %v452_v10, %v450_v9  ;;  %v8134_v9 = vrot.slane %v621_v62, %v7889_v49  ;;  %v5819_v10 = vpack.c.bf16 %v481_v29, %v479_v6  ;;  %v4834_v62 = vld [vmem:[%s12493_s6 + $0xc8] sm:$0xff]  ;;  %v505_v6 = vld [vmem:[%s12494_s7 + $0x2d8] sm:$0xff] }
  0x7b   :  { %5766 = vmatpush1.bf16.msra.mxu0 %v5765_v19  ;;  %v5797_v19 = vpack.c.bf16 %v456_v16, %v454_v15  ;;  %v5821_v15 = vpack.c.bf16 %v480_v12, %v478_v11  ;;  %v637_v16 = vcombine.high %v8134_v9, %v8134_v9 }
  0x7c   :  { %5768 = vmatprep.subr.bf16.mxu0 %v5767_v21  ;;  %v458_v21 = vld [vmem:[%s12494_s7 + $0x160] sm:$0xff] }
  0x7d   :  { %v5801_v26 = vpack.c.bf16 %v460_v22, %v458_v21  ;;  %v489_v21 = vld [vmem:[%s12494_s7 + $0x258] sm:$0xff]  ;;  %v4825_v22 = vld [vmem:[%s12493_s6 + $0x80] sm:$0xff] }
  0x7f   :  { %5770 = vmatpush1.bf16.msra.mxu0 %v5769_v28  ;;  %v462_v28 = vld [vmem:[%s12494_s7 + $0x180] sm:$0xff] }
  0x80   :  { %5772 = vmatprep.subr.bf16.mxu0 %v5771_v30  ;;  %v464_v30 = vld [vmem:[%s12494_s7 + $0x190] sm:$0xff] }
  0x81   :  { %v5805_v36 = vpack.c.bf16 %v464_v30, %v462_v28  ;;  %v486_v30 = vld [vmem:[%s12494_s7 + $0x240] sm:$0xff] }
  0x82   :  { %v5829_v44 = vpack.c.bf16 %v488_v31, %v486_v30  ;;  %v4839_v30 = vld [vmem:[%s12493_s6 + $0xf0] sm:$0xff]  ;;  %v4840_v31 = vld [vmem:[%s12493_s6 + $0xf8] sm:$0xff] }
  0x83   :  { %5774 = vmatpush1.bf16.msra.mxu0 %v5773_v39  ;;  %v8078_v39 = vsub.s32 5, %v7846_v23  ;;  %v320_v23 = vrot.slane %v7886_v45, %v8075_v37 }
  0x84   :  { %5776 = vmatprep.subr.bf16.mxu0 %v5775_v42  ;;  %v466_v42 = vld [vmem:[%s12494_s7 + $0x1a0] sm:$0xff] }
  0x85   :  { %v324_v47 = vrot.slane %v7886_v45, %v8078_v39  ;;  %v382_v54 = vrot.slane %v7891_v50, %v8078_v39  ;;  %v475_v45 = vld [vmem:[%s12494_s7 + $0x1e8] sm:$0xff] }
  0x87   :  { %5778 = vmatpush1.bf16.msra.mxu0 %v5777_v48  ;;  %v5809_v48 = vpack.c.bf16 %v468_v43, %v466_v42  ;;  %v400_v59 = vcombine.low %v378_v53, %v382_v54  ;;  %v4829_v42 = vld [vmem:[%s12493_s6 + $0xa0] sm:$0xff]  ;;  %v4830_v43 = vld [vmem:[%s12493_s6 + $0xa8] sm:$0xff]  ;;  %v4831_v54 = vld [vmem:[%s12493_s6 + $0xb0] sm:$0xff] }
  0x88   :  { %5780 = vmatprep.subr.bf16.mxu0 %v5779_v52  ;;  %v342_v52 = vcombine.low %v320_v23, %v324_v47  ;;  %v490_v23 = vld [vmem:[%s12494_s7 + $0x260] sm:$0xff]  ;;  %v492_v47 = vld [vmem:[%s12494_s7 + $0x270] sm:$0xff]  ;;  %v5738_v53 = vpack.c.bf16 %v4830_v43, %v4829_v42 }
  0x89   :  { %v512_v42 = vld [vmem:[%s12494_s7 + $0x310] sm:$0xff] }
  0x8a   :  { %v349_v50 = vrot.slane %v342_v52, %v7889_v49  ;;  %v497_v52 = vld [vmem:[%s12494_s7 + $0x298] sm:$0xff] }
  0x8b   :  { %5782 = vmatpush1.bf16.msra.mxu0 %v5781_v57  ;;  %v472_v57 = vld [vmem:[%s12494_s7 + $0x1d0] sm:$0xff] }
  0x8c   :  { %5784 = vmatprep.subr.bf16.mxu0 %v5783_v58  ;;  %v477_v58 = vld [vmem:[%s12494_s7 + $0x1f8] sm:$0xff]  ;;  %v5813_v61 = vpack.c.bf16 %v472_v57, %v470_v56  ;;  %v5833_v56 = vpack.c.bf16 %v492_v47, %v490_v23  ;;  %v5753_v23 = vpack.c.bf16 %v4840_v31, %v4839_v30  ;;  %v897_v47 = vld [vmem:[#allocation4] sm:$0xff]  ;;  %v535_v30 = vld [vmem:[%s12494_s7 + $0x3c8] sm:$0xff] }
  0x8d   :  { %v5815_v3 = vpack.c.bf16 %v477_v58, %v475_v45  ;;  %v494_v45 = vld [vmem:[%s12494_s7 + $0x280] sm:$0xff]  ;;  %v496_v58 = vld [vmem:[%s12494_s7 + $0x290] sm:$0xff]  ;;  %v537_v31 = vld [vmem:[%s12494_s7 + $0x3d8] sm:$0xff] }
  0x8f   :  { %5786 = vmatpush1.bf16.msra.mxu0 %v5785_v63  ;;  %v353_v63 = vmul.f32 %v349_v50, %v295_v60  ;;  %v499_v50 = vld [vmem:[%s12494_s7 + $0x2a8] sm:$0xff] }
  0x90   :  { %5788 = vmatprep.subr.bf16.mxu0 %v5787_v2  ;;  %v407_v2 = vrot.slane %v400_v59, %v7889_v49  ;;  %v501_v59 = vld [vmem:[%s12494_s7 + $0x2b8] sm:$0xff] }
  0x93   :  { %5790 = vmatpush1.bf16.msra.mxu0 %v5789_v7  ;;  %v8131_v7 = vadd.f32 %v407_v2, %v353_v63  ;;  %v5837_v63 = vpack.c.bf16 %v496_v58, %v494_v45  ;;  %v5839_v2 = vpack.c.bf16 %v501_v59, %v499_v50  ;;  %v521_v45 = vld [vmem:[%s12494_s7 + $0x358] sm:$0xff]  ;;  %v899_v50 = vld [vmem:[#allocation4 + $0x10] sm:$0xff]  ;;  %v900_v59 = vld [vmem:[#allocation4 + $0x18] sm:$0xff] }
  0x94   :  { %5792 = vmatprep.subr.bf16.mxu0 %v5791_v8  ;;  %v5817_v8 = vpack.c.bf16 %v476_v5, %v474_v4  ;;  %v500_v4 = vld [vmem:[%s12494_s7 + $0x2b0] sm:$0xff]  ;;  %v503_v5 = vld [vmem:[%s12494_s7 + $0x2c8] sm:$0xff] }
  0x95   :  { %v5843_v12 = vpack.c.bf16 %v505_v6, %v503_v5  ;;  %v901_v5 = vld [vmem:[#allocation4 + $0x20] sm:$0xff]  ;;  %v902_v6 = vld [vmem:[#allocation4 + $0x28] sm:$0xff] }
  0x97   :  { %5794 = vmatpush1.bf16.msra.mxu0 %v5793_v13  ;;  %v483_v13 = vld [vmem:[%s12494_s7 + $0x228] sm:$0xff] }
  0x98   :  { %5796 = vmatprep.subr.bf16.mxu0 %v5795_v14  ;;  %v485_v14 = vld [vmem:[%s12494_s7 + $0x238] sm:$0xff] }
  0x99   :  { %v5823_v17 = vpack.c.bf16 %v485_v14, %v483_v13  ;;  %v502_v13 = vld [vmem:[%s12494_s7 + $0x2c0] sm:$0xff]  ;;  %v504_v14 = vld [vmem:[%s12494_s7 + $0x2d0] sm:$0xff] }
  0x9b   :  { %5798 = vmatpush1.bf16.msra.mxu0 %v5797_v19  ;;  %v484_v19 = vld [vmem:[%s12494_s7 + $0x230] sm:$0xff] }
  0x9c   :  { %5800 = vmatprep.subr.bf16.mxu0 %v5799_v20  ;;  %v487_v20 = vld [vmem:[%s12494_s7 + $0x248] sm:$0xff] }
  0x9d   :  { %v5827_v28 = vpack.c.bf16 %v489_v21, %v487_v20  ;;  %v4838_v20 = vld [vmem:[%s12493_s6 + $0xe8] sm:$0xff]  ;;  %v5845_v21 = vpack.c.bf16 %v504_v14, %v502_v13  ;;  %v529_v13 = vld [vmem:[%s12494_s7 + $0x398] sm:$0xff]  ;;  %v5954_v14 = vpack.c.bf16 %v902_v6, %v901_v5 }
  0x9e   :  { %v549_v5 = vld [vmem:[%s12494_s7 + $0x438] sm:$0xff] }
  0x9f   :  { %5802 = vmatpush1.bf16.msra.mxu0 %v5801_v26  ;;  %v5825_v26 = vpack.c.bf16 %v484_v19, %v482_v18  ;;  %v4837_v19 = vld [vmem:[%s12493_s6 + $0xe0] sm:$0xff] }
  0xa0   :  { %5804 = vmatprep.subr.bf16.mxu0 %v5803_v27  ;;  %v5732_v27 = vpack.c.bf16 %v4826_v24, %v4825_v22 }
  0xa2   :  { %5733 = vmatpush3.bf16.msra.mxu1 %v5732_v27  ;;  %v511_v27 = vld [vmem:[%s12494_s7 + $0x308] sm:$0xff] }
  0xa3   :  { %5806 = vmatpush1.bf16.msra.mxu0 %v5805_v36  ;;  %v493_v36 = vld [vmem:[%s12494_s7 + $0x278] sm:$0xff]  ;;  %5734 = vmatprep.subr.bf16.mxu1 %v12509_v0 }
  0xa4   :  { %5808 = vmatprep.subr.bf16.mxu0 %v5807_v40  ;;  %v5831_v46 = vpack.c.bf16 %v493_v36, %v491_v32 }
  0xa7   :  { %5810 = vmatpush1.bf16.msra.mxu0 %v5809_v48  ;;  %v495_v48 = vld [vmem:[%s12494_s7 + $0x288] sm:$0xff] }
  0xa8   :  { %5812 = vmatprep.subr.bf16.mxu0 %v5811_v55  ;;  %v4832_v55 = vld [vmem:[%s12493_s6 + $0xb8] sm:$0xff]  ;;  %v5835_v57 = vpack.c.bf16 %v497_v52, %v495_v48 }
  0xa9   :  { %v5741_v60 = vpack.c.bf16 %v4832_v55, %v4831_v54  ;;  %v898_v48 = vld [vmem:[#allocation4 + $0x8] sm:$0xff]  ;;  %v514_v54 = vld [vmem:[%s12494_s7 + $0x320] sm:$0xff]  ;;  %v516_v55 = vld [vmem:[%s12494_s7 + $0x330] sm:$0xff] }
  0xaa   :  { %v5948_v58 = vpack.c.bf16 %v898_v48, %v897_v47  ;;  %v541_v47 = vld [vmem:[%s12494_s7 + $0x3f8] sm:$0xff] }
  0xab   :  { %5814 = vmatpush1.bf16.msra.mxu0 %v5813_v61  ;;  %v4833_v61 = vld [vmem:[%s12493_s6 + $0xc0] sm:$0xff] }
  0xac   :  { %5816 = vmatprep.subr.bf16.mxu0 %v5815_v3  ;;  %v498_v3 = vld [vmem:[%s12494_s7 + $0x2a0] sm:$0xff]  ;;  %v5744_v29 = vpack.c.bf16 %v4834_v62, %v4833_v61 }
  0xad   :  { %v5841_v11 = vpack.c.bf16 %v500_v4, %v498_v3  ;;  %v518_v62 = vld [vmem:[%s12494_s7 + $0x340] sm:$0xff]  ;;  %v525_v3 = vld [vmem:[%s12494_s7 + $0x378] sm:$0xff]  ;;  %v5951_v4 = vpack.c.bf16 %v900_v59, %v899_v50 }
  0xae   :  { %v545_v50 = vld [vmem:[%s12494_s7 + $0x418] sm:$0xff]  ;;  %v911_v59 = vld [vmem:[#allocation4 + $0x70] sm:$0xff] }
  0xaf   :  { %5818 = vmatpush1.bf16.msra.mxu0 %v5817_v8  ;;  %v4835_v8 = vld [vmem:[%s12493_s6 + $0xd0] sm:$0xff] }
  0xb0   :  { %5820 = vmatprep.subr.bf16.mxu0 %v5819_v10  ;;  %v4836_v10 = vld [vmem:[%s12493_s6 + $0xd8] sm:$0xff] }
  0xb1   :  { %v5747_v18 = vpack.c.bf16 %v4836_v10, %v4835_v8  ;;  %v522_v10 = vld [vmem:[%s12494_s7 + $0x360] sm:$0xff] }
  0xb2   :  { %717 = vmatmul.mubr.f32.vlgmr.msra.gmra.mrb[2].mxu0 %v7974_v38  ;;  %v4828_v38 = vld [vmem:[%s12493_s6 + $0x98] sm:$0xff] }
  0xb3   :  { %5822 = vmatpush1.bf16.msra.mxu0 %v5821_v15  ;;  %787 = vmatprep.mubr.f32.mxu0 %v637_v16  ;;  %v5735_v40 = vpack.c.bf16 %v4828_v38, %v4827_v25  ;;  %v201_v15 = vld [vmem:[#allocation2] ss:$0 sm:$0xff]  ;;  %v507_v16 = vld [vmem:[%s12494_s7 + $0x2e8] sm:$0xff]  ;;  %v513_v38 = vld [vmem:[%s12494_s7 + $0x318] sm:$0xff] }
  0xb4   :  { %5824 = vmatprep.subr.bf16.mxu0 %v5823_v17  ;;  %v509_v17 = vld [vmem:[%s12494_s7 + $0x2f8] sm:$0xff]  ;;  %v202_v22 = vmul.f32 %v201_v15, %v7896_v51  ;;  %v506_v25 = vld [vmem:[%s12494_s7 + $0x2e0] sm:$0xff]  ;;  %v5750_v51 = vpack.c.bf16 %v4838_v20, %v4837_v19  ;;  %v5851_v36 = vpack.c.bf16 %v513_v38, %v511_v27  ;;  %v528_v20 = vld [vmem:[%s12494_s7 + $0x390] sm:$0xff] }
  0xb5   :  { %5736 = vmatpush3.bf16.msra.mxu1 %v5735_v40  ;;  %v5847_v24 = vpack.c.bf16 %v509_v17, %v507_v16  ;;  %v510_v40 = vld [vmem:[%s12494_s7 + $0x300] sm:$0xff]  ;;  %v904_v16 = vld [vmem:[#allocation4 + $0x38] sm:$0xff] }
  0xb6   :  { %5737 = vmatprep.subr.bf16.mxu1 %v12509_v0  ;;  %v5853_v52 = vpack.c.bf16 %v512_v42, %v510_v40  ;;  %v903_v15 = vld [vmem:[#allocation4 + $0x30] sm:$0xff]  ;;  %v908_v40 = vld [vmem:[#allocation4 + $0x58] sm:$0xff] }
  0xb7   :  { %5826 = vmatpush1.bf16.msra.mxu0 %v5825_v26  ;;  %v508_v26 = vld [vmem:[%s12494_s7 + $0x2f0] sm:$0xff]  ;;  %v526_v19 = vld [vmem:[%s12494_s7 + $0x380] sm:$0xff] }
  0xb8   :  { %5828 = vmatprep.subr.bf16.mxu0 %v5827_v28  ;;  %v203_v28 = vld [vmem:[#allocation2 + $0x1] ss:$0 sm:$0xff]  ;;  %v5849_v32 = vpack.c.bf16 %v508_v26, %v506_v25  ;;  %v905_v25 = vld [vmem:[#allocation4 + $0x40] sm:$0xff]  ;;  %v906_v26 = vld [vmem:[#allocation4 + $0x48] sm:$0xff]  ;;  %v5869_v27 = vpack.c.bf16 %v528_v20, %v526_v19 }
  0xb9   :  { %5739 = vmatpush3.bf16.msra.mxu1 %v5738_v53  ;;  %v204_v43 = vadd.f32 %v203_v28, %v202_v22  ;;  %v533_v22 = vld [vmem:[%s12494_s7 + $0x3b8] sm:$0xff]  ;;  %v532_v28 = vld [vmem:[%s12494_s7 + $0x3b0] sm:$0xff]  ;;  %v916_v19 = vld [vmem:[#allocation4 + $0x98] sm:$0xff] }
  0xba   :  { %5740 = vmatprep.subr.bf16.mxu1 %v12509_v0 }
  0xbb   :  { %5830 = vmatpush1.bf16.msra.mxu0 %v5829_v44  ;;  %v515_v44 = vld [vmem:[%s12494_s7 + $0x328] sm:$0xff] }
  0xbc   :  { %5832 = vmatprep.subr.bf16.mxu0 %v5831_v46  ;;  %v517_v46 = vld [vmem:[%s12494_s7 + $0x338] sm:$0xff] }
  0xbd   :  { %5742 = vmatpush3.bf16.msra.mxu1 %v5741_v60  ;;  %v5855_v53 = vpack.c.bf16 %v517_v46, %v515_v44  ;;  %v5857_v60 = vpack.c.bf16 %v516_v55, %v514_v54  ;;  %v534_v44 = vld [vmem:[%s12494_s7 + $0x3c0] sm:$0xff]  ;;  %v536_v46 = vld [vmem:[%s12494_s7 + $0x3d0] sm:$0xff]  ;;  %v413_v55 = vmax.f32 %v8131_v7, 0.0 }
  0xbe   :  { %5743 = vmatprep.subr.bf16.mxu1 %v12509_v0  ;;  %v5877_v54 = vpack.c.bf16 %v536_v46, %v534_v44  ;;  %v565_v44 = vld [vmem:[%s12494_s7 + $0x4b8] sm:$0xff] }
  0xbf   :  { %5834 = vmatpush1.bf16.msra.mxu0 %v5833_v56  ;;  %v205_v56 = vmax.f32 %v204_v43, 0.0  ;;  %v5875_v43 = vpack.c.bf16 %v537_v31, %v535_v30  ;;  %v559_v30 = vld [vmem:[%s12494_s7 + $0x488] sm:$0xff]  ;;  %v561_v31 = vld [vmem:[%s12494_s7 + $0x498] sm:$0xff] }
  0xc0   :  { %5836 = vmatprep.subr.bf16.mxu0 %v5835_v57  ;;  %v519_v57 = vld [vmem:[%s12494_s7 + $0x348] sm:$0xff] }
  0xc1   :  { %5745 = vmatpush3.bf16.msra.mxu1 %v5744_v29  ;;  %v5859_v61 = vpack.c.bf16 %v521_v45, %v519_v57  ;;  %v538_v57 = vld [vmem:[%s12494_s7 + $0x3e0] sm:$0xff]  ;;  %v540_v45 = vld [vmem:[%s12494_s7 + $0x3f0] sm:$0xff] }
  0xc2   :  { %5746 = vmatprep.subr.bf16.mxu1 %v12509_v0 }
  0xc3   :  { %5838 = vmatpush1.bf16.msra.mxu0 %v5837_v63  ;;  %v520_v63 = vld [vmem:[%s12494_s7 + $0x350] sm:$0xff] }
  0xc4   :  { %5840 = vmatprep.subr.bf16.mxu0 %v5839_v2  ;;  %v523_v2 = vld [vmem:[%s12494_s7 + $0x368] sm:$0xff]  ;;  %v5861_v29 = vpack.c.bf16 %v520_v63, %v518_v62  ;;  %v8396_v62 = vrot.slane %v413_v55, %v7889_v49 }
  0xc5   :  { %5748 = vmatpush3.bf16.msra.mxu1 %v5747_v18  ;;  %v5863_v8 = vpack.c.bf16 %v525_v3, %v523_v2  ;;  %v542_v2 = vld [vmem:[%s12494_s7 + $0x400] sm:$0xff]  ;;  %v544_v3 = vld [vmem:[%s12494_s7 + $0x410] sm:$0xff] }
  0xc6   :  { %5749 = vmatprep.subr.bf16.mxu1 %v12509_v0 }
  0xc7   :  { %5842 = vmatpush1.bf16.msra.mxu0 %v5841_v11  ;;  %v524_v11 = vld [vmem:[%s12494_s7 + $0x370] sm:$0xff] }
  0xc8   :  { %5844 = vmatprep.subr.bf16.mxu0 %v5843_v12  ;;  %v527_v12 = vld [vmem:[%s12494_s7 + $0x388] sm:$0xff]  ;;  %v5865_v17 = vpack.c.bf16 %v524_v11, %v522_v10  ;;  %v5885_v10 = vpack.c.bf16 %v544_v3, %v542_v2  ;;  %v645_v11 = vcombine.high %v8396_v62, %v8396_v62 }
  0xc9   :  { %5751 = vmatpush3.bf16.msra.mxu1 %v5750_v51  ;;  %v5867_v18 = vpack.c.bf16 %v529_v13, %v527_v12  ;;  %v530_v51 = vld [vmem:[%s12494_s7 + $0x3a0] sm:$0xff] }
  0xca   :  { %5752 = vmatprep.subr.bf16.mxu1 %v12509_v0  ;;  %v5873_v42 = vpack.c.bf16 %v532_v28, %v530_v51  ;;  %v546_v13 = vld [vmem:[%s12494_s7 + $0x420] sm:$0xff]  ;;  %v556_v28 = vld [vmem:[%s12494_s7 + $0x470] sm:$0xff] }
  0xcb   :  { %5846 = vmatpush1.bf16.msra.mxu0 %v5845_v21  ;;  %v531_v21 = vld [vmem:[%s12494_s7 + $0x3a8] sm:$0xff]  ;;  %v554_v51 = vld [vmem:[%s12494_s7 + $0x460] sm:$0xff] }
  0xcc   :  { %5848 = vmatprep.subr.bf16.mxu0 %v5847_v24  ;;  %v5957_v24 = vpack.c.bf16 %v904_v16, %v903_v15  ;;  %v5871_v38 = vpack.c.bf16 %v533_v22, %v531_v21  ;;  %v551_v15 = vld [vmem:[%s12494_s7 + $0x448] sm:$0xff]  ;;  %v553_v16 = vld [vmem:[%s12494_s7 + $0x458] sm:$0xff]  ;;  %v550_v22 = vld [vmem:[%s12494_s7 + $0x440] sm:$0xff] }
  0xcd   :  { %5754 = vmatpush3.bf16.msra.mxu1 %v5753_v23  ;;  %v539_v23 = vld [vmem:[%s12494_s7 + $0x3e8] sm:$0xff]  ;;  %v5891_v21 = vpack.c.bf16 %v553_v16, %v551_v15 }
  0xce   :  { %5947 = vmatprep.subr.bf16.mxu1 %v12509_v0 }
  0xcf   :  { %5850 = vmatpush1.bf16.msra.mxu0 %v5849_v32  ;;  %v5960_v32 = vpack.c.bf16 %v906_v26, %v905_v25  ;;  %v557_v25 = vld [vmem:[%s12494_s7 + $0x478] sm:$0xff] }
  0xd0   :  { %5852 = vmatprep.subr.bf16.mxu0 %v5851_v36  ;;  %5460 = vmatmul.mubr.f32.vlgmr.msra.gmra.mrb[0].mxu1 %v205_v56  ;;  %v907_v36 = vld [vmem:[#allocation4 + $0x50] sm:$0xff]  ;;  %v5879_v56 = vpack.c.bf16 %v541_v47, %v539_v23 }
  0xd1   :  { %5949 = vmatpush1.bf16.msra.mxu1 %v5948_v58  ;;  %v5963_v48 = vpack.c.bf16 %v908_v40, %v907_v36  ;;  %v543_v58 = vld [vmem:[%s12494_s7 + $0x408] sm:$0xff]  ;;  %v5899_v36 = vpack.c.bf16 %v561_v31, %v559_v30  ;;  %v558_v40 = vld [vmem:[%s12494_s7 + $0x480] sm:$0xff]  ;;  %v597_v31 = vld [vmem:[%s12494_s7 + $0x5b8] sm:$0xff] }
  0xd2   :  { %5950 = vmatprep.subr.bf16.mxu1 %v12509_v0  ;;  %v5883_v63 = vpack.c.bf16 %v545_v50, %v543_v58  ;;  %v562_v47 = vld [vmem:[%s12494_s7 + $0x4a0] sm:$0xff]  ;;  %v573_v58 = vld [vmem:[%s12494_s7 + $0x4f8] sm:$0xff]  ;;  %v595_v30 = vld [vmem:[%s12494_s7 + $0x5a8] sm:$0xff] }
  0xd3   :  { %5854 = vmatpush1.bf16.msra.mxu0 %v5853_v52  ;;  %v909_v52 = vld [vmem:[#allocation4 + $0x60] sm:$0xff] }
  0xd4   :  { %5856 = vmatprep.subr.bf16.mxu0 %v5855_v53  ;;  %v910_v53 = vld [vmem:[#allocation4 + $0x68] sm:$0xff] }
  0xd5   :  { %5952 = vmatpush1.bf16.msra.mxu1 %v5951_v4  ;;  %v5966_v7 = vpack.c.bf16 %v910_v53, %v909_v52  ;;  %v547_v4 = vld [vmem:[%s12494_s7 + $0x428] sm:$0xff]  ;;  %v569_v53 = vld [vmem:[%s12494_s7 + $0x4d8] sm:$0xff] }
  0xd6   :  { %5953 = vmatprep.subr.bf16.mxu1 %v12509_v0  ;;  %v5887_v12 = vpack.c.bf16 %v549_v5, %v547_v4  ;;  %v567_v52 = vld [vmem:[%s12494_s7 + $0x4c8] sm:$0xff]  ;;  %v574_v4 = vld [vmem:[%s12494_s7 + $0x500] sm:$0xff]  ;;  %v576_v5 = vld [vmem:[%s12494_s7 + $0x510] sm:$0xff] }
  0xd7   :  { %5858 = vmatpush1.bf16.msra.mxu0 %v5857_v60  ;;  %v912_v60 = vld [vmem:[#allocation4 + $0x78] sm:$0xff]  ;;  %v5907_v55 = vpack.c.bf16 %v569_v53, %v567_v52  ;;  %v605_v53 = vld [vmem:[%s12494_s7 + $0x5f8] sm:$0xff] }
  0xd8   :  { %5860 = vmatprep.subr.bf16.mxu0 %v5859_v61  ;;  %v5881_v61 = vpack.c.bf16 %v540_v45, %v538_v57  ;;  %v5969_v6 = vpack.c.bf16 %v912_v60, %v911_v59  ;;  %v568_v57 = vld [vmem:[%s12494_s7 + $0x4d0] sm:$0xff]  ;;  %v571_v45 = vld [vmem:[%s12494_s7 + $0x4e8] sm:$0xff]  ;;  %v570_v59 = vld [vmem:[%s12494_s7 + $0x4e0] sm:$0xff] }
  0xd9   :  { %5955 = vmatpush1.bf16.msra.mxu1 %v5954_v14  ;;  %v548_v14 = vld [vmem:[%s12494_s7 + $0x430] sm:$0xff]  ;;  %v603_v52 = vld [vmem:[%s12494_s7 + $0x5e8] sm:$0xff] }
  0xda   :  { %5956 = vmatprep.subr.bf16.mxu1 %v12509_v0  ;;  %v5889_v20 = vpack.c.bf16 %v548_v14, %v546_v13  ;;  %v572_v60 = vld [vmem:[%s12494_s7 + $0x4f0] sm:$0xff]  ;;  %v583_v13 = vld [vmem:[%s12494_s7 + $0x548] sm:$0xff]  ;;  %v585_v14 = vld [vmem:[%s12494_s7 + $0x558] sm:$0xff] }
  0xdb   :  { %5862 = vmatpush1.bf16.msra.mxu0 %v5861_v29  ;;  %v913_v29 = vld [vmem:[#allocation4 + $0x80] sm:$0xff]  ;;  %v5913_v2 = vpack.c.bf16 %v572_v60, %v570_v59  ;;  %v5923_v16 = vpack.c.bf16 %v585_v14, %v583_v13  ;;  %v919_v59 = vld [vmem:[#allocation4 + $0xb0] sm:$0xff]  ;;  %v920_v60 = vld [vmem:[#allocation4 + $0xb8] sm:$0xff] }
  0xdc   :  { %5864 = vmatprep.subr.bf16.mxu0 %v5863_v8  ;;  %v914_v8 = vld [vmem:[#allocation4 + $0x88] sm:$0xff] }
  0xdd   :  { %5958 = vmatpush1.bf16.msra.mxu1 %v5957_v24  ;;  %v552_v24 = vld [vmem:[%s12494_s7 + $0x450] sm:$0xff] }
  0xde   :  { %5959 = vmatprep.subr.bf16.mxu1 %v12509_v0 }
  0xdf   :  { %5866 = vmatpush1.bf16.msra.mxu0 %v5865_v17  ;;  %v5972_v17 = vpack.c.bf16 %v914_v8, %v913_v29  ;;  %v581_v29 = vld [vmem:[%s12494_s7 + $0x538] sm:$0xff]  ;;  %v5917_v8 = vpack.c.bf16 %v576_v5, %v574_v4  ;;  %v1000_v4 = vld [vmem:[#allocation2 + $0x6] ss:$8 sm:$0x30] }
  0xe0   :  { %5868 = vmatprep.subr.bf16.mxu0 %v5867_v18  ;;  %v915_v18 = vld [vmem:[#allocation4 + $0x90] sm:$0xff] }
  0xe1   :  { %5961 = vmatpush1.bf16.msra.mxu1 %v5960_v32  ;;  %v5975_v26 = vpack.c.bf16 %v916_v19, %v915_v18  ;;  %v5897_v32 = vpack.c.bf16 %v556_v28, %v554_v51  ;;  %v584_v18 = vld [vmem:[%s12494_s7 + $0x550] sm:$0xff]  ;;  %v587_v19 = vld [vmem:[%s12494_s7 + $0x568] sm:$0xff]  ;;  %v590_v51 = vld [vmem:[%s12494_s7 + $0x580] sm:$0xff] }
  0xe2   :  { %5962 = vmatprep.subr.bf16.mxu1 %v12509_v0  ;;  %v592_v28 = vld [vmem:[%s12494_s7 + $0x590] sm:$0xff] }
  0xe3   :  { %5870 = vmatpush1.bf16.msra.mxu0 %v5869_v27  ;;  %v5893_v27 = vpack.c.bf16 %v552_v24, %v550_v22  ;;  %v586_v24 = vld [vmem:[%s12494_s7 + $0x560] sm:$0xff] }
  0xe4   :  { %5872 = vmatprep.subr.bf16.mxu0 %v5871_v38 }
  0xe5   :  { %5964 = vmatpush1.bf16.msra.mxu1 %v5963_v48  ;;  %v564_v48 = vld [vmem:[%s12494_s7 + $0x4b0] sm:$0xff] }
  0xe6   :  { %5965 = vmatprep.subr.bf16.mxu1 %v12509_v0 }
  0xe7   :  { %5874 = vmatpush1.bf16.msra.mxu0 %v5873_v42  ;;  %v560_v42 = vld [vmem:[%s12494_s7 + $0x490] sm:$0xff] }
  0xe8   :  { %5876 = vmatprep.subr.bf16.mxu0 %v5875_v43  ;;  %v563_v43 = vld [vmem:[%s12494_s7 + $0x4a8] sm:$0xff]  ;;  %v5901_v46 = vpack.c.bf16 %v560_v42, %v558_v40  ;;  %v594_v40 = vld [vmem:[%s12494_s7 + $0x5a0] sm:$0xff]  ;;  %v596_v42 = vld [vmem:[%s12494_s7 + $0x5b0] sm:$0xff] }
  0xe9   :  { %5967 = vmatpush1.bf16.msra.mxu1 %v5966_v7  ;;  %v5903_v23 = vpack.c.bf16 %v565_v44, %v563_v43  ;;  %v5911_v7 = vpack.c.bf16 %v573_v58, %v571_v45  ;;  %v599_v43 = vld [vmem:[%s12494_s7 + $0x5c8] sm:$0xff]  ;;  %v601_v44 = vld [vmem:[%s12494_s7 + $0x5d8] sm:$0xff]  ;;  %v917_v58 = vld [vmem:[#allocation4 + $0xa0] sm:$0xff] }
  0xea   :  { %5968 = vmatprep.subr.bf16.mxu1 %v12509_v0 }
  0xeb   :  { %5878 = vmatpush1.bf16.msra.mxu0 %v5877_v54  ;;  %v5905_v54 = vpack.c.bf16 %v564_v48, %v562_v47  ;;  %v598_v47 = vld [vmem:[%s12494_s7 + $0x5c0] sm:$0xff]  ;;  %v600_v48 = vld [vmem:[%s12494_s7 + $0x5d0] sm:$0xff] }
  0xec   :  { %5880 = vmatprep.subr.bf16.mxu0 %v5879_v56  ;;  %v566_v56 = vld [vmem:[%s12494_s7 + $0x4c0] sm:$0xff] }
  0xed   :  { %5970 = vmatpush1.bf16.msra.mxu1 %v5969_v6  ;;  %v5909_v50 = vpack.c.bf16 %v568_v57, %v566_v56  ;;  %v579_v6 = vld [vmem:[%s12494_s7 + $0x528] sm:$0xff]  ;;  %v602_v56 = vld [vmem:[%s12494_s7 + $0x5e0] sm:$0xff]  ;;  %v604_v57 = vld [vmem:[%s12494_s7 + $0x5f0] sm:$0xff] }
  0xee   :  { %5971 = vmatprep.subr.bf16.mxu1 %v12509_v0  ;;  %v5945_v45 = vpack.c.bf16 %v604_v57, %v602_v56 }
  0xef   :  { %5882 = vmatpush1.bf16.msra.mxu0 %v5881_v61  ;;  %v575_v61 = vld [vmem:[%s12494_s7 + $0x508] sm:$0xff] }
  0xf0   :  { %5884 = vmatprep.subr.bf16.mxu0 %v5883_v63  ;;  %v577_v63 = vld [vmem:[%s12494_s7 + $0x518] sm:$0xff] }
  0xf1   :  { %5973 = vmatpush1.bf16.msra.mxu1 %v5972_v17  ;;  %v5915_v3 = vpack.c.bf16 %v577_v63, %v575_v61  ;;  %v582_v17 = vld [vmem:[%s12494_s7 + $0x540] sm:$0xff]  ;;  %v5981_v61 = vpack.c.bf16 %v920_v60, %v919_v59  ;;  %v4843_v63 = vld [vmem:[%s12494_s7 + $0x608] sm:$0xff]  ;;  %v4849_v59 = vld [vmem:[%s12494_s7 + $0x638] sm:$0xff] }
  0xf2   :  { %788 = vmatmul.mubr.f32.vlgmr.msra.gmra.mrb[2].mxu0 %v8134_v9  ;;  %v555_v9 = vld [vmem:[%s12494_s7 + $0x468] sm:$0xff]  ;;  %5974 = vmatprep.subr.bf16.mxu1 %v12509_v0 }
  0xf3   :  { %5886 = vmatpush1.bf16.msra.mxu0 %v5885_v10  ;;  %858 = vmatprep.mubr.f32.mxu0 %v645_v11  ;;  %v5895_v38 = vpack.c.bf16 %v557_v25, %v555_v9  ;;  %v5919_v10 = vpack.c.bf16 %v581_v29, %v579_v6  ;;  %v578_v11 = vld [vmem:[%s12494_s7 + $0x520] sm:$0xff]  ;;  %v588_v9 = vld [vmem:[%s12494_s7 + $0x570] sm:$0xff]  ;;  %v591_v25 = vld [vmem:[%s12494_s7 + $0x588] sm:$0xff] }
  0xf4   :  { %5888 = vmatprep.subr.bf16.mxu0 %v5887_v12  ;;  %v580_v12 = vld [vmem:[%s12494_s7 + $0x530] sm:$0xff]  ;;  %v1058_v29 = vld [vmem:[#allocation2 + $0x7] ss:$8 sm:$0x30] }
  0xf5   :  { %5976 = vmatpush1.bf16.msra.mxu1 %v5975_v26  ;;  %v5921_v15 = vpack.c.bf16 %v580_v12, %v578_v11  ;;  %v593_v26 = vld [vmem:[%s12494_s7 + $0x598] sm:$0xff] }
  0xf6   :  { %5977 = vmatprep.subr.bf16.mxu1 %v12509_v0  ;;  %v1057_v6 = vld [vmem:[#allocation2 + $0x7] ss:$8 sm:$0xf] }
  0xf7   :  { %5890 = vmatpush1.bf16.msra.mxu0 %v5889_v20  ;;  %v589_v20 = vld [vmem:[%s12494_s7 + $0x578] sm:$0xff]  ;;  %v8610_v13 = vor.u32 %v1058_v29, %v1057_v6  ;;  %v4851_v6 = vld [vmem:[%s12494_s7 + $0x648] sm:$0xff] }
  0xf8   :  { %5892 = vmatprep.subr.bf16.mxu0 %v5891_v21  ;;  %v5925_v21 = vpack.c.bf16 %v584_v18, %v582_v17  ;;  %v5927_v22 = vpack.c.bf16 %v589_v20, %v587_v19  ;;  %v4853_v29 = vld [vmem:[%s12494_s7 + $0x658] sm:$0xff] }
  0xf9   :  { %v1068_v17 = vrot.slane %v8610_v13, %v7871_v34  ;;  %v1072_v18 = vrot.slane %v8610_v13, %v7874_v35  ;;  %v1076_v19 = vrot.slane %v8610_v13, %v7883_v41 }
  0xfb   :  { %5894 = vmatpush1.bf16.msra.mxu0 %v5893_v27  ;;  %v5929_v27 = vpack.c.bf16 %v588_v9, %v586_v24  ;;  %v1086_v24 = vcombine.low %v1072_v18, %v1076_v19  ;;  %v4854_v18 = vld [vmem:[%s12494_s7 + $0x660] sm:$0xff]  ;;  %v4856_v19 = vld [vmem:[%s12494_s7 + $0x670] sm:$0xff] }
  0xfc   :  { %5896 = vmatprep.subr.bf16.mxu0 %v5895_v38  ;;  %v5931_v38 = vpack.c.bf16 %v593_v26, %v591_v25 }
  0xfd   :  { %v1100_v26 = vrot.slane %v1086_v24, %v7889_v49 }
  0xff   :  { %5898 = vmatpush1.bf16.msra.mxu0 %v5897_v32  ;;  %v5933_v32 = vpack.c.bf16 %v592_v28, %v590_v51  ;;  %v607_v28 = vld [vmem:[#allocation2 + $0x65] ss:$8 sm:$0x3] }
 0x100   :  { %5900 = vmatprep.subr.bf16.mxu0 %v5899_v36  ;;  %v5935_v36 = vpack.c.bf16 %v597_v31, %v595_v30  ;;  %v866_v30 = vld [vmem:[#allocation2 + $0x4] ss:$8 sm:$0x3] }
 0x103   :  { %5902 = vmatpush1.bf16.msra.mxu0 %v5901_v46  ;;  %v5937_v46 = vpack.c.bf16 %v596_v42, %v594_v40  ;;  %v616_v40 = vrot.slane %v607_v28, %v7871_v34  ;;  %v871_v42 = vrot.slane %v866_v30, %v7868_v33 }
 0x104   :  { %5904 = vmatprep.subr.bf16.mxu0 %v5903_v23  ;;  %v5939_v23 = vpack.c.bf16 %v601_v44, %v599_v43  ;;  %v875_v44 = vrot.slane %v866_v30, %v7871_v34  ;;  %v4864_v30 = vld [vmem:[%s12494_s7 + $0x6b0] sm:$0xff] }
 0x107   :  { %5906 = vmatpush1.bf16.msra.mxu0 %v5905_v54  ;;  %v5941_v54 = vpack.c.bf16 %v600_v48, %v598_v47 }
 0x108   :  { %5908 = vmatprep.subr.bf16.mxu0 %v5907_v55  ;;  %v5943_v55 = vpack.c.bf16 %v605_v53, %v603_v52 }
 0x10b   :  { %5910 = vmatpush1.bf16.msra.mxu0 %v5909_v50  ;;  %v918_v50 = vld [vmem:[#allocation4 + $0xa8] sm:$0xff] }
 0x10c   :  { %5912 = vmatprep.subr.bf16.mxu0 %v5911_v7  ;;  %v5978_v7 = vpack.c.bf16 %v918_v50, %v917_v58  ;;  %v4844_v58 = vld [vmem:[%s12494_s7 + $0x610] sm:$0xff] }
 0x10e   :  { %5979 = vmatpush1.bf16.msra.mxu1 %v5978_v7  ;;  %v4847_v7 = vld [vmem:[%s12494_s7 + $0x628] sm:$0xff] }
 0x10f   :  { %5914 = vmatpush1.bf16.msra.mxu0 %v5913_v2  ;;  %5980 = vmatprep.subr.bf16.mxu1 %v12509_v0  ;;  %v4845_v2 = vld [vmem:[%s12494_s7 + $0x618] sm:$0xff] }
 0x110   :  { %5916 = vmatprep.subr.bf16.mxu0 %v5915_v3  ;;  %v5983_v3 = vpack.c.bf16 %v4845_v2, %v4843_v63 }
 0x112   :  { %5982 = vmatpush1.bf16.msra.mxu1 %v5981_v61 }
 0x113   :  { %5918 = vmatpush1.bf16.msra.mxu0 %v5917_v8  ;;  %5984 = vmatprep.subr.bf16.mxu1 %v5983_v3  ;;  %v5987_v3 = vpack.c.bf16 %v4849_v59, %v4847_v7  ;;  %v4879_v7 = vld [vmem:[%s12494_s7 + $0x728] sm:$0xff]  ;;  %v4881_v59 = vld [vmem:[%s12494_s7 + $0x738] sm:$0xff] }
 0x114   :  { %5920 = vmatprep.subr.bf16.mxu0 %v5919_v10 }
 0x117   :  { %5922 = vmatpush1.bf16.msra.mxu0 %v5921_v15 }
 0x118   :  { %5924 = vmatprep.subr.bf16.mxu0 %v5923_v16  ;;  %v1064_v16 = vrot.slane %v8610_v13, %v7868_v33 }
 0x11b   :  { %5926 = vmatpush1.bf16.msra.mxu0 %v5925_v21 }
 0x11c   :  { %5928 = vmatprep.subr.bf16.mxu0 %v5927_v22  ;;  %v1085_v22 = vcombine.low %v1064_v16, %v1068_v17 }
 0x11e   :  { %v1093_v25 = vrot.slane %v1085_v22, %v7889_v49  ;;  %v5997_v22 = vpack.c.bf16 %v4856_v19, %v4854_v18  ;;  %v4888_v18 = vld [vmem:[%s12494_s7 + $0x770] sm:$0xff]  ;;  %v4891_v19 = vld [vmem:[%s12494_s7 + $0x788] sm:$0xff] }
 0x11f   :  { %5930 = vmatpush1.bf16.msra.mxu0 %v5929_v27  ;;  %v996_v27 = vld [vmem:[%s12607_s19] sm:$0xff] }
 0x120   :  { %5932 = vmatprep.subr.bf16.mxu0 %v5931_v38  ;;  %v1101_v51 = vcombine.low %v1093_v25, %v1100_v26  ;;  %v4860_v25 = vld [vmem:[%s12494_s7 + $0x690] sm:$0xff]  ;;  %v4863_v26 = vld [vmem:[%s12494_s7 + $0x6a8] sm:$0xff] }
 0x123   :  { %5934 = vmatpush1.bf16.msra.mxu0 %v5933_v32  ;;  %v612_v32 = vrot.slane %v607_v28, %v7868_v33  ;;  %v4862_v28 = vld [vmem:[%s12494_s7 + $0x6a0] sm:$0xff] }
 0x124   :  { %5936 = vmatprep.subr.bf16.mxu0 %v5935_v36  ;;  %v881_v36 = vld [vmem:[#allocation2 + $0x5] ss:$8 sm:$0x3] }
 0x125   :  { %v886_v47 = vrot.slane %v881_v36, %v7868_v33  ;;  %v890_v53 = vrot.slane %v881_v36, %v7871_v34  ;;  %v6005_v36 = vpack.c.bf16 %v4864_v30, %v4862_v28  ;;  %v4896_v28 = vld [vmem:[%s12494_s7 + $0x7b0] sm:$0xff]  ;;  %v4899_v30 = vld [vmem:[%s12494_s7 + $0x7c8] sm:$0xff] }
 0x127   :  { %5938 = vmatpush1.bf16.msra.mxu0 %v5937_v46 }
 0x128   :  { %5940 = vmatprep.subr.bf16.mxu0 %v5939_v23 }
 0x12b   :  { %5942 = vmatpush1.bf16.msra.mxu0 %v5941_v54 }
 0x12c   :  { %5944 = vmatprep.subr.bf16.mxu0 %v5943_v55 }
 0x12f   :  { %5946 = vmatpush1.bf16.msra.mxu0 %v5945_v45  ;;  %v4842_v45 = vld [vmem:[%s12494_s7 + $0x600] sm:$0xff] }
 0x130   :  { %6175 = vmatprep.subr.bf16.mxu0 %v12509_v0  ;;  %v5985_v61 = vpack.c.bf16 %v4844_v58, %v4842_v45  ;;  %v4874_v58 = vld [vmem:[%s12494_s7 + $0x700] sm:$0xff] }
 0x132   :  { %859 = vmatmul.mubr.f32.vlgmr.msra.gmra.mrb[2].mxu0 %v8396_v62  ;;  %v999_v62 = vld [vmem:[#allocation2 + $0x6] ss:$8 sm:$0xf] }
 0x133   :  { %v8600_v5 = vor.u32 %v1000_v4, %v999_v62  ;;  %v4846_v62 = vld [vmem:[%s12494_s7 + $0x620] sm:$0xff]  ;;  %v4848_v4 = vld [vmem:[%s12494_s7 + $0x630] sm:$0xff] }
 0x135   :  { %v1006_v8 = vrot.slane %v8600_v5, %v7868_v33  ;;  %v1010_v10 = vrot.slane %v8600_v5, %v7871_v34  ;;  %v1014_v11 = vrot.slane %v8600_v5, %v7874_v35  ;;  %v1018_v12 = vrot.slane %v8600_v5, %v7883_v41  ;;  %v2008_v35 = vld [vmem:[%s12496_s9 + $0x2b0] sm:$0xff]  ;;  %v2013_v41 = vld [vmem:[%s12496_s9 + $0x2d8] sm:$0xff] }
 0x137   :  { %v1027_v14 = vcombine.low %v1006_v8, %v1010_v10  ;;  %v1028_v15 = vcombine.low %v1014_v11, %v1018_v12  ;;  %v5989_v8 = vpack.c.bf16 %v4848_v4, %v4846_v62  ;;  %v5991_v10 = vpack.c.bf16 %v4853_v29, %v4851_v6  ;;  %v4850_v11 = vld [vmem:[%s12494_s7 + $0x640] sm:$0xff]  ;;  %v4852_v12 = vld [vmem:[%s12494_s7 + $0x650] sm:$0xff]  ;;  %v4885_v62 = vld [vmem:[%s12494_s7 + $0x758] sm:$0xff] }
 0x138   :  { %v5993_v16 = vpack.c.bf16 %v4852_v12, %v4850_v11  ;;  %v4887_v12 = vld [vmem:[%s12494_s7 + $0x768] sm:$0xff] }
 0x139   :  { %v1035_v20 = vrot.slane %v1027_v14, %v7889_v49  ;;  %v1042_v21 = vrot.slane %v1028_v15, %v7889_v49  ;;  %v4855_v14 = vld [vmem:[%s12494_s7 + $0x668] sm:$0xff]  ;;  %v4857_v15 = vld [vmem:[%s12494_s7 + $0x678] sm:$0xff] }
 0x13a   :  { %v5995_v17 = vpack.c.bf16 %v4857_v15, %v4855_v14  ;;  %v4889_v14 = vld [vmem:[%s12494_s7 + $0x778] sm:$0xff] }
 0x13b   :  { %v1043_v9 = vcombine.low %v1035_v20, %v1042_v21  ;;  %v4859_v20 = vld [vmem:[%s12494_s7 + $0x688] sm:$0xff]  ;;  %v4861_v21 = vld [vmem:[%s12494_s7 + $0x698] sm:$0xff] }
 0x13c   :  { %v5999_v24 = vpack.c.bf16 %v4861_v21, %v4859_v20  ;;  %v4893_v20 = vld [vmem:[%s12494_s7 + $0x798] sm:$0xff] }
 0x13d   :  { %v1054_v38 = vmul.f32 %v1043_v9, %v996_v27  ;;  %v4858_v9 = vld [vmem:[%s12494_s7 + $0x680] sm:$0xff]  ;;  %v4865_v27 = vld [vmem:[%s12494_s7 + $0x6b8] sm:$0xff] }
 0x13f   :  { %v1112_v31 = vadd.f32 %v1101_v51, %v1054_v38  ;;  %v6001_v38 = vpack.c.bf16 %v4860_v25, %v4858_v9  ;;  %v6003_v51 = vpack.c.bf16 %v4865_v27, %v4863_v26  ;;  %v4892_v9 = vld [vmem:[%s12494_s7 + $0x790] sm:$0xff]  ;;  %v4895_v25 = vld [vmem:[%s12494_s7 + $0x7a8] sm:$0xff]  ;;  %v4897_v26 = vld [vmem:[%s12494_s7 + $0x7b8] sm:$0xff] }
 0x141   :  { %v8631_v46 = vmax.f32 %v1112_v31, 0.0  ;;  %v4867_v31 = vld [vmem:[%s12494_s7 + $0x6c8] sm:$0xff] }
 0x143   :  { %v8637_v56 = vrot.slane %v8631_v46, %v7889_v49 }
 0x145   :  { %v1339_v63 = vcombine.high %v8637_v56, %v8637_v56 }
 0x1a3   :  { %v8762_v6 = vpop.f32.mrb[0].mxu1 }
 0x1a4   :  { %v5461_v11 = vpop.f32.mrb[1].mxu1 }
 0x1a5   :  { %v4916_v11 = vld [vmem:[%s12494_s7 + $0x850] sm:$0xff] }
 0x205   :  { %v860_v43 = vpop.f32.mrb[2].mxu0 }
 0x206   :  { %v7469_v23 = vadd.f32 %v860_v43, %v612_v32  ;;  %v862_v48 = vpop.f32.mrb[3].mxu0  ;;  %v4869_v32 = vld [vmem:[%s12494_s7 + $0x6d8] sm:$0xff]  ;;  %v4868_v43 = vld [vmem:[%s12494_s7 + $0x6d0] sm:$0xff] }
 0x207   :  { %v7470_v52 = vadd.f32 %v862_v48, %v616_v40  ;;  %v6007_v40 = vpack.c.bf16 %v4869_v32, %v4867_v31  ;;  %v4901_v31 = vld [vmem:[%s12494_s7 + $0x7d8] sm:$0xff] }
 0x208   :  { %v878_v54 = vmul.f32 %v7469_v23, %v871_v42  ;;  %v4866_v42 = vld [vmem:[%s12494_s7 + $0x6c0] sm:$0xff]  ;;  %v4873_v23 = vld [vmem:[%s12494_s7 + $0x6f8] sm:$0xff] }
 0x209   :  { %v879_v55 = vmul.f32 %v7470_v52, %v875_v44  ;;  %v4871_v44 = vld [vmem:[%s12494_s7 + $0x6e8] sm:$0xff]  ;;  %v4870_v52 = vld [vmem:[%s12494_s7 + $0x6e0] sm:$0xff] }
 0x20a   :  { %v893_v57 = vadd.f32 %v886_v47, %v878_v54  ;;  %v6009_v47 = vpack.c.bf16 %v4868_v43, %v4866_v42  ;;  %v6011_v48 = vpack.c.bf16 %v4873_v23, %v4871_v44  ;;  %v4875_v54 = vld [vmem:[%s12494_s7 + $0x708] sm:$0xff]  ;;  %v4900_v42 = vld [vmem:[%s12494_s7 + $0x7d0] sm:$0xff]  ;;  %v4905_v44 = vld [vmem:[%s12494_s7 + $0x7f8] sm:$0xff] }
 0x20b   :  { %v894_v50 = vadd.f32 %v890_v53, %v879_v55  ;;  %v4872_v53 = vld [vmem:[%s12494_s7 + $0x6f0] sm:$0xff]  ;;  %v4877_v55 = vld [vmem:[%s12494_s7 + $0x718] sm:$0xff]  ;;  %v4903_v43 = vld [vmem:[%s12494_s7 + $0x7e8] sm:$0xff] }
 0x20c   :  { %v895_v2 = vmax.f32 %v893_v57, 0.0  ;;  %v6013_v57 = vpack.c.bf16 %v4872_v53, %v4870_v52  ;;  %v6015_v45 = vpack.c.bf16 %v4877_v55, %v4875_v54  ;;  %v4902_v52 = vld [vmem:[%s12494_s7 + $0x7e0] sm:$0xff]  ;;  %v4904_v53 = vld [vmem:[%s12494_s7 + $0x7f0] sm:$0xff]  ;;  %v4907_v54 = vld [vmem:[%s12494_s7 + $0x808] sm:$0xff] }
 0x20d   :  { %v896_v60 = vmax.f32 %v894_v50, 0.0  ;;  %v4876_v50 = vld [vmem:[%s12494_s7 + $0x710] sm:$0xff]  ;;  %v4909_v55 = vld [vmem:[%s12494_s7 + $0x818] sm:$0xff] }
 0x20f   :  { %4841 = vmatprep.mubr.msk.f32.mxu1 %vm922_vm1, %v896_v60  ;;  %v6017_v60 = vpack.c.bf16 %v4876_v50, %v4874_v58  ;;  %v4906_v58 = vld [vmem:[%s12494_s7 + $0x800] sm:$0xff]  ;;  %v4908_v50 = vld [vmem:[%s12494_s7 + $0x810] sm:$0xff] }
 0x210   :  { %991 = vmatmul.mubr.f32.vlgmr.msra.gmra.mrb[2].mxu1 %v895_v2  ;;  %v4880_v2 = vld [vmem:[%s12494_s7 + $0x730] sm:$0xff] }
 0x211   :  { %5986 = vmatpush1.bf16.msra.mxu1 %v5985_v61  ;;  %1419 = vmatprep.mubr.f32.mxu1 %v1339_v63  ;;  %v6019_v61 = vpack.c.bf16 %v4881_v59, %v4879_v7  ;;  %v4878_v63 = vld [vmem:[%s12494_s7 + $0x720] sm:$0xff]  ;;  %v4911_v7 = vld [vmem:[%s12494_s7 + $0x828] sm:$0xff]  ;;  %v4913_v59 = vld [vmem:[%s12494_s7 + $0x838] sm:$0xff] }
 0x212   :  { %5988 = vmatprep.subr.bf16.mxu1 %v5987_v3  ;;  %v4883_v3 = vld [vmem:[%s12494_s7 + $0x748] sm:$0xff]  ;;  %v6021_v4 = vpack.c.bf16 %v4880_v2, %v4878_v63  ;;  %v6051_v63 = vpack.c.bf16 %v4913_v59, %v4911_v7  ;;  %v4910_v2 = vld [vmem:[%s12494_s7 + $0x820] sm:$0xff]  ;;  %v1605_v7 = vld [vmem:[#allocation4 + $0xe0] sm:$0xff] }
 0x213   :  { %v6023_v29 = vpack.c.bf16 %v4885_v62, %v4883_v3  ;;  %v4912_v3 = vld [vmem:[%s12494_s7 + $0x830] sm:$0xff]  ;;  %v4915_v62 = vld [vmem:[%s12494_s7 + $0x848] sm:$0xff]  ;;  %v1606_v59 = vld [vmem:[#allocation4 + $0xe8] sm:$0xff] }
 0x215   :  { %5990 = vmatpush1.bf16.msra.mxu1 %v5989_v8  ;;  %v4882_v8 = vld [vmem:[%s12494_s7 + $0x740] sm:$0xff] }
 0x216   :  { %5992 = vmatprep.subr.bf16.mxu1 %v5991_v10  ;;  %v4884_v10 = vld [vmem:[%s12494_s7 + $0x750] sm:$0xff] }
 0x217   :  { %v6025_v15 = vpack.c.bf16 %v4884_v10, %v4882_v8  ;;  %v4914_v10 = vld [vmem:[%s12494_s7 + $0x840] sm:$0xff] }
 0x219   :  { %5994 = vmatpush1.bf16.msra.mxu1 %v5993_v16  ;;  %v6027_v16 = vpack.c.bf16 %v4889_v14, %v4887_v12  ;;  %v4919_v12 = vld [vmem:[%s12494_s7 + $0x868] sm:$0xff]  ;;  %v6057_v14 = vpack.c.bf16 %v4916_v11, %v4914_v10 }
 0x21a   :  { %5996 = vmatprep.subr.bf16.mxu1 %v5995_v17  ;;  %v4886_v17 = vld [vmem:[%s12494_s7 + $0x760] sm:$0xff] }
 0x21b   :  { %v6029_v21 = vpack.c.bf16 %v4888_v18, %v4886_v17  ;;  %v4920_v17 = vld [vmem:[%s12494_s7 + $0x870] sm:$0xff]  ;;  %v4923_v18 = vld [vmem:[%s12494_s7 + $0x888] sm:$0xff] }
 0x21d   :  { %5998 = vmatpush1.bf16.msra.mxu1 %v5997_v22  ;;  %v6031_v22 = vpack.c.bf16 %v4893_v20, %v4891_v19  ;;  %v4925_v19 = vld [vmem:[%s12494_s7 + $0x898] sm:$0xff] }
 0x21e   :  { %6000 = vmatprep.subr.bf16.mxu1 %v5999_v24  ;;  %v4890_v24 = vld [vmem:[%s12494_s7 + $0x780] sm:$0xff] }
 0x21f   :  { %v6033_v27 = vpack.c.bf16 %v4892_v9, %v4890_v24  ;;  %v4924_v24 = vld [vmem:[%s12494_s7 + $0x890] sm:$0xff]  ;;  %v4927_v9 = vld [vmem:[%s12494_s7 + $0x8a8] sm:$0xff] }
 0x221   :  { %6002 = vmatpush1.bf16.msra.mxu1 %v6001_v38  ;;  %v6035_v38 = vpack.c.bf16 %v4897_v26, %v4895_v25  ;;  %v4929_v25 = vld [vmem:[%s12494_s7 + $0x8b8] sm:$0xff] }
 0x222   :  { %6004 = vmatprep.subr.bf16.mxu1 %v6003_v51  ;;  %v4894_v51 = vld [vmem:[%s12494_s7 + $0x7a0] sm:$0xff] }
 0x223   :  { %v6037_v32 = vpack.c.bf16 %v4896_v28, %v4894_v51  ;;  %v4928_v51 = vld [vmem:[%s12494_s7 + $0x8b0] sm:$0xff]  ;;  %v4931_v28 = vld [vmem:[%s12494_s7 + $0x8c8] sm:$0xff] }
 0x225   :  { %6006 = vmatpush1.bf16.msra.mxu1 %v6005_v36  ;;  %v6039_v36 = vpack.c.bf16 %v4901_v31, %v4899_v30  ;;  %v4933_v30 = vld [vmem:[%s12494_s7 + $0x8d8] sm:$0xff] }
 0x226   :  { %6008 = vmatprep.subr.bf16.mxu1 %v6007_v40  ;;  %v4898_v40 = vld [vmem:[%s12494_s7 + $0x7c0] sm:$0xff] }
 0x227   :  { %v6041_v23 = vpack.c.bf16 %v4900_v42, %v4898_v40  ;;  %v4932_v40 = vld [vmem:[%s12494_s7 + $0x8d0] sm:$0xff]  ;;  %v4935_v42 = vld [vmem:[%s12494_s7 + $0x8e8] sm:$0xff] }
 0x229   :  { %6010 = vmatpush1.bf16.msra.mxu1 %v6009_v47  ;;  %v1324_v47 = vcombine.high %v8631_v46, %v8631_v46  ;;  %v6045_v46 = vpack.c.bf16 %v4904_v53, %v4902_v52  ;;  %v1604_v53 = vld [vmem:[#allocation4 + $0xd8] sm:$0xff] }
 0x22a   :  { %6012 = vmatprep.subr.bf16.mxu1 %v6011_v48  ;;  %v6043_v48 = vpack.c.bf16 %v4905_v44, %v4903_v43  ;;  %v4937_v43 = vld [vmem:[%s12494_s7 + $0x8f8] sm:$0xff]  ;;  %v1601_v44 = vld [vmem:[#allocation4 + $0xc0] sm:$0xff] }
 0x22d   :  { %6014 = vmatpush1.bf16.msra.mxu1 %v6013_v57  ;;  %v8839_v57 = vrot.slane %v1324_v47, %v7889_v49  ;;  %v1603_v47 = vld [vmem:[#allocation4 + $0xd0] sm:$0xff] }
 0x22e   :  { %6016 = vmatprep.subr.bf16.mxu1 %v6015_v45  ;;  %v6047_v45 = vpack.c.bf16 %v4909_v55, %v4907_v54  ;;  %v6075_v54 = vpack.c.bf16 %v4937_v43, %v4935_v42  ;;  %v4934_v55 = vld [vmem:[%s12494_s7 + $0x8e0] sm:$0xff]  ;;  %v4955_v42 = vld [vmem:[%s12494_s7 + $0x988] sm:$0xff]  ;;  %v1614_v43 = vld [vmem:[#allocation4 + $0x128] sm:$0xff] }
 0x231   :  { %6018 = vmatpush1.bf16.msra.mxu1 %v6017_v60  ;;  %v6049_v60 = vpack.c.bf16 %v4908_v50, %v4906_v58  ;;  %v4941_v58 = vld [vmem:[%s12494_s7 + $0x918] sm:$0xff]  ;;  %v6179_v50 = vpack.c.bf16 %v1604_v53, %v1603_v47  ;;  %v4956_v53 = vld [vmem:[%s12494_s7 + $0x990] sm:$0xff] }
 0x232   :  { %6020 = vmatprep.subr.bf16.mxu1 %v6019_v61  ;;  %v1340_v61 = vcombine.high %v8839_v57, %v8839_v57 }
 0x235   :  { %6022 = vmatpush1.bf16.msra.mxu1 %v6021_v4  ;;  %v4917_v4 = vld [vmem:[%s12494_s7 + $0x858] sm:$0xff] }
 0x236   :  { %6024 = vmatprep.subr.bf16.mxu1 %v6023_v29  ;;  %v6053_v29 = vpack.c.bf16 %v4912_v3, %v4910_v2  ;;  %v6055_v8 = vpack.c.bf16 %v4917_v4, %v4915_v62  ;;  %v4940_v2 = vld [vmem:[%s12494_s7 + $0x910] sm:$0xff]  ;;  %v4943_v3 = vld [vmem:[%s12494_s7 + $0x928] sm:$0xff]  ;;  %v4945_v62 = vld [vmem:[%s12494_s7 + $0x938] sm:$0xff]  ;;  %v6182_v4 = vpack.c.bf16 %v1606_v59, %v1605_v7 }
 0x237   :  { %v6083_v11 = vpack.c.bf16 %v4945_v62, %v4943_v3  ;;  %v4963_v3 = vld [vmem:[%s12494_s7 + $0x9c8] sm:$0xff]  ;;  %v4965_v62 = vld [vmem:[%s12494_s7 + $0x9d8] sm:$0xff] }
 0x239   :  { %6026 = vmatpush1.bf16.msra.mxu1 %v6025_v15 }
 0x23a   :  { %6028 = vmatprep.subr.bf16.mxu1 %v6027_v16  ;;  %v4918_v16 = vld [vmem:[%s12494_s7 + $0x860] sm:$0xff] }
 0x23b   :  { %v6061_v20 = vpack.c.bf16 %v4920_v17, %v4918_v16  ;;  %v1609_v17 = vld [vmem:[#allocation4 + $0x100] sm:$0xff] }
 0x23d   :  { %6030 = vmatpush1.bf16.msra.mxu1 %v6029_v21  ;;  %v6063_v21 = vpack.c.bf16 %v4925_v19, %v4923_v18  ;;  %v1610_v18 = vld [vmem:[#allocation4 + $0x108] sm:$0xff] }
 0x23e   :  { %6032 = vmatprep.subr.bf16.mxu1 %v6031_v22  ;;  %v4922_v22 = vld [vmem:[%s12494_s7 + $0x880] sm:$0xff] }
 0x23f   :  { %v6065_v26 = vpack.c.bf16 %v4924_v24, %v4922_v22  ;;  %v4946_v24 = vld [vmem:[%s12494_s7 + $0x940] sm:$0xff] }
 0x241   :  { %6034 = vmatpush1.bf16.msra.mxu1 %v6033_v27  ;;  %v6067_v27 = vpack.c.bf16 %v4929_v25, %v4927_v9  ;;  %v4948_v9 = vld [vmem:[%s12494_s7 + $0x950] sm:$0xff]  ;;  %v4951_v25 = vld [vmem:[%s12494_s7 + $0x968] sm:$0xff] }
 0x242   :  { %6036 = vmatprep.subr.bf16.mxu1 %v6035_v38  ;;  %v4926_v38 = vld [vmem:[%s12494_s7 + $0x8a0] sm:$0xff] }
 0x243   :  { %v6069_v31 = vpack.c.bf16 %v4928_v51, %v4926_v38  ;;  %v1612_v38 = vld [vmem:[#allocation4 + $0x118] sm:$0xff]  ;;  %v6089_v51 = vpack.c.bf16 %v4948_v9, %v4946_v24  ;;  %v4966_v24 = vld [vmem:[%s12494_s7 + $0x9e0] sm:$0xff]  ;;  %v4968_v9 = vld [vmem:[%s12494_s7 + $0x9f0] sm:$0xff] }
 0x245   :  { %6038 = vmatpush1.bf16.msra.mxu1 %v6037_v32  ;;  %v6071_v32 = vpack.c.bf16 %v4933_v30, %v4931_v28  ;;  %v1080_v30 = vrot.slane %v8610_v13, %v8075_v37 }
 0x246   :  { %6040 = vmatprep.subr.bf16.mxu1 %v6039_v36  ;;  %v4930_v36 = vld [vmem:[%s12494_s7 + $0x8c0] sm:$0xff] }
 0x249   :  { %6042 = vmatpush1.bf16.msra.mxu1 %v6041_v23  ;;  %v1602_v23 = vld [vmem:[#allocation4 + $0xc8] sm:$0xff] }
 0x24a   :  { %6044 = vmatprep.subr.bf16.mxu1 %v6043_v48  ;;  %v6073_v48 = vpack.c.bf16 %v4932_v40, %v4930_v36  ;;  %v6176_v52 = vpack.c.bf16 %v1602_v23, %v1601_v44  ;;  %v4950_v36 = vld [vmem:[%s12494_s7 + $0x960] sm:$0xff]  ;;  %v4952_v40 = vld [vmem:[%s12494_s7 + $0x970] sm:$0xff] }
 0x24b   :  { %v6093_v44 = vpack.c.bf16 %v4952_v40, %v4950_v36 }
 0x24c   :  { %6177 = vmatpush1.bf16.msra.mxu0 %v6176_v52  ;;  %v4954_v52 = vld [vmem:[%s12494_s7 + $0x980] sm:$0xff] }
 0x24d   :  { %6046 = vmatpush1.bf16.msra.mxu1 %v6045_v46  ;;  %v4936_v46 = vld [vmem:[%s12494_s7 + $0x8f0] sm:$0xff]  ;;  %6178 = vmatprep.subr.bf16.mxu0 %v12509_v0  ;;  %v6097_v7 = vpack.c.bf16 %v4956_v53, %v4954_v52 }
 0x24e   :  { %6048 = vmatprep.subr.bf16.mxu1 %v6047_v45  ;;  %v4939_v45 = vld [vmem:[%s12494_s7 + $0x908] sm:$0xff] }
 0x250   :  { %1420 = vmatmul.mubr.f32.vlgmr.msra.gmra.mrb[4].mxu1 %v8637_v56  ;;  %v4921_v56 = vld [vmem:[%s12494_s7 + $0x878] sm:$0xff]  ;;  %6180 = vmatpush1.bf16.msra.mxu0 %v6179_v50  ;;  %v1616_v50 = vld [vmem:[#allocation4 + $0x138] sm:$0xff] }
 0x251   :  { %6050 = vmatpush1.bf16.msra.mxu1 %v6049_v60  ;;  %1490 = vmatprep.mubr.f32.mxu1 %v1340_v61  ;;  %v6059_v15 = vpack.c.bf16 %v4921_v56, %v4919_v12  ;;  %v6077_v60 = vpack.c.bf16 %v4936_v46, %v4934_v55  ;;  %v6079_v61 = vpack.c.bf16 %v4941_v58, %v4939_v45  ;;  %v4942_v12 = vld [vmem:[%s12494_s7 + $0x920] sm:$0xff]  ;;  %v4944_v56 = vld [vmem:[%s12494_s7 + $0x930] sm:$0xff]  ;;  %v4959_v55 = vld [vmem:[%s12494_s7 + $0x9a8] sm:$0xff] }
 0x252   :  { %6052 = vmatprep.subr.bf16.mxu1 %v6051_v63  ;;  %v4938_v63 = vld [vmem:[%s12494_s7 + $0x900] sm:$0xff]  ;;  %6181 = vmatprep.subr.bf16.mxu0 %v12509_v0  ;;  %v6085_v19 = vpack.c.bf16 %v4944_v56, %v4942_v12  ;;  %v4961_v46 = vld [vmem:[%s12494_s7 + $0x9b8] sm:$0xff]  ;;  %v6103_v12 = vpack.c.bf16 %v4965_v62, %v4963_v3  ;;  %v4992_v62 = vld [vmem:[%s12494_s7 + $0xab0] sm:$0xff] }
 0x253   :  { %v6081_v10 = vpack.c.bf16 %v4940_v2, %v4938_v63  ;;  %v1615_v58 = vld [vmem:[#allocation4 + $0x130] sm:$0xff]  ;;  %v4960_v2 = vld [vmem:[%s12494_s7 + $0x9b0] sm:$0xff] }
 0x254   :  { %6183 = vmatpush1.bf16.msra.mxu0 %v6182_v4  ;;  %v4958_v63 = vld [vmem:[%s12494_s7 + $0x9a0] sm:$0xff]  ;;  %v6197_v4 = vpack.c.bf16 %v1616_v50, %v1615_v58 }
 0x255   :  { %6054 = vmatpush1.bf16.msra.mxu1 %v6053_v29  ;;  %v1607_v29 = vld [vmem:[#allocation4 + $0xf0] sm:$0xff]  ;;  %6184 = vmatprep.subr.bf16.mxu0 %v12509_v0 }
 0x256   :  { %6056 = vmatprep.subr.bf16.mxu1 %v6055_v8  ;;  %v1608_v8 = vld [vmem:[#allocation4 + $0xf8] sm:$0xff]  ;;  %v4962_v56 = vld [vmem:[%s12494_s7 + $0x9c0] sm:$0xff] }
 0x257   :  { %v6185_v16 = vpack.c.bf16 %v1608_v8, %v1607_v29  ;;  %v1617_v29 = vld [vmem:[#allocation4 + $0x140] sm:$0xff]  ;;  %v1618_v8 = vld [vmem:[#allocation4 + $0x148] sm:$0xff]  ;;  %v4990_v3 = vld [vmem:[%s12494_s7 + $0xaa0] sm:$0xff] }
 0x259   :  { %6058 = vmatpush1.bf16.msra.mxu1 %v6057_v14  ;;  %v4947_v14 = vld [vmem:[%s12494_s7 + $0x948] sm:$0xff]  ;;  %6186 = vmatpush1.bf16.msra.mxu0 %v6185_v16  ;;  %v4969_v16 = vld [vmem:[%s12494_s7 + $0x9f8] sm:$0xff] }
 0x25a   :  { %6060 = vmatprep.subr.bf16.mxu1 %v6059_v15  ;;  %v4949_v15 = vld [vmem:[%s12494_s7 + $0x958] sm:$0xff]  ;;  %6187 = vmatprep.subr.bf16.mxu0 %v12509_v0 }
 0x25b   :  { %v6087_v22 = vpack.c.bf16 %v4949_v15, %v4947_v14  ;;  %v4964_v14 = vld [vmem:[%s12494_s7 + $0x9d0] sm:$0xff]  ;;  %v4967_v15 = vld [vmem:[%s12494_s7 + $0x9e8] sm:$0xff] }
 0x25d   :  { %6062 = vmatpush1.bf16.msra.mxu1 %v6061_v20  ;;  %v1022_v20 = vrot.slane %v8600_v5, %v8075_v37  ;;  %v4957_v37 = vld [vmem:[%s12494_s7 + $0x998] sm:$0xff] }
 0x25e   :  { %6064 = vmatprep.subr.bf16.mxu1 %v6063_v21  ;;  %v1026_v21 = vrot.slane %v8600_v5, %v8078_v39  ;;  %v6188_v5 = vpack.c.bf16 %v1610_v18, %v1609_v17  ;;  %v6200_v17 = vpack.c.bf16 %v1618_v8, %v1617_v29  ;;  %v1619_v18 = vld [vmem:[#allocation4 + $0x150] sm:$0xff]  ;;  %v4997_v29 = vld [vmem:[%s12494_s7 + $0xad8] sm:$0xff]  ;;  %v6133_v8 = vpack.c.bf16 %v4992_v62, %v4990_v3  ;;  %v5031_v3 = vld [vmem:[%s12494_s7 + $0xbe8] sm:$0xff] }
 0x25f   :  { %v5033_v62 = vld [vmem:[%s12494_s7 + $0xbf8] sm:$0xff] }
 0x260   :  { %v1044_v28 = vcombine.low %v1022_v20, %v1026_v21  ;;  %6189 = vmatpush1.bf16.msra.mxu0 %v6188_v5  ;;  %v6105_v20 = vpack.c.bf16 %v4964_v14, %v4962_v56  ;;  %v4999_v56 = vld [vmem:[%s12494_s7 + $0xae8] sm:$0xff]  ;;  %v5001_v14 = vld [vmem:[%s12494_s7 + $0xaf8] sm:$0xff] }
 0x261   :  { %6066 = vmatpush1.bf16.msra.mxu1 %v6065_v26  ;;  %v4953_v26 = vld [vmem:[%s12494_s7 + $0x978] sm:$0xff]  ;;  %6190 = vmatprep.subr.bf16.mxu0 %v12509_v0 }
 0x262   :  { %6068 = vmatprep.subr.bf16.mxu1 %v6067_v27  ;;  %v1611_v27 = vld [vmem:[#allocation4 + $0x110] sm:$0xff]  ;;  %v1051_v23 = vrot.slane %v1044_v28, %v7889_v49 }
 0x263   :  { %v4970_v28 = vld [vmem:[%s12494_s7 + $0xa00] sm:$0xff] }
 0x265   :  { %6070 = vmatpush1.bf16.msra.mxu1 %v6069_v31  ;;  %v1084_v31 = vrot.slane %v8610_v13, %v8078_v39  ;;  %v6191_v39 = vpack.c.bf16 %v1612_v38, %v1611_v27  ;;  %v1613_v13 = vld [vmem:[#allocation4 + $0x120] sm:$0xff]  ;;  %v6109_v27 = vpack.c.bf16 %v4968_v9, %v4966_v24  ;;  %v5002_v24 = vld [vmem:[%s12494_s7 + $0xb00] sm:$0xff] }
 0x266   :  { %6072 = vmatprep.subr.bf16.mxu1 %v6071_v32  ;;  %v6091_v32 = vpack.c.bf16 %v4953_v26, %v4951_v25  ;;  %v6194_v45 = vpack.c.bf16 %v1614_v43, %v1613_v13  ;;  %v4971_v25 = vld [vmem:[%s12494_s7 + $0xa08] sm:$0xff]  ;;  %v4973_v26 = vld [vmem:[%s12494_s7 + $0xa18] sm:$0xff]  ;;  %v5004_v9 = vld [vmem:[%s12494_s7 + $0xb10] sm:$0xff] }
 0x267   :  { %v1102_v47 = vcombine.low %v1080_v30, %v1084_v31  ;;  %6192 = vmatpush1.bf16.msra.mxu0 %v6191_v39  ;;  %v4972_v30 = vld [vmem:[%s12494_s7 + $0xa10] sm:$0xff]  ;;  %v4975_v31 = vld [vmem:[%s12494_s7 + $0xa28] sm:$0xff]  ;;  %v4981_v13 = vld [vmem:[%s12494_s7 + $0xa58] sm:$0xff] }
 0x268   :  { %6193 = vmatprep.subr.bf16.mxu0 %v12509_v0  ;;  %v4979_v39 = vld [vmem:[%s12494_s7 + $0xa48] sm:$0xff] }
 0x269   :  { %6074 = vmatpush1.bf16.msra.mxu1 %v6073_v48  ;;  %v6095_v48 = vpack.c.bf16 %v4957_v37, %v4955_v42  ;;  %v4974_v42 = vld [vmem:[%s12494_s7 + $0xa20] sm:$0xff]  ;;  %v4976_v37 = vld [vmem:[%s12494_s7 + $0xa30] sm:$0xff] }
 0x26a   :  { %6076 = vmatprep.subr.bf16.mxu1 %v6075_v54  ;;  %v997_v54 = vld [vmem:[%s12607_s19 + $0x8] sm:$0xf]  ;;  %v6117_v43 = vpack.c.bf16 %v4976_v37, %v4974_v42  ;;  %v5017_v37 = vld [vmem:[%s12494_s7 + $0xb78] sm:$0xff] }
 0x26b   :  { %v1055_v59 = vmul.f32 %v1051_v23, %v997_v54  ;;  %6195 = vmatpush1.bf16.msra.mxu0 %v6194_v45  ;;  %v4978_v23 = vld [vmem:[%s12494_s7 + $0xa40] sm:$0xff]  ;;  %v4989_v45 = vld [vmem:[%s12494_s7 + $0xa98] sm:$0xff]  ;;  %v5015_v42 = vld [vmem:[%s12494_s7 + $0xb68] sm:$0xff] }
 0x26c   :  { %6196 = vmatprep.subr.bf16.mxu0 %v12509_v0  ;;  %v4982_v54 = vld [vmem:[%s12494_s7 + $0xa60] sm:$0xff] }
 0x26d   :  { %6078 = vmatpush1.bf16.msra.mxu1 %v6077_v60  ;;  %v1109_v60 = vrot.slane %v1102_v47, %v7889_v49  ;;  %v4980_v47 = vld [vmem:[%s12494_s7 + $0xa50] sm:$0xff] }
 0x26e   :  { %6080 = vmatprep.subr.bf16.mxu1 %v6079_v61  ;;  %v6099_v61 = vpack.c.bf16 %v4961_v46, %v4959_v55  ;;  %v6121_v52 = vpack.c.bf16 %v4980_v47, %v4978_v23  ;;  %v4984_v55 = vld [vmem:[%s12494_s7 + $0xa70] sm:$0xff]  ;;  %v4987_v46 = vld [vmem:[%s12494_s7 + $0xa88] sm:$0xff]  ;;  %v5021_v47 = vld [vmem:[%s12494_s7 + $0xb98] sm:$0xff] }
 0x26f   :  { %6198 = vmatpush1.bf16.msra.mxu0 %v6197_v4  ;;  %v6125_v58 = vpack.c.bf16 %v4984_v55, %v4982_v54  ;;  %v6127_v50 = vpack.c.bf16 %v4989_v45, %v4987_v46  ;;  %v4995_v4 = vld [vmem:[%s12494_s7 + $0xac8] sm:$0xff]  ;;  %v5025_v55 = vld [vmem:[%s12494_s7 + $0xbb8] sm:$0xff] }
 0x270   :  { %6199 = vmatprep.subr.bf16.mxu0 %v12509_v0  ;;  %v5019_v23 = vld [vmem:[%s12494_s7 + $0xb88] sm:$0xff] }
 0x271   :  { %6082 = vmatpush1.bf16.msra.mxu1 %v6081_v10  ;;  %v6101_v10 = vpack.c.bf16 %v4960_v2, %v4958_v63  ;;  %v5023_v54 = vld [vmem:[%s12494_s7 + $0xba8] sm:$0xff] }
 0x272   :  { %6084 = vmatprep.subr.bf16.mxu1 %v6083_v11  ;;  %v1113_v11 = vadd.f32 %v1109_v60, %v1055_v59  ;;  %v4988_v59 = vld [vmem:[%s12494_s7 + $0xa90] sm:$0xff]  ;;  %v4991_v60 = vld [vmem:[%s12494_s7 + $0xaa8] sm:$0xff]  ;;  %v6163_v45 = vpack.c.bf16 %v5025_v55, %v5023_v54  ;;  %v5043_v55 = vld [vmem:[%s12493_s6 + $0x140] sm:$0xff] }
 0x273   :  { %6201 = vmatpush1.bf16.msra.mxu0 %v6200_v17  ;;  %v4998_v17 = vld [vmem:[%s12494_s7 + $0xae0] sm:$0xff] }
 0x274   :  { %v1115_v21 = vmax.f32 %v1113_v11, 0.0  ;;  %6202 = vmatprep.subr.bf16.mxu0 %v12509_v0  ;;  %v4994_v11 = vld [vmem:[%s12494_s7 + $0xac0] sm:$0xff] }
 0x275   :  { %6086 = vmatpush1.bf16.msra.mxu1 %v6085_v19  ;;  %v1620_v19 = vld [vmem:[#allocation4 + $0x158] sm:$0xff] }
 0x276   :  { %6088 = vmatprep.subr.bf16.mxu1 %v6087_v22  ;;  %v6107_v22 = vpack.c.bf16 %v4969_v16, %v4967_v15  ;;  %v6203_v5 = vpack.c.bf16 %v1620_v19, %v1619_v18  ;;  %v9059_v38 = vrot.slane %v1115_v21, %v7889_v49  ;;  %v6113_v49 = vpack.c.bf16 %v4972_v30, %v4970_v28  ;;  %v5000_v18 = vld [vmem:[%s12494_s7 + $0xaf0] sm:$0xff]  ;;  %v5003_v19 = vld [vmem:[%s12494_s7 + $0xb08] sm:$0xff] }
 0x277   :  { %v6139_v16 = vpack.c.bf16 %v5001_v14, %v4999_v56  ;;  %v6141_v21 = vpack.c.bf16 %v5000_v18, %v4998_v17  ;;  %v5008_v28 = vld [vmem:[%s12494_s7 + $0xb30] sm:$0xff]  ;;  %v5011_v30 = vld [vmem:[%s12494_s7 + $0xb48] sm:$0xff]  ;;  %v1623_v17 = vld [vmem:[#allocation4 + $0x170] sm:$0xff] }
 0x278   :  { %6204 = vmatpush1.bf16.msra.mxu0 %v6203_v5  ;;  %v1348_v36 = vcombine.high %v9059_v38, %v9059_v38  ;;  %v6145_v5 = vpack.c.bf16 %v5004_v9, %v5002_v24  ;;  %v1621_v14 = vld [vmem:[#allocation4 + $0x160] sm:$0xff]  ;;  %v1624_v18 = vld [vmem:[#allocation4 + $0x178] sm:$0xff] }
 0x279   :  { %6090 = vmatpush1.bf16.msra.mxu1 %v6089_v51  ;;  %v6111_v51 = vpack.c.bf16 %v4973_v26, %v4971_v25  ;;  %6205 = vmatprep.subr.bf16.mxu0 %v12509_v0  ;;  %v5007_v25 = vld [vmem:[%s12494_s7 + $0xb28] sm:$0xff]  ;;  %v5009_v26 = vld [vmem:[%s12494_s7 + $0xb38] sm:$0xff] }
 0x27a   :  { %6092 = vmatprep.subr.bf16.mxu1 %v6091_v32  ;;  %v4977_v32 = vld [vmem:[%s12494_s7 + $0xa38] sm:$0xff] }
 0x27b   :  { %v6115_v40 = vpack.c.bf16 %v4977_v32, %v4975_v31  ;;  %v5013_v31 = vld [vmem:[%s12494_s7 + $0xb58] sm:$0xff] }
 0x27d   :  { %6094 = vmatpush1.bf16.msra.mxu1 %v6093_v44  ;;  %v6119_v44 = vpack.c.bf16 %v4981_v13, %v4979_v39  ;;  %v6155_v13 = vpack.c.bf16 %v5017_v37, %v5015_v42 }
 0x27e   :  { %6096 = vmatprep.subr.bf16.mxu1 %v6095_v48  ;;  %v4983_v48 = vld [vmem:[%s12494_s7 + $0xa68] sm:$0xff] }
 0x281   :  { %6098 = vmatpush1.bf16.msra.mxu1 %v6097_v7  ;;  %v4986_v7 = vld [vmem:[%s12494_s7 + $0xa80] sm:$0xff] }
 0x282   :  { %6100 = vmatprep.subr.bf16.mxu1 %v6099_v61  ;;  %v4993_v61 = vld [vmem:[%s12494_s7 + $0xab8] sm:$0xff]  ;;  %v6129_v63 = vpack.c.bf16 %v4988_v59, %v4986_v7  ;;  %v5027_v7 = vld [vmem:[%s12494_s7 + $0xbc8] sm:$0xff] }
 0x283   :  { %v6131_v2 = vpack.c.bf16 %v4993_v61, %v4991_v60  ;;  %v5029_v59 = vld [vmem:[%s12494_s7 + $0xbd8] sm:$0xff] }
 0x284   :  { %v6167_v61 = vpack.c.bf16 %v5029_v59, %v5027_v7  ;;  %v1699_v59 = vld [vmem:[%s12490_s3] sm:$0x3] }
 0x285   :  { %6102 = vmatpush1.bf16.msra.mxu1 %v6101_v10  ;;  %v6135_v10 = vpack.c.bf16 %v4997_v29, %v4995_v4  ;;  %v6171_v29 = vpack.c.bf16 %v5033_v62, %v5031_v3  ;;  %v1702_v62 = vld [vmem:[#allocation2 + $0x33] ss:$0 sm:$0xff] }
 0x286   :  { %6104 = vmatprep.subr.bf16.mxu1 %v6103_v12  ;;  %v4996_v12 = vld [vmem:[%s12494_s7 + $0xad0] sm:$0xff] }
 0x287   :  { %v6137_v15 = vpack.c.bf16 %v4996_v12, %v4994_v11 }
 0x289   :  { %6106 = vmatpush1.bf16.msra.mxu1 %v6105_v20  ;;  %v5005_v20 = vld [vmem:[%s12494_s7 + $0xb18] sm:$0xff] }
 0x28a   :  { %6108 = vmatprep.subr.bf16.mxu1 %v6107_v22  ;;  %v6143_v22 = vpack.c.bf16 %v5005_v20, %v5003_v19  ;;  %v6209_v19 = vpack.c.bf16 %v1624_v18, %v1623_v17  ;;  %v1310_v20 = vld [vmem:[#allocation2 + $0x67] ss:$8 sm:$0x3]  ;;  %v5054_v17 = vld [vmem:[%s12493_s6 + $0x198] sm:$0xff] }
 0x28b   :  { %v1319_v24 = vrot.slane %v1310_v20, %v7871_v34 }
 0x28d   :  { %6110 = vmatpush1.bf16.msra.mxu1 %v6109_v27  ;;  %v6147_v27 = vpack.c.bf16 %v5009_v26, %v5007_v25 }
 0x28e   :  { %6112 = vmatprep.subr.bf16.mxu1 %v6111_v51  ;;  %v5006_v51 = vld [vmem:[%s12494_s7 + $0xb20] sm:$0xff] }
 0x28f   :  { %v6149_v32 = vpack.c.bf16 %v5008_v28, %v5006_v51 }
 0x290   :  { %1491 = vmatmul.mubr.f32.vlgmr.msra.gmra.mrb[4].mxu1 %v8839_v57  ;;  %v4985_v57 = vld [vmem:[%s12494_s7 + $0xa78] sm:$0xff] }
 0x291   :  { %6114 = vmatpush1.bf16.msra.mxu1 %v6113_v49  ;;  %1561 = vmatprep.mubr.f32.mxu1 %v1348_v36  ;;  %v6123_v53 = vpack.c.bf16 %v4985_v57, %v4983_v48  ;;  %v6151_v49 = vpack.c.bf16 %v5013_v31, %v5011_v30  ;;  %v5010_v36 = vld [vmem:[%s12494_s7 + $0xb40] sm:$0xff]  ;;  %v6159_v57 = vpack.c.bf16 %v5021_v47, %v5019_v23 }
 0x292   :  { %6116 = vmatprep.subr.bf16.mxu1 %v6115_v40  ;;  %v5012_v40 = vld [vmem:[%s12494_s7 + $0xb50] sm:$0xff]  ;;  %v5039_v47 = vld [vmem:[%s12493_s6 + $0x120] sm:$0xff] }
 0x293   :  { %v6153_v39 = vpack.c.bf16 %v5012_v40, %v5010_v36  ;;  %v5035_v36 = vld [vmem:[%s12493_s6 + $0x100] sm:$0xff]  ;;  %v5036_v40 = vld [vmem:[%s12493_s6 + $0x108] sm:$0xff] }
 0x295   :  { %6118 = vmatpush1.bf16.msra.mxu1 %v6117_v43  ;;  %v5014_v43 = vld [vmem:[%s12494_s7 + $0xb60] sm:$0xff] }
 0x296   :  { %6120 = vmatprep.subr.bf16.mxu1 %v6119_v44  ;;  %v5016_v44 = vld [vmem:[%s12494_s7 + $0xb70] sm:$0xff] }
 0x297   :  { %v6157_v48 = vpack.c.bf16 %v5016_v44, %v5014_v43  ;;  %v5037_v43 = vld [vmem:[%s12493_s6 + $0x110] sm:$0xff]  ;;  %v5038_v44 = vld [vmem:[%s12493_s6 + $0x118] sm:$0xff] }
 0x298   :  { %v6215_v23 = vpack.c.bf16 %v5038_v44, %v5037_v43  ;;  %v1922_v43 = vld [vmem:[%s12496_s9] sm:$0xff] }
 0x299   :  { %6122 = vmatpush1.bf16.msra.mxu1 %v6121_v52  ;;  %v5018_v52 = vld [vmem:[%s12494_s7 + $0xb80] sm:$0xff] }
 0x29a   :  { %6124 = vmatprep.subr.bf16.mxu1 %v6123_v53  ;;  %v5020_v53 = vld [vmem:[%s12494_s7 + $0xb90] sm:$0xff]  ;;  %v1926_v44 = vld [vmem:[%s12496_s9 + $0x20] sm:$0xff] }
 0x29b   :  { %v6161_v46 = vpack.c.bf16 %v5020_v53, %v5018_v52  ;;  %v5041_v52 = vld [vmem:[%s12493_s6 + $0x130] sm:$0xff]  ;;  %v5042_v53 = vld [vmem:[%s12493_s6 + $0x138] sm:$0xff] }
 0x29c   :  { %v6221_v54 = vpack.c.bf16 %v5042_v53, %v5041_v52  ;;  %v1930_v53 = vld [vmem:[%s12496_s9 + $0x40] sm:$0xff] }
 0x29d   :  { %6126 = vmatpush1.bf16.msra.mxu1 %v6125_v58  ;;  %v5022_v58 = vld [vmem:[%s12494_s7 + $0xba0] sm:$0xff] }
 0x29e   :  { %6128 = vmatprep.subr.bf16.mxu1 %v6127_v50  ;;  %v5024_v50 = vld [vmem:[%s12494_s7 + $0xbb0] sm:$0xff] }
 0x29f   :  { %v6165_v60 = vpack.c.bf16 %v5024_v50, %v5022_v58  ;;  %v5045_v58 = vld [vmem:[%s12493_s6 + $0x150] sm:$0xff]  ;;  %v5046_v50 = vld [vmem:[%s12493_s6 + $0x158] sm:$0xff] }
 0x2a0   :  { %v6227_v7 = vpack.c.bf16 %v5046_v50, %v5045_v58  ;;  %v1938_v50 = vld [vmem:[%s12496_s9 + $0x80] sm:$0xff] }
 0x2a1   :  { %6130 = vmatpush1.bf16.msra.mxu1 %v6129_v63  ;;  %v5026_v63 = vld [vmem:[%s12494_s7 + $0xbc0] sm:$0xff] }
 0x2a2   :  { %6132 = vmatprep.subr.bf16.mxu1 %v6131_v2  ;;  %v5028_v2 = vld [vmem:[%s12494_s7 + $0xbd0] sm:$0xff] }
 0x2a3   :  { %v6169_v4 = vpack.c.bf16 %v5028_v2, %v5026_v63  ;;  %v5048_v63 = vld [vmem:[%s12493_s6 + $0x168] sm:$0xff] }
 0x2a5   :  { %6134 = vmatpush1.bf16.msra.mxu1 %v6133_v8  ;;  %v5030_v8 = vld [vmem:[%s12494_s7 + $0xbe0] sm:$0xff] }
 0x2a6   :  { %6136 = vmatprep.subr.bf16.mxu1 %v6135_v10  ;;  %v5032_v10 = vld [vmem:[%s12494_s7 + $0xbf0] sm:$0xff] }
 0x2a7   :  { %v6173_v11 = vpack.c.bf16 %v5032_v10, %v5030_v8 }
 0x2a9   :  { %6138 = vmatpush1.bf16.msra.mxu1 %v6137_v15  ;;  %v1622_v15 = vld [vmem:[#allocation4 + $0x168] sm:$0xff] }
 0x2aa   :  { %6140 = vmatprep.subr.bf16.mxu1 %v6139_v16  ;;  %v6206_v16 = vpack.c.bf16 %v1622_v15, %v1621_v14  ;;  %v5052_v14 = vld [vmem:[%s12493_s6 + $0x188] sm:$0xff]  ;;  %v5053_v15 = vld [vmem:[%s12493_s6 + $0x190] sm:$0xff] }
 0x2ab   :  { %v6239_v18 = vpack.c.bf16 %v5054_v17, %v5053_v15  ;;  %v1967_v15 = vld [vmem:[%s12496_s9 + $0x168] sm:$0xff]  ;;  %v1962_v17 = vld [vmem:[%s12496_s9 + $0x140] sm:$0xff] }
 0x2ac   :  { %6207 = vmatpush1.bf16.msra.mxu0 %v6206_v16 }
 0x2ad   :  { %6142 = vmatpush1.bf16.msra.mxu1 %v6141_v21  ;;  %6208 = vmatprep.subr.bf16.mxu0 %v12509_v0  ;;  %v1315_v21 = vrot.slane %v1310_v20, %v7868_v33  ;;  %v5056_v20 = vld [vmem:[%s12493_s6 + $0x1a8] sm:$0xff] }
 0x2ae   :  { %6144 = vmatprep.subr.bf16.mxu1 %v6143_v22  ;;  %v1584_v22 = vld [vmem:[#allocation2 + $0x31] ss:$8 sm:$0x3] }
 0x2af   :  { %v1593_v30 = vrot.slane %v1584_v22, %v7871_v34 }
 0x2b0   :  { %6210 = vmatpush1.bf16.msra.mxu0 %v6209_v19  ;;  %v5055_v19 = vld [vmem:[%s12493_s6 + $0x1a0] sm:$0xff] }
 0x2b1   :  { %6146 = vmatpush1.bf16.msra.mxu1 %v6145_v5  ;;  %6211 = vmatprep.subr.bf16.mxu0 %v12509_v0 }
 0x2b2   :  { %6148 = vmatprep.subr.bf16.mxu1 %v6147_v27  ;;  %v1589_v27 = vrot.slane %v1584_v22, %v7868_v33  ;;  %v5058_v22 = vld [vmem:[%s12493_s6 + $0x1b8] sm:$0xff] }
 0x2b5   :  { %6150 = vmatpush1.bf16.msra.mxu1 %v6149_v32 }
 0x2b6   :  { %6152 = vmatprep.subr.bf16.mxu1 %v6151_v49 }
 0x2b9   :  { %6154 = vmatpush1.bf16.msra.mxu1 %v6153_v39  ;;  %v6212_v39 = vpack.c.bf16 %v5036_v40, %v5035_v36  ;;  %v1923_v40 = vld [vmem:[%s12496_s9 + $0x8] sm:$0xff] }
 0x2ba   :  { %6156 = vmatprep.subr.bf16.mxu1 %v6155_v13 }
 0x2bd   :  { %6158 = vmatpush1.bf16.msra.mxu1 %v6157_v48  ;;  %v5040_v48 = vld [vmem:[%s12493_s6 + $0x128] sm:$0xff] }
 0x2be   :  { %6160 = vmatprep.subr.bf16.mxu1 %v6159_v57  ;;  %v6218_v57 = vpack.c.bf16 %v5040_v48, %v5039_v47  ;;  %v9403_v47 = vpack.c.bf16 %v1926_v44, %v1922_v43  ;;  %v1931_v48 = vld [vmem:[%s12496_s9 + $0x48] sm:$0xff]  ;;  %v1994_v43 = vld [vmem:[%s12496_s9 + $0x240] sm:$0xff] }
 0x2bf   :  { %v1998_v44 = vld [vmem:[%s12496_s9 + $0x260] sm:$0xff] }
 0x2c1   :  { %6162 = vmatpush1.bf16.msra.mxu1 %v6161_v46  ;;  %v5044_v46 = vld [vmem:[%s12493_s6 + $0x148] sm:$0xff] }
 0x2c2   :  { %6164 = vmatprep.subr.bf16.mxu1 %v6163_v45  ;;  %v6224_v45 = vpack.c.bf16 %v5044_v46, %v5043_v55  ;;  %v1939_v46 = vld [vmem:[%s12496_s9 + $0x88] sm:$0xff] }
 0x2c5   :  { %6166 = vmatpush1.bf16.msra.mxu1 %v6165_v60  ;;  %v1700_v60 = vld [vmem:[#allocation2 + $0x32] ss:$0 sm:$0xff] }
 0x2c6   :  { %6168 = vmatprep.subr.bf16.mxu1 %v6167_v61  ;;  %v5047_v61 = vld [vmem:[%s12493_s6 + $0x160] sm:$0xff]  ;;  %v1701_v2 = vmul.f32 %v1700_v60, %v1699_v59  ;;  %v1947_v60 = vld [vmem:[%s12496_s9 + $0xc8] sm:$0xff] }
 0x2c7   :  { %v6230_v3 = vpack.c.bf16 %v5048_v63, %v5047_v61  ;;  %v1951_v61 = vld [vmem:[%s12496_s9 + $0xe8] sm:$0xff] }
 0x2c8   :  { %v1703_v8 = vadd.f32 %v1702_v62, %v1701_v2  ;;  %v9449_v63 = vpack.c.bf16 %v1951_v61, %v1947_v60  ;;  %v1946_v2 = vld [vmem:[%s12496_s9 + $0xc0] sm:$0xff]  ;;  %v2015_v60 = vld [vmem:[%s12496_s9 + $0x2e8] sm:$0xff] }
 0x2c9   :  { %6170 = vmatpush1.bf16.msra.mxu1 %v6169_v4  ;;  %v5049_v4 = vld [vmem:[%s12493_s6 + $0x170] sm:$0xff] }
 0x2ca   :  { %6172 = vmatprep.subr.bf16.mxu1 %v6171_v29  ;;  %v5050_v29 = vld [vmem:[%s12493_s6 + $0x178] sm:$0xff] }
 0x2cb   :  { %v6233_v10 = vpack.c.bf16 %v5050_v29, %v5049_v4  ;;  %v1955_v4 = vld [vmem:[%s12496_s9 + $0x108] sm:$0xff] }
 0x2cc   :  { %v1959_v29 = vld [vmem:[%s12496_s9 + $0x128] sm:$0xff] }
 0x2cd   :  { %6174 = vmatpush1.bf16.msra.mxu1 %v6173_v11  ;;  %v1704_v11 = vmax.f32 %v1703_v8, 0.0  ;;  %v9467_v8 = vpack.c.bf16 %v1959_v29, %v1955_v4  ;;  %v2019_v29 = vld [vmem:[%s12496_s9 + $0x308] sm:$0xff] }
 0x2ce   :  { %6235 = vmatprep.subr.bf16.mxu1 %v12509_v0 }
 0x2d0   :  { %1562 = vmatmul.mubr.f32.vlgmr.msra.gmra.mrb[4].mxu1 %v9059_v38  ;;  %v1569_v38 = vld [vmem:[#allocation2 + $0x30] ss:$8 sm:$0x3] }
 0x2d1   :  { %5529 = vmatprep.mubr.msk.f32.mxu1 %vm7640_vm0, %v12511_v1  ;;  %v1574_v9 = vrot.slane %v1569_v38, %v7868_v33  ;;  %v1578_v26 = vrot.slane %v1569_v38, %v7871_v34  ;;  %v6242_v38 = vpack.c.bf16 %v5056_v20, %v5055_v19  ;;  %v1971_v20 = vld [vmem:[%s12496_s9 + $0x188] sm:$0xff]  ;;  %v2016_v33 = vld [vmem:[%s12496_s9 + $0x2f0] sm:$0xff]  ;;  %v2021_v34 = vld [vmem:[%s12496_s9 + $0x318] sm:$0xff] }
 0x2e3   :  { %v9255_v12 = vpop.f32.mrb[2].mxu1 }
 0x2e4   :  { %v994_v56 = vpop.f32.mrb[3].mxu1 }
 0x2e5   :  { %v5051_v56 = vld [vmem:[%s12493_s6 + $0x180] sm:$0xff] }
 0x2e6   :  { %v6236_v16 = vpack.c.bf16 %v5052_v14, %v5051_v56  ;;  %v1963_v14 = vld [vmem:[%s12496_s9 + $0x148] sm:$0xff] }
 0x2e8   :  { %6237 = vmatpush3.bf16.msra.mxu1 %v6236_v16  ;;  %v9485_v16 = vpack.c.bf16 %v1967_v15, %v1963_v14  ;;  %v2018_v14 = vld [vmem:[%s12496_s9 + $0x300] sm:$0xff] }
 0x2e9   :  { %6238 = vmatprep.subr.bf16.mxu1 %v12509_v0  ;;  %v2022_v15 = vld [vmem:[%s12496_s9 + $0x320] sm:$0xff] }
 0x2ec   :  { %6240 = vmatpush3.bf16.msra.mxu1 %v6239_v18  ;;  %v1966_v18 = vld [vmem:[%s12496_s9 + $0x160] sm:$0xff] }
 0x2ed   :  { %6241 = vmatprep.subr.bf16.mxu1 %v12509_v0  ;;  %v9494_v19 = vpack.c.bf16 %v1966_v18, %v1962_v17  ;;  %v9620_v17 = vpack.c.bf16 %v2022_v15, %v2018_v14  ;;  %v2027_v18 = vld [vmem:[%s12496_s9 + $0x348] sm:$0xff]  ;;  %v1937_v14 = vld [vmem:[%s12496_s9 + $0x78] sm:$0xff] }
 0x2ef   :  { %12612 = vst [vmem:[#allocation20_spill] sm:$0xff] %v9620_v17 }
 0x2f0   :  { %6243 = vmatpush3.bf16.msra.mxu1 %v6242_v38  ;;  %v1975_v38 = vld [vmem:[%s12496_s9 + $0x1a8] sm:$0xff] }
 0x2f1   :  { %6244 = vmatprep.subr.bf16.mxu1 %v12509_v0 }
 0x3a3   :  { %v1563_v25 = vpop.f32.mrb[4].mxu1 }
 0x3a4   :  { %v7471_v5 = vadd.f32 %v1563_v25, %v1315_v21  ;;  %v1565_v51 = vpop.f32.mrb[5].mxu1  ;;  %v5057_v21 = vld [vmem:[%s12493_s6 + $0x1b0] sm:$0xff]  ;;  %v5060_v25 = vld [vmem:[%s12493_s6 + $0x1c8] sm:$0xff] }
 0x3a5   :  { %v7472_v28 = vadd.f32 %v1565_v51, %v1319_v24  ;;  %v6245_v24 = vpack.c.bf16 %v5058_v22, %v5057_v21  ;;  %v9503_v21 = vpack.c.bf16 %v1975_v38, %v1971_v20  ;;  %v1970_v22 = vld [vmem:[%s12496_s9 + $0x180] sm:$0xff]  ;;  %v2031_v20 = vld [vmem:[%s12496_s9 + $0x368] sm:$0xff] }
 0x3a6   :  { %v1581_v31 = vmul.f32 %v7471_v5, %v1574_v9  ;;  %v5059_v9 = vld [vmem:[%s12493_s6 + $0x1c0] sm:$0xff]  ;;  %v5061_v5 = vld [vmem:[%s12493_s6 + $0x1d0] sm:$0xff]  ;;  %v9629_v38 = vpack.c.bf16 %v2031_v20, %v2027_v18 }
 0x3a7   :  { %v1582_v32 = vmul.f32 %v7472_v28, %v1578_v26  ;;  %6246 = vmatpush3.bf16.msra.mxu1 %v6245_v24  ;;  %v6248_v26 = vpack.c.bf16 %v5060_v25, %v5059_v9  ;;  %v5063_v28 = vld [vmem:[%s12493_s6 + $0x1e0] sm:$0xff]  ;;  %v1979_v25 = vld [vmem:[%s12496_s9 + $0x1c8] sm:$0xff] }
 0x3a8   :  { %v1596_v49 = vadd.f32 %v1589_v27, %v1581_v31  ;;  %6247 = vmatprep.subr.bf16.mxu1 %v12509_v0  ;;  %v5062_v27 = vld [vmem:[%s12493_s6 + $0x1d8] sm:$0xff]  ;;  %v1974_v24 = vld [vmem:[%s12496_s9 + $0x1a0] sm:$0xff]  ;;  %12613 = vst [vmem:[#allocation21_spill] sm:$0xff] %v9629_v38 }
 0x3a9   :  { %v1597_v42 = vadd.f32 %v1593_v30, %v1582_v32  ;;  %v6251_v51 = vpack.c.bf16 %v5062_v27, %v5061_v5  ;;  %v5064_v30 = vld [vmem:[%s12493_s6 + $0x1e8] sm:$0xff]  ;;  %v5065_v32 = vld [vmem:[%s12493_s6 + $0x1f0] sm:$0xff]  ;;  %v9512_v9 = vpack.c.bf16 %v1974_v24, %v1970_v22  ;;  %v1978_v27 = vld [vmem:[%s12496_s9 + $0x1c0] sm:$0xff] }
 0x3aa   :  { %v1598_v13 = vmax.f32 %v1596_v49, 0.0  ;;  %v6254_v31 = vpack.c.bf16 %v5064_v30, %v5063_v28  ;;  %v5066_v49 = vld [vmem:[%s12493_s6 + $0x1f8] sm:$0xff]  ;;  %v1987_v30 = vld [vmem:[%s12496_s9 + $0x208] sm:$0xff]  ;;  %v2026_v22 = vld [vmem:[%s12496_s9 + $0x340] sm:$0xff] }
 0x3ab   :  { %v1599_v37 = vmax.f32 %v1597_v42, 0.0  ;;  %6249 = vmatpush3.bf16.msra.mxu1 %v6248_v26  ;;  %v6257_v36 = vpack.c.bf16 %v5066_v49, %v5065_v32  ;;  %v1927_v42 = vld [vmem:[%s12496_s9 + $0x28] sm:$0xff]  ;;  %v1986_v49 = vld [vmem:[%s12496_s9 + $0x200] sm:$0xff] }
 0x3ac   :  { %6250 = vmatprep.subr.bf16.mxu1 %v12509_v0  ;;  %v1983_v26 = vld [vmem:[%s12496_s9 + $0x1e8] sm:$0xff]  ;;  %v2030_v24 = vld [vmem:[%s12496_s9 + $0x360] sm:$0xff] }
 0x3ad   :  { %5034 = vmatprep.mubr.msk.f32.mxu0 %vm922_vm1, %v1599_v37  ;;  %v1925_v37 = vld [vmem:[%s12496_s9 + $0x18] sm:$0xff]  ;;  %v9521_v5 = vpack.c.bf16 %v1983_v26, %v1979_v25  ;;  %v9638_v25 = vpack.c.bf16 %v2030_v24, %v2026_v22  ;;  %v2035_v26 = vld [vmem:[%s12496_s9 + $0x388] sm:$0xff]  ;;  %v1932_v24 = vld [vmem:[%s12496_s9 + $0x50] sm:$0xff] }
 0x3ae   :  { %1694 = vmatmul.mubr.f32.vlgmr.msra.gmra.mrb[4].mxu0 %v1598_v13  ;;  %v1929_v13 = vld [vmem:[%s12496_s9 + $0x38] sm:$0xff] }
 0x3af   :  { %6213 = vmatpush3.bf16.msra.mxu0 %v6212_v39  ;;  %5494 = vmatprep.mubr.msk.f32.mxu0 %vm7640_vm0, %v12511_v1  ;;  %v9390_v39 = vpack.c.bf16 %v1927_v42, %v1923_v40  ;;  %v1995_v42 = vld [vmem:[%s12496_s9 + $0x248] sm:$0xff]  ;;  %12614 = vst [vmem:[#allocation22_spill] sm:$0xff] %v9638_v25  ;;  %v2005_v1 = vld [vmem:[%s12496_s9 + $0x298] sm:$0xff] }
 0x3b0   :  { %6214 = vmatprep.subr.bf16.mxu0 %v12509_v0  ;;  %6252 = vmatpush3.bf16.msra.mxu1 %v6251_v51  ;;  %v1982_v51 = vld [vmem:[%s12496_s9 + $0x1e0] sm:$0xff] }
 0x3b1   :  { %6253 = vmatprep.subr.bf16.mxu1 %v12509_v0  ;;  %v9530_v28 = vpack.c.bf16 %v1982_v51, %v1978_v27  ;;  %v2039_v27 = vld [vmem:[%s12496_s9 + $0x3a8] sm:$0xff] }
 0x3b2   :  { %v9647_v51 = vpack.c.bf16 %v2039_v27, %v2035_v26  ;;  %v1936_v26 = vld [vmem:[%s12496_s9 + $0x70] sm:$0xff]  ;;  %v1941_v27 = vld [vmem:[%s12496_s9 + $0x98] sm:$0xff] }
 0x3b3   :  { %6216 = vmatpush3.bf16.msra.mxu0 %v6215_v23  ;;  %v9401_v23 = vpack.c.bf16 %v1929_v13, %v1925_v37  ;;  %v1999_v37 = vld [vmem:[%s12496_s9 + $0x268] sm:$0xff] }
 0x3b4   :  { %6217 = vmatprep.subr.bf16.mxu0 %v12509_v0  ;;  %6255 = vmatpush3.bf16.msra.mxu1 %v6254_v31  ;;  %v1991_v31 = vld [vmem:[%s12496_s9 + $0x228] sm:$0xff]  ;;  %v9557_v13 = vpack.c.bf16 %v1999_v37, %v1995_v42  ;;  %12615 = vst [vmem:[#allocation23_spill] sm:$0xff] %v9647_v51 }
 0x3b5   :  { %6256 = vmatprep.subr.bf16.mxu1 %v12509_v0  ;;  %v9539_v32 = vpack.c.bf16 %v1991_v31, %v1987_v30  ;;  %v2034_v30 = vld [vmem:[%s12496_s9 + $0x380] sm:$0xff]  ;;  %v2047_v42 = vld [vmem:[%s12496_s9 + $0x3e8] sm:$0xff] }
 0x3b6   :  { %v2038_v31 = vld [vmem:[%s12496_s9 + $0x3a0] sm:$0xff] }
 0x3b7   :  { %6219 = vmatpush3.bf16.msra.mxu0 %v6218_v57  ;;  %v1935_v57 = vld [vmem:[%s12496_s9 + $0x68] sm:$0xff] }
 0x3b8   :  { %6220 = vmatprep.subr.bf16.mxu0 %v12509_v0  ;;  %6258 = vmatpush3.bf16.msra.mxu1 %v6257_v36  ;;  %v9414_v52 = vpack.c.bf16 %v1935_v57, %v1931_v48  ;;  %v1990_v36 = vld [vmem:[%s12496_s9 + $0x220] sm:$0xff]  ;;  %v9566_v48 = vpack.c.bf16 %v1998_v44, %v1994_v43  ;;  %v2003_v57 = vld [vmem:[%s12496_s9 + $0x288] sm:$0xff] }
 0x3b9   :  { %6388 = vmatprep.subr.bf16.mxu1 %v9401_v23  ;;  %v9548_v40 = vpack.c.bf16 %v1990_v36, %v1986_v49  ;;  %v9656_v49 = vpack.c.bf16 %v2038_v31, %v2034_v30  ;;  %v2043_v36 = vld [vmem:[%s12496_s9 + $0x3c8] sm:$0xff]  ;;  %v1945_v30 = vld [vmem:[%s12496_s9 + $0xb8] sm:$0xff]  ;;  %v9700_v31 = vpack.c.bf16 %v1936_v26, %v1932_v24 }
 0x3ba   :  { %v9665_v37 = vpack.c.bf16 %v2047_v42, %v2043_v36  ;;  %v9703_v36 = vpack.c.bf16 %v1945_v30, %v1941_v27  ;;  %v1940_v42 = vld [vmem:[%s12496_s9 + $0x90] sm:$0xff]  ;;  %v1969_v24 = vld [vmem:[%s12496_s9 + $0x178] sm:$0xff] }
 0x3bb   :  { %6222 = vmatpush3.bf16.msra.mxu0 %v6221_v54  ;;  %v1934_v54 = vld [vmem:[%s12496_s9 + $0x60] sm:$0xff]  ;;  %12616 = vst [vmem:[#allocation24_spill] sm:$0xff] %v9656_v49  ;;  %v1964_v30 = vld [vmem:[%s12496_s9 + $0x150] sm:$0xff] }
 0x3bc   :  { %6223 = vmatprep.subr.bf16.mxu0 %v12509_v0  ;;  %v9422_v55 = vpack.c.bf16 %v1934_v54, %v1930_v53  ;;  %v2007_v53 = vld [vmem:[%s12496_s9 + $0x2a8] sm:$0xff]  ;;  %12617 = vst [vmem:[#allocation25_spill] sm:$0xff] %v9665_v37 }
 0x3bd   :  { %v9575_v54 = vpack.c.bf16 %v2007_v53, %v2003_v57  ;;  %v1722_v57 = vld [vmem:[#allocation2 + $0x62] ss:$0 sm:$0xff] }
 0x3bf   :  { %6225 = vmatpush3.bf16.msra.mxu0 %v6224_v45  ;;  %v1943_v45 = vld [vmem:[%s12496_s9 + $0xa8] sm:$0xff] }
 0x3c0   :  { %6226 = vmatprep.subr.bf16.mxu0 %v12509_v0  ;;  %v9431_v58 = vpack.c.bf16 %v1943_v45, %v1939_v46  ;;  %v2002_v46 = vld [vmem:[%s12496_s9 + $0x280] sm:$0xff] }
 0x3c1   :  { %v2006_v45 = vld [vmem:[%s12496_s9 + $0x2a0] sm:$0xff] }
 0x3c3   :  { %6228 = vmatpush3.bf16.msra.mxu0 %v6227_v7  ;;  %v1942_v7 = vld [vmem:[%s12496_s9 + $0xa0] sm:$0xff] }
 0x3c4   :  { %6229 = vmatprep.subr.bf16.mxu0 %v12509_v0  ;;  %v9440_v59 = vpack.c.bf16 %v1942_v7, %v1938_v50  ;;  %v9584_v50 = vpack.c.bf16 %v2006_v45, %v2002_v46  ;;  %v2011_v7 = vld [vmem:[%s12496_s9 + $0x2c8] sm:$0xff]  ;;  %v1793_v46 = vld [vmem:[#allocation2 + $0x34] ss:$0 sm:$0xff] }
 0x3c5   :  { %v9593_v61 = vpack.c.bf16 %v2015_v60, %v2011_v7  ;;  %v1795_v60 = vld [vmem:[#allocation2 + $0x35] ss:$0 sm:$0xff] }
 0x3c6   :  { %12608 = vst [vmem:[#allocation16_spill] sm:$0xff] %v9584_v50 }
 0x3c7   :  { %6231 = vmatpush3.bf16.msra.mxu0 %v6230_v3  ;;  %v1950_v3 = vld [vmem:[%s12496_s9 + $0xe0] sm:$0xff]  ;;  %12609 = vst [vmem:[#allocation17_spill] sm:$0xff] %v9593_v61 }
 0x3c8   :  { %6232 = vmatprep.subr.bf16.mxu0 %v12509_v0  ;;  %v9458_v62 = vpack.c.bf16 %v1950_v3, %v1946_v2  ;;  %v2010_v2 = vld [vmem:[%s12496_s9 + $0x2c0] sm:$0xff]  ;;  %v2000_v0 = vld [vmem:[%s12496_s9 + $0x270] sm:$0xff] }
 0x3c9   :  { %v2014_v3 = vld [vmem:[%s12496_s9 + $0x2e0] sm:$0xff] }
 0x3ca   :  { %v9602_v4 = vpack.c.bf16 %v2014_v3, %v2010_v2  ;;  %v1924_v3 = vld [vmem:[%s12496_s9 + $0x10] sm:$0xff] }
 0x3cb   :  { %6234 = vmatpush3.bf16.msra.mxu0 %v6233_v10  ;;  %v1954_v10 = vld [vmem:[%s12496_s9 + $0x100] sm:$0xff] }
 0x3cc   :  { %6260 = vmatprep.subr.bf16.mxu0 %v9390_v39  ;;  %12610 = vst [vmem:[#allocation18_spill] sm:$0xff] %v9602_v4 }
 0x3ce   :  { %5495 = vmatmul.mubr.f32.vlgmr.msra.gmra.mrb[6].mxu0 %v1704_v11  ;;  %v1958_v11 = vld [vmem:[%s12496_s9 + $0x120] sm:$0xff] }
 0x3cf   :  { %6262 = vmatpush1.bf16.msra.mxu0 %v9403_v47  ;;  %v9476_v56 = vpack.c.bf16 %v1958_v11, %v1954_v10  ;;  %v2023_v10 = vld [vmem:[%s12496_s9 + $0x328] sm:$0xff] }
 0x3d0   :  { %6264 = vmatprep.subr.bf16.mxu0 %v9414_v52  ;;  %v9611_v11 = vpack.c.bf16 %v2023_v10, %v2019_v29  ;;  %v1928_v29 = vld [vmem:[%s12496_s9 + $0x30] sm:$0xff]  ;;  %v1933_v10 = vld [vmem:[%s12496_s9 + $0x58] sm:$0xff] }
 0x3d1   :  { %v9683_v18 = vpack.c.bf16 %v1928_v29, %v1924_v3  ;;  %v9685_v22 = vpack.c.bf16 %v1937_v14, %v1933_v10  ;;  %v1961_v3 = vld [vmem:[%s12496_s9 + $0x138] sm:$0xff]  ;;  %v1956_v14 = vld [vmem:[%s12496_s9 + $0x110] sm:$0xff] }
 0x3d2   :  { %12611 = vst [vmem:[#allocation19_spill] sm:$0xff] %v9611_v11 }
 0x3d3   :  { %6266 = vmatpush1.bf16.msra.mxu0 %v9422_v55 }
 0x3d4   :  { %6268 = vmatprep.subr.bf16.mxu0 %v9431_v58 }
 0x3d7   :  { %6270 = vmatpush1.bf16.msra.mxu0 %v9440_v59 }
 0x3d8   :  { %6272 = vmatprep.subr.bf16.mxu0 %v9449_v63 }
 0x3db   :  { %6274 = vmatpush1.bf16.msra.mxu0 %v9458_v62 }
 0x3dc   :  { %6276 = vmatprep.subr.bf16.mxu0 %v9467_v8 }
 0x3df   :  { %6278 = vmatpush1.bf16.msra.mxu0 %v9476_v56 }
 0x3e0   :  { %6280 = vmatprep.subr.bf16.mxu0 %v9485_v16 }
 0x3e3   :  { %6282 = vmatpush1.bf16.msra.mxu0 %v9494_v19 }
 0x3e4   :  { %6284 = vmatprep.subr.bf16.mxu0 %v9503_v21 }
 0x3e7   :  { %6286 = vmatpush1.bf16.msra.mxu0 %v9512_v9 }
 0x3e8   :  { %6288 = vmatprep.subr.bf16.mxu0 %v9521_v5 }
 0x3eb   :  { %6290 = vmatpush1.bf16.msra.mxu0 %v9530_v28 }
 0x3ec   :  { %6292 = vmatprep.subr.bf16.mxu0 %v9539_v32 }
 0x3ef   :  { %6294 = vmatpush1.bf16.msra.mxu0 %v9548_v40 }
 0x3f0   :  { %6296 = vmatprep.subr.bf16.mxu0 %v9557_v13 }
 0x3f3   :  { %6298 = vmatpush1.bf16.msra.mxu0 %v9566_v48 }
 0x3f4   :  { %6300 = vmatprep.subr.bf16.mxu0 %v9575_v54 }
 0x3f7   :  { %6302 = vmatpush1.bf16.msra.mxu0 %v9584_v50 }
 0x3f8   :  { %6304 = vmatprep.subr.bf16.mxu0 %v9593_v61  ;;  %v2058_v61 = vld [vmem:[%s12496_s9 + $0x440] sm:$0xff] }
 0x3fb   :  { %6306 = vmatpush1.bf16.msra.mxu0 %v9602_v4 }
 0x3fc   :  { %6308 = vmatprep.subr.bf16.mxu0 %v9611_v11  ;;  %v921_v11 = vld [vmem:[#allocation2 + $0x66] ss:$0 sm:$0xff] }
 0x3ff   :  { %6310 = vmatpush1.bf16.msra.mxu0 %v9620_v17  ;;  %v2045_v17 = vld [vmem:[%s12496_s9 + $0x3d8] sm:$0xff] }
 0x400   :  { %6312 = vmatprep.subr.bf16.mxu0 %v9629_v38  ;;  %v2040_v38 = vld [vmem:[%s12496_s9 + $0x3b0] sm:$0xff] }
 0x403   :  { %6314 = vmatpush1.bf16.msra.mxu0 %v9638_v25  ;;  %v2037_v25 = vld [vmem:[%s12496_s9 + $0x398] sm:$0xff] }
 0x404   :  { %6316 = vmatprep.subr.bf16.mxu0 %v9647_v51  ;;  %v2032_v51 = vld [vmem:[%s12496_s9 + $0x370] sm:$0xff] }
 0x407   :  { %6318 = vmatpush1.bf16.msra.mxu0 %v9656_v49  ;;  %v2029_v49 = vld [vmem:[%s12496_s9 + $0x358] sm:$0xff] }
 0x408   :  { %6320 = vmatprep.subr.bf16.mxu0 %v9665_v37  ;;  %v2024_v37 = vld [vmem:[%s12496_s9 + $0x330] sm:$0xff] }
 0x481   :  { %v9669_v43 = vpop.f32.mrb[4].mxu0 }
 0x482   :  { %v1697_v44 = vpop.f32.mrb[5].mxu0 }
 0x483   :  { %v1944_v44 = vld [vmem:[%s12496_s9 + $0xb0] sm:$0xff] }
 0x4a1   :  { %v1789_v53 = vpop.f32.mrb[6].mxu0 }
 0x4a2   :  { %v1790_v45 = vadd.f32 %v1789_v53, %v1722_v57  ;;  %v5496_v7 = vpop.f32.mrb[7].mxu0  ;;  %v1949_v57 = vld [vmem:[%s12496_s9 + $0xd8] sm:$0xff] }
 0x4a3   :  { %v1953_v53 = vld [vmem:[%s12496_s9 + $0xf8] sm:$0xff]  ;;  %v1948_v7 = vld [vmem:[%s12496_s9 + $0xd0] sm:$0xff] }
 0x4a4   :  { %v1794_v2 = vmul.f32 %v1793_v46, %v1790_v45  ;;  %v9718_v46 = vpack.c.bf16 %v1944_v44, %v1940_v42  ;;  %v9721_v45 = vpack.c.bf16 %v1953_v53, %v1949_v57  ;;  %v1968_v42 = vld [vmem:[%s12496_s9 + $0x170] sm:$0xff]  ;;  %v1973_v44 = vld [vmem:[%s12496_s9 + $0x198] sm:$0xff] }
 0x4a5   :  { %v1977_v57 = vld [vmem:[%s12496_s9 + $0x1b8] sm:$0xff]  ;;  %v9772_v53 = vpack.c.bf16 %v1968_v42, %v1964_v30  ;;  %v1984_v30 = vld [vmem:[%s12496_s9 + $0x1f0] sm:$0xff] }
 0x4a6   :  { %v1796_v15 = vadd.f32 %v1795_v60, %v1794_v2  ;;  %v1952_v60 = vld [vmem:[%s12496_s9 + $0xf0] sm:$0xff]  ;;  %v1957_v2 = vld [vmem:[%s12496_s9 + $0x118] sm:$0xff] }
 0x4a7   :  { %v9736_v29 = vpack.c.bf16 %v1952_v60, %v1948_v7  ;;  %v9739_v10 = vpack.c.bf16 %v1961_v3, %v1957_v2  ;;  %v9775_v7 = vpack.c.bf16 %v1977_v57, %v1973_v44  ;;  %v1972_v60 = vld [vmem:[%s12496_s9 + $0x190] sm:$0xff]  ;;  %v1981_v3 = vld [vmem:[%s12496_s9 + $0x1d8] sm:$0xff] }
 0x4a8   :  { %v1797_v20 = vmax.f32 %v1796_v15, 0.0  ;;  %v1960_v15 = vld [vmem:[%s12496_s9 + $0x130] sm:$0xff]  ;;  %v1989_v42 = vld [vmem:[%s12496_s9 + $0x218] sm:$0xff] }
 0x4a9   :  { %v9754_v26 = vpack.c.bf16 %v1960_v15, %v1956_v14  ;;  %v1976_v2 = vld [vmem:[%s12496_s9 + $0x1b0] sm:$0xff]  ;;  %v1985_v14 = vld [vmem:[%s12496_s9 + $0x1f8] sm:$0xff] }
 0x4aa   :  { %5530 = vmatmul.mubr.f32.vlgmr.msra.gmra.mrb[6].mxu1 %v1797_v20  ;;  %v1965_v20 = vld [vmem:[%s12496_s9 + $0x158] sm:$0xff]  ;;  %v9790_v15 = vpack.c.bf16 %v1976_v2, %v1972_v60  ;;  %v1988_v2 = vld [vmem:[%s12496_s9 + $0x210] sm:$0xff] }
 0x4ab   :  { %6390 = vmatpush1.bf16.msra.mxu1 %v9683_v18  ;;  %v9757_v27 = vpack.c.bf16 %v1969_v24, %v1965_v20  ;;  %v9793_v20 = vpack.c.bf16 %v1985_v14, %v1981_v3  ;;  %v1980_v24 = vld [vmem:[%s12496_s9 + $0x1d0] sm:$0xff]  ;;  %v1993_v44 = vld [vmem:[%s12496_s9 + $0x238] sm:$0xff] }
 0x4ac   :  { %6392 = vmatprep.subr.bf16.mxu1 %v9685_v22  ;;  %v9808_v57 = vpack.c.bf16 %v1984_v30, %v1980_v24  ;;  %v9811_v60 = vpack.c.bf16 %v1993_v44, %v1989_v42  ;;  %v1992_v3 = vld [vmem:[%s12496_s9 + $0x230] sm:$0xff]  ;;  %v1997_v14 = vld [vmem:[%s12496_s9 + $0x258] sm:$0xff] }
 0x4ad   :  { %v2001_v24 = vld [vmem:[%s12496_s9 + $0x278] sm:$0xff]  ;;  %v9826_v30 = vpack.c.bf16 %v1992_v3, %v1988_v2  ;;  %v1996_v44 = vld [vmem:[%s12496_s9 + $0x250] sm:$0xff] }
 0x4ae   :  { %v9829_v42 = vpack.c.bf16 %v2001_v24, %v1997_v14  ;;  %v2009_v2 = vld [vmem:[%s12496_s9 + $0x2b8] sm:$0xff]  ;;  %v9844_v3 = vpack.c.bf16 %v2000_v0, %v1996_v44  ;;  %v2004_v24 = vld [vmem:[%s12496_s9 + $0x290] sm:$0xff] }
 0x4af   :  { %6394 = vmatpush1.bf16.msra.mxu1 %v9700_v31  ;;  %v9847_v14 = vpack.c.bf16 %v2009_v2, %v2005_v1  ;;  %v2017_v0 = vld [vmem:[%s12496_s9 + $0x2f8] sm:$0xff]  ;;  %v9862_v1 = vpack.c.bf16 %v2008_v35, %v2004_v24  ;;  %v2012_v2 = vld [vmem:[%s12496_s9 + $0x2d0] sm:$0xff] }
 0x4b0   :  { %6396 = vmatprep.subr.bf16.mxu1 %v9703_v36  ;;  %v9865_v44 = vpack.c.bf16 %v2017_v0, %v2013_v41  ;;  %v2025_v35 = vld [vmem:[%s12496_s9 + $0x338] sm:$0xff]  ;;  %v9880_v41 = vpack.c.bf16 %v2016_v33, %v2012_v2  ;;  %v2020_v0 = vld [vmem:[%s12496_s9 + $0x310] sm:$0xff] }
 0x4b1   :  { %12618 = vst [vmem:[#allocation26_spill] sm:$0xff] %v9862_v1  ;;  %v9883_v24 = vpack.c.bf16 %v2025_v35, %v2021_v34  ;;  %v2033_v33 = vld [vmem:[%s12496_s9 + $0x378] sm:$0xff]  ;;  %v9898_v34 = vpack.c.bf16 %v2024_v37, %v2020_v0  ;;  %v2028_v35 = vld [vmem:[%s12496_s9 + $0x350] sm:$0xff] }
 0x4b2   :  { %12619 = vst [vmem:[#allocation27_spill] sm:$0xff] %v9865_v44  ;;  %12620 = vst [vmem:[#allocation28_spill] sm:$0xff] %v9880_v41  ;;  %v9901_v2 = vpack.c.bf16 %v2033_v33, %v2029_v49  ;;  %v2041_v37 = vld [vmem:[%s12496_s9 + $0x3b8] sm:$0xff]  ;;  %v9916_v49 = vpack.c.bf16 %v2032_v51, %v2028_v35  ;;  %v2036_v33 = vld [vmem:[%s12496_s9 + $0x390] sm:$0xff] }
 0x4b3   :  { %6398 = vmatpush1.bf16.msra.mxu1 %v9718_v46  ;;  %12621 = vst [vmem:[#allocation29_spill] sm:$0xff] %v9883_v24  ;;  %12622 = vst [vmem:[#allocation30_spill] sm:$0xff] %v9898_v34  ;;  %v9919_v0 = vpack.c.bf16 %v2041_v37, %v2037_v25  ;;  %v2049_v51 = vld [vmem:[%s12496_s9 + $0x3f8] sm:$0xff]  ;;  %v9934_v25 = vpack.c.bf16 %v2040_v38, %v2036_v33  ;;  %v2042_v37 = vld [vmem:[%s12496_s9 + $0x3c0] sm:$0xff] }
 0x4b4   :  { %6400 = vmatprep.subr.bf16.mxu1 %v9721_v45  ;;  %12623 = vst [vmem:[#allocation31_spill] sm:$0xff] %v9901_v2  ;;  %12624 = vst [vmem:[#allocation32_spill] sm:$0xff] %v9916_v49  ;;  %v9937_v35 = vpack.c.bf16 %v2049_v51, %v2045_v17  ;;  %v2044_v38 = vld [vmem:[%s12496_s9 + $0x3d0] sm:$0xff] }
 0x4b5   :  { %12625 = vst [vmem:[#allocation33_spill] sm:$0xff] %v9919_v0  ;;  %12626 = vst [vmem:[#allocation34_spill] sm:$0xff] %v9934_v25  ;;  %v2048_v17 = vld [vmem:[%s12496_s9 + $0x3f0] sm:$0xff] }
 0x4b6   :  { %12627 = vst [vmem:[#allocation35_spill] sm:$0xff] %v9937_v35  ;;  %v9955_v51 = vpack.c.bf16 %v2048_v17, %v2044_v38  ;;  %v2057_v38 = vld [vmem:[%s12496_s9 + $0x438] sm:$0xff] }
 0x4b7   :  { %6402 = vmatpush1.bf16.msra.mxu1 %v9736_v29 }
 0x4b8   :  { %6404 = vmatprep.subr.bf16.mxu1 %v9739_v10  ;;  %12629 = vst [vmem:[#allocation37_spill] sm:$0xff] %v9955_v51 }
 0x4bb   :  { %6406 = vmatpush1.bf16.msra.mxu1 %v9754_v26 }
 0x4bc   :  { %6408 = vmatprep.subr.bf16.mxu1 %v9757_v27 }
 0x4bf   :  { %6410 = vmatpush1.bf16.msra.mxu1 %v9772_v53 }
 0x4c0   :  { %6412 = vmatprep.subr.bf16.mxu1 %v9775_v7 }
 0x4c3   :  { %6414 = vmatpush1.bf16.msra.mxu1 %v9790_v15 }
 0x4c4   :  { %6416 = vmatprep.subr.bf16.mxu1 %v9793_v20 }
 0x4c7   :  { %6418 = vmatpush1.bf16.msra.mxu1 %v9808_v57 }
 0x4c8   :  { %6420 = vmatprep.subr.bf16.mxu1 %v9811_v60 }
 0x4cb   :  { %6422 = vmatpush1.bf16.msra.mxu1 %v9826_v30 }
 0x4cc   :  { %6424 = vmatprep.subr.bf16.mxu1 %v9829_v42 }
 0x4cf   :  { %6426 = vmatpush1.bf16.msra.mxu1 %v9844_v3 }
 0x4d0   :  { %6428 = vmatprep.subr.bf16.mxu1 %v9847_v14 }
 0x4d3   :  { %6430 = vmatpush1.bf16.msra.mxu1 %v9862_v1  ;;  %v2062_v1 = vld [vmem:[%s12496_s9 + $0x460] sm:$0xff] }
 0x4d4   :  { %6432 = vmatprep.subr.bf16.mxu1 %v9865_v44 }
 0x4d7   :  { %6434 = vmatpush1.bf16.msra.mxu1 %v9880_v41 }
 0x4d8   :  { %6436 = vmatprep.subr.bf16.mxu1 %v9883_v24  ;;  %v2065_v24 = vld [vmem:[%s12496_s9 + $0x478] sm:$0xff] }
 0x4db   :  { %6438 = vmatpush1.bf16.msra.mxu1 %v9898_v34  ;;  %v2061_v34 = vld [vmem:[%s12496_s9 + $0x458] sm:$0xff] }
 0x4dc   :  { %6440 = vmatprep.subr.bf16.mxu1 %v9901_v2  ;;  %v2046_v2 = vld [vmem:[%s12496_s9 + $0x3e0] sm:$0xff] }
 0x4dd   :  { %v9950_v33 = vpack.c.bf16 %v2046_v2, %v2042_v37  ;;  %v2053_v2 = vld [vmem:[%s12496_s9 + $0x418] sm:$0xff] }
 0x4de   :  { %v9973_v17 = vpack.c.bf16 %v2057_v38, %v2053_v2  ;;  %v2056_v2 = vld [vmem:[%s12496_s9 + $0x430] sm:$0xff]  ;;  %v7643_v38 = vmov 0  }
 0x4df   :  { %6442 = vmatpush1.bf16.msra.mxu1 %v9916_v49  ;;  %12628 = vst [vmem:[#allocation36_spill] sm:$0xff] %v9950_v33  ;;  %6322 = vmatpush1.bf16.msra.mxu0 %v9950_v33  ;;  %v1815_v33 = vld [vmem:[#allocation2 + $0x63] ss:$0 sm:$0xff]  ;;  %v2063_v49 = vld [vmem:[%s12496_s9 + $0x468] sm:$0xff] }
 0x4e0   :  { %6444 = vmatprep.subr.bf16.mxu1 %v9919_v0  ;;  %12631 = vst [vmem:[#allocation39_spill] sm:$0xff] %v9973_v17  ;;  %v2050_v0 = vld [vmem:[%s12496_s9 + $0x400] sm:$0xff]  ;;  %7512 = vset.pattern.permute.xlu0 %v7643_v38 }
 0x4e3   :  { %6446 = vmatpush1.bf16.msra.mxu1 %v9934_v25  ;;  %v2055_v25 = vld [vmem:[%s12496_s9 + $0x428] sm:$0xff] }
 0x4e4   :  { %6448 = vmatprep.subr.bf16.mxu1 %v9937_v35  ;;  %v2051_v35 = vld [vmem:[%s12496_s9 + $0x408] sm:$0xff] }
 0x4e5   :  { %v9968_v37 = vpack.c.bf16 %v2055_v25, %v2051_v35  ;;  %v2054_v25 = vld [vmem:[%s12496_s9 + $0x420] sm:$0xff]  ;;  %v2052_v35 = vld [vmem:[%s12496_s9 + $0x410] sm:$0xff] }
 0x4e6   :  { %v10003_v4 = vpack.c.bf16 %v2054_v25, %v2050_v0  ;;  %v10005_v44 = vpack.c.bf16 %v2056_v2, %v2052_v35  ;;  %v2067_v0 = vld [vmem:[%s12496_s9 + $0x488] sm:$0xff]  ;;  %v2069_v25 = vld [vmem:[%s12496_s9 + $0x498] sm:$0xff]  ;;  %v10041_v2 = vadd.f32 %v9255_v12, %v921_v11  ;;  %v2070_v12 = vld [vmem:[%s12496_s9 + $0x4a0] sm:$0xff] }
 0x4e7   :  { %6450 = vmatpush1.bf16.msra.mxu1 %v9955_v51  ;;  %12630 = vst [vmem:[#allocation38_spill] sm:$0xff] %v9968_v37  ;;  %6324 = vmatprep.subr.bf16.mxu0 %v9968_v37  ;;  %v2059_v37 = vld [vmem:[%s12496_s9 + $0x448] sm:$0xff]  ;;  %v2073_v35 = vld [vmem:[%s12496_s9 + $0x4b8] sm:$0xff] }
 0x4e8   :  { %6452 = vmatprep.subr.bf16.mxu1 %v9973_v17  ;;  %v223_v17 = vld [vmem:[#allocation2 + $0x61] ss:$0 sm:$0xff]  ;;  %12632 = vst [vmem:[#allocation40_spill] sm:$0xff] %v10005_v44 }
 0x4e9   :  { %v10014_v50 = vadd.f32 %v8762_v6, %v223_v17  ;;  %v10029_v6 = vpack.c.bf16 %v2065_v24, %v2061_v34  ;;  %v2071_v17 = vld [vmem:[%s12496_s9 + $0x4a8] sm:$0xff]  ;;  %v10047_v24 = vpack.c.bf16 %v2062_v1, %v2058_v61  ;;  %v2068_v61 = vld [vmem:[%s12496_s9 + $0x490] sm:$0xff] }
 0x4ea   :  { %v10059_v11 = vpack.c.bf16 %v2071_v17, %v2067_v0  ;;  %v2072_v1 = vld [vmem:[%s12496_s9 + $0x4b0] sm:$0xff]  ;;  %v2077_v0 = vld [vmem:[%s12496_s9 + $0x4d8] sm:$0xff] }
 0x4eb   :  { %12634 = vst [vmem:[#allocation42_spill] sm:$0xff] %v10029_v6  ;;  %12635 = vst [vmem:[#allocation43_spill] sm:$0xff] %v10047_v24  ;;  %v2081_v17 = vld [vmem:[%s12496_s9 + $0x4f8] sm:$0xff] }
 0x4ec   :  { %12637 = vst [vmem:[#allocation45_spill] sm:$0xff] %v10059_v11 }
 0x57d   :  { %v1882_v51 = vpop.f32.mrb[6].mxu1 }
 0x57e   :  { %v10001_v38 = vadd.f32 %v1882_v51, %v1815_v33  ;;  %v5531_v41 = vpop.f32.mrb[7].mxu1  ;;  %v2060_v33 = vld [vmem:[%s12496_s9 + $0x450] sm:$0xff]  ;;  %v10027_v51 = vpack.c.bf16 %v2063_v49, %v2059_v37  ;;  %v2066_v49 = vld [vmem:[%s12496_s9 + $0x480] sm:$0xff]  ;;  %v10061_v37 = vpack.c.bf16 %v2073_v35, %v2069_v25  ;;  %v10087_v35 = vpack.c.bf16 %v2072_v1, %v2068_v61  ;;  %v2083_v61 = vld [vmem:[%s12496_s9 + $0x508] sm:$0xff] }
 0x57f   :  { %v2064_v41 = vld [vmem:[%s12496_s9 + $0x470] sm:$0xff]  ;;  %v10085_v25 = vpack.c.bf16 %v2070_v12, %v2066_v49  ;;  %v2087_v1 = vld [vmem:[%s12496_s9 + $0x528] sm:$0xff] }
 0x580   :  { %2242 = vmatprep.mubr.f32.mxu0 %v10001_v38  ;;  %2384 = vmatprep.mubr.f32.mxu1 %v10001_v38  ;;  %12633 = vst [vmem:[#allocation41_spill] sm:$0xff] %v10027_v51  ;;  %v10049_v34 = vpack.c.bf16 %v2064_v41, %v2060_v33  ;;  %12638 = vst [vmem:[#allocation46_spill] sm:$0xff] %v10061_v37  ;;  %v2075_v33 = vld [vmem:[%s12496_s9 + $0x4c8] sm:$0xff]  ;;  %v2076_v49 = vld [vmem:[%s12496_s9 + $0x4d0] sm:$0xff] }
 0x581   :  { %2243 = vmatmul.mubr.f32.vlgmr.msra.gmra.mrb[8].mxu0 %v10014_v50  ;;  %2385 = vmatmul.mubr.f32.vlgmr.msra.gmra.mrb[8].mxu1 %v10014_v50  ;;  %v2079_v41 = vld [vmem:[%s12496_s9 + $0x4e8] sm:$0xff]  ;;  %12639 = vst [vmem:[#allocation47_spill] sm:$0xff] %v10085_v25  ;;  %12640 = vst [vmem:[#allocation48_spill] sm:$0xff] %v10087_v35  ;;  %v2080_v12 = vld [vmem:[%s12496_s9 + $0x4f0] sm:$0xff] }
 0x582   :  { %6326 = vmatpush1.bf16.msra.mxu0 %v10003_v4  ;;  %6454 = vmatpush1.bf16.msra.mxu1 %v10005_v44  ;;  %12636 = vst [vmem:[#allocation44_spill] sm:$0xff] %v10049_v34  ;;  %v10097_v44 = vpack.c.bf16 %v2079_v41, %v2075_v33  ;;  %v2085_v33 = vld [vmem:[%s12496_s9 + $0x518] sm:$0xff] }
 0x583   :  { %2313 = vmatprep.mubr.f32.mxu0 %v10041_v2  ;;  %2455 = vmatprep.mubr.f32.mxu1 %v10041_v2  ;;  %v2089_v41 = vld [vmem:[%s12496_s9 + $0x538] sm:$0xff] }
 0x584   :  { %6328 = vmatprep.subr.bf16.mxu0 %v10027_v51  ;;  %6456 = vmatprep.subr.bf16.mxu1 %v10029_v6  ;;  %v2074_v6 = vld [vmem:[%s12496_s9 + $0x4c0] sm:$0xff]  ;;  %12641 = vst [vmem:[#allocation49_spill] sm:$0xff] %v10097_v44 }
 0x585   :  { %v2078_v51 = vld [vmem:[%s12496_s9 + $0x4e0] sm:$0xff] }
 0x586   :  { %6330 = vmatpush1.bf16.msra.mxu0 %v10047_v24  ;;  %6458 = vmatpush1.bf16.msra.mxu1 %v10049_v34  ;;  %v10099_v24 = vpack.c.bf16 %v2081_v17, %v2077_v0  ;;  %v10121_v0 = vpack.c.bf16 %v2078_v51, %v2074_v6  ;;  %v10123_v17 = vpack.c.bf16 %v2080_v12, %v2076_v49  ;;  %v2084_v51 = vld [vmem:[%s12496_s9 + $0x510] sm:$0xff]  ;;  %v2091_v49 = vld [vmem:[%s12496_s9 + $0x548] sm:$0xff] }
 0x587   :  { %6332 = vmatprep.subr.bf16.mxu0 %v10059_v11  ;;  %6460 = vmatprep.subr.bf16.mxu1 %v10061_v37  ;;  %v2082_v37 = vld [vmem:[%s12496_s9 + $0x500] sm:$0xff]  ;;  %v10133_v34 = vpack.c.bf16 %v2087_v1, %v2083_v61  ;;  %v2088_v6 = vld [vmem:[%s12496_s9 + $0x530] sm:$0xff]  ;;  %v2095_v12 = vld [vmem:[%s12496_s9 + $0x568] sm:$0xff] }
 0x588   :  { %12642 = vst [vmem:[#allocation50_spill] sm:$0xff] %v10099_v24  ;;  %12643 = vst [vmem:[#allocation51_spill] sm:$0xff] %v10121_v0  ;;  %v2086_v11 = vld [vmem:[%s12496_s9 + $0x520] sm:$0xff]  ;;  %v2093_v61 = vld [vmem:[%s12496_s9 + $0x558] sm:$0xff] }
 0x589   :  { %12644 = vst [vmem:[#allocation52_spill] sm:$0xff] %v10123_v17  ;;  %12645 = vst [vmem:[#allocation53_spill] sm:$0xff] %v10133_v34  ;;  %v2097_v1 = vld [vmem:[%s12496_s9 + $0x578] sm:$0xff] }
 0x58a   :  { %6334 = vmatpush1.bf16.msra.mxu0 %v10085_v25  ;;  %6462 = vmatpush1.bf16.msra.mxu1 %v10087_v35  ;;  %v10135_v25 = vpack.c.bf16 %v2089_v41, %v2085_v33  ;;  %v10157_v33 = vpack.c.bf16 %v2086_v11, %v2082_v37  ;;  %v10159_v41 = vpack.c.bf16 %v2088_v6, %v2084_v51  ;;  %v2092_v11 = vld [vmem:[%s12496_s9 + $0x550] sm:$0xff]  ;;  %v2099_v51 = vld [vmem:[%s12496_s9 + $0x588] sm:$0xff] }
 0x58b   :  { %6336 = vmatprep.subr.bf16.mxu0 %v10097_v44  ;;  %6464 = vmatprep.subr.bf16.mxu1 %v10099_v24  ;;  %v2090_v24 = vld [vmem:[%s12496_s9 + $0x540] sm:$0xff]  ;;  %v10169_v35 = vpack.c.bf16 %v2095_v12, %v2091_v49  ;;  %v2096_v37 = vld [vmem:[%s12496_s9 + $0x570] sm:$0xff]  ;;  %v2103_v6 = vld [vmem:[%s12496_s9 + $0x5a8] sm:$0xff] }
 0x58c   :  { %12646 = vst [vmem:[#allocation54_spill] sm:$0xff] %v10135_v25  ;;  %12647 = vst [vmem:[#allocation55_spill] sm:$0xff] %v10157_v33  ;;  %v2094_v44 = vld [vmem:[%s12496_s9 + $0x560] sm:$0xff]  ;;  %v2101_v49 = vld [vmem:[%s12496_s9 + $0x598] sm:$0xff] }
 0x58d   :  { %12648 = vst [vmem:[#allocation56_spill] sm:$0xff] %v10159_v41  ;;  %12649 = vst [vmem:[#allocation57_spill] sm:$0xff] %v10169_v35  ;;  %v2105_v12 = vld [vmem:[%s12496_s9 + $0x5b8] sm:$0xff] }
 0x58e   :  { %6338 = vmatpush1.bf16.msra.mxu0 %v10121_v0  ;;  %6466 = vmatpush1.bf16.msra.mxu1 %v10123_v17  ;;  %v10171_v0 = vpack.c.bf16 %v2097_v1, %v2093_v61  ;;  %v10193_v61 = vpack.c.bf16 %v2094_v44, %v2090_v24  ;;  %v10195_v1 = vpack.c.bf16 %v2096_v37, %v2092_v11  ;;  %v2100_v44 = vld [vmem:[%s12496_s9 + $0x590] sm:$0xff]  ;;  %v2107_v11 = vld [vmem:[%s12496_s9 + $0x5c8] sm:$0xff] }
 0x58f   :  { %6340 = vmatprep.subr.bf16.mxu0 %v10133_v34  ;;  %6468 = vmatprep.subr.bf16.mxu1 %v10135_v25  ;;  %v2098_v25 = vld [vmem:[%s12496_s9 + $0x580] sm:$0xff]  ;;  %v10205_v17 = vpack.c.bf16 %v2103_v6, %v2099_v51  ;;  %v2104_v24 = vld [vmem:[%s12496_s9 + $0x5b0] sm:$0xff]  ;;  %v2111_v37 = vld [vmem:[%s12496_s9 + $0x5e8] sm:$0xff] }
 0x590   :  { %12650 = vst [vmem:[#allocation58_spill] sm:$0xff] %v10171_v0  ;;  %12651 = vst [vmem:[#allocation59_spill] sm:$0xff] %v10193_v61  ;;  %v2102_v34 = vld [vmem:[%s12496_s9 + $0x5a0] sm:$0xff]  ;;  %v2109_v51 = vld [vmem:[%s12496_s9 + $0x5d8] sm:$0xff] }
 0x591   :  { %12652 = vst [vmem:[#allocation60_spill] sm:$0xff] %v10195_v1  ;;  %12653 = vst [vmem:[#allocation61_spill] sm:$0xff] %v10205_v17  ;;  %v2113_v6 = vld [vmem:[%s12496_s9 + $0x5f8] sm:$0xff] }
 0x592   :  { %6342 = vmatpush1.bf16.msra.mxu0 %v10157_v33  ;;  %6470 = vmatpush1.bf16.msra.mxu1 %v10159_v41  ;;  %v10207_v33 = vpack.c.bf16 %v2105_v12, %v2101_v49  ;;  %v10229_v49 = vpack.c.bf16 %v2102_v34, %v2098_v25  ;;  %v10231_v12 = vpack.c.bf16 %v2104_v24, %v2100_v44  ;;  %v2108_v34 = vld [vmem:[%s12496_s9 + $0x5d0] sm:$0xff]  ;;  %v2115_v44 = vld [vmem:[%s12496_s9 + $0x608] sm:$0xff] }
 0x593   :  { %6344 = vmatprep.subr.bf16.mxu0 %v10169_v35  ;;  %6472 = vmatprep.subr.bf16.mxu1 %v10171_v0  ;;  %v2106_v0 = vld [vmem:[%s12496_s9 + $0x5c0] sm:$0xff]  ;;  %v10241_v41 = vpack.c.bf16 %v2111_v37, %v2107_v11  ;;  %v2112_v25 = vld [vmem:[%s12496_s9 + $0x5f0] sm:$0xff]  ;;  %v2119_v24 = vld [vmem:[%s12496_s9 + $0x628] sm:$0xff] }
 0x594   :  { %12654 = vst [vmem:[#allocation62_spill] sm:$0xff] %v10207_v33  ;;  %12655 = vst [vmem:[#allocation63_spill] sm:$0xff] %v10229_v49  ;;  %v2110_v35 = vld [vmem:[%s12496_s9 + $0x5e0] sm:$0xff]  ;;  %v2117_v11 = vld [vmem:[%s12496_s9 + $0x618] sm:$0xff] }
 0x595   :  { %12656 = vst [vmem:[#allocation64_spill] sm:$0xff] %v10231_v12  ;;  %12657 = vst [vmem:[#allocation65_spill] sm:$0xff] %v10241_v41  ;;  %v2121_v37 = vld [vmem:[%s12496_s9 + $0x638] sm:$0xff] }
 0x596   :  { %6346 = vmatpush1.bf16.msra.mxu0 %v10193_v61  ;;  %6474 = vmatpush1.bf16.msra.mxu1 %v10195_v1  ;;  %v10243_v61 = vpack.c.bf16 %v2113_v6, %v2109_v51  ;;  %v10265_v51 = vpack.c.bf16 %v2110_v35, %v2106_v0  ;;  %v10267_v6 = vpack.c.bf16 %v2112_v25, %v2108_v34  ;;  %v2116_v35 = vld [vmem:[%s12496_s9 + $0x610] sm:$0xff]  ;;  %v2123_v34 = vld [vmem:[%s12496_s9 + $0x648] sm:$0xff] }
 0x597   :  { %6348 = vmatprep.subr.bf16.mxu0 %v10205_v17  ;;  %6476 = vmatprep.subr.bf16.mxu1 %v10207_v33  ;;  %v2114_v33 = vld [vmem:[%s12496_s9 + $0x600] sm:$0xff]  ;;  %v10277_v1 = vpack.c.bf16 %v2119_v24, %v2115_v44  ;;  %v2120_v0 = vld [vmem:[%s12496_s9 + $0x630] sm:$0xff]  ;;  %v2127_v25 = vld [vmem:[%s12496_s9 + $0x668] sm:$0xff] }
 0x598   :  { %12658 = vst [vmem:[#allocation66_spill] sm:$0xff] %v10243_v61  ;;  %12659 = vst [vmem:[#allocation67_spill] sm:$0xff] %v10265_v51  ;;  %v2118_v17 = vld [vmem:[%s12496_s9 + $0x620] sm:$0xff]  ;;  %v2125_v44 = vld [vmem:[%s12496_s9 + $0x658] sm:$0xff] }
 0x599   :  { %12660 = vst [vmem:[#allocation68_spill] sm:$0xff] %v10267_v6  ;;  %12661 = vst [vmem:[#allocation69_spill] sm:$0xff] %v10277_v1  ;;  %v2129_v24 = vld [vmem:[%s12496_s9 + $0x678] sm:$0xff] }
 0x59a   :  { %6350 = vmatpush1.bf16.msra.mxu0 %v10229_v49  ;;  %6478 = vmatpush1.bf16.msra.mxu1 %v10231_v12  ;;  %v10279_v49 = vpack.c.bf16 %v2121_v37, %v2117_v11  ;;  %v10301_v11 = vpack.c.bf16 %v2118_v17, %v2114_v33  ;;  %v10303_v37 = vpack.c.bf16 %v2120_v0, %v2116_v35  ;;  %v2124_v17 = vld [vmem:[%s12496_s9 + $0x650] sm:$0xff]  ;;  %v2131_v35 = vld [vmem:[%s12496_s9 + $0x688] sm:$0xff] }
 0x59b   :  { %6352 = vmatprep.subr.bf16.mxu0 %v10241_v41  ;;  %6480 = vmatprep.subr.bf16.mxu1 %v10243_v61  ;;  %v2122_v61 = vld [vmem:[%s12496_s9 + $0x640] sm:$0xff]  ;;  %v10313_v12 = vpack.c.bf16 %v2127_v25, %v2123_v34  ;;  %v2128_v33 = vld [vmem:[%s12496_s9 + $0x670] sm:$0xff]  ;;  %v2135_v0 = vld [vmem:[%s12496_s9 + $0x6a8] sm:$0xff] }
 0x59c   :  { %12662 = vst [vmem:[#allocation70_spill] sm:$0xff] %v10279_v49  ;;  %12663 = vst [vmem:[#allocation71_spill] sm:$0xff] %v10301_v11  ;;  %v2126_v41 = vld [vmem:[%s12496_s9 + $0x660] sm:$0xff]  ;;  %v2133_v34 = vld [vmem:[%s12496_s9 + $0x698] sm:$0xff] }
 0x59d   :  { %12664 = vst [vmem:[#allocation72_spill] sm:$0xff] %v10303_v37  ;;  %12665 = vst [vmem:[#allocation73_spill] sm:$0xff] %v10313_v12  ;;  %v2137_v25 = vld [vmem:[%s12496_s9 + $0x6b8] sm:$0xff] }
 0x59e   :  { %6354 = vmatpush1.bf16.msra.mxu0 %v10265_v51  ;;  %6482 = vmatpush1.bf16.msra.mxu1 %v10267_v6  ;;  %v10315_v51 = vpack.c.bf16 %v2129_v24, %v2125_v44  ;;  %v10337_v44 = vpack.c.bf16 %v2126_v41, %v2122_v61  ;;  %v10339_v24 = vpack.c.bf16 %v2128_v33, %v2124_v17  ;;  %v2132_v41 = vld [vmem:[%s12496_s9 + $0x690] sm:$0xff]  ;;  %v2139_v17 = vld [vmem:[%s12496_s9 + $0x6c8] sm:$0xff] }
 0x59f   :  { %6356 = vmatprep.subr.bf16.mxu0 %v10277_v1  ;;  %6484 = vmatprep.subr.bf16.mxu1 %v10279_v49  ;;  %v2130_v49 = vld [vmem:[%s12496_s9 + $0x680] sm:$0xff]  ;;  %v10349_v6 = vpack.c.bf16 %v2135_v0, %v2131_v35  ;;  %v2136_v61 = vld [vmem:[%s12496_s9 + $0x6b0] sm:$0xff]  ;;  %v2143_v33 = vld [vmem:[%s12496_s9 + $0x6e8] sm:$0xff] }
 0x5a0   :  { %12666 = vst [vmem:[#allocation74_spill] sm:$0xff] %v10315_v51  ;;  %12667 = vst [vmem:[#allocation75_spill] sm:$0xff] %v10337_v44  ;;  %v2134_v1 = vld [vmem:[%s12496_s9 + $0x6a0] sm:$0xff]  ;;  %v2141_v35 = vld [vmem:[%s12496_s9 + $0x6d8] sm:$0xff] }
 0x5a1   :  { %12668 = vst [vmem:[#allocation76_spill] sm:$0xff] %v10339_v24  ;;  %12669 = vst [vmem:[#allocation77_spill] sm:$0xff] %v10349_v6  ;;  %v2145_v0 = vld [vmem:[%s12496_s9 + $0x6f8] sm:$0xff] }
 0x5a2   :  { %6358 = vmatpush1.bf16.msra.mxu0 %v10301_v11  ;;  %6486 = vmatpush1.bf16.msra.mxu1 %v10303_v37  ;;  %v10351_v11 = vpack.c.bf16 %v2137_v25, %v2133_v34  ;;  %v10373_v34 = vpack.c.bf16 %v2134_v1, %v2130_v49  ;;  %v10375_v25 = vpack.c.bf16 %v2136_v61, %v2132_v41  ;;  %v2140_v1 = vld [vmem:[%s12496_s9 + $0x6d0] sm:$0xff]  ;;  %v2147_v41 = vld [vmem:[%s12496_s9 + $0x708] sm:$0xff] }
 0x5a3   :  { %6360 = vmatprep.subr.bf16.mxu0 %v10313_v12  ;;  %6488 = vmatprep.subr.bf16.mxu1 %v10315_v51  ;;  %v2138_v51 = vld [vmem:[%s12496_s9 + $0x6c0] sm:$0xff]  ;;  %v10385_v37 = vpack.c.bf16 %v2143_v33, %v2139_v17  ;;  %v2144_v49 = vld [vmem:[%s12496_s9 + $0x6f0] sm:$0xff]  ;;  %v2151_v61 = vld [vmem:[%s12496_s9 + $0x728] sm:$0xff] }
 0x5a4   :  { %12670 = vst [vmem:[#allocation78_spill] sm:$0xff] %v10351_v11  ;;  %12671 = vst [vmem:[#allocation79_spill] sm:$0xff] %v10373_v34  ;;  %v2142_v12 = vld [vmem:[%s12496_s9 + $0x6e0] sm:$0xff]  ;;  %v2149_v17 = vld [vmem:[%s12496_s9 + $0x718] sm:$0xff] }
 0x5a5   :  { %12672 = vst [vmem:[#allocation80_spill] sm:$0xff] %v10375_v25  ;;  %12673 = vst [vmem:[#allocation81_spill] sm:$0xff] %v10385_v37  ;;  %v2153_v33 = vld [vmem:[%s12496_s9 + $0x738] sm:$0xff] }
 0x5a6   :  { %6362 = vmatpush1.bf16.msra.mxu0 %v10337_v44  ;;  %6490 = vmatpush1.bf16.msra.mxu1 %v10339_v24  ;;  %v10387_v44 = vpack.c.bf16 %v2145_v0, %v2141_v35  ;;  %v10409_v35 = vpack.c.bf16 %v2142_v12, %v2138_v51  ;;  %v10411_v0 = vpack.c.bf16 %v2144_v49, %v2140_v1  ;;  %v2148_v12 = vld [vmem:[%s12496_s9 + $0x710] sm:$0xff]  ;;  %v2155_v1 = vld [vmem:[%s12496_s9 + $0x748] sm:$0xff] }
 0x5a7   :  { %6364 = vmatprep.subr.bf16.mxu0 %v10349_v6  ;;  %6492 = vmatprep.subr.bf16.mxu1 %v10351_v11  ;;  %v2146_v11 = vld [vmem:[%s12496_s9 + $0x700] sm:$0xff]  ;;  %v10421_v24 = vpack.c.bf16 %v2151_v61, %v2147_v41  ;;  %v2152_v51 = vld [vmem:[%s12496_s9 + $0x730] sm:$0xff]  ;;  %v2159_v49 = vld [vmem:[%s12496_s9 + $0x768] sm:$0xff] }
 0x5a8   :  { %12674 = vst [vmem:[#allocation82_spill] sm:$0xff] %v10387_v44  ;;  %12675 = vst [vmem:[#allocation83_spill] sm:$0xff] %v10409_v35  ;;  %v2150_v6 = vld [vmem:[%s12496_s9 + $0x720] sm:$0xff]  ;;  %v2157_v41 = vld [vmem:[%s12496_s9 + $0x758] sm:$0xff] }
 0x5a9   :  { %12676 = vst [vmem:[#allocation84_spill] sm:$0xff] %v10411_v0  ;;  %12677 = vst [vmem:[#allocation85_spill] sm:$0xff] %v10421_v24  ;;  %v2161_v61 = vld [vmem:[%s12496_s9 + $0x778] sm:$0xff] }
 0x5aa   :  { %6366 = vmatpush1.bf16.msra.mxu0 %v10373_v34  ;;  %6494 = vmatpush1.bf16.msra.mxu1 %v10375_v25  ;;  %v10423_v34 = vpack.c.bf16 %v2153_v33, %v2149_v17  ;;  %v10445_v17 = vpack.c.bf16 %v2150_v6, %v2146_v11  ;;  %v10447_v33 = vpack.c.bf16 %v2152_v51, %v2148_v12  ;;  %v2156_v6 = vld [vmem:[%s12496_s9 + $0x750] sm:$0xff]  ;;  %v2163_v12 = vld [vmem:[%s12496_s9 + $0x788] sm:$0xff] }
 0x5ab   :  { %6368 = vmatprep.subr.bf16.mxu0 %v10385_v37  ;;  %6496 = vmatprep.subr.bf16.mxu1 %v10387_v44  ;;  %v2154_v44 = vld [vmem:[%s12496_s9 + $0x740] sm:$0xff]  ;;  %v10457_v25 = vpack.c.bf16 %v2159_v49, %v2155_v1  ;;  %v2160_v11 = vld [vmem:[%s12496_s9 + $0x770] sm:$0xff]  ;;  %v2167_v51 = vld [vmem:[%s12496_s9 + $0x7a8] sm:$0xff] }
 0x5ac   :  { %12678 = vst [vmem:[#allocation86_spill] sm:$0xff] %v10423_v34  ;;  %12679 = vst [vmem:[#allocation87_spill] sm:$0xff] %v10445_v17  ;;  %v2158_v37 = vld [vmem:[%s12496_s9 + $0x760] sm:$0xff]  ;;  %v2165_v1 = vld [vmem:[%s12496_s9 + $0x798] sm:$0xff] }
 0x5ad   :  { %12680 = vst [vmem:[#allocation88_spill] sm:$0xff] %v10447_v33  ;;  %12681 = vst [vmem:[#allocation89_spill] sm:$0xff] %v10457_v25  ;;  %v2169_v49 = vld [vmem:[%s12496_s9 + $0x7b8] sm:$0xff] }
 0x5ae   :  { %6370 = vmatpush1.bf16.msra.mxu0 %v10409_v35  ;;  %6498 = vmatpush1.bf16.msra.mxu1 %v10411_v0  ;;  %v10459_v35 = vpack.c.bf16 %v2161_v61, %v2157_v41  ;;  %v10481_v41 = vpack.c.bf16 %v2158_v37, %v2154_v44  ;;  %v10483_v61 = vpack.c.bf16 %v2160_v11, %v2156_v6  ;;  %v2164_v37 = vld [vmem:[%s12496_s9 + $0x790] sm:$0xff]  ;;  %v2171_v6 = vld [vmem:[%s12496_s9 + $0x7c8] sm:$0xff] }
 0x5af   :  { %6372 = vmatprep.subr.bf16.mxu0 %v10421_v24  ;;  %6500 = vmatprep.subr.bf16.mxu1 %v10423_v34  ;;  %v2162_v34 = vld [vmem:[%s12496_s9 + $0x780] sm:$0xff]  ;;  %v10493_v0 = vpack.c.bf16 %v2167_v51, %v2163_v12  ;;  %v2168_v44 = vld [vmem:[%s12496_s9 + $0x7b0] sm:$0xff]  ;;  %v2175_v11 = vld [vmem:[%s12496_s9 + $0x7e8] sm:$0xff] }
 0x5b0   :  { %12682 = vst [vmem:[#allocation90_spill] sm:$0xff] %v10459_v35  ;;  %12683 = vst [vmem:[#allocation91_spill] sm:$0xff] %v10483_v61  ;;  %v2166_v24 = vld [vmem:[%s12496_s9 + $0x7a0] sm:$0xff]  ;;  %v2173_v12 = vld [vmem:[%s12496_s9 + $0x7d8] sm:$0xff] }
 0x5b1   :  { %v2177_v51 = vld [vmem:[%s12496_s9 + $0x7f8] sm:$0xff] }
 0x5b2   :  { %6374 = vmatpush1.bf16.msra.mxu0 %v10445_v17  ;;  %6502 = vmatpush1.bf16.msra.mxu1 %v10447_v33  ;;  %v10495_v17 = vpack.c.bf16 %v2169_v49, %v2165_v1  ;;  %v10517_v1 = vpack.c.bf16 %v2166_v24, %v2162_v34  ;;  %v10519_v49 = vpack.c.bf16 %v2168_v44, %v2164_v37  ;;  %v2172_v24 = vld [vmem:[%s12496_s9 + $0x7d0] sm:$0xff] }
 0x5b3   :  { %6376 = vmatprep.subr.bf16.mxu0 %v10457_v25  ;;  %6504 = vmatprep.subr.bf16.mxu1 %v10459_v35  ;;  %v2170_v35 = vld [vmem:[%s12496_s9 + $0x7c0] sm:$0xff]  ;;  %v10526_v25 = vpack.c.bf16 %v2175_v11, %v2171_v6  ;;  %v10528_v33 = vpack.c.bf16 %v2177_v51, %v2173_v12  ;;  %v2176_v34 = vld [vmem:[%s12496_s9 + $0x7f0] sm:$0xff]  ;;  %v12721_v51 = vld [vmem:[#allocation53_spill] sm:$0xff] }
 0x5b4   :  { %v10543_v44 = vpack.c.bf16 %v2176_v34, %v2172_v24  ;;  %v1625_v6 = vld [vmem:[#allocation2 + $0x90] ss:$0 sm:$0xff]  ;;  %v12722_v24 = vld [vmem:[#allocation54_spill] sm:$0xff]  ;;  %v12723_v34 = vld [vmem:[#allocation55_spill] sm:$0xff] }
 0x5b5   :  { %v10550_v11 = vadd.f32 %v9669_v43, %v1625_v6  ;;  %v12706_v43 = vld [vmem:[#allocation38_spill] sm:$0xff]  ;;  %v12720_v12 = vld [vmem:[#allocation52_spill] sm:$0xff] }
 0x5b6   :  { %6378 = vmatpush1.bf16.msra.mxu0 %v10481_v41  ;;  %6506 = vmatpush1.bf16.msra.mxu1 %v10483_v61  ;;  %v2174_v61 = vld [vmem:[%s12496_s9 + $0x7e0] sm:$0xff]  ;;  %v12724_v6 = vld [vmem:[#allocation56_spill] sm:$0xff] }
 0x5b7   :  { %6380 = vmatprep.subr.bf16.mxu0 %v10493_v0  ;;  %6508 = vmatprep.subr.bf16.mxu1 %v10495_v17  ;;  %v10541_v37 = vpack.c.bf16 %v2174_v61, %v2170_v35  ;;  %v12718_v35 = vld [vmem:[#allocation50_spill] sm:$0xff]  ;;  %v12719_v61 = vld [vmem:[#allocation51_spill] sm:$0xff] }
 0x5ba   :  { %6382 = vmatpush1.bf16.msra.mxu0 %v10517_v1  ;;  %6510 = vmatpush1.bf16.msra.mxu1 %v10519_v49 }
 0x5bb   :  { %6384 = vmatprep.subr.bf16.mxu0 %v10526_v25  ;;  %6512 = vmatprep.subr.bf16.mxu1 %v10528_v33 }
 0x5be   :  { %6386 = vmatpush1.bf16.msra.mxu0 %v10541_v37  ;;  %6514 = vmatpush1.bf16.msra.mxu1 %v10543_v44 }
 0x5bf   :  { %6516 = vmatprep.subr.bf16.mxu0 %v9390_v39  ;;  %6644 = vmatprep.subr.bf16.mxu1 %v9401_v23  ;;  %v12684_v39 = vld [vmem:[#allocation16_spill] sm:$0xff]  ;;  %v12685_v23 = vld [vmem:[#allocation26_spill] sm:$0xff] }
 0x5c1   :  { %2314 = vmatmul.mubr.f32.vlgmr.msra.gmra.mrb[8].mxu0 %v10550_v11  ;;  %2456 = vmatmul.mubr.f32.vlgmr.msra.gmra.mrb[8].mxu1 %v10550_v11 }
 0x5c2   :  { %6518 = vmatpush1.bf16.msra.mxu0 %v9403_v47  ;;  %6646 = vmatpush1.bf16.msra.mxu1 %v9683_v18  ;;  %v12686_v47 = vld [vmem:[#allocation17_spill] sm:$0xff]  ;;  %v12707_v18 = vld [vmem:[#allocation39_spill] sm:$0xff] }
 0x5c3   :  { %6520 = vmatprep.subr.bf16.mxu0 %v9414_v52  ;;  %6648 = vmatprep.subr.bf16.mxu1 %v9685_v22  ;;  %v12687_v52 = vld [vmem:[#allocation27_spill] sm:$0xff]  ;;  %v1886_v22 = vld [vmem:[%s12491_s4] sm:$0x3] }
 0x5c4   :  { %1891 = vperm.xlu0 %7512, %v1886_v22   ;;  %v12749_v22 = vld [vmem:[#allocation81_spill] sm:$0xff] }
 0x5c6   :  { %6522 = vmatpush1.bf16.msra.mxu0 %v9422_v55  ;;  %6650 = vmatpush1.bf16.msra.mxu1 %v9700_v31  ;;  %v12688_v55 = vld [vmem:[#allocation18_spill] sm:$0xff] }
 0x5c7   :  { %6524 = vmatprep.subr.bf16.mxu0 %v9431_v58  ;;  %6652 = vmatprep.subr.bf16.mxu1 %v9703_v36  ;;  %v12689_v58 = vld [vmem:[#allocation28_spill] sm:$0xff] }
 0x5ca   :  { %6526 = vmatpush1.bf16.msra.mxu0 %v9440_v59  ;;  %6654 = vmatpush1.bf16.msra.mxu1 %v9718_v46  ;;  %v12690_v59 = vld [vmem:[#allocation19_spill] sm:$0xff] }
 0x5cb   :  { %6528 = vmatprep.subr.bf16.mxu0 %v9449_v63  ;;  %6656 = vmatprep.subr.bf16.mxu1 %v9721_v45  ;;  %v12691_v63 = vld [vmem:[#allocation29_spill] sm:$0xff] }
 0x5ce   :  { %6530 = vmatpush1.bf16.msra.mxu0 %v9458_v62  ;;  %6658 = vmatpush1.bf16.msra.mxu1 %v9736_v29  ;;  %v12692_v62 = vld [vmem:[#allocation20_spill] sm:$0xff] }
 0x5cf   :  { %6532 = vmatprep.subr.bf16.mxu0 %v9467_v8  ;;  %6660 = vmatprep.subr.bf16.mxu1 %v9739_v10  ;;  %v12693_v8 = vld [vmem:[#allocation30_spill] sm:$0xff] }
 0x5d2   :  { %6534 = vmatpush1.bf16.msra.mxu0 %v9476_v56  ;;  %6662 = vmatpush1.bf16.msra.mxu1 %v9754_v26  ;;  %v12694_v56 = vld [vmem:[#allocation21_spill] sm:$0xff] }
 0x5d3   :  { %6536 = vmatprep.subr.bf16.mxu0 %v9485_v16  ;;  %6664 = vmatprep.subr.bf16.mxu1 %v9757_v27  ;;  %v12695_v16 = vld [vmem:[#allocation31_spill] sm:$0xff] }
 0x5d6   :  { %6538 = vmatpush1.bf16.msra.mxu0 %v9494_v19  ;;  %6666 = vmatpush1.bf16.msra.mxu1 %v9772_v53  ;;  %v12696_v19 = vld [vmem:[#allocation22_spill] sm:$0xff] }
 0x5d7   :  { %6540 = vmatprep.subr.bf16.mxu0 %v9503_v21  ;;  %6668 = vmatprep.subr.bf16.mxu1 %v9775_v7  ;;  %v12697_v21 = vld [vmem:[#allocation32_spill] sm:$0xff] }
 0x5da   :  { %6542 = vmatpush1.bf16.msra.mxu0 %v9512_v9  ;;  %6670 = vmatpush1.bf16.msra.mxu1 %v9790_v15  ;;  %v12698_v9 = vld [vmem:[#allocation23_spill] sm:$0xff]  ;;  %v12708_v15 = vld [vmem:[#allocation40_spill] sm:$0xff] }
 0x5db   :  { %6544 = vmatprep.subr.bf16.mxu0 %v9521_v5  ;;  %6672 = vmatprep.subr.bf16.mxu1 %v9793_v20  ;;  %v12699_v5 = vld [vmem:[#allocation33_spill] sm:$0xff] }
 0x5dc   :  { %v12709_v20 = vld [vmem:[#allocation41_spill] sm:$0xff] }
 0x5de   :  { %6546 = vmatpush1.bf16.msra.mxu0 %v9530_v28  ;;  %6674 = vmatpush1.bf16.msra.mxu1 %v9808_v57  ;;  %v12700_v28 = vld [vmem:[#allocation24_spill] sm:$0xff]  ;;  %v12710_v57 = vld [vmem:[#allocation42_spill] sm:$0xff] }
 0x5df   :  { %6548 = vmatprep.subr.bf16.mxu0 %v9539_v32  ;;  %6676 = vmatprep.subr.bf16.mxu1 %v9811_v60  ;;  %v12701_v32 = vld [vmem:[#allocation34_spill] sm:$0xff]  ;;  %v12711_v60 = vld [vmem:[#allocation43_spill] sm:$0xff] }
 0x5e2   :  { %6550 = vmatpush1.bf16.msra.mxu0 %v9548_v40  ;;  %6678 = vmatpush1.bf16.msra.mxu1 %v9826_v30  ;;  %v12702_v40 = vld [vmem:[#allocation25_spill] sm:$0xff]  ;;  %v12712_v30 = vld [vmem:[#allocation44_spill] sm:$0xff] }
 0x5e3   :  { %6552 = vmatprep.subr.bf16.mxu0 %v9557_v13  ;;  %6680 = vmatprep.subr.bf16.mxu1 %v9829_v42  ;;  %v12703_v13 = vld [vmem:[#allocation35_spill] sm:$0xff]  ;;  %v12713_v42 = vld [vmem:[#allocation45_spill] sm:$0xff] }
 0x5e6   :  { %6554 = vmatpush1.bf16.msra.mxu0 %v9566_v48  ;;  %6682 = vmatpush1.bf16.msra.mxu1 %v9844_v3  ;;  %v12704_v48 = vld [vmem:[#allocation36_spill] sm:$0xff]  ;;  %v12714_v3 = vld [vmem:[#allocation46_spill] sm:$0xff] }
 0x5e7   :  { %6556 = vmatprep.subr.bf16.mxu0 %v9575_v54  ;;  %6684 = vmatprep.subr.bf16.mxu1 %v9847_v14  ;;  %v12705_v54 = vld [vmem:[#allocation37_spill] sm:$0xff]  ;;  %v12715_v14 = vld [vmem:[#allocation47_spill] sm:$0xff] }
 0x5ea   :  { %6558 = vmatpush1.bf16.msra.mxu0 %v12684_v39  ;;  %6686 = vmatpush1.bf16.msra.mxu1 %v12685_v23  ;;  %v12725_v39 = vld [vmem:[#allocation57_spill] sm:$0xff]  ;;  %v12726_v23 = vld [vmem:[#allocation58_spill] sm:$0xff] }
 0x5eb   :  { %6560 = vmatprep.subr.bf16.mxu0 %v12686_v47  ;;  %6688 = vmatprep.subr.bf16.mxu1 %v12687_v52  ;;  %v12727_v47 = vld [vmem:[#allocation59_spill] sm:$0xff]  ;;  %v12728_v52 = vld [vmem:[#allocation60_spill] sm:$0xff] }
 0x5ee   :  { %6562 = vmatpush1.bf16.msra.mxu0 %v12688_v55  ;;  %6690 = vmatpush1.bf16.msra.mxu1 %v12689_v58  ;;  %v12729_v55 = vld [vmem:[#allocation61_spill] sm:$0xff]  ;;  %v12730_v58 = vld [vmem:[#allocation62_spill] sm:$0xff] }
 0x5ef   :  { %6564 = vmatprep.subr.bf16.mxu0 %v12690_v59  ;;  %6692 = vmatprep.subr.bf16.mxu1 %v12691_v63  ;;  %v12731_v59 = vld [vmem:[#allocation63_spill] sm:$0xff]  ;;  %v12732_v63 = vld [vmem:[#allocation64_spill] sm:$0xff] }
 0x5f2   :  { %6566 = vmatpush1.bf16.msra.mxu0 %v12692_v62  ;;  %6694 = vmatpush1.bf16.msra.mxu1 %v12693_v8  ;;  %v12733_v62 = vld [vmem:[#allocation65_spill] sm:$0xff]  ;;  %v12734_v8 = vld [vmem:[#allocation66_spill] sm:$0xff] }
 0x5f3   :  { %6568 = vmatprep.subr.bf16.mxu0 %v12694_v56  ;;  %6696 = vmatprep.subr.bf16.mxu1 %v12695_v16  ;;  %v12735_v56 = vld [vmem:[#allocation67_spill] sm:$0xff]  ;;  %v12736_v16 = vld [vmem:[#allocation68_spill] sm:$0xff] }
 0x5f6   :  { %6570 = vmatpush1.bf16.msra.mxu0 %v12696_v19  ;;  %6698 = vmatpush1.bf16.msra.mxu1 %v12697_v21  ;;  %v12737_v19 = vld [vmem:[#allocation69_spill] sm:$0xff]  ;;  %v12738_v21 = vld [vmem:[#allocation70_spill] sm:$0xff] }
 0x5f7   :  { %6572 = vmatprep.subr.bf16.mxu0 %v12698_v9  ;;  %6700 = vmatprep.subr.bf16.mxu1 %v12699_v5  ;;  %v12739_v9 = vld [vmem:[#allocation71_spill] sm:$0xff]  ;;  %v12740_v5 = vld [vmem:[#allocation72_spill] sm:$0xff] }
 0x5fa   :  { %6574 = vmatpush1.bf16.msra.mxu0 %v12700_v28  ;;  %6702 = vmatpush1.bf16.msra.mxu1 %v12701_v32  ;;  %v12741_v28 = vld [vmem:[#allocation73_spill] sm:$0xff]  ;;  %v12742_v32 = vld [vmem:[#allocation74_spill] sm:$0xff] }
 0x5fb   :  { %6576 = vmatprep.subr.bf16.mxu0 %v12702_v40  ;;  %6704 = vmatprep.subr.bf16.mxu1 %v12703_v13  ;;  %v12743_v40 = vld [vmem:[#allocation75_spill] sm:$0xff]  ;;  %v12744_v13 = vld [vmem:[#allocation76_spill] sm:$0xff] }
 0x5fe   :  { %6578 = vmatpush1.bf16.msra.mxu0 %v12704_v48  ;;  %6706 = vmatpush1.bf16.msra.mxu1 %v12705_v54  ;;  %v12745_v48 = vld [vmem:[#allocation77_spill] sm:$0xff]  ;;  %v12746_v54 = vld [vmem:[#allocation78_spill] sm:$0xff] }
 0x5ff   :  { %6580 = vmatprep.subr.bf16.mxu0 %v12706_v43  ;;  %6708 = vmatprep.subr.bf16.mxu1 %v12707_v18  ;;  %v12747_v43 = vld [vmem:[#allocation79_spill] sm:$0xff]  ;;  %v12748_v18 = vld [vmem:[#allocation80_spill] sm:$0xff] }
 0x694   :  { %v2315_v31 = vpop.f32.mrb[8].mxu0  ;;  %v10623_v36 = vpop.f32.mrb[8].mxu1 }
 0x695   :  { %v10626_v46 = vsub.f32 %v10014_v50, %v2315_v31  ;;  %v2317_v45 = vpop.f32.mrb[9].mxu0  ;;  %v2459_v29 = vpop.f32.mrb[9].mxu1  ;;  %v12750_v31 = vld [vmem:[#allocation82_spill] sm:$0xff] }
 0x696   :  { %v10629_v10 = vsub.f32 %v10001_v38, %v2317_v45  ;;  %v10632_v26 = vsub.f32 %v10041_v2, %v2459_v29  ;;  %v12716_v2 = vld [vmem:[#allocation48_spill] sm:$0xff]  ;;  %v12751_v45 = vld [vmem:[#allocation83_spill] sm:$0xff] }
 0x697   :  { %v2466_v53 = vmul.f32 %v10626_v46, %v10626_v46  ;;  %v12752_v29 = vld [vmem:[#allocation84_spill] sm:$0xff] }
 0x698   :  { %v2467_v27 = vmul.f32 %v10629_v10, %v10629_v10  ;;  %v2469_v7 = vmul.f32 %v10632_v26, %v10632_v26 }
 0x69a   :  { %2534 = vmatprep.mubr.f32.mxu0 %v2467_v27  ;;  %2676 = vmatprep.mubr.f32.mxu1 %v2467_v27  ;;  %v12753_v27 = vld [vmem:[#allocation85_spill] sm:$0xff] }
 0x69b   :  { %2535 = vmatmul.mubr.f32.vlgmr.msra.gmra.mrb[10].mxu0 %v2466_v53  ;;  %2677 = vmatmul.mubr.f32.vlgmr.msra.gmra.mrb[10].mxu1 %v2466_v53  ;;  %v12754_v53 = vld [vmem:[#allocation86_spill] sm:$0xff] }
 0x69c   :  { %6582 = vmatpush1.bf16.msra.mxu0 %v10003_v4  ;;  %6710 = vmatpush1.bf16.msra.mxu1 %v12708_v15  ;;  %v12717_v4 = vld [vmem:[#allocation49_spill] sm:$0xff]  ;;  %v12756_v15 = vld [vmem:[#allocation88_spill] sm:$0xff] }
 0x69d   :  { %2605 = vmatprep.mubr.f32.mxu0 %v2469_v7  ;;  %2747 = vmatprep.mubr.f32.mxu1 %v2469_v7  ;;  %v12755_v7 = vld [vmem:[#allocation87_spill] sm:$0xff] }
 0x69e   :  { %6584 = vmatprep.subr.bf16.mxu0 %v12709_v20  ;;  %6712 = vmatprep.subr.bf16.mxu1 %v12710_v57  ;;  %v12757_v20 = vld [vmem:[#allocation89_spill] sm:$0xff]  ;;  %v12758_v57 = vld [vmem:[#allocation90_spill] sm:$0xff] }
 0x6a0   :  { %6586 = vmatpush1.bf16.msra.mxu0 %v12711_v60  ;;  %6714 = vmatpush1.bf16.msra.mxu1 %v12712_v30  ;;  %v10692_v60 = vld [vmem:[#allocation2 + $0x91] ss:$8 sm:$0x3]  ;;  %v12759_v30 = vld [vmem:[#allocation91_spill] sm:$0xff] }
 0x6a1   :  { %6588 = vmatprep.subr.bf16.mxu0 %v12713_v42  ;;  %6716 = vmatprep.subr.bf16.mxu1 %v12714_v3  ;;  %v2817_v42 = vld [vmem:[%s12497_s10 + $0x8] sm:$0xff] }
 0x6a2   :  { %v2821_v3 = vld [vmem:[%s12497_s10 + $0x28] sm:$0xff] }
 0x6a4   :  { %6590 = vmatpush1.bf16.msra.mxu0 %v12715_v14  ;;  %6718 = vmatpush1.bf16.msra.mxu1 %v12716_v2  ;;  %v2819_v14 = vld [vmem:[%s12497_s10 + $0x18] sm:$0xff] }
 0x6a5   :  { %6592 = vmatprep.subr.bf16.mxu0 %v12717_v4  ;;  %6720 = vmatprep.subr.bf16.mxu1 %v12718_v35  ;;  %v12760_v2 = vld [vmem:[#allocation13_spill] sm:$0xff]  ;;  %v10714_v4 = vpop.permute.xlu0 %1891  ;;  %v2816_v35 = vld [vmem:[%s12497_s10] sm:$0xff] }
 0x6a8   :  { %6594 = vmatpush1.bf16.msra.mxu0 %v12719_v61  ;;  %6722 = vmatpush1.bf16.msra.mxu1 %v12720_v12  ;;  %v2820_v61 = vld [vmem:[%s12497_s10 + $0x20] sm:$0xff]  ;;  %v10726_v12 = vsub.f32 %v10550_v11, %v10623_v36  ;;  %v2831_v11 = vld [vmem:[%s12497_s10 + $0x78] sm:$0xff] }
 0x6a9   :  { %6596 = vmatprep.subr.bf16.mxu0 %v12721_v51  ;;  %6724 = vmatprep.subr.bf16.mxu1 %v12722_v24  ;;  %v6771_v51 = vpack.c.bf16 %v2821_v3, %v2817_v42  ;;  %v2822_v24 = vld [vmem:[%s12497_s10 + $0x30] sm:$0xff]  ;;  %v2855_v42 = vld [vmem:[%s12497_s10 + $0x138] sm:$0xff] }
 0x6ac   :  { %6598 = vmatpush1.bf16.msra.mxu0 %v12723_v34  ;;  %6726 = vmatpush1.bf16.msra.mxu1 %v12724_v6  ;;  %v2825_v34 = vld [vmem:[%s12497_s10 + $0x48] sm:$0xff] }
 0x6ad   :  { %6600 = vmatprep.subr.bf16.mxu0 %v12725_v39  ;;  %6728 = vmatprep.subr.bf16.mxu1 %v12726_v23  ;;  %v6773_v39 = vpack.c.bf16 %v2820_v61, %v2816_v35 }
 0x6b0   :  { %6602 = vmatpush1.bf16.msra.mxu0 %v12727_v47  ;;  %6730 = vmatpush1.bf16.msra.mxu1 %v12728_v52  ;;  %v2824_v47 = vld [vmem:[%s12497_s10 + $0x40] sm:$0xff] }
 0x6b1   :  { %6604 = vmatprep.subr.bf16.mxu0 %v12729_v55  ;;  %6732 = vmatprep.subr.bf16.mxu1 %v12730_v58  ;;  %v2828_v52 = vld [vmem:[%s12497_s10 + $0x60] sm:$0xff]  ;;  %v2468_v55 = vmul.f32 %v10726_v12, %v10726_v12 }
 0x6b4   :  { %6606 = vmatpush1.bf16.msra.mxu0 %v12731_v59  ;;  %6734 = vmatpush1.bf16.msra.mxu1 %v12732_v63  ;;  %v2833_v63 = vld [vmem:[%s12497_s10 + $0x88] sm:$0xff] }
 0x6b5   :  { %6608 = vmatprep.subr.bf16.mxu0 %v12733_v62  ;;  %6736 = vmatprep.subr.bf16.mxu1 %v12734_v8  ;;  %v2837_v62 = vld [vmem:[%s12497_s10 + $0xa8] sm:$0xff]  ;;  %v2835_v8 = vld [vmem:[%s12497_s10 + $0x98] sm:$0xff] }
 0x6b8   :  { %6610 = vmatpush1.bf16.msra.mxu0 %v12735_v56  ;;  %6738 = vmatpush1.bf16.msra.mxu1 %v12736_v16  ;;  %v2839_v56 = vld [vmem:[%s12497_s10 + $0xb8] sm:$0xff] }
 0x6b9   :  { %6612 = vmatprep.subr.bf16.mxu0 %v12737_v19  ;;  %6740 = vmatprep.subr.bf16.mxu1 %v12738_v21  ;;  %v6777_v19 = vpack.c.bf16 %v2828_v52, %v2824_v47  ;;  %v2858_v47 = vld [vmem:[%s12497_s10 + $0x150] sm:$0xff] }
 0x6ba   :  { %v2862_v52 = vld [vmem:[%s12497_s10 + $0x170] sm:$0xff] }
 0x6bc   :  { %6614 = vmatpush1.bf16.msra.mxu0 %v12739_v9  ;;  %6742 = vmatpush1.bf16.msra.mxu1 %v12740_v5  ;;  %v2832_v9 = vld [vmem:[%s12497_s10 + $0x80] sm:$0xff] }
 0x6bd   :  { %6616 = vmatprep.subr.bf16.mxu0 %v12741_v28  ;;  %6744 = vmatprep.subr.bf16.mxu1 %v12742_v32  ;;  %v2836_v5 = vld [vmem:[%s12497_s10 + $0xa0] sm:$0xff]  ;;  %v6779_v28 = vpack.c.bf16 %v2837_v62, %v2833_v63  ;;  %v6843_v32 = vpack.c.bf16 %v2839_v56, %v2835_v8  ;;  %v6857_v63 = vpack.c.bf16 %v2862_v52, %v2858_v47 }
 0x6be   :  { %v2864_v62 = vld [vmem:[%s12497_s10 + $0x180] sm:$0xff] }
 0x6bf   :  { %v2868_v8 = vld [vmem:[%s12497_s10 + $0x1a0] sm:$0xff] }
 0x6c0   :  { %6618 = vmatpush1.bf16.msra.mxu0 %v12743_v40  ;;  %6746 = vmatpush1.bf16.msra.mxu1 %v12744_v13  ;;  %v2834_v40 = vld [vmem:[%s12497_s10 + $0x90] sm:$0xff] }
 0x6c1   :  { %6620 = vmatprep.subr.bf16.mxu0 %v12745_v48  ;;  %6748 = vmatprep.subr.bf16.mxu1 %v12746_v54  ;;  %v2838_v13 = vld [vmem:[%s12497_s10 + $0xb0] sm:$0xff]  ;;  %v2841_v48 = vld [vmem:[%s12497_s10 + $0xc8] sm:$0xff] }
 0x6c2   :  { %v2845_v54 = vld [vmem:[%s12497_s10 + $0xe8] sm:$0xff] }
 0x6c4   :  { %6622 = vmatpush1.bf16.msra.mxu0 %v12747_v43  ;;  %6750 = vmatpush1.bf16.msra.mxu1 %v12748_v18  ;;  %v2843_v43 = vld [vmem:[%s12497_s10 + $0xd8] sm:$0xff] }
 0x6c5   :  { %6624 = vmatprep.subr.bf16.mxu0 %v12749_v22  ;;  %6752 = vmatprep.subr.bf16.mxu1 %v12750_v31  ;;  %v2847_v18 = vld [vmem:[%s12497_s10 + $0xf8] sm:$0xff]  ;;  %v6781_v22 = vpack.c.bf16 %v2836_v5, %v2832_v9  ;;  %v6845_v31 = vpack.c.bf16 %v2838_v13, %v2834_v40  ;;  %v2873_v9 = vld [vmem:[%s12497_s10 + $0x1c8] sm:$0xff]  ;;  %v6797_v40 = vpack.c.bf16 %v2868_v8, %v2864_v62 }
 0x6c6   :  { %v2877_v5 = vld [vmem:[%s12497_s10 + $0x1e8] sm:$0xff] }
 0x6c7   :  { %v2905_v62 = vld [vmem:[%s12497_s10 + $0x2c8] sm:$0xff] }
 0x6c8   :  { %6626 = vmatpush1.bf16.msra.mxu0 %v12751_v45  ;;  %6754 = vmatpush1.bf16.msra.mxu1 %v12752_v29  ;;  %v2840_v45 = vld [vmem:[%s12497_s10 + $0xc0] sm:$0xff]  ;;  %v2909_v8 = vld [vmem:[%s12497_s10 + $0x2e8] sm:$0xff] }
 0x6c9   :  { %6628 = vmatprep.subr.bf16.mxu0 %v12753_v27  ;;  %6756 = vmatprep.subr.bf16.mxu1 %v12754_v53  ;;  %v2844_v29 = vld [vmem:[%s12497_s10 + $0xe0] sm:$0xff]  ;;  %v6783_v27 = vpack.c.bf16 %v2845_v54, %v2841_v48  ;;  %v6847_v53 = vpack.c.bf16 %v2847_v18, %v2843_v43  ;;  %v6799_v43 = vpack.c.bf16 %v2877_v5, %v2873_v9 }
 0x6ca   :  { %v6785_v3 = vpack.c.bf16 %v2844_v29, %v2840_v45  ;;  %v2872_v48 = vld [vmem:[%s12497_s10 + $0x1c0] sm:$0xff]  ;;  %v2881_v45 = vld [vmem:[%s12497_s10 + $0x208] sm:$0xff] }
 0x6cb   :  { %v2876_v54 = vld [vmem:[%s12497_s10 + $0x1e0] sm:$0xff]  ;;  %v2885_v29 = vld [vmem:[%s12497_s10 + $0x228] sm:$0xff] }
 0x6cc   :  { %6630 = vmatpush1.bf16.msra.mxu0 %v12755_v7  ;;  %6758 = vmatpush1.bf16.msra.mxu1 %v12756_v15  ;;  %v2842_v7 = vld [vmem:[%s12497_s10 + $0xd0] sm:$0xff]  ;;  %v2904_v9 = vld [vmem:[%s12497_s10 + $0x2c0] sm:$0xff] }
 0x6cd   :  { %6632 = vmatprep.subr.bf16.mxu0 %v12757_v20  ;;  %6760 = vmatprep.subr.bf16.mxu1 %v12758_v57  ;;  %v2846_v15 = vld [vmem:[%s12497_s10 + $0xf0] sm:$0xff]  ;;  %v2849_v20 = vld [vmem:[%s12497_s10 + $0x108] sm:$0xff]  ;;  %v2908_v5 = vld [vmem:[%s12497_s10 + $0x2e0] sm:$0xff] }
 0x6ce   :  { %v2853_v57 = vld [vmem:[%s12497_s10 + $0x128] sm:$0xff] }
 0x6cf   :  { %v6787_v35 = vpack.c.bf16 %v2853_v57, %v2849_v20  ;;  %v2880_v20 = vld [vmem:[%s12497_s10 + $0x200] sm:$0xff] }
 0x6d0   :  { %6634 = vmatpush1.bf16.msra.mxu0 %v10481_v41  ;;  %6762 = vmatpush1.bf16.msra.mxu1 %v12759_v30  ;;  %v2823_v41 = vld [vmem:[%s12497_s10 + $0x38] sm:$0xff]  ;;  %v2884_v57 = vld [vmem:[%s12497_s10 + $0x220] sm:$0xff] }
 0x6d1   :  { %6636 = vmatprep.subr.bf16.mxu0 %v10493_v0  ;;  %6764 = vmatprep.subr.bf16.mxu1 %v10495_v17  ;;  %v1902_v0 = vrot.slane %v10692_v60, %v12760_v2  ;;  %v10712_v17 = vld [vmem:[#allocation2 + $0x92] ss:$8 sm:$0x3] }
 0x6d2   :  { %v1917_v36 = vrot.slane %v10712_v17, %v12760_v2  ;;  %v2851_v30 = vld [vmem:[%s12497_s10 + $0x118] sm:$0xff] }
 0x6d3   :  { %v1906_v6 = vmul.f32 %v1902_v0, %v10714_v4  ;;  %v2852_v0 = vld [vmem:[%s12497_s10 + $0x120] sm:$0xff]  ;;  %v6851_v61 = vpack.c.bf16 %v2855_v42, %v2851_v30  ;;  %v6803_v30 = vpack.c.bf16 %v2885_v29, %v2881_v45 }
 0x6d4   :  { %6638 = vmatpush1.bf16.msra.mxu0 %v10517_v1  ;;  %6766 = vmatpush1.bf16.msra.mxu1 %v10519_v49  ;;  %v6835_v1 = vpack.c.bf16 %v2823_v41, %v2819_v14  ;;  %v2818_v49 = vld [vmem:[%s12497_s10 + $0x10] sm:$0xff]  ;;  %v6849_v14 = vpack.c.bf16 %v2846_v15, %v2842_v7  ;;  %v2848_v41 = vld [vmem:[%s12497_s10 + $0x100] sm:$0xff]  ;;  %v6801_v7 = vpack.c.bf16 %v2876_v54, %v2872_v48  ;;  %v2913_v48 = vld [vmem:[%s12497_s10 + $0x308] sm:$0xff] }
 0x6d5   :  { %6640 = vmatprep.subr.bf16.mxu0 %v10526_v25  ;;  %6768 = vmatprep.subr.bf16.mxu1 %v10528_v33  ;;  %v2829_v25 = vld [vmem:[%s12497_s10 + $0x68] sm:$0xff]  ;;  %v2827_v33 = vld [vmem:[%s12497_s10 + $0x58] sm:$0xff]  ;;  %v6837_v23 = vpack.c.bf16 %v2822_v24, %v2818_v49  ;;  %v1921_v16 = vadd.f32 %v1917_v36, %v1906_v6  ;;  %v2856_v36 = vld [vmem:[%s12497_s10 + $0x140] sm:$0xff] }
 0x6d6   :  { %v6775_v58 = vpack.c.bf16 %v2829_v25, %v2825_v34  ;;  %v6839_v59 = vpack.c.bf16 %v2831_v11, %v2827_v33  ;;  %v2857_v49 = vld [vmem:[%s12497_s10 + $0x148] sm:$0xff]  ;;  %v2859_v34 = vld [vmem:[%s12497_s10 + $0x158] sm:$0xff]  ;;  %v6789_v33 = vpack.c.bf16 %v2852_v0, %v2848_v41  ;;  %v2860_v6 = vld [vmem:[%s12497_s10 + $0x160] sm:$0xff] }
 0x6d7   :  { %v2861_v24 = vld [vmem:[%s12497_s10 + $0x168] sm:$0xff]  ;;  %v2863_v25 = vld [vmem:[%s12497_s10 + $0x178] sm:$0xff]  ;;  %v2912_v45 = vld [vmem:[%s12497_s10 + $0x300] sm:$0xff] }
 0x6d8   :  { %6642 = vmatpush1.bf16.msra.mxu0 %v10541_v37  ;;  %6770 = vmatpush1.bf16.msra.mxu1 %v10543_v44  ;;  %v2826_v37 = vld [vmem:[%s12497_s10 + $0x50] sm:$0xff]  ;;  %v2889_v41 = vld [vmem:[%s12497_s10 + $0x248] sm:$0xff]  ;;  %v2916_v29 = vld [vmem:[%s12497_s10 + $0x320] sm:$0xff] }
 0x6d9   :  { %6772 = vmatprep.subr.bf16.mxu0 %v6771_v51  ;;  %6836 = vmatprep.subr.bf16.mxu1 %v6835_v1  ;;  %v2830_v44 = vld [vmem:[%s12497_s10 + $0x70] sm:$0xff]  ;;  %v2893_v0 = vld [vmem:[%s12497_s10 + $0x268] sm:$0xff] }
 0x6da   :  { %v6841_v21 = vpack.c.bf16 %v2830_v44, %v2826_v37  ;;  %v2850_v51 = vld [vmem:[%s12497_s10 + $0x110] sm:$0xff]  ;;  %v2871_v37 = vld [vmem:[%s12497_s10 + $0x1b8] sm:$0xff]  ;;  %v6793_v44 = vpack.c.bf16 %v2860_v6, %v2856_v36  ;;  %v2897_v36 = vld [vmem:[%s12497_s10 + $0x288] sm:$0xff] }
 0x6db   :  { %2606 = vmatmul.mubr.f32.vlgmr.msra.gmra.mrb[10].mxu0 %v2468_v55  ;;  %2748 = vmatmul.mubr.f32.vlgmr.msra.gmra.mrb[10].mxu1 %v2468_v55  ;;  %v2854_v1 = vld [vmem:[%s12497_s10 + $0x130] sm:$0xff]  ;;  %v2865_v55 = vld [vmem:[%s12497_s10 + $0x188] sm:$0xff] }
 0x6dc   :  { %6774 = vmatpush1.bf16.msra.mxu0 %v6773_v39  ;;  %6838 = vmatpush1.bf16.msra.mxu1 %v6837_v23  ;;  %v6853_v11 = vpack.c.bf16 %v2854_v1, %v2850_v51  ;;  %v6791_v39 = vpack.c.bf16 %v2861_v24, %v2857_v49  ;;  %v6855_v23 = vpack.c.bf16 %v2863_v25, %v2859_v34  ;;  %v2888_v49 = vld [vmem:[%s12497_s10 + $0x240] sm:$0xff]  ;;  %v2901_v6 = vld [vmem:[%s12497_s10 + $0x2a8] sm:$0xff] }
 0x6dd   :  { %6776 = vmatprep.subr.bf16.mxu0 %v6775_v58  ;;  %6840 = vmatprep.subr.bf16.mxu1 %v6839_v59  ;;  %v2869_v58 = vld [vmem:[%s12497_s10 + $0x1a8] sm:$0xff]  ;;  %v2867_v59 = vld [vmem:[%s12497_s10 + $0x198] sm:$0xff]  ;;  %v6805_v51 = vpack.c.bf16 %v2884_v57, %v2880_v20  ;;  %v2892_v24 = vld [vmem:[%s12497_s10 + $0x260] sm:$0xff]  ;;  %v6807_v34 = vpack.c.bf16 %v2893_v0, %v2889_v41 }
 0x6de   :  { %3008 = vmatprep.mubr.f32.mxu0 %v1921_v16  ;;  %3079 = vmatprep.mubr.f32.mxu1 %v1921_v16  ;;  %v6795_v56 = vpack.c.bf16 %v2869_v58, %v2865_v55  ;;  %v6859_v16 = vpack.c.bf16 %v2871_v37, %v2867_v59  ;;  %v6809_v47 = vpack.c.bf16 %v2892_v24, %v2888_v49  ;;  %v2896_v55 = vld [vmem:[%s12497_s10 + $0x280] sm:$0xff]  ;;  %v2917_v54 = vld [vmem:[%s12497_s10 + $0x328] sm:$0xff] }
 0x6df   :  { %v2900_v58 = vld [vmem:[%s12497_s10 + $0x2a0] sm:$0xff]  ;;  %v6811_v59 = vpack.c.bf16 %v2901_v6, %v2897_v36  ;;  %v2921_v20 = vld [vmem:[%s12497_s10 + $0x348] sm:$0xff] }
 0x6e0   :  { %6778 = vmatpush1.bf16.msra.mxu0 %v6777_v19  ;;  %6842 = vmatpush1.bf16.msra.mxu1 %v6841_v21  ;;  %v2866_v19 = vld [vmem:[%s12497_s10 + $0x190] sm:$0xff]  ;;  %v2925_v57 = vld [vmem:[%s12497_s10 + $0x368] sm:$0xff]  ;;  %v2920_v41 = vld [vmem:[%s12497_s10 + $0x340] sm:$0xff] }
 0x6e1   :  { %6780 = vmatprep.subr.bf16.mxu0 %v6779_v28  ;;  %6844 = vmatprep.subr.bf16.mxu1 %v6843_v32  ;;  %v2870_v21 = vld [vmem:[%s12497_s10 + $0x1b0] sm:$0xff]  ;;  %v2875_v28 = vld [vmem:[%s12497_s10 + $0x1d8] sm:$0xff]  ;;  %v2924_v0 = vld [vmem:[%s12497_s10 + $0x360] sm:$0xff] }
 0x6e2   :  { %v2879_v32 = vld [vmem:[%s12497_s10 + $0x1f8] sm:$0xff]  ;;  %v6861_v13 = vpack.c.bf16 %v2870_v21, %v2866_v19  ;;  %v6813_v19 = vpack.c.bf16 %v2900_v58, %v2896_v55  ;;  %v2929_v49 = vld [vmem:[%s12497_s10 + $0x388] sm:$0xff]  ;;  %v2928_v36 = vld [vmem:[%s12497_s10 + $0x380] sm:$0xff] }
 0x6e3   :  { %v6863_v18 = vpack.c.bf16 %v2879_v32, %v2875_v28  ;;  %v6815_v28 = vpack.c.bf16 %v2909_v8, %v2905_v62  ;;  %v2933_v24 = vld [vmem:[%s12497_s10 + $0x3a8] sm:$0xff]  ;;  %v2932_v6 = vld [vmem:[%s12497_s10 + $0x3a0] sm:$0xff] }
 0x6e4   :  { %6782 = vmatpush1.bf16.msra.mxu0 %v6781_v22  ;;  %6846 = vmatpush1.bf16.msra.mxu1 %v6845_v31  ;;  %v2874_v22 = vld [vmem:[%s12497_s10 + $0x1d0] sm:$0xff]  ;;  %v2937_v55 = vld [vmem:[%s12497_s10 + $0x3c8] sm:$0xff]  ;;  %v6829_v62 = vpack.c.bf16 %v2932_v6, %v2928_v36  ;;  %v3126_v36 = vld [vmem:[%s12498_s11 + $0x120] sm:$0xff] }
 0x6e5   :  { %6784 = vmatprep.subr.bf16.mxu0 %v6783_v27  ;;  %6848 = vmatprep.subr.bf16.mxu1 %v6847_v53  ;;  %v2878_v31 = vld [vmem:[%s12497_s10 + $0x1f0] sm:$0xff]  ;;  %v2883_v27 = vld [vmem:[%s12497_s10 + $0x218] sm:$0xff]  ;;  %v2941_v58 = vld [vmem:[%s12497_s10 + $0x3e8] sm:$0xff] }
 0x6e6   :  { %v2887_v53 = vld [vmem:[%s12497_s10 + $0x238] sm:$0xff]  ;;  %v6865_v15 = vpack.c.bf16 %v2878_v31, %v2874_v22  ;;  %v6817_v22 = vpack.c.bf16 %v2908_v5, %v2904_v9  ;;  %v2942_v9 = vld [vmem:[%s12497_s10 + $0x3f0] sm:$0xff]  ;;  %v3127_v6 = vld [vmem:[%s12498_s11 + $0x128] sm:$0xff] }
 0x6e7   :  { %v6867_v42 = vpack.c.bf16 %v2887_v53, %v2883_v27  ;;  %v6819_v27 = vpack.c.bf16 %v2917_v54, %v2913_v48  ;;  %v3106_v48 = vld [vmem:[%s12498_s11 + $0x80] sm:$0xff] }
 0x6e8   :  { %6786 = vmatpush1.bf16.msra.mxu0 %v6785_v3  ;;  %6850 = vmatpush1.bf16.msra.mxu1 %v6849_v14  ;;  %v2882_v3 = vld [vmem:[%s12497_s10 + $0x210] sm:$0xff] }
 0x6e9   :  { %6788 = vmatprep.subr.bf16.mxu0 %v6787_v35  ;;  %6852 = vmatprep.subr.bf16.mxu1 %v6851_v61  ;;  %v2886_v14 = vld [vmem:[%s12497_s10 + $0x230] sm:$0xff]  ;;  %v2891_v35 = vld [vmem:[%s12497_s10 + $0x258] sm:$0xff] }
 0x6ea   :  { %v2895_v61 = vld [vmem:[%s12497_s10 + $0x278] sm:$0xff]  ;;  %v6869_v1 = vpack.c.bf16 %v2886_v14, %v2882_v3  ;;  %v6821_v3 = vpack.c.bf16 %v2916_v29, %v2912_v45  ;;  %v3122_v29 = vld [vmem:[%s12498_s11 + $0x100] sm:$0xff] }
 0x6eb   :  { %v6871_v25 = vpack.c.bf16 %v2895_v61, %v2891_v35  ;;  %v6823_v35 = vpack.c.bf16 %v2925_v57, %v2921_v20  ;;  %v3140_v20 = vld [vmem:[%s12498_s11 + $0x190] sm:$0xff]  ;;  %v3141_v57 = vld [vmem:[%s12498_s11 + $0x198] sm:$0xff] }
 0x6ec   :  { %6790 = vmatpush1.bf16.msra.mxu0 %v6789_v33  ;;  %6854 = vmatpush1.bf16.msra.mxu1 %v6853_v11  ;;  %v2890_v33 = vld [vmem:[%s12497_s10 + $0x250] sm:$0xff] }
 0x6ed   :  { %6792 = vmatprep.subr.bf16.mxu0 %v6791_v39  ;;  %6856 = vmatprep.subr.bf16.mxu1 %v6855_v23  ;;  %v2894_v11 = vld [vmem:[%s12497_s10 + $0x270] sm:$0xff]  ;;  %v2899_v39 = vld [vmem:[%s12497_s10 + $0x298] sm:$0xff] }
 0x6ee   :  { %v2903_v23 = vld [vmem:[%s12497_s10 + $0x2b8] sm:$0xff]  ;;  %v6873_v52 = vpack.c.bf16 %v2894_v11, %v2890_v33  ;;  %v6825_v33 = vpack.c.bf16 %v2924_v0, %v2920_v41  ;;  %v3124_v41 = vld [vmem:[%s12498_s11 + $0x110] sm:$0xff] }
 0x6ef   :  { %v6875_v37 = vpack.c.bf16 %v2903_v23, %v2899_v39  ;;  %v6827_v39 = vpack.c.bf16 %v2933_v24, %v2929_v49  ;;  %v3142_v24 = vld [vmem:[%s12498_s11 + $0x1a0] sm:$0xff] }
 0x6f0   :  { %6794 = vmatpush1.bf16.msra.mxu0 %v6793_v44  ;;  %6858 = vmatpush1.bf16.msra.mxu1 %v6857_v63  ;;  %v2898_v44 = vld [vmem:[%s12497_s10 + $0x290] sm:$0xff] }
 0x6f1   :  { %6796 = vmatprep.subr.bf16.mxu0 %v6795_v56  ;;  %6860 = vmatprep.subr.bf16.mxu1 %v6859_v16  ;;  %v2902_v63 = vld [vmem:[%s12497_s10 + $0x2b0] sm:$0xff]  ;;  %v2907_v56 = vld [vmem:[%s12497_s10 + $0x2d8] sm:$0xff] }
 0x6f2   :  { %v2911_v16 = vld [vmem:[%s12497_s10 + $0x2f8] sm:$0xff]  ;;  %v6877_v21 = vpack.c.bf16 %v2902_v63, %v2898_v44  ;;  %v12761_v44 = vld [vmem:[#allocation12_spill] sm:$0xff] }
 0x6f3   :  { %v6879_v32 = vpack.c.bf16 %v2911_v16, %v2907_v56  ;;  %v1898_v63 = vrot.slane %v10692_v60, %v12761_v44  ;;  %v2936_v56 = vld [vmem:[%s12497_s10 + $0x3c0] sm:$0xff]  ;;  %v6831_v16 = vpack.c.bf16 %v2941_v58, %v2937_v55  ;;  %v2938_v60 = vld [vmem:[%s12497_s10 + $0x3d0] sm:$0xff]  ;;  %v1913_v5 = vrot.slane %v10712_v17, %v12761_v44  ;;  %v3107_v17 = vld [vmem:[%s12498_s11 + $0x88] sm:$0xff] }
 0x6f4   :  { %6798 = vmatpush1.bf16.msra.mxu0 %v6797_v40  ;;  %6862 = vmatpush1.bf16.msra.mxu1 %v6861_v13  ;;  %v2906_v40 = vld [vmem:[%s12497_s10 + $0x2d0] sm:$0xff]  ;;  %v6899_v54 = vpack.c.bf16 %v3107_v17, %v3106_v48  ;;  %v6941_v55 = vpack.c.bf16 %v3127_v6, %v3126_v36  ;;  %v3131_v17 = vld [vmem:[%s12498_s11 + $0x148] sm:$0xff]  ;;  %v3153_v36 = vld [vmem:[%s12498_s11 + $0x1f8] sm:$0xff] }
 0x6f5   :  { %6800 = vmatprep.subr.bf16.mxu0 %v6799_v43  ;;  %6864 = vmatprep.subr.bf16.mxu1 %v6863_v18  ;;  %v2910_v13 = vld [vmem:[%s12497_s10 + $0x2f0] sm:$0xff]  ;;  %v2915_v43 = vld [vmem:[%s12497_s10 + $0x318] sm:$0xff] }
 0x6f6   :  { %v2919_v18 = vld [vmem:[%s12497_s10 + $0x338] sm:$0xff]  ;;  %v6881_v31 = vpack.c.bf16 %v2910_v13, %v2906_v40  ;;  %v6897_v40 = vpack.c.bf16 %v2942_v9, %v2938_v60  ;;  %v3147_v60 = vld [vmem:[%s12498_s11 + $0x1c8] sm:$0xff]  ;;  %v3104_v6 = vld [vmem:[%s12498_s11 + $0x70] sm:$0xff] }
 0x6f7   :  { %v6883_v53 = vpack.c.bf16 %v2919_v18, %v2915_v43  ;;  %v3139_v43 = vld [vmem:[%s12498_s11 + $0x188] sm:$0xff]  ;;  %v3090_v18 = vld [vmem:[%s12498_s11] sm:$0xff] }
 0x6f8   :  { %6802 = vmatpush1.bf16.msra.mxu0 %v6801_v7  ;;  %6866 = vmatpush1.bf16.msra.mxu1 %v6865_v15  ;;  %v2914_v7 = vld [vmem:[%s12497_s10 + $0x310] sm:$0xff] }
 0x6f9   :  { %6804 = vmatprep.subr.bf16.mxu0 %v6803_v30  ;;  %6868 = vmatprep.subr.bf16.mxu1 %v6867_v42  ;;  %v2918_v15 = vld [vmem:[%s12497_s10 + $0x330] sm:$0xff]  ;;  %v2923_v30 = vld [vmem:[%s12497_s10 + $0x358] sm:$0xff] }
 0x6fa   :  { %v2927_v42 = vld [vmem:[%s12497_s10 + $0x378] sm:$0xff]  ;;  %v6885_v14 = vpack.c.bf16 %v2918_v15, %v2914_v7 }
 0x6fb   :  { %v6887_v61 = vpack.c.bf16 %v2927_v42, %v2923_v30  ;;  %v3109_v15 = vld [vmem:[%s12498_s11 + $0x98] sm:$0xff]  ;;  %v6935_v42 = vpack.c.bf16 %v3141_v57, %v3140_v20  ;;  %v3118_v20 = vld [vmem:[%s12498_s11 + $0xe0] sm:$0xff]  ;;  %v3119_v57 = vld [vmem:[%s12498_s11 + $0xe8] sm:$0xff] }
 0x6fc   :  { %6806 = vmatpush1.bf16.msra.mxu0 %v6805_v51  ;;  %6870 = vmatpush1.bf16.msra.mxu1 %v6869_v1  ;;  %v2922_v51 = vld [vmem:[%s12497_s10 + $0x350] sm:$0xff] }
 0x6fd   :  { %6808 = vmatprep.subr.bf16.mxu0 %v6807_v34  ;;  %6872 = vmatprep.subr.bf16.mxu1 %v6871_v25  ;;  %v2926_v1 = vld [vmem:[%s12497_s10 + $0x370] sm:$0xff]  ;;  %v2931_v34 = vld [vmem:[%s12497_s10 + $0x398] sm:$0xff] }
 0x6fe   :  { %v2935_v25 = vld [vmem:[%s12497_s10 + $0x3b8] sm:$0xff]  ;;  %v6889_v11 = vpack.c.bf16 %v2926_v1, %v2922_v51  ;;  %v3111_v51 = vld [vmem:[%s12498_s11 + $0xa8] sm:$0xff] }
 0x6ff   :  { %v6891_v23 = vpack.c.bf16 %v2935_v25, %v2931_v34  ;;  %v3143_v34 = vld [vmem:[%s12498_s11 + $0x1a8] sm:$0xff]  ;;  %v3094_v25 = vld [vmem:[%s12498_s11 + $0x20] sm:$0xff] }
 0x700   :  { %6810 = vmatpush1.bf16.msra.mxu0 %v6809_v47  ;;  %6874 = vmatpush1.bf16.msra.mxu1 %v6873_v52  ;;  %v2930_v47 = vld [vmem:[%s12497_s10 + $0x390] sm:$0xff] }
 0x701   :  { %6812 = vmatprep.subr.bf16.mxu0 %v6811_v59  ;;  %6876 = vmatprep.subr.bf16.mxu1 %v6875_v37  ;;  %v2934_v52 = vld [vmem:[%s12497_s10 + $0x3b0] sm:$0xff]  ;;  %v2939_v59 = vld [vmem:[%s12497_s10 + $0x3d8] sm:$0xff] }
 0x702   :  { %v2943_v37 = vld [vmem:[%s12497_s10 + $0x3f8] sm:$0xff]  ;;  %v6893_v8 = vpack.c.bf16 %v2934_v52, %v2930_v47  ;;  %v3144_v52 = vld [vmem:[%s12498_s11 + $0x1b0] sm:$0xff] }
 0x703   :  { %v3113_v47 = vld [vmem:[%s12498_s11 + $0xb8] sm:$0xff] }
 0x704   :  { %6814 = vmatpush1.bf16.msra.mxu0 %v6813_v19  ;;  %6878 = vmatpush1.bf16.msra.mxu1 %v6877_v21  ;;  %v6895_v19 = vpack.c.bf16 %v2943_v37, %v2939_v59  ;;  %v2940_v21 = vld [vmem:[%s12497_s10 + $0x3e0] sm:$0xff]  ;;  %v3145_v59 = vld [vmem:[%s12498_s11 + $0x1b8] sm:$0xff]  ;;  %v3096_v37 = vld [vmem:[%s12498_s11 + $0x30] sm:$0xff] }
 0x705   :  { %6816 = vmatprep.subr.bf16.mxu0 %v6815_v28  ;;  %6880 = vmatprep.subr.bf16.mxu1 %v6879_v32  ;;  %v1905_v28 = vmul.f32 %v1898_v63, %v10714_v4  ;;  %v6833_v32 = vpack.c.bf16 %v2940_v21, %v2936_v56  ;;  %v3138_v4 = vld [vmem:[%s12498_s11 + $0x180] sm:$0xff]  ;;  %v3097_v63 = vld [vmem:[%s12498_s11 + $0x38] sm:$0xff] }
 0x706   :  { %v3129_v56 = vld [vmem:[%s12498_s11 + $0x138] sm:$0xff]  ;;  %v3146_v21 = vld [vmem:[%s12498_s11 + $0x1c0] sm:$0xff]  ;;  %v6913_v9 = vpack.c.bf16 %v3097_v63, %v3096_v37 }
 0x707   :  { %v1920_v13 = vadd.f32 %v1913_v5, %v1905_v28  ;;  %v6947_v48 = vpack.c.bf16 %v3147_v60, %v3146_v21 }
 0x708   :  { %6818 = vmatpush1.bf16.msra.mxu0 %v6817_v22  ;;  %6882 = vmatpush1.bf16.msra.mxu1 %v6881_v31  ;;  %v3091_v22 = vld [vmem:[%s12498_s11 + $0x8] sm:$0xff]  ;;  %v6931_v31 = vpack.c.bf16 %v3139_v43, %v3138_v4  ;;  %v3116_v4 = vld [vmem:[%s12498_s11 + $0xd0] sm:$0xff] }
 0x709   :  { %6820 = vmatprep.subr.bf16.mxu0 %v6819_v27  ;;  %6884 = vmatprep.subr.bf16.mxu1 %v6883_v53  ;;  %v6901_v45 = vpack.c.bf16 %v3091_v22, %v3090_v18  ;;  %v3123_v27 = vld [vmem:[%s12498_s11 + $0x108] sm:$0xff]  ;;  %v3108_v53 = vld [vmem:[%s12498_s11 + $0x90] sm:$0xff]  ;;  %v3149_v18 = vld [vmem:[%s12498_s11 + $0x1d8] sm:$0xff] }
 0x70a   :  { %v6933_v7 = vpack.c.bf16 %v3123_v27, %v3122_v29  ;;  %v6903_v30 = vpack.c.bf16 %v3109_v15, %v3108_v53  ;;  %v3148_v43 = vld [vmem:[%s12498_s11 + $0x1d0] sm:$0xff]  ;;  %v3101_v27 = vld [vmem:[%s12498_s11 + $0x58] sm:$0xff] }
 0x70b   :  { %v3100_v29 = vld [vmem:[%s12498_s11 + $0x50] sm:$0xff]  ;;  %v3133_v15 = vld [vmem:[%s12498_s11 + $0x158] sm:$0xff] }
 0x70c   :  { %6822 = vmatpush1.bf16.msra.mxu0 %v6821_v3  ;;  %6886 = vmatpush1.bf16.msra.mxu1 %v6885_v14  ;;  %v3092_v3 = vld [vmem:[%s12498_s11 + $0x10] sm:$0xff]  ;;  %v3093_v14 = vld [vmem:[%s12498_s11 + $0x18] sm:$0xff] }
 0x70d   :  { %6824 = vmatprep.subr.bf16.mxu0 %v6823_v35  ;;  %6888 = vmatprep.subr.bf16.mxu1 %v6887_v61  ;;  %v6905_v0 = vpack.c.bf16 %v3093_v14, %v3092_v3  ;;  %v3125_v35 = vld [vmem:[%s12498_s11 + $0x118] sm:$0xff]  ;;  %v3110_v61 = vld [vmem:[%s12498_s11 + $0xa0] sm:$0xff]  ;;  %v3132_v53 = vld [vmem:[%s12498_s11 + $0x150] sm:$0xff]  ;;  %v6921_v3 = vpack.c.bf16 %v3101_v27, %v3100_v29 }
 0x70e   :  { %v6937_v1 = vpack.c.bf16 %v3125_v35, %v3124_v41  ;;  %v6907_v49 = vpack.c.bf16 %v3111_v51, %v3110_v61  ;;  %v6953_v14 = vpack.c.bf16 %v3133_v15, %v3132_v53  ;;  %v6923_v41 = vpack.c.bf16 %v3119_v57, %v3118_v20  ;;  %v3103_v35 = vld [vmem:[%s12498_s11 + $0x68] sm:$0xff]  ;;  %v3134_v51 = vld [vmem:[%s12498_s11 + $0x160] sm:$0xff] }
 0x710   :  { %6826 = vmatpush1.bf16.msra.mxu0 %v6825_v33  ;;  %6890 = vmatpush1.bf16.msra.mxu1 %v6889_v11  ;;  %v6939_v33 = vpack.c.bf16 %v3143_v34, %v3142_v24  ;;  %v3095_v11 = vld [vmem:[%s12498_s11 + $0x28] sm:$0xff]  ;;  %v3120_v34 = vld [vmem:[%s12498_s11 + $0xf0] sm:$0xff] }
 0x711   :  { %6828 = vmatprep.subr.bf16.mxu0 %v6827_v39  ;;  %6892 = vmatprep.subr.bf16.mxu1 %v6891_v23  ;;  %v6909_v39 = vpack.c.bf16 %v3095_v11, %v3094_v25  ;;  %v3112_v23 = vld [vmem:[%s12498_s11 + $0xb0] sm:$0xff]  ;;  %v3121_v25 = vld [vmem:[%s12498_s11 + $0xf8] sm:$0xff] }
 0x712   :  { %v6911_v58 = vpack.c.bf16 %v3113_v47, %v3112_v23  ;;  %v6927_v11 = vpack.c.bf16 %v3121_v25, %v3120_v34 }
 0x714   :  { %6830 = vmatpush1.bf16.msra.mxu0 %v6829_v62  ;;  %6894 = vmatpush1.bf16.msra.mxu1 %v6893_v8  ;;  %v6943_v62 = vpack.c.bf16 %v3145_v59, %v3144_v52  ;;  %v3128_v8 = vld [vmem:[%s12498_s11 + $0x130] sm:$0xff] }
 0x715   :  { %6832 = vmatprep.subr.bf16.mxu0 %v6831_v16  ;;  %6896 = vmatprep.subr.bf16.mxu1 %v6895_v19  ;;  %v3114_v16 = vld [vmem:[%s12498_s11 + $0xc0] sm:$0xff]  ;;  %v3115_v19 = vld [vmem:[%s12498_s11 + $0xc8] sm:$0xff]  ;;  %v6945_v5 = vpack.c.bf16 %v3129_v56, %v3128_v8  ;;  %v3136_v52 = vld [vmem:[%s12498_s11 + $0x170] sm:$0xff] }
 0x716   :  { %v6915_v28 = vpack.c.bf16 %v3115_v19, %v3114_v16 }
 0x718   :  { %6834 = vmatpush1.bf16.msra.mxu0 %v6833_v32  ;;  %6898 = vmatpush1.bf16.msra.mxu1 %v6897_v40  ;;  %v3098_v32 = vld [vmem:[%s12498_s11 + $0x40] sm:$0xff]  ;;  %v3099_v40 = vld [vmem:[%s12498_s11 + $0x48] sm:$0xff] }
 0x719   :  { %6900 = vmatprep.subr.bf16.mxu0 %v6899_v54  ;;  %6932 = vmatprep.subr.bf16.mxu1 %v6931_v31  ;;  %v3117_v54 = vld [vmem:[%s12498_s11 + $0xd8] sm:$0xff]  ;;  %v6917_v22 = vpack.c.bf16 %v3099_v40, %v3098_v32 }
 0x71b   :  { %3009 = vmatmul.mubr.f32.vlgmr.msra.gmra.mrb[12].mxu0 %v1920_v13  ;;  %3080 = vmatmul.mubr.f32.vlgmr.msra.gmra.mrb[12].mxu1 %v1920_v13  ;;  %v3130_v13 = vld [vmem:[%s12498_s11 + $0x140] sm:$0xff] }
 0x71c   :  { %6902 = vmatpush3.bf16.msra.mxu0 %v6901_v45  ;;  %6934 = vmatpush3.bf16.msra.mxu1 %v6933_v7  ;;  %v6949_v31 = vpack.c.bf16 %v3131_v17, %v3130_v13  ;;  %v6919_v45 = vpack.c.bf16 %v3117_v54, %v3116_v4  ;;  %v6951_v7 = vpack.c.bf16 %v3149_v18, %v3148_v43  ;;  %v2790_v43 = vld [vmem:[#allocation2 + $0x94] ss:$8 sm:$0xf] }
 0x71d   :  { %6904 = vmatprep.subr.bf16.mxu0 %v6903_v30  ;;  %6936 = vmatprep.subr.bf16.mxu1 %v6935_v42  ;;  %v3150_v30 = vld [vmem:[%s12498_s11 + $0x1e0] sm:$0xff]  ;;  %v3151_v42 = vld [vmem:[%s12498_s11 + $0x1e8] sm:$0xff]  ;;  %v2799_v29 = vrot.slane %v2790_v43, %v12760_v2 }
 0x71e   :  { %v6955_v61 = vpack.c.bf16 %v3151_v42, %v3150_v30 }
 0x720   :  { %6906 = vmatpush3.bf16.msra.mxu0 %v6905_v0  ;;  %6938 = vmatpush3.bf16.msra.mxu1 %v6937_v1  ;;  %v3102_v0 = vld [vmem:[%s12498_s11 + $0x60] sm:$0xff]  ;;  %v3135_v1 = vld [vmem:[%s12498_s11 + $0x168] sm:$0xff] }
 0x721   :  { %6908 = vmatprep.subr.bf16.mxu0 %v6907_v49  ;;  %6940 = vmatprep.subr.bf16.mxu1 %v6939_v33  ;;  %v6925_v49 = vpack.c.bf16 %v3103_v35, %v3102_v0  ;;  %v6957_v24 = vpack.c.bf16 %v3135_v1, %v3134_v51  ;;  %v3152_v33 = vld [vmem:[%s12498_s11 + $0x1f0] sm:$0xff]  ;;  %v12764_v51 = vmov 0.0  }
 0x722   :  { %v6959_v23 = vpack.c.bf16 %v3153_v36, %v3152_v33 }
 0x724   :  { %6910 = vmatpush3.bf16.msra.mxu0 %v6909_v39  ;;  %6942 = vmatpush3.bf16.msra.mxu1 %v6941_v55  ;;  %v3105_v39 = vld [vmem:[%s12498_s11 + $0x78] sm:$0xff] }
 0x725   :  { %6912 = vmatprep.subr.bf16.mxu0 %v6911_v58  ;;  %6944 = vmatprep.subr.bf16.mxu1 %v6943_v62  ;;  %v6929_v47 = vpack.c.bf16 %v3105_v39, %v3104_v6  ;;  %v3137_v55 = vld [vmem:[%s12498_s11 + $0x178] sm:$0xff]  ;;  %v3308_v39 = vld [vmem:[%s12499_s12 + $0x8] sm:$0xff] }
 0x726   :  { %v6961_v58 = vpack.c.bf16 %v3137_v55, %v3136_v52  ;;  %v3314_v55 = vld [vmem:[%s12499_s12 + $0x38] sm:$0xff] }
 0x728   :  { %6914 = vmatpush3.bf16.msra.mxu0 %v6913_v9  ;;  %6946 = vmatpush3.bf16.msra.mxu1 %v6945_v5  ;;  %v2763_v5 = vld [vmem:[#allocation2 + $0x93] ss:$8 sm:$0xf] }
 0x729   :  { %6916 = vmatprep.subr.bf16.mxu0 %v6915_v28  ;;  %6948 = vmatprep.subr.bf16.mxu1 %v6947_v48  ;;  %v2772_v40 = vrot.slane %v2763_v5, %v12760_v2  ;;  %v12762_v48 = vld [vmem:[#allocation15_spill] sm:$0xff]  ;;  %v2768_v54 = vrot.slane %v2763_v5, %v12761_v44 }
 0x72a   :  { %v2780_v17 = vrot.slane %v2763_v5, %v12762_v48 }
 0x72c   :  { %6918 = vmatpush3.bf16.msra.mxu0 %v6917_v22  ;;  %6950 = vmatpush3.bf16.msra.mxu1 %v6949_v31  ;;  %v12763_v22 = vld [vmem:[#allocation14_spill] sm:$0xff] }
 0x72d   :  { %6920 = vmatprep.subr.bf16.mxu0 %v6919_v45  ;;  %6952 = vmatprep.subr.bf16.mxu1 %v6951_v7  ;;  %v2776_v31 = vrot.slane %v2763_v5, %v12763_v22  ;;  %v2803_v15 = vrot.slane %v2790_v43, %v12763_v22  ;;  %v3316_v5 = vld [vmem:[%s12499_s12 + $0x48] sm:$0xff] }
 0x730   :  { %6922 = vmatpush3.bf16.msra.mxu0 %v6921_v3  ;;  %6954 = vmatpush3.bf16.msra.mxu1 %v6953_v14 }
 0x731   :  { %6924 = vmatprep.subr.bf16.mxu0 %v6923_v41  ;;  %6956 = vmatprep.subr.bf16.mxu1 %v6955_v61 }
 0x734   :  { %6926 = vmatpush3.bf16.msra.mxu0 %v6925_v49  ;;  %6958 = vmatpush3.bf16.msra.mxu1 %v6957_v24 }
 0x735   :  { %6928 = vmatprep.subr.bf16.mxu0 %v6927_v11  ;;  %6960 = vmatprep.subr.bf16.mxu1 %v6959_v23  ;;  %v3312_v23 = vld [vmem:[%s12499_s12 + $0x28] sm:$0xff] }
 0x736   :  { %v6963_v52 = vpack.c.bf16 %v3312_v23, %v3308_v39  ;;  %v3489_v39 = vld [vmem:[%s12500_s13 + $0x8] sm:$0xff]  ;;  %v3491_v23 = vld [vmem:[%s12500_s13 + $0x18] sm:$0xff] }
 0x738   :  { %6930 = vmatpush3.bf16.msra.mxu0 %v6929_v47  ;;  %6962 = vmatpush3.bf16.msra.mxu1 %v6961_v58  ;;  %v3310_v47 = vld [vmem:[%s12499_s12 + $0x18] sm:$0xff]  ;;  %v3307_v58 = vld [vmem:[%s12499_s12] sm:$0xff] }
 0x739   :  { %6964 = vmatprep.subr.bf16.mxu0 %v6963_v52 }
 0x7ae   :  { %v2607_v59 = vpop.f32.mrb[10].mxu0  ;;  %v2749_v37 = vpop.f32.mrb[10].mxu1 }
 0x7af   :  { %v2609_v63 = vpop.f32.mrb[11].mxu0  ;;  %v2751_v62 = vpop.f32.mrb[11].mxu1  ;;  %v7473_v8 = vadd.f32 1e-05, %v2607_v59  ;;  %v7475_v19 = vadd.f32 1e-05, %v2749_v37  ;;  %v6979_v37 = vpack.c.bf16 %v3314_v55, %v3310_v47  ;;  %v6995_v47 = vpack.c.bf16 %v3491_v23, %v3489_v39 }
 0x7b0   :  { %v7474_v56 = vadd.f32 1e-05, %v2609_v63  ;;  %v7476_v16 = vadd.f32 1e-05, %v2751_v62  ;;  %v3311_v59 = vld [vmem:[%s12499_s12 + $0x20] sm:$0xff]  ;;  %v3309_v62 = vld [vmem:[%s12499_s12 + $0x10] sm:$0xff] }
 0x7b1   :  { %7513 = vrsqrt.f32 %v7473_v8  ;;  %v6965_v63 = vpack.c.bf16 %v3311_v59, %v3307_v58  ;;  %v3313_v8 = vld [vmem:[%s12499_s12 + $0x30] sm:$0xff]  ;;  %6980 = vmatprep.subr.bf16.mxu1 %v6979_v37  ;;  %v3488_v55 = vld [vmem:[%s12500_s13] sm:$0xff]  ;;  %v3493_v59 = vld [vmem:[%s12500_s13 + $0x28] sm:$0xff] }
 0x7b2   :  { %7515 = vrsqrt.f32 %v7474_v56  ;;  %v6981_v56 = vpack.c.bf16 %v3313_v8, %v3309_v62  ;;  %v3490_v58 = vld [vmem:[%s12500_s13 + $0x10] sm:$0xff]  ;;  %v3495_v37 = vld [vmem:[%s12500_s13 + $0x38] sm:$0xff]  ;;  %v3520_v23 = vld [vmem:[%s12500_s13 + $0x100] sm:$0xff] }
 0x7b3   :  { %7517 = vrsqrt.f32 %v7476_v16  ;;  %v6997_v62 = vpack.c.bf16 %v3490_v58, %v3488_v55  ;;  %v3527_v55 = vld [vmem:[%s12500_s13 + $0x138] sm:$0xff] }
 0x7b4   :  { %7519 = vrsqrt.f32 %v7475_v19 }
 0x7bb   :  { %v7514_v21 = vpop.eup %7513 }
 0x7bc   :  { %v7516_v60 = vpop.eup %7515  ;;  %v2758_v4 = vmul.f32 %v7514_v21, %v10626_v46 }
 0x7bd   :  { %v7518_v9 = vpop.eup %7517  ;;  %v2759_v32 = vmul.f32 %v7516_v60, %v10629_v10  ;;  %v2807_v10 = vrot.slane %v2790_v43, %v12762_v48 }
 0x7be   :  { %v7520_v28 = vpop.eup %7519  ;;  %v2761_v13 = vmul.f32 %v7518_v9, %v10632_v26  ;;  %v2785_v53 = vmul.f32 %v2768_v54, %v2758_v4  ;;  %v2795_v26 = vrot.slane %v2790_v43, %v12761_v44  ;;  %v3319_v4 = vld [vmem:[%s12499_s12 + $0x60] sm:$0xff] }
 0x7bf   :  { %v2760_v18 = vmul.f32 %v7520_v28, %v10726_v12  ;;  %v2786_v45 = vmul.f32 %v2772_v40, %v2759_v32  ;;  %v3320_v28 = vld [vmem:[%s12499_s12 + $0x68] sm:$0xff]  ;;  %v3318_v32 = vld [vmem:[%s12499_s12 + $0x58] sm:$0xff] }
 0x7c0   :  { %v2788_v27 = vmul.f32 %v2780_v17, %v2761_v13  ;;  %v11316_v12 = vadd.f32 %v2795_v26, %v2785_v53  ;;  %v6967_v40 = vpack.c.bf16 %v3320_v28, %v3316_v5  ;;  %v3322_v13 = vld [vmem:[%s12499_s12 + $0x78] sm:$0xff]  ;;  %v3315_v17 = vld [vmem:[%s12499_s12 + $0x40] sm:$0xff] }
 0x7c1   :  { %v2787_v7 = vmul.f32 %v2776_v31, %v2760_v18  ;;  %v11312_v57 = vadd.f32 %v2799_v29, %v2786_v45  ;;  %v6983_v54 = vpack.c.bf16 %v3322_v13, %v3318_v32  ;;  %v6969_v43 = vpack.c.bf16 %v3319_v4, %v3315_v17  ;;  %v3317_v18 = vld [vmem:[%s12499_s12 + $0x50] sm:$0xff]  ;;  %v3324_v29 = vld [vmem:[%s12499_s12 + $0x88] sm:$0xff]  ;;  %v3330_v26 = vld [vmem:[%s12499_s12 + $0xb8] sm:$0xff] }
 0x7c2   :  { %v11314_v30 = vadd.f32 %v2807_v10, %v2788_v27  ;;  %v3321_v31 = vld [vmem:[%s12499_s12 + $0x70] sm:$0xff]  ;;  %v3328_v27 = vld [vmem:[%s12499_s12 + $0xa8] sm:$0xff]  ;;  %v3326_v10 = vld [vmem:[%s12499_s12 + $0x98] sm:$0xff] }
 0x7c3   :  { %v11318_v42 = vadd.f32 %v2803_v15, %v2787_v7  ;;  %v6985_v45 = vpack.c.bf16 %v3321_v31, %v3317_v18  ;;  %v6971_v53 = vpack.c.bf16 %v3328_v27, %v3324_v29  ;;  %v3323_v7 = vld [vmem:[%s12499_s12 + $0x80] sm:$0xff]  ;;  %v3498_v32 = vld [vmem:[%s12500_s13 + $0x50] sm:$0xff]  ;;  %v3503_v13 = vld [vmem:[%s12500_s13 + $0x78] sm:$0xff] }
 0x7c4   :  { %v3327_v15 = vld [vmem:[%s12499_s12 + $0xa0] sm:$0xff]  ;;  %v3505_v18 = vld [vmem:[%s12500_s13 + $0x88] sm:$0xff]  ;;  %v3507_v31 = vld [vmem:[%s12500_s13 + $0x98] sm:$0xff] }
 0x7c5   :  { %v3496_v28 = vld [vmem:[%s12500_s13 + $0x40] sm:$0xff]  ;;  %v7011_v29 = vpack.c.bf16 %v3507_v31, %v3505_v18  ;;  %v3538_v18 = vld [vmem:[%s12500_s13 + $0x190] sm:$0xff]  ;;  %v3541_v31 = vld [vmem:[%s12500_s13 + $0x1a8] sm:$0xff] }
 0x7c6   :  { %v7005_v17 = vpack.c.bf16 %v3498_v32, %v3496_v28  ;;  %v3504_v27 = vld [vmem:[%s12500_s13 + $0x80] sm:$0xff] }
 0x7c7   :  { %v3532_v32 = vld [vmem:[%s12500_s13 + $0x160] sm:$0xff] }
 0x7ee   :  { %v3010_v46 = vpop.f32.mrb[12].mxu0  ;;  %v3081_v20 = vpop.f32.mrb[12].mxu1 }
 0x7ef   :  { %v3012_v3 = vpop.f32.mrb[13].mxu0  ;;  %v3083_v14 = vpop.f32.mrb[13].mxu1  ;;  %v3086_v35 = vmul.f32 %v3010_v46, %v11316_v12  ;;  %v3088_v61 = vmul.f32 %v3081_v20, %v11318_v42  ;;  %v6987_v46 = vpack.c.bf16 %v3330_v26, %v3326_v10  ;;  %v6973_v20 = vpack.c.bf16 %v3327_v15, %v3323_v7  ;;  %v3506_v10 = vld [vmem:[%s12500_s13 + $0x90] sm:$0xff]  ;;  %v3511_v26 = vld [vmem:[%s12500_s13 + $0xb8] sm:$0xff] }
 0x7f0   :  { %v3087_v41 = vmul.f32 %v3012_v3, %v11312_v57  ;;  %v3089_v0 = vmul.f32 %v3083_v14, %v11314_v30  ;;  %v3325_v3 = vld [vmem:[%s12499_s12 + $0x90] sm:$0xff]  ;;  %v7013_v7 = vpack.c.bf16 %v3506_v10, %v3504_v27  ;;  %v3540_v10 = vld [vmem:[%s12500_s13 + $0x1a0] sm:$0xff] }
 0x7f1   :  { %v3329_v14 = vld [vmem:[%s12499_s12 + $0xb0] sm:$0xff] }
 0x7f2   :  { %3218 = vmatprep.mubr.f32.mxu0 %v3087_v41  ;;  %3288 = vmatprep.mubr.f32.mxu1 %v3089_v0  ;;  %v6989_v41 = vpack.c.bf16 %v3329_v14, %v3325_v3  ;;  %v3332_v0 = vld [vmem:[%s12499_s12 + $0xc8] sm:$0xff]  ;;  %v3515_v14 = vld [vmem:[%s12500_s13 + $0xd8] sm:$0xff] }
 0x7f3   :  { %3219 = vmatmul.mubr.f32.vlgmr.msra.gmra.mrb[14].mxu0 %v3086_v35  ;;  %3289 = vmatmul.mubr.f32.vlgmr.msra.gmra.mrb[14].mxu1 %v3088_v61  ;;  %v3336_v35 = vld [vmem:[%s12499_s12 + $0xe8] sm:$0xff]  ;;  %v3334_v61 = vld [vmem:[%s12499_s12 + $0xd8] sm:$0xff] }
 0x7f4   :  { %3406 = vmatprep.mubr.f32.mxu0 %v12764_v51  ;;  %3477 = vmatprep.mubr.f32.mxu1 %v12764_v51  ;;  %v3513_v3 = vld [vmem:[%s12500_s13 + $0xc8] sm:$0xff] }
 0x7f5   :  { %6966 = vmatpush1.bf16.msra.mxu0 %v6965_v63  ;;  %6982 = vmatpush1.bf16.msra.mxu1 %v6981_v56  ;;  %v6999_v56 = vpack.c.bf16 %v3495_v37, %v3493_v59  ;;  %v3524_v37 = vld [vmem:[%s12500_s13 + $0x120] sm:$0xff] }
 0x7f6   :  { %6968 = vmatprep.subr.bf16.mxu0 %v6967_v40  ;;  %6984 = vmatprep.subr.bf16.mxu1 %v6983_v54  ;;  %v3501_v40 = vld [vmem:[%s12500_s13 + $0x68] sm:$0xff]  ;;  %v3500_v54 = vld [vmem:[%s12500_s13 + $0x60] sm:$0xff] }
 0x7f7   :  { %v7007_v4 = vpack.c.bf16 %v3503_v13, %v3501_v40  ;;  %v3534_v40 = vld [vmem:[%s12500_s13 + $0x170] sm:$0xff]  ;;  %v3537_v13 = vld [vmem:[%s12500_s13 + $0x188] sm:$0xff] }
 0x7f9   :  { %6970 = vmatpush1.bf16.msra.mxu0 %v6969_v43  ;;  %6986 = vmatpush1.bf16.msra.mxu1 %v6985_v45  ;;  %v3502_v43 = vld [vmem:[%s12500_s13 + $0x70] sm:$0xff] }
 0x7fa   :  { %6972 = vmatprep.subr.bf16.mxu0 %v6971_v53  ;;  %6988 = vmatprep.subr.bf16.mxu1 %v6987_v46  ;;  %v7009_v45 = vpack.c.bf16 %v3502_v43, %v3500_v54  ;;  %v3509_v53 = vld [vmem:[%s12500_s13 + $0xa8] sm:$0xff]  ;;  %v3508_v46 = vld [vmem:[%s12500_s13 + $0xa0] sm:$0xff] }
 0x7fb   :  { %v7015_v15 = vpack.c.bf16 %v3511_v26, %v3509_v53  ;;  %v3536_v43 = vld [vmem:[%s12500_s13 + $0x180] sm:$0xff]  ;;  %v3542_v53 = vld [vmem:[%s12500_s13 + $0x1b0] sm:$0xff]  ;;  %v3545_v26 = vld [vmem:[%s12500_s13 + $0x1c8] sm:$0xff] }
 0x7fd   :  { %6974 = vmatpush1.bf16.msra.mxu0 %v6973_v20  ;;  %6990 = vmatpush1.bf16.msra.mxu1 %v6989_v41  ;;  %v3510_v20 = vld [vmem:[%s12500_s13 + $0xb0] sm:$0xff] }
 0x7fe   :  { %v7017_v41 = vpack.c.bf16 %v3510_v20, %v3508_v46  ;;  %v3544_v20 = vld [vmem:[%s12500_s13 + $0x1c0] sm:$0xff] }
 0x8c6   :  { %v5234_v1 = vpop.f32.mrb[14].mxu0  ;;  %v5269_v49 = vpop.f32.mrb[14].mxu1 }
 0x8c7   :  { %v5235_v24 = vpop.f32.mrb[15].mxu0  ;;  %v5270_v34 = vpop.f32.mrb[15].mxu1 }
 0x8c8   :  { %v5236_v25 = vadd.f32 %v5235_v24, %v5234_v1  ;;  %v5271_v33 = vadd.f32 %v5270_v34, %v5269_v49  ;;  %v6975_v1 = vpack.c.bf16 %v3336_v35, %v3332_v0  ;;  %v3338_v49 = vld [vmem:[%s12499_s12 + $0xf8] sm:$0xff]  ;;  %v3331_v24 = vld [vmem:[%s12499_s12 + $0xc0] sm:$0xff]  ;;  %v7019_v0 = vpack.c.bf16 %v3515_v14, %v3513_v3  ;;  %v3546_v3 = vld [vmem:[%s12500_s13 + $0x1d0] sm:$0xff] }
 0x8c9   :  { %v3335_v34 = vld [vmem:[%s12499_s12 + $0xe0] sm:$0xff]  ;;  %v7053_v14 = vpack.c.bf16 %v3546_v3, %v3544_v20  ;;  %v3578_v20 = vld [vmem:[%s12500_s13 + $0x2d0] sm:$0xff]  ;;  %v3581_v3 = vld [vmem:[%s12500_s13 + $0x2e8] sm:$0xff] }
 0x8ca   :  { %v3291_v11 = vadd.f32 %v5271_v33, %v5236_v25  ;;  %v6991_v25 = vpack.c.bf16 %v3338_v49, %v3334_v61  ;;  %v6977_v33 = vpack.c.bf16 %v3335_v34, %v3331_v24  ;;  %6976 = vmatprep.subr.bf16.mxu0 %v6975_v1  ;;  %v3512_v35 = vld [vmem:[%s12500_s13 + $0xc0] sm:$0xff]  ;;  %v3514_v61 = vld [vmem:[%s12500_s13 + $0xd0] sm:$0xff]  ;;  %v3517_v1 = vld [vmem:[%s12500_s13 + $0xe8] sm:$0xff] }
 0x8cb   :  { %v3519_v49 = vld [vmem:[%s12500_s13 + $0xf8] sm:$0xff]  ;;  %v7021_v24 = vpack.c.bf16 %v3514_v61, %v3512_v35  ;;  %v3548_v61 = vld [vmem:[%s12500_s13 + $0x1e0] sm:$0xff] }
 0x8cc   :  { %v3294_v36 = vmul.f32 0.0625, %v3291_v11  ;;  %v3333_v11 = vld [vmem:[%s12499_s12 + $0xd0] sm:$0xff]  ;;  %6992 = vmatprep.subr.bf16.mxu1 %v6991_v25  ;;  %6978 = vmatpush1.bf16.msra.mxu0 %v6977_v33  ;;  %v7023_v34 = vpack.c.bf16 %v3519_v49, %v3517_v1  ;;  %v3516_v25 = vld [vmem:[%s12500_s13 + $0xe0] sm:$0xff] }
 0x8cd   :  { %6996 = vmatprep.subr.bf16.mxu0 %v6995_v47  ;;  %v3518_v33 = vld [vmem:[%s12500_s13 + $0xf0] sm:$0xff] }
 0x8ce   :  { %v3296_v6 = vsel %vm3295_vm2, %v3294_v36, -inf  ;;  %v3522_v47 = vld [vmem:[%s12500_s13 + $0x110] sm:$0xff] }
 0x8cf   :  { %3297 = vmax.xlane.f32.xlu0 %v3296_v6  ;;  %v7029_v58 = vpack.c.bf16 %v3522_v47, %v3520_v23  ;;  %v3550_v1 = vld [vmem:[%s12500_s13 + $0x1f0] sm:$0xff]  ;;  %v3559_v23 = vld [vmem:[%s12500_s13 + $0x238] sm:$0xff] }
 0x8d0   :  { %v7057_v49 = vpack.c.bf16 %v3550_v1, %v3548_v61  ;;  %v3582_v61 = vld [vmem:[%s12500_s13 + $0x2f0] sm:$0xff]  ;;  %v3585_v1 = vld [vmem:[%s12500_s13 + $0x308] sm:$0xff] }
 0x95c   :  { %v3298_v16 = vpop.xlane.xlu0 %3297 }
 0x95d   :  { %v3299_v19 = vsub.f32 %v3294_v36, %v3298_v16  ;;  %v3337_v36 = vld [vmem:[%s12499_s12 + $0xf0] sm:$0xff]  ;;  %v3492_v16 = vld [vmem:[%s12500_s13 + $0x20] sm:$0xff] }
 0x95e   :  { %v6993_v6 = vpack.c.bf16 %v3337_v36, %v3333_v11  ;;  %v3521_v11 = vld [vmem:[%s12500_s13 + $0x108] sm:$0xff]  ;;  %v3523_v36 = vld [vmem:[%s12500_s13 + $0x118] sm:$0xff] }
 0x95f   :  { %v3300_v21 = vmul.f32 1.442695, %v3299_v19  ;;  %v3494_v19 = vld [vmem:[%s12500_s13 + $0x30] sm:$0xff]  ;;  %v7027_v39 = vpack.c.bf16 %v3523_v36, %v3521_v11 }
 0x960   :  { %6994 = vmatpush1.bf16.msra.mxu1 %v6993_v6  ;;  %v7025_v6 = vpack.c.bf16 %v3518_v33, %v3516_v25  ;;  %v3552_v33 = vld [vmem:[%s12500_s13 + $0x200] sm:$0xff]  ;;  %v3554_v11 = vld [vmem:[%s12500_s13 + $0x210] sm:$0xff] }
 0x961   :  { %7521 = vpow2.f32 %v3300_v21  ;;  %v3497_v21 = vld [vmem:[%s12500_s13 + $0x48] sm:$0xff] }
 0x96b   :  { %v11351_v60 = vpop.eup %7521 }
 0x96c   :  { %v3302_v9 = vsel %vm3295_vm2, %v11351_v60, 0.0 }
 0x96d   :  { %3303 = vadd.xlane.f32.xlu1 %v3302_v9  ;;  %v3499_v9 = vld [vmem:[%s12500_s13 + $0x58] sm:$0xff] }
 0x96e   :  { %v7003_v5 = vpack.c.bf16 %v3499_v9, %v3497_v21  ;;  %v3530_v21 = vld [vmem:[%s12500_s13 + $0x150] sm:$0xff]  ;;  %v3533_v9 = vld [vmem:[%s12500_s13 + $0x168] sm:$0xff] }
 0x9fa   :  { %v3304_v52 = vpop.xlane.xlu1 %3303 }
 0x9fb   :  { %7523 = vrcp.f32 %v3304_v52  ;;  %v3525_v52 = vld [vmem:[%s12500_s13 + $0x128] sm:$0xff] }
 0x9fc   :  { %v7031_v59 = vpack.c.bf16 %v3527_v55, %v3525_v52 }
 0xa05   :  { %v7524_v63 = vpop.eup %7523 }
 0xa06   :  { %v3306_v8 = vmul.f32 %v7524_v63, %v11351_v60  ;;  %v7001_v60 = vpack.c.bf16 %v3494_v19, %v3492_v16  ;;  %v3526_v63 = vld [vmem:[%s12500_s13 + $0x130] sm:$0xff]  ;;  %v3528_v19 = vld [vmem:[%s12500_s13 + $0x140] sm:$0xff] }
 0xa08   :  { %5067 = vmatmul.mubr.msk.f32.vlgmr.msra.gmra.mrb[16].mxu0 %vm922_vm1, %v3306_v8  ;;  %5068 = vmatmul.mubr.msk.f32.vlgmr.msra.gmra.mrb[16].mxu1 %vm922_vm1, %v3306_v8  ;;  %v3531_v8 = vld [vmem:[%s12500_s13 + $0x158] sm:$0xff] }
 0xa09   :  { %6998 = vmatpush1.bf16.msra.mxu0 %v6997_v62  ;;  %v3529_v62 = vld [vmem:[%s12500_s13 + $0x148] sm:$0xff] }
 0xa0a   :  { %7000 = vmatprep.subr.bf16.mxu0 %v6999_v56  ;;  %v7033_v56 = vpack.c.bf16 %v3526_v63, %v3524_v37  ;;  %v7035_v16 = vpack.c.bf16 %v3531_v8, %v3529_v62  ;;  %v3556_v63 = vld [vmem:[%s12500_s13 + $0x220] sm:$0xff]  ;;  %v3558_v62 = vld [vmem:[%s12500_s13 + $0x230] sm:$0xff] }
 0xa0d   :  { %7002 = vmatpush1.bf16.msra.mxu0 %v7001_v60  ;;  %v3535_v60 = vld [vmem:[%s12500_s13 + $0x178] sm:$0xff] }
 0xa0e   :  { %7004 = vmatprep.subr.bf16.mxu0 %v7003_v5  ;;  %v7037_v5 = vpack.c.bf16 %v3530_v21, %v3528_v19  ;;  %v7039_v28 = vpack.c.bf16 %v3535_v60, %v3533_v9  ;;  %v3560_v19 = vld [vmem:[%s12500_s13 + $0x240] sm:$0xff]  ;;  %v3565_v21 = vld [vmem:[%s12500_s13 + $0x268] sm:$0xff]  ;;  %v3567_v9 = vld [vmem:[%s12500_s13 + $0x278] sm:$0xff] }
 0xa11   :  { %7006 = vmatpush1.bf16.msra.mxu0 %v7005_v17  ;;  %v3539_v17 = vld [vmem:[%s12500_s13 + $0x198] sm:$0xff] }
 0xa12   :  { %7008 = vmatprep.subr.bf16.mxu0 %v7007_v4  ;;  %v7041_v4 = vpack.c.bf16 %v3534_v40, %v3532_v32  ;;  %v7043_v54 = vpack.c.bf16 %v3539_v17, %v3537_v13  ;;  %v3566_v32 = vld [vmem:[%s12500_s13 + $0x270] sm:$0xff]  ;;  %v3569_v40 = vld [vmem:[%s12500_s13 + $0x288] sm:$0xff]  ;;  %v3571_v13 = vld [vmem:[%s12500_s13 + $0x298] sm:$0xff] }
 0xa15   :  { %7010 = vmatpush1.bf16.msra.mxu0 %v7009_v45  ;;  %v3543_v45 = vld [vmem:[%s12500_s13 + $0x1b8] sm:$0xff] }
 0xa16   :  { %7012 = vmatprep.subr.bf16.mxu0 %v7011_v29  ;;  %v7045_v29 = vpack.c.bf16 %v3538_v18, %v3536_v43  ;;  %v7047_v27 = vpack.c.bf16 %v3543_v45, %v3541_v31  ;;  %v3570_v43 = vld [vmem:[%s12500_s13 + $0x290] sm:$0xff]  ;;  %v3573_v18 = vld [vmem:[%s12500_s13 + $0x2a8] sm:$0xff]  ;;  %v3575_v31 = vld [vmem:[%s12500_s13 + $0x2b8] sm:$0xff] }
 0xa19   :  { %7014 = vmatpush1.bf16.msra.mxu0 %v7013_v7  ;;  %v3547_v7 = vld [vmem:[%s12500_s13 + $0x1d8] sm:$0xff] }
 0xa1a   :  { %7016 = vmatprep.subr.bf16.mxu0 %v7015_v15  ;;  %v7049_v15 = vpack.c.bf16 %v3542_v53, %v3540_v10  ;;  %v7051_v46 = vpack.c.bf16 %v3547_v7, %v3545_v26  ;;  %v3574_v10 = vld [vmem:[%s12500_s13 + $0x2b0] sm:$0xff]  ;;  %v3577_v53 = vld [vmem:[%s12500_s13 + $0x2c8] sm:$0xff]  ;;  %v3579_v26 = vld [vmem:[%s12500_s13 + $0x2d8] sm:$0xff] }
 0xa1d   :  { %7018 = vmatpush1.bf16.msra.mxu0 %v7017_v41  ;;  %v3549_v41 = vld [vmem:[%s12500_s13 + $0x1e8] sm:$0xff] }
 0xa1e   :  { %7020 = vmatprep.subr.bf16.mxu0 %v7019_v0  ;;  %v3551_v0 = vld [vmem:[%s12500_s13 + $0x1f8] sm:$0xff] }
 0xa1f   :  { %v7055_v35 = vpack.c.bf16 %v3551_v0, %v3549_v41 }
 0xa21   :  { %7022 = vmatpush1.bf16.msra.mxu0 %v7021_v24  ;;  %v3553_v24 = vld [vmem:[%s12500_s13 + $0x208] sm:$0xff] }
 0xa22   :  { %7024 = vmatprep.subr.bf16.mxu0 %v7023_v34  ;;  %v3555_v34 = vld [vmem:[%s12500_s13 + $0x218] sm:$0xff] }
 0xa23   :  { %v7059_v25 = vpack.c.bf16 %v3555_v34, %v3553_v24 }
 0xa25   :  { %7026 = vmatpush1.bf16.msra.mxu0 %v7025_v6 }
 0xa26   :  { %7028 = vmatprep.subr.bf16.mxu0 %v7027_v39  ;;  %v3557_v39 = vld [vmem:[%s12500_s13 + $0x228] sm:$0xff] }
 0xa27   :  { %v7063_v37 = vpack.c.bf16 %v3559_v23, %v3557_v39 }
 0xa29   :  { %7030 = vmatpush1.bf16.msra.mxu0 %v7029_v58  ;;  %v7061_v58 = vpack.c.bf16 %v3554_v11, %v3552_v33  ;;  %v3586_v33 = vld [vmem:[%s12500_s13 + $0x310] sm:$0xff]  ;;  %v3589_v11 = vld [vmem:[%s12500_s13 + $0x328] sm:$0xff] }
 0xa2a   :  { %7032 = vmatprep.subr.bf16.mxu0 %v7031_v59 }
 0xa2d   :  { %7034 = vmatpush1.bf16.msra.mxu0 %v7033_v56  ;;  %v3561_v56 = vld [vmem:[%s12500_s13 + $0x248] sm:$0xff] }
 0xa2e   :  { %7036 = vmatprep.subr.bf16.mxu0 %v7035_v16 }
 0xa31   :  { %7038 = vmatpush1.bf16.msra.mxu0 %v7037_v5  ;;  %v7071_v5 = vpack.c.bf16 %v3567_v9, %v3565_v21  ;;  %v3603_v21 = vld [vmem:[%s12500_s13 + $0x398] sm:$0xff] }
 0xa32   :  { %7040 = vmatprep.subr.bf16.mxu0 %v7039_v28  ;;  %v3564_v28 = vld [vmem:[%s12500_s13 + $0x260] sm:$0xff] }
 0xa33   :  { %v7073_v17 = vpack.c.bf16 %v3566_v32, %v3564_v28  ;;  %v3602_v28 = vld [vmem:[%s12500_s13 + $0x390] sm:$0xff]  ;;  %v3605_v32 = vld [vmem:[%s12500_s13 + $0x3a8] sm:$0xff] }
 0xa35   :  { %7042 = vmatpush1.bf16.msra.mxu0 %v7041_v4  ;;  %v7075_v4 = vpack.c.bf16 %v3571_v13, %v3569_v40  ;;  %v3607_v40 = vld [vmem:[%s12500_s13 + $0x3b8] sm:$0xff] }
 0xa36   :  { %7044 = vmatprep.subr.bf16.mxu0 %v7043_v54  ;;  %v3568_v54 = vld [vmem:[%s12500_s13 + $0x280] sm:$0xff] }
 0xa37   :  { %v7077_v45 = vpack.c.bf16 %v3570_v43, %v3568_v54  ;;  %v3606_v54 = vld [vmem:[%s12500_s13 + $0x3b0] sm:$0xff]  ;;  %v3609_v43 = vld [vmem:[%s12500_s13 + $0x3c8] sm:$0xff] }
 0xa39   :  { %7046 = vmatpush1.bf16.msra.mxu0 %v7045_v29  ;;  %v7079_v29 = vpack.c.bf16 %v3575_v31, %v3573_v18  ;;  %v3611_v18 = vld [vmem:[%s12500_s13 + $0x3d8] sm:$0xff] }
 0xa3a   :  { %7048 = vmatprep.subr.bf16.mxu0 %v7047_v27  ;;  %v3572_v27 = vld [vmem:[%s12500_s13 + $0x2a0] sm:$0xff] }
 0xa3b   :  { %v7081_v7 = vpack.c.bf16 %v3574_v10, %v3572_v27  ;;  %v3610_v27 = vld [vmem:[%s12500_s13 + $0x3d0] sm:$0xff]  ;;  %v3613_v10 = vld [vmem:[%s12500_s13 + $0x3e8] sm:$0xff] }
 0xa3d   :  { %7050 = vmatpush1.bf16.msra.mxu0 %v7049_v15  ;;  %v7083_v15 = vpack.c.bf16 %v3579_v26, %v3577_v53  ;;  %v3615_v53 = vld [vmem:[%s12500_s13 + $0x3f8] sm:$0xff] }
 0xa3e   :  { %7052 = vmatprep.subr.bf16.mxu0 %v7051_v46  ;;  %v3576_v46 = vld [vmem:[%s12500_s13 + $0x2c0] sm:$0xff] }
 0xa3f   :  { %v7085_v41 = vpack.c.bf16 %v3578_v20, %v3576_v46  ;;  %v3614_v46 = vld [vmem:[%s12500_s13 + $0x3f0] sm:$0xff] }
 0xa41   :  { %7054 = vmatpush1.bf16.msra.mxu0 %v7053_v14  ;;  %v3583_v14 = vld [vmem:[%s12500_s13 + $0x2f8] sm:$0xff] }
 0xa42   :  { %7056 = vmatprep.subr.bf16.mxu0 %v7055_v35  ;;  %v7087_v0 = vpack.c.bf16 %v3583_v14, %v3581_v3  ;;  %v3580_v35 = vld [vmem:[%s12500_s13 + $0x2e0] sm:$0xff] }
 0xa43   :  { %v7089_v24 = vpack.c.bf16 %v3582_v61, %v3580_v35 }
 0xa45   :  { %7058 = vmatpush1.bf16.msra.mxu0 %v7057_v49  ;;  %v3587_v49 = vld [vmem:[%s12500_s13 + $0x318] sm:$0xff] }
 0xa46   :  { %7060 = vmatprep.subr.bf16.mxu0 %v7059_v25  ;;  %v7091_v34 = vpack.c.bf16 %v3587_v49, %v3585_v1  ;;  %v3584_v25 = vld [vmem:[%s12500_s13 + $0x300] sm:$0xff]  ;;  %v3811_v1 = vld [vmem:[%s12501_s14 + $0x8] sm:$0xff] }
 0xa47   :  { %v7093_v39 = vpack.c.bf16 %v3586_v33, %v3584_v25  ;;  %v3823_v25 = vld [vmem:[%s12501_s14 + $0x68] sm:$0xff] }
 0xadb   :  { %v3408_v36 = vpop.f32.mrb[16].mxu0  ;;  %v11634_v6 = vpop.f32.mrb[16].mxu1 }
 0xadc   :  { %v3410_v47 = vpop.f32.mrb[17].mxu0  ;;  %v3481_v52 = vpop.f32.mrb[17].mxu1  ;;  %v3484_v59 = vmul.f32 %v3408_v36, %v11316_v12  ;;  %v7065_v12 = vpack.c.bf16 %v3558_v62, %v3556_v63  ;;  %v3591_v36 = vld [vmem:[%s12500_s13 + $0x338] sm:$0xff]  ;;  %v3592_v63 = vld [vmem:[%s12500_s13 + $0x340] sm:$0xff]  ;;  %v3594_v62 = vld [vmem:[%s12500_s13 + $0x350] sm:$0xff]  ;;  %v3486_v3 = vmul.f32 %v11634_v6, %v11318_v42 }
 0xadd   :  { %v3485_v55 = vmul.f32 %v3410_v47, %v11312_v57  ;;  %v3487_v8 = vmul.f32 %v3481_v52, %v11314_v30  ;;  %v3563_v57 = vld [vmem:[%s12500_s13 + $0x258] sm:$0xff]  ;;  %v3562_v30 = vld [vmem:[%s12500_s13 + $0x250] sm:$0xff]  ;;  %v7095_v23 = vpack.c.bf16 %v3591_v36, %v3589_v11  ;;  %v3588_v47 = vld [vmem:[%s12500_s13 + $0x320] sm:$0xff] }
 0xade   :  { %v7067_v16 = vpack.c.bf16 %v3563_v57, %v3561_v56  ;;  %v7069_v60 = vpack.c.bf16 %v3562_v30, %v3560_v19  ;;  %v3590_v52 = vld [vmem:[%s12500_s13 + $0x330] sm:$0xff]  ;;  %v3599_v56 = vld [vmem:[%s12500_s13 + $0x378] sm:$0xff]  ;;  %v7101_v57 = vpack.c.bf16 %v3594_v62, %v3592_v63  ;;  %v3601_v30 = vld [vmem:[%s12500_s13 + $0x388] sm:$0xff] }
 0xadf   :  { %3680 = vmatprep.mubr.f32.mxu0 %v3485_v55  ;;  %v3593_v55 = vld [vmem:[%s12500_s13 + $0x348] sm:$0xff]  ;;  %v3598_v19 = vld [vmem:[%s12500_s13 + $0x370] sm:$0xff]  ;;  %v3810_v6 = vld [vmem:[%s12501_s14] sm:$0xff] }
 0xae0   :  { %3681 = vmatmul.mubr.f32.vlgmr.msra.gmra.mrb[18].mxu0 %v3484_v59  ;;  %v7097_v59 = vpack.c.bf16 %v3590_v52, %v3588_v47  ;;  %v3815_v42 = vld [vmem:[%s12501_s14 + $0x28] sm:$0xff]  ;;  %v3818_v36 = vld [vmem:[%s12501_s14 + $0x40] sm:$0xff] }
 0xae1   :  { %7062 = vmatpush1.bf16.msra.mxu0 %v7061_v58  ;;  %3751 = vmatprep.mubr.f32.mxu0 %v3487_v8  ;;  %v3595_v58 = vld [vmem:[%s12500_s13 + $0x358] sm:$0xff]  ;;  %v3597_v8 = vld [vmem:[%s12500_s13 + $0x368] sm:$0xff]  ;;  %v7123_v49 = vpack.c.bf16 %v3815_v42, %v3811_v1 }
 0xae2   :  { %7064 = vmatprep.subr.bf16.mxu0 %v7063_v37  ;;  %v7099_v37 = vpack.c.bf16 %v3595_v58, %v3593_v55  ;;  %v3831_v47 = vld [vmem:[%s12501_s14 + $0xa8] sm:$0xff]  ;;  %v3826_v58 = vld [vmem:[%s12501_s14 + $0x80] sm:$0xff] }
 0xae3   :  { %7124 = vmatprep.subr.bf16.mxu1 %v7123_v49  ;;  %v3839_v63 = vld [vmem:[%s12501_s14 + $0xe8] sm:$0xff]  ;;  %v3886_v49 = vld [vmem:[%s12501_s14 + $0x260] sm:$0xff] }
 0xae5   :  { %7066 = vmatpush1.bf16.msra.mxu0 %v7065_v12  ;;  %v7103_v12 = vpack.c.bf16 %v3599_v56, %v3597_v8  ;;  %v3834_v56 = vld [vmem:[%s12501_s14 + $0xc0] sm:$0xff] }
 0xae6   :  { %7068 = vmatprep.subr.bf16.mxu0 %v7067_v16  ;;  %v3596_v16 = vld [vmem:[%s12500_s13 + $0x360] sm:$0xff] }
 0xae7   :  { %v7105_v9 = vpack.c.bf16 %v3598_v19, %v3596_v16  ;;  %v3847_v16 = vld [vmem:[%s12501_s14 + $0x128] sm:$0xff] }
 0xae9   :  { %7070 = vmatpush1.bf16.msra.mxu0 %v7069_v60  ;;  %v7107_v60 = vpack.c.bf16 %v3603_v21, %v3601_v30  ;;  %v3842_v21 = vld [vmem:[%s12501_s14 + $0x100] sm:$0xff] }
 0xaea   :  { %7072 = vmatprep.subr.bf16.mxu0 %v7071_v5  ;;  %v3600_v5 = vld [vmem:[%s12500_s13 + $0x380] sm:$0xff] }
 0xaeb   :  { %v7109_v13 = vpack.c.bf16 %v3602_v28, %v3600_v5  ;;  %v3855_v5 = vld [vmem:[%s12501_s14 + $0x168] sm:$0xff] }
 0xaed   :  { %7074 = vmatpush1.bf16.msra.mxu0 %v7073_v17  ;;  %v7111_v17 = vpack.c.bf16 %v3607_v40, %v3605_v32  ;;  %v3850_v40 = vld [vmem:[%s12501_s14 + $0x140] sm:$0xff] }
 0xaee   :  { %7076 = vmatprep.subr.bf16.mxu0 %v7075_v4  ;;  %v3604_v4 = vld [vmem:[%s12500_s13 + $0x3a0] sm:$0xff] }
 0xaef   :  { %v7113_v31 = vpack.c.bf16 %v3606_v54, %v3604_v4  ;;  %v3863_v4 = vld [vmem:[%s12501_s14 + $0x1a8] sm:$0xff] }
 0xaf1   :  { %7078 = vmatpush1.bf16.msra.mxu0 %v7077_v45  ;;  %v7115_v45 = vpack.c.bf16 %v3611_v18, %v3609_v43  ;;  %v3858_v18 = vld [vmem:[%s12501_s14 + $0x180] sm:$0xff] }
 0xaf2   :  { %7080 = vmatprep.subr.bf16.mxu0 %v7079_v29  ;;  %v3608_v29 = vld [vmem:[%s12500_s13 + $0x3c0] sm:$0xff] }
 0xaf3   :  { %v7117_v26 = vpack.c.bf16 %v3610_v27, %v3608_v29  ;;  %v3871_v29 = vld [vmem:[%s12501_s14 + $0x1e8] sm:$0xff] }
 0xaf5   :  { %7082 = vmatpush1.bf16.msra.mxu0 %v7081_v7  ;;  %v7119_v7 = vpack.c.bf16 %v3615_v53, %v3613_v10  ;;  %v3866_v53 = vld [vmem:[%s12501_s14 + $0x1c0] sm:$0xff] }
 0xaf6   :  { %7084 = vmatprep.subr.bf16.mxu0 %v7083_v15  ;;  %v3612_v15 = vld [vmem:[%s12500_s13 + $0x3e0] sm:$0xff] }
 0xaf7   :  { %v7121_v20 = vpack.c.bf16 %v3614_v46, %v3612_v15  ;;  %v3879_v15 = vld [vmem:[%s12501_s14 + $0x228] sm:$0xff] }
 0xaf9   :  { %7086 = vmatpush1.bf16.msra.mxu0 %v7085_v41 }
 0xafa   :  { %7088 = vmatprep.subr.bf16.mxu0 %v7087_v0 }
 0xafd   :  { %7090 = vmatpush1.bf16.msra.mxu0 %v7089_v24  ;;  %v3814_v24 = vld [vmem:[%s12501_s14 + $0x20] sm:$0xff] }
 0xafe   :  { %7092 = vmatprep.subr.bf16.mxu0 %v7091_v34  ;;  %v3819_v34 = vld [vmem:[%s12501_s14 + $0x48] sm:$0xff]  ;;  %v7125_v33 = vpack.c.bf16 %v3814_v24, %v3810_v6  ;;  %v3882_v6 = vld [vmem:[%s12501_s14 + $0x240] sm:$0xff] }
 0xaff   :  { %v7127_v11 = vpack.c.bf16 %v3823_v25, %v3819_v34  ;;  %v3891_v24 = vld [vmem:[%s12501_s14 + $0x288] sm:$0xff]  ;;  %v7161_v25 = vpack.c.bf16 %v3886_v49, %v3882_v6 }
 0xb00   :  { %7126 = vmatpush1.bf16.msra.mxu1 %v7125_v33  ;;  %v3895_v34 = vld [vmem:[%s12501_s14 + $0x2a8] sm:$0xff] }
 0xb01   :  { %7094 = vmatpush1.bf16.msra.mxu0 %v7093_v39  ;;  %v3822_v39 = vld [vmem:[%s12501_s14 + $0x60] sm:$0xff]  ;;  %7128 = vmatprep.subr.bf16.mxu1 %v7127_v11  ;;  %v7163_v33 = vpack.c.bf16 %v3895_v34, %v3891_v24 }
 0xb02   :  { %7096 = vmatprep.subr.bf16.mxu0 %v7095_v23  ;;  %v3827_v23 = vld [vmem:[%s12501_s14 + $0x88] sm:$0xff]  ;;  %v7129_v52 = vpack.c.bf16 %v3822_v39, %v3818_v36  ;;  %v3890_v11 = vld [vmem:[%s12501_s14 + $0x280] sm:$0xff] }
 0xb03   :  { %v7131_v55 = vpack.c.bf16 %v3831_v47, %v3827_v23  ;;  %v3894_v36 = vld [vmem:[%s12501_s14 + $0x2a0] sm:$0xff] }
 0xb04   :  { %7130 = vmatpush1.bf16.msra.mxu1 %v7129_v52  ;;  %v7165_v39 = vpack.c.bf16 %v3894_v36, %v3890_v11  ;;  %v3812_v11 = vld [vmem:[%s12501_s14 + $0x10] sm:$0xff] }
 0xb05   :  { %7098 = vmatpush1.bf16.msra.mxu0 %v7097_v59  ;;  %v3830_v59 = vld [vmem:[%s12501_s14 + $0xa0] sm:$0xff]  ;;  %7132 = vmatprep.subr.bf16.mxu1 %v7131_v55  ;;  %v3816_v36 = vld [vmem:[%s12501_s14 + $0x30] sm:$0xff] }
 0xb06   :  { %7100 = vmatprep.subr.bf16.mxu0 %v7099_v37  ;;  %v3835_v37 = vld [vmem:[%s12501_s14 + $0xc8] sm:$0xff]  ;;  %v7133_v62 = vpack.c.bf16 %v3830_v59, %v3826_v58 }
 0xb07   :  { %v7135_v8 = vpack.c.bf16 %v3839_v63, %v3835_v37 }
 0xb08   :  { %7134 = vmatpush1.bf16.msra.mxu1 %v7133_v62 }
 0xb09   :  { %7102 = vmatpush1.bf16.msra.mxu0 %v7101_v57  ;;  %v3838_v57 = vld [vmem:[%s12501_s14 + $0xe0] sm:$0xff]  ;;  %7136 = vmatprep.subr.bf16.mxu1 %v7135_v8  ;;  %v3899_v8 = vld [vmem:[%s12501_s14 + $0x2c8] sm:$0xff] }
 0xb0a   :  { %7104 = vmatprep.subr.bf16.mxu0 %v7103_v12  ;;  %v3843_v12 = vld [vmem:[%s12501_s14 + $0x108] sm:$0xff]  ;;  %v7137_v19 = vpack.c.bf16 %v3838_v57, %v3834_v56  ;;  %v3902_v57 = vld [vmem:[%s12501_s14 + $0x2e0] sm:$0xff] }
 0xb0b   :  { %v7139_v30 = vpack.c.bf16 %v3847_v16, %v3843_v12  ;;  %v3907_v16 = vld [vmem:[%s12501_s14 + $0x308] sm:$0xff] }
 0xb0c   :  { %7138 = vmatpush1.bf16.msra.mxu1 %v7137_v19  ;;  %v3911_v19 = vld [vmem:[%s12501_s14 + $0x328] sm:$0xff] }
 0xb0d   :  { %7106 = vmatpush1.bf16.msra.mxu0 %v7105_v9  ;;  %v3846_v9 = vld [vmem:[%s12501_s14 + $0x120] sm:$0xff]  ;;  %7140 = vmatprep.subr.bf16.mxu1 %v7139_v30  ;;  %v7171_v30 = vpack.c.bf16 %v3911_v19, %v3907_v16  ;;  %v3837_v16 = vld [vmem:[%s12501_s14 + $0xd8] sm:$0xff] }
 0xb0e   :  { %7108 = vmatprep.subr.bf16.mxu0 %v7107_v60  ;;  %v3851_v60 = vld [vmem:[%s12501_s14 + $0x148] sm:$0xff]  ;;  %v7141_v28 = vpack.c.bf16 %v3846_v9, %v3842_v21  ;;  %v3906_v21 = vld [vmem:[%s12501_s14 + $0x300] sm:$0xff]  ;;  %v3841_v19 = vld [vmem:[%s12501_s14 + $0xf8] sm:$0xff] }
 0xb0f   :  { %v7143_v32 = vpack.c.bf16 %v3855_v5, %v3851_v60  ;;  %v3910_v9 = vld [vmem:[%s12501_s14 + $0x320] sm:$0xff]  ;;  %v3915_v60 = vld [vmem:[%s12501_s14 + $0x348] sm:$0xff] }
 0xb10   :  { %7142 = vmatpush1.bf16.msra.mxu1 %v7141_v28  ;;  %v7173_v5 = vpack.c.bf16 %v3910_v9, %v3906_v21  ;;  %v3919_v28 = vld [vmem:[%s12501_s14 + $0x368] sm:$0xff]  ;;  %v7199_v21 = vpack.c.bf16 %v3841_v19, %v3837_v16  ;;  %v3836_v9 = vld [vmem:[%s12501_s14 + $0xd0] sm:$0xff] }
 0xb11   :  { %7110 = vmatpush1.bf16.msra.mxu0 %v7109_v13  ;;  %v3854_v13 = vld [vmem:[%s12501_s14 + $0x160] sm:$0xff]  ;;  %7144 = vmatprep.subr.bf16.mxu1 %v7143_v32 }
 0xb12   :  { %7112 = vmatprep.subr.bf16.mxu0 %v7111_v17  ;;  %v3859_v17 = vld [vmem:[%s12501_s14 + $0x188] sm:$0xff]  ;;  %v7145_v54 = vpack.c.bf16 %v3854_v13, %v3850_v40  ;;  %v3914_v32 = vld [vmem:[%s12501_s14 + $0x340] sm:$0xff]  ;;  %v7175_v13 = vpack.c.bf16 %v3919_v28, %v3915_v60  ;;  %v3840_v60 = vld [vmem:[%s12501_s14 + $0xf0] sm:$0xff] }
 0xb13   :  { %v7147_v43 = vpack.c.bf16 %v3863_v4, %v3859_v17  ;;  %v3918_v40 = vld [vmem:[%s12501_s14 + $0x360] sm:$0xff]  ;;  %v3923_v17 = vld [vmem:[%s12501_s14 + $0x388] sm:$0xff]  ;;  %v3849_v28 = vld [vmem:[%s12501_s14 + $0x138] sm:$0xff] }
 0xb14   :  { %7146 = vmatpush1.bf16.msra.mxu1 %v7145_v54  ;;  %v3927_v4 = vld [vmem:[%s12501_s14 + $0x3a8] sm:$0xff]  ;;  %v7177_v54 = vpack.c.bf16 %v3918_v40, %v3914_v32  ;;  %v7201_v32 = vpack.c.bf16 %v3840_v60, %v3836_v9  ;;  %v3917_v9 = vld [vmem:[%s12501_s14 + $0x358] sm:$0xff] }
 0xb15   :  { %7114 = vmatpush1.bf16.msra.mxu0 %v7113_v31  ;;  %v3862_v31 = vld [vmem:[%s12501_s14 + $0x1a0] sm:$0xff]  ;;  %7148 = vmatprep.subr.bf16.mxu1 %v7147_v43  ;;  %v7179_v43 = vpack.c.bf16 %v3927_v4, %v3923_v17  ;;  %v3848_v17 = vld [vmem:[%s12501_s14 + $0x130] sm:$0xff]  ;;  %v3853_v4 = vld [vmem:[%s12501_s14 + $0x158] sm:$0xff] }
 0xb16   :  { %7116 = vmatprep.subr.bf16.mxu0 %v7115_v45  ;;  %v3867_v45 = vld [vmem:[%s12501_s14 + $0x1c8] sm:$0xff]  ;;  %v7149_v27 = vpack.c.bf16 %v3862_v31, %v3858_v18  ;;  %v3922_v18 = vld [vmem:[%s12501_s14 + $0x380] sm:$0xff]  ;;  %v3921_v60 = vld [vmem:[%s12501_s14 + $0x378] sm:$0xff] }
 0xb17   :  { %v7151_v10 = vpack.c.bf16 %v3871_v29, %v3867_v45  ;;  %v3926_v31 = vld [vmem:[%s12501_s14 + $0x3a0] sm:$0xff]  ;;  %v3931_v45 = vld [vmem:[%s12501_s14 + $0x3c8] sm:$0xff] }
 0xb18   :  { %7150 = vmatpush1.bf16.msra.mxu1 %v7149_v27  ;;  %v3935_v29 = vld [vmem:[%s12501_s14 + $0x3e8] sm:$0xff]  ;;  %v7181_v27 = vpack.c.bf16 %v3926_v31, %v3922_v18  ;;  %v3852_v31 = vld [vmem:[%s12501_s14 + $0x150] sm:$0xff] }
 0xb19   :  { %7118 = vmatpush1.bf16.msra.mxu0 %v7117_v26  ;;  %v3870_v26 = vld [vmem:[%s12501_s14 + $0x1e0] sm:$0xff]  ;;  %7152 = vmatprep.subr.bf16.mxu1 %v7151_v10  ;;  %v7183_v10 = vpack.c.bf16 %v3935_v29, %v3931_v45  ;;  %v3856_v45 = vld [vmem:[%s12501_s14 + $0x170] sm:$0xff]  ;;  %v3861_v29 = vld [vmem:[%s12501_s14 + $0x198] sm:$0xff] }
 0xb1a   :  { %7120 = vmatprep.subr.bf16.mxu0 %v7119_v7  ;;  %v3875_v7 = vld [vmem:[%s12501_s14 + $0x208] sm:$0xff]  ;;  %v7153_v46 = vpack.c.bf16 %v3870_v26, %v3866_v53  ;;  %v3930_v53 = vld [vmem:[%s12501_s14 + $0x3c0] sm:$0xff] }
 0xb1b   :  { %v3934_v26 = vld [vmem:[%s12501_s14 + $0x3e0] sm:$0xff] }
 0xb1c   :  { %7154 = vmatpush1.bf16.msra.mxu1 %v7153_v46  ;;  %v3817_v46 = vld [vmem:[%s12501_s14 + $0x38] sm:$0xff] }
 0xb1d   :  { %7122 = vmatpush1.bf16.msra.mxu0 %v7121_v20  ;;  %v7155_v20 = vpack.c.bf16 %v3879_v15, %v3875_v7  ;;  %v7185_v7 = vpack.c.bf16 %v3934_v26, %v3930_v53  ;;  %v3813_v15 = vld [vmem:[%s12501_s14 + $0x18] sm:$0xff]  ;;  %v3860_v26 = vld [vmem:[%s12501_s14 + $0x190] sm:$0xff] }
 0xb1f   :  { %7156 = vmatprep.subr.bf16.mxu1 %v7155_v20  ;;  %v7187_v20 = vpack.c.bf16 %v3817_v46, %v3813_v15  ;;  %v3869_v15 = vld [vmem:[%s12501_s14 + $0x1d8] sm:$0xff] }
 0xb20   :  { %3752 = vmatmul.mubr.f32.vlgmr.msra.gmra.mrb[18].mxu0 %v3486_v3  ;;  %v3874_v3 = vld [vmem:[%s12501_s14 + $0x200] sm:$0xff]  ;;  %v3873_v46 = vld [vmem:[%s12501_s14 + $0x1f8] sm:$0xff] }
 0xbf3   :  { %v11821_v14 = vpop.f32.mrb[18].mxu0 }
 0xbf4   :  { %v3759_v41 = vsel %vm3758_vm3, %v11821_v14, 0.0  ;;  %v11825_v0 = vpop.f32.mrb[19].mxu0 }
 0xbf5   :  { %v3760_v35 = vsel %vm3758_vm3, %v11825_v0, 0.0 }
 0xbf6   :  { %v3761_v61 = vadd.f32 %v3760_v35, %v3759_v41  ;;  %v3878_v41 = vld [vmem:[%s12501_s14 + $0x220] sm:$0xff]  ;;  %v3883_v35 = vld [vmem:[%s12501_s14 + $0x248] sm:$0xff] }
 0xbf7   :  { %v7157_v1 = vpack.c.bf16 %v3878_v41, %v3874_v3 }
 0xbf8   :  { %3762 = vadd.xlane.f32.xlu1 %v3761_v61  ;;  %v3887_v61 = vld [vmem:[%s12501_s14 + $0x268] sm:$0xff] }
 0xbf9   :  { %v7159_v42 = vpack.c.bf16 %v3887_v61, %v3883_v35  ;;  %7158 = vmatpush1.bf16.msra.mxu1 %v7157_v1  ;;  %v3781_v61 = vld [vmem:[#allocation2 + $0x95] ss:$8 sm:$0x3]  ;;  %v3796_v1 = vld [vmem:[#allocation2 + $0x96] ss:$8 sm:$0x3] }
 0xbfa   :  { %v3790_v6 = vrot.slane %v3781_v61, %v12760_v2  ;;  %v3801_v34 = vrot.slane %v3796_v1, %v12761_v44 }
 0xbfb   :  { %7160 = vmatprep.subr.bf16.mxu1 %v7159_v42  ;;  %v3786_v42 = vrot.slane %v3781_v61, %v12761_v44  ;;  %v3877_v61 = vld [vmem:[%s12501_s14 + $0x218] sm:$0xff] }
 0xbfd   :  { %7162 = vmatpush1.bf16.msra.mxu1 %v7161_v25  ;;  %v3805_v25 = vrot.slane %v3796_v1, %v12760_v2  ;;  %v3881_v1 = vld [vmem:[%s12501_s14 + $0x238] sm:$0xff] }
 0xbfe   :  { %7164 = vmatprep.subr.bf16.mxu1 %v7163_v33 }
 0xc01   :  { %7166 = vmatpush1.bf16.msra.mxu1 %v7165_v39 }
 0xc85   :  { %v3763_v23 = vpop.xlane.xlu1 %3762 }
 0xc86   :  { %v3765_v47 = vmul.f32 0.00390625, %v3763_v23 }
 0xc88   :  { %v11962_v52 = vsub.f32 %v11821_v14, %v3765_v47  ;;  %v3767_v55 = vsub.f32 %v11825_v0, %v3765_v47  ;;  %v3903_v14 = vld [vmem:[%s12501_s14 + $0x2e8] sm:$0xff]  ;;  %v3898_v0 = vld [vmem:[%s12501_s14 + $0x2c0] sm:$0xff]  ;;  %v3821_v47 = vld [vmem:[%s12501_s14 + $0x58] sm:$0xff] }
 0xc89   :  { %v7167_v56 = vpack.c.bf16 %v3903_v14, %v3899_v8  ;;  %v7169_v12 = vpack.c.bf16 %v3902_v57, %v3898_v0  ;;  %v3829_v8 = vld [vmem:[%s12501_s14 + $0x98] sm:$0xff]  ;;  %v3828_v57 = vld [vmem:[%s12501_s14 + $0x90] sm:$0xff] }
 0xc8a   :  { %v3768_v58 = vmul.f32 %v11962_v52, %v11962_v52  ;;  %v3769_v59 = vmul.f32 %v3767_v55, %v3767_v55  ;;  %v3833_v14 = vld [vmem:[%s12501_s14 + $0xb8] sm:$0xff] }
 0xc8b   :  { %7168 = vmatprep.subr.bf16.mxu1 %v7167_v56  ;;  %v7195_v0 = vpack.c.bf16 %v3833_v14, %v3829_v8 }
 0xc8c   :  { %v3770_v37 = vsel %vm3758_vm3, %v3768_v58, 0.0  ;;  %v3771_v63 = vsel %vm3758_vm3, %v3769_v59, 0.0  ;;  %7170 = vmatpush1.bf16.msra.mxu1 %v7169_v12  ;;  %v7189_v59 = vpack.c.bf16 %v3816_v36, %v3812_v11  ;;  %v3832_v12 = vld [vmem:[%s12501_s14 + $0xb0] sm:$0xff] }
 0xc8d   :  { %v3772_v62 = vadd.f32 %v3771_v63, %v3770_v37  ;;  %7172 = vmatprep.subr.bf16.mxu1 %v7171_v30  ;;  %v3820_v63 = vld [vmem:[%s12501_s14 + $0x50] sm:$0xff]  ;;  %v7197_v30 = vpack.c.bf16 %v3832_v12, %v3828_v57  ;;  %v3909_v57 = vld [vmem:[%s12501_s14 + $0x318] sm:$0xff] }
 0xc8e   :  { %v3884_v36 = vld [vmem:[%s12501_s14 + $0x250] sm:$0xff]  ;;  %v3913_v12 = vld [vmem:[%s12501_s14 + $0x338] sm:$0xff] }
 0xc8f   :  { %3773 = vadd.xlane.f32.xlu1 %v3772_v62  ;;  %v3824_v62 = vld [vmem:[%s12501_s14 + $0x70] sm:$0xff]  ;;  %v7235_v19 = vpack.c.bf16 %v3913_v12, %v3909_v57 }
 0xc90   :  { %7174 = vmatpush1.bf16.msra.mxu1 %v7173_v5  ;;  %v7193_v56 = vpack.c.bf16 %v3824_v62, %v3820_v63  ;;  %v3845_v5 = vld [vmem:[%s12501_s14 + $0x118] sm:$0xff]  ;;  %v4143_v12 = vld [vmem:[#allocation6 + $0xa0] sm:$0xff] }
 0xc91   :  { %7176 = vmatprep.subr.bf16.mxu1 %v7175_v13  ;;  %v7203_v40 = vpack.c.bf16 %v3849_v28, %v3845_v5  ;;  %v3844_v13 = vld [vmem:[%s12501_s14 + $0x110] sm:$0xff]  ;;  %v3901_v63 = vld [vmem:[%s12501_s14 + $0x2d8] sm:$0xff]  ;;  %v7239_v28 = vpack.c.bf16 %v3921_v60, %v3917_v9 }
 0xc92   :  { %v3905_v62 = vld [vmem:[%s12501_s14 + $0x2f8] sm:$0xff]  ;;  %v4147_v60 = vld [vmem:[#allocation6 + $0xc0] sm:$0xff] }
 0xc93   :  { %v7231_v14 = vpack.c.bf16 %v3905_v62, %v3901_v63  ;;  %v4139_v62 = vld [vmem:[#allocation6 + $0x80] sm:$0xff] }
 0xc94   :  { %7178 = vmatpush1.bf16.msra.mxu1 %v7177_v54  ;;  %v3857_v54 = vld [vmem:[%s12501_s14 + $0x178] sm:$0xff] }
 0xc95   :  { %7180 = vmatprep.subr.bf16.mxu1 %v7179_v43  ;;  %v7205_v43 = vpack.c.bf16 %v3848_v17, %v3844_v13  ;;  %v7207_v18 = vpack.c.bf16 %v3857_v54, %v3853_v4  ;;  %v3925_v13 = vld [vmem:[%s12501_s14 + $0x398] sm:$0xff] }
 0xc96   :  { %v3929_v17 = vld [vmem:[%s12501_s14 + $0x3b8] sm:$0xff] }
 0xc97   :  { %v7243_v54 = vpack.c.bf16 %v3929_v17, %v3925_v13  ;;  %v4151_v17 = vld [vmem:[#allocation6 + $0xe0] sm:$0xff] }
 0xc98   :  { %7182 = vmatpush1.bf16.msra.mxu1 %v7181_v27  ;;  %v3865_v27 = vld [vmem:[%s12501_s14 + $0x1b8] sm:$0xff] }
 0xc99   :  { %7184 = vmatprep.subr.bf16.mxu1 %v7183_v10  ;;  %v7209_v10 = vpack.c.bf16 %v3856_v45, %v3852_v31  ;;  %v7211_v53 = vpack.c.bf16 %v3865_v27, %v3861_v29  ;;  %v3933_v31 = vld [vmem:[%s12501_s14 + $0x3d8] sm:$0xff] }
 0xc9a   :  { %v3937_v45 = vld [vmem:[%s12501_s14 + $0x3f8] sm:$0xff] }
 0xc9b   :  { %v7247_v27 = vpack.c.bf16 %v3937_v45, %v3933_v31  ;;  %v4155_v45 = vld [vmem:[#allocation6 + $0x100] sm:$0xff] }
 0xc9c   :  { %7186 = vmatpush1.bf16.msra.mxu1 %v7185_v7  ;;  %v3864_v7 = vld [vmem:[%s12501_s14 + $0x1b0] sm:$0xff] }
 0xc9d   :  { %7188 = vmatprep.subr.bf16.mxu1 %v7187_v20  ;;  %v7213_v20 = vpack.c.bf16 %v3864_v7, %v3860_v26  ;;  %v4124_v7 = vld [vmem:[#allocation6 + $0x8] sm:$0xff] }
 0xd1c   :  { %v3774_v3 = vpop.xlane.xlu1 %3773 }
 0xd1d   :  { %v3775_v41 = vmul.f32 0.00390625, %v3774_v3  ;;  %v7215_v3 = vpack.c.bf16 %v3873_v46, %v3869_v15  ;;  %v4126_v15 = vld [vmem:[#allocation6 + $0x18] sm:$0xff]  ;;  %v4123_v46 = vld [vmem:[#allocation6] sm:$0xff] }
 0xd1f   :  { %v3776_v35 = vadd.f32 1e-05, %v3775_v41  ;;  %v3868_v41 = vld [vmem:[%s12501_s14 + $0x1d0] sm:$0xff] }
 0xd21   :  { %7525 = vrsqrt.f32 %v3776_v35  ;;  %v3872_v35 = vld [vmem:[%s12501_s14 + $0x1f0] sm:$0xff] }
 0xd2b   :  { %v7526_v49 = vpop.eup %7525 }
 0xd2c   :  { %v3779_v24 = vmul.f32 %v7526_v49, %v3767_v55  ;;  %v3778_v33 = vmul.f32 %v7526_v49, %v11962_v52  ;;  %v3825_v55 = vld [vmem:[%s12501_s14 + $0x78] sm:$0xff]  ;;  %v3876_v49 = vld [vmem:[%s12501_s14 + $0x210] sm:$0xff] }
 0xd2d   :  { %v7191_v37 = vpack.c.bf16 %v3825_v55, %v3821_v47  ;;  %v3897_v47 = vld [vmem:[%s12501_s14 + $0x2b8] sm:$0xff] }
 0xd2e   :  { %v3794_v39 = vmul.f32 %v3790_v6, %v3779_v24  ;;  %v3793_v23 = vmul.f32 %v3786_v42, %v3778_v33  ;;  %v7217_v42 = vpack.c.bf16 %v3872_v35, %v3868_v41  ;;  %v7219_v6 = vpack.c.bf16 %v3881_v1, %v3877_v61  ;;  %v3880_v24 = vld [vmem:[%s12501_s14 + $0x230] sm:$0xff]  ;;  %v4128_v41 = vld [vmem:[#allocation6 + $0x28] sm:$0xff]  ;;  %v4130_v35 = vld [vmem:[#allocation6 + $0x38] sm:$0xff] }
 0xd2f   :  { %v7221_v33 = vpack.c.bf16 %v3880_v24, %v3876_v49  ;;  %v7255_v1 = vpack.c.bf16 %v4130_v35, %v4128_v41  ;;  %v4132_v49 = vld [vmem:[#allocation6 + $0x48] sm:$0xff]  ;;  %v4134_v24 = vld [vmem:[#allocation6 + $0x58] sm:$0xff]  ;;  %v4163_v35 = vld [vmem:[#allocation6 + $0x140] sm:$0xff] }
 0xd30   :  { %v3809_v58 = vadd.f32 %v3805_v25, %v3794_v39  ;;  %v12052_v52 = vadd.f32 %v3801_v34, %v3793_v23  ;;  %v3885_v34 = vld [vmem:[%s12501_s14 + $0x258] sm:$0xff]  ;;  %v3888_v39 = vld [vmem:[%s12501_s14 + $0x270] sm:$0xff] }
 0xd31   :  { %v3889_v25 = vld [vmem:[%s12501_s14 + $0x278] sm:$0xff]  ;;  %v7225_v55 = vpack.c.bf16 %v3888_v39, %v3884_v36  ;;  %v4138_v36 = vld [vmem:[#allocation6 + $0x78] sm:$0xff] }
 0xd32   :  { %4025 = vmatprep.mubr.f32.mxu1 %v3809_v58  ;;  %v7223_v11 = vpack.c.bf16 %v3889_v25, %v3885_v34  ;;  %v3893_v23 = vld [vmem:[%s12501_s14 + $0x298] sm:$0xff]  ;;  %v7259_v25 = vpack.c.bf16 %v4134_v24, %v4132_v49  ;;  %v4167_v24 = vld [vmem:[#allocation6 + $0x160] sm:$0xff] }
 0xd33   :  { %4026 = vmatmul.mubr.f32.vlgmr.msra.gmra.mrb[18].mxu1 %v12052_v52 }
 0xd34   :  { %7190 = vmatpush1.bf16.msra.mxu1 %v7189_v59  ;;  %4096 = vmatprep.mubr.f32.mxu1 %v3809_v58  ;;  %v7227_v58 = vpack.c.bf16 %v3897_v47, %v3893_v23  ;;  %v3892_v59 = vld [vmem:[%s12501_s14 + $0x290] sm:$0xff] }
 0xd35   :  { %7192 = vmatprep.subr.bf16.mxu1 %v7191_v37  ;;  %v3896_v37 = vld [vmem:[%s12501_s14 + $0x2b0] sm:$0xff] }
 0xd36   :  { %v7229_v8 = vpack.c.bf16 %v3896_v37, %v3892_v59  ;;  %v4135_v47 = vld [vmem:[#allocation6 + $0x60] sm:$0xff]  ;;  %v4142_v59 = vld [vmem:[#allocation6 + $0x98] sm:$0xff] }
 0xd38   :  { %7194 = vmatpush1.bf16.msra.mxu1 %v7193_v56  ;;  %v3900_v56 = vld [vmem:[%s12501_s14 + $0x2d0] sm:$0xff] }
 0xd39   :  { %7196 = vmatprep.subr.bf16.mxu1 %v7195_v0  ;;  %v3904_v0 = vld [vmem:[%s12501_s14 + $0x2f0] sm:$0xff] }
 0xd3a   :  { %v7233_v16 = vpack.c.bf16 %v3904_v0, %v3900_v56  ;;  %v4146_v56 = vld [vmem:[#allocation6 + $0xb8] sm:$0xff] }
 0xd3c   :  { %7198 = vmatpush1.bf16.msra.mxu1 %v7197_v30  ;;  %v3908_v30 = vld [vmem:[%s12501_s14 + $0x310] sm:$0xff] }
 0xd3d   :  { %7200 = vmatprep.subr.bf16.mxu1 %v7199_v21  ;;  %v3912_v21 = vld [vmem:[%s12501_s14 + $0x330] sm:$0xff] }
 0xd3e   :  { %v7237_v5 = vpack.c.bf16 %v3912_v21, %v3908_v30  ;;  %v4150_v30 = vld [vmem:[#allocation6 + $0xd8] sm:$0xff] }
 0xd40   :  { %7202 = vmatpush1.bf16.msra.mxu1 %v7201_v32  ;;  %v3916_v32 = vld [vmem:[%s12501_s14 + $0x350] sm:$0xff] }
 0xd41   :  { %7204 = vmatprep.subr.bf16.mxu1 %v7203_v40  ;;  %v3920_v40 = vld [vmem:[%s12501_s14 + $0x370] sm:$0xff] }
 0xd42   :  { %v7241_v4 = vpack.c.bf16 %v3920_v40, %v3916_v32  ;;  %v4154_v32 = vld [vmem:[#allocation6 + $0xf8] sm:$0xff] }
 0xd44   :  { %7206 = vmatpush1.bf16.msra.mxu1 %v7205_v43  ;;  %v3924_v43 = vld [vmem:[%s12501_s14 + $0x390] sm:$0xff] }
 0xd45   :  { %7208 = vmatprep.subr.bf16.mxu1 %v7207_v18  ;;  %v3928_v18 = vld [vmem:[%s12501_s14 + $0x3b0] sm:$0xff] }
 0xd46   :  { %v7245_v29 = vpack.c.bf16 %v3928_v18, %v3924_v43  ;;  %v4156_v43 = vld [vmem:[#allocation6 + $0x108] sm:$0xff]  ;;  %v4158_v18 = vld [vmem:[#allocation6 + $0x118] sm:$0xff] }
 0xd47   :  { %v7283_v31 = vpack.c.bf16 %v4158_v18, %v4156_v43  ;;  %v4273_v18 = vld [vmem:[#allocation7 + $0x10] sm:$0xff] }
 0xd48   :  { %7210 = vmatpush1.bf16.msra.mxu1 %v7209_v10  ;;  %v3932_v10 = vld [vmem:[%s12501_s14 + $0x3d0] sm:$0xff] }
 0xd49   :  { %7212 = vmatprep.subr.bf16.mxu1 %v7211_v53  ;;  %v3936_v53 = vld [vmem:[%s12501_s14 + $0x3f0] sm:$0xff] }
 0xd4a   :  { %v7249_v26 = vpack.c.bf16 %v3936_v53, %v3932_v10  ;;  %v4160_v10 = vld [vmem:[#allocation6 + $0x128] sm:$0xff]  ;;  %v4162_v53 = vld [vmem:[#allocation6 + $0x138] sm:$0xff] }
 0xd4c   :  { %7214 = vmatpush1.bf16.msra.mxu1 %v7213_v20  ;;  %v7251_v20 = vpack.c.bf16 %v4126_v15, %v4124_v7  ;;  %v4159_v7 = vld [vmem:[#allocation6 + $0x120] sm:$0xff]  ;;  %v4161_v15 = vld [vmem:[#allocation6 + $0x130] sm:$0xff] }
 0xd4d   :  { %7216 = vmatprep.subr.bf16.mxu1 %v7215_v3  ;;  %v4125_v3 = vld [vmem:[#allocation6 + $0x10] sm:$0xff] }
 0xd4e   :  { %v7253_v61 = vpack.c.bf16 %v4125_v3, %v4123_v46  ;;  %7252 = vmatprep.subr.bf16.mxu0 %v7251_v20  ;;  %v7289_v46 = vpack.c.bf16 %v4161_v15, %v4159_v7  ;;  %v4164_v20 = vld [vmem:[#allocation6 + $0x148] sm:$0xff]  ;;  %v4166_v3 = vld [vmem:[#allocation6 + $0x158] sm:$0xff]  ;;  %v4293_v7 = vld [vmem:[#allocation7 + $0xb0] sm:$0xff] }
 0xd4f   :  { %v7291_v41 = vpack.c.bf16 %v4166_v3, %v4164_v20  ;;  %v4294_v15 = vld [vmem:[#allocation7 + $0xb8] sm:$0xff]  ;;  %v4277_v3 = vld [vmem:[#allocation7 + $0x30] sm:$0xff] }
 0xd50   :  { %7218 = vmatpush1.bf16.msra.mxu1 %v7217_v42  ;;  %v4127_v42 = vld [vmem:[#allocation6 + $0x20] sm:$0xff]  ;;  %7254 = vmatpush1.bf16.msra.mxu0 %v7253_v61  ;;  %v4165_v61 = vld [vmem:[#allocation6 + $0x150] sm:$0xff]  ;;  %v7327_v20 = vpack.c.bf16 %v4294_v15, %v4293_v7  ;;  %v4302_v15 = vld [vmem:[#allocation7 + $0xf8] sm:$0xff] }
 0xd51   :  { %7220 = vmatprep.subr.bf16.mxu1 %v7219_v6  ;;  %v4129_v6 = vld [vmem:[#allocation6 + $0x30] sm:$0xff]  ;;  %7256 = vmatprep.subr.bf16.mxu0 %v7255_v1  ;;  %v7293_v1 = vpack.c.bf16 %v4165_v61, %v4163_v35  ;;  %v4295_v35 = vld [vmem:[#allocation7 + $0xc0] sm:$0xff]  ;;  %v4296_v61 = vld [vmem:[#allocation7 + $0xc8] sm:$0xff] }
 0xd52   :  { %v7257_v34 = vpack.c.bf16 %v4129_v6, %v4127_v42  ;;  %v4168_v42 = vld [vmem:[#allocation6 + $0x168] sm:$0xff]  ;;  %v4170_v6 = vld [vmem:[#allocation6 + $0x178] sm:$0xff]  ;;  %v4301_v7 = vld [vmem:[#allocation7 + $0xf0] sm:$0xff] }
 0xd53   :  { %v7295_v49 = vpack.c.bf16 %v4170_v6, %v4168_v42  ;;  %v7331_v42 = vpack.c.bf16 %v4296_v61, %v4295_v35  ;;  %v4279_v6 = vld [vmem:[#allocation7 + $0x40] sm:$0xff]  ;;  %v5069_v35 = vld [vmem:[%s12493_s6 + $0x200] sm:$0xff]  ;;  %v5070_v61 = vld [vmem:[%s12493_s6 + $0x208] sm:$0xff] }
 0xd54   :  { %7222 = vmatpush1.bf16.msra.mxu1 %v7221_v33  ;;  %v4131_v33 = vld [vmem:[#allocation6 + $0x40] sm:$0xff]  ;;  %7258 = vmatpush1.bf16.msra.mxu0 %v7257_v34  ;;  %v4169_v34 = vld [vmem:[#allocation6 + $0x170] sm:$0xff] }
 0xd55   :  { %7224 = vmatprep.subr.bf16.mxu1 %v7223_v11  ;;  %v4136_v11 = vld [vmem:[#allocation6 + $0x68] sm:$0xff]  ;;  %7260 = vmatprep.subr.bf16.mxu0 %v7259_v25  ;;  %v7297_v25 = vpack.c.bf16 %v4169_v34, %v4167_v24  ;;  %v4297_v24 = vld [vmem:[#allocation7 + $0xd0] sm:$0xff]  ;;  %v4298_v34 = vld [vmem:[#allocation7 + $0xd8] sm:$0xff] }
 0xd56   :  { %v7263_v23 = vpack.c.bf16 %v4138_v36, %v4136_v11  ;;  %v4171_v11 = vld [vmem:[#allocation6 + $0x180] sm:$0xff] }
 0xd58   :  { %7226 = vmatpush1.bf16.msra.mxu1 %v7225_v55  ;;  %v4137_v55 = vld [vmem:[#allocation6 + $0x70] sm:$0xff] }
 0xd59   :  { %7228 = vmatprep.subr.bf16.mxu1 %v7227_v58  ;;  %v4140_v58 = vld [vmem:[#allocation6 + $0x88] sm:$0xff]  ;;  %v7265_v37 = vpack.c.bf16 %v4137_v55, %v4135_v47  ;;  %v4178_v47 = vld [vmem:[#allocation6 + $0x1b8] sm:$0xff] }
 0xd5a   :  { %v7267_v63 = vpack.c.bf16 %v4142_v59, %v4140_v58  ;;  %v4175_v59 = vld [vmem:[#allocation6 + $0x1a0] sm:$0xff] }
 0xd5c   :  { %7230 = vmatpush1.bf16.msra.mxu1 %v7229_v8  ;;  %v4141_v8 = vld [vmem:[#allocation6 + $0x90] sm:$0xff] }
 0xd5d   :  { %7232 = vmatprep.subr.bf16.mxu1 %v7231_v14  ;;  %v4144_v14 = vld [vmem:[#allocation6 + $0xa8] sm:$0xff]  ;;  %v7269_v0 = vpack.c.bf16 %v4141_v8, %v4139_v62  ;;  %v4182_v62 = vld [vmem:[#allocation6 + $0x1d8] sm:$0xff] }
 0xd5e   :  { %v7271_v57 = vpack.c.bf16 %v4146_v56, %v4144_v14  ;;  %v4179_v56 = vld [vmem:[#allocation6 + $0x1c0] sm:$0xff] }
 0xd60   :  { %7234 = vmatpush1.bf16.msra.mxu1 %v7233_v16  ;;  %v4145_v16 = vld [vmem:[#allocation6 + $0xb0] sm:$0xff] }
 0xd61   :  { %7236 = vmatprep.subr.bf16.mxu1 %v7235_v19  ;;  %v4148_v19 = vld [vmem:[#allocation6 + $0xc8] sm:$0xff]  ;;  %v7273_v21 = vpack.c.bf16 %v4145_v16, %v4143_v12  ;;  %v4186_v12 = vld [vmem:[#allocation6 + $0x1f8] sm:$0xff] }
 0xd62   :  { %v7275_v9 = vpack.c.bf16 %v4150_v30, %v4148_v19  ;;  %v4183_v30 = vld [vmem:[#allocation6 + $0x1e0] sm:$0xff] }
 0xd64   :  { %7238 = vmatpush1.bf16.msra.mxu1 %v7237_v5  ;;  %v4149_v5 = vld [vmem:[#allocation6 + $0xd0] sm:$0xff] }
 0xd65   :  { %7240 = vmatprep.subr.bf16.mxu1 %v7239_v28  ;;  %v4152_v28 = vld [vmem:[#allocation6 + $0xe8] sm:$0xff]  ;;  %v7277_v40 = vpack.c.bf16 %v4149_v5, %v4147_v60  ;;  %v12765_v60 = vmov 0.0|0.0   ;;  %v4287_v5 = vld [vmem:[#allocation7 + $0x80] sm:$0xff] }
 0xd66   :  { %v7279_v13 = vpack.c.bf16 %v4154_v32, %v4152_v28  ;;  %v4288_v28 = vld [vmem:[#allocation7 + $0x88] sm:$0xff]  ;;  %v4271_v32 = vld [vmem:[#allocation7] sm:$0xff] }
 0xd68   :  { %7242 = vmatpush1.bf16.msra.mxu1 %v7241_v4  ;;  %v4153_v4 = vld [vmem:[#allocation6 + $0xf0] sm:$0xff] }
 0xd69   :  { %7244 = vmatprep.subr.bf16.mxu1 %v7243_v54  ;;  %v7281_v54 = vpack.c.bf16 %v4153_v4, %v4151_v17  ;;  %v4289_v17 = vld [vmem:[#allocation7 + $0x90] sm:$0xff]  ;;  %v4290_v4 = vld [vmem:[#allocation7 + $0x98] sm:$0xff] }
 0xd6a   :  { %v7319_v43 = vpack.c.bf16 %v4290_v4, %v4289_v17 }
 0xd6c   :  { %7246 = vmatpush1.bf16.msra.mxu1 %v7245_v29  ;;  %v4157_v29 = vld [vmem:[#allocation6 + $0x110] sm:$0xff] }
 0xd6d   :  { %7248 = vmatprep.subr.bf16.mxu1 %v7247_v27  ;;  %v7285_v27 = vpack.c.bf16 %v4157_v29, %v4155_v45  ;;  %v4291_v45 = vld [vmem:[#allocation7 + $0xa0] sm:$0xff]  ;;  %v4292_v29 = vld [vmem:[#allocation7 + $0xa8] sm:$0xff] }
 0xd70   :  { %7250 = vmatpush1.bf16.msra.mxu1 %v7249_v26  ;;  %v7287_v26 = vpack.c.bf16 %v4162_v53, %v4160_v10  ;;  %v7323_v10 = vpack.c.bf16 %v4292_v29, %v4291_v45  ;;  %v4275_v53 = vld [vmem:[#allocation7 + $0x20] sm:$0xff] }
 0xd73   :  { %4097 = vmatmul.mubr.f32.vlgmr.msra.gmra.mrb[20].mxu1 %v12052_v52  ;;  %v4133_v52 = vld [vmem:[#allocation6 + $0x50] sm:$0xff] }
 0xd74   :  { %v7261_v39 = vpack.c.bf16 %v4133_v52, %v4131_v33  ;;  %v4172_v33 = vld [vmem:[#allocation6 + $0x188] sm:$0xff]  ;;  %v4174_v52 = vld [vmem:[#allocation6 + $0x198] sm:$0xff] }
 0xd75   :  { %v7299_v36 = vpack.c.bf16 %v4174_v52, %v4172_v33  ;;  %v7335_v33 = vpack.c.bf16 %v4298_v34, %v4297_v24  ;;  %v4281_v52 = vld [vmem:[#allocation7 + $0x50] sm:$0xff]  ;;  %v5074_v34 = vld [vmem:[%s12493_s6 + $0x228] sm:$0xff] }
 0xd76   :  { %7262 = vmatpush1.bf16.msra.mxu0 %v7261_v39  ;;  %v4173_v39 = vld [vmem:[#allocation6 + $0x190] sm:$0xff] }
 0xd77   :  { %7264 = vmatprep.subr.bf16.mxu0 %v7263_v23  ;;  %v4176_v23 = vld [vmem:[#allocation6 + $0x1a8] sm:$0xff]  ;;  %v7301_v55 = vpack.c.bf16 %v4173_v39, %v4171_v11  ;;  %v4282_v11 = vld [vmem:[#allocation7 + $0x58] sm:$0xff]  ;;  %v5073_v24 = vld [vmem:[%s12493_s6 + $0x220] sm:$0xff] }
 0xd78   :  { %v7303_v58 = vpack.c.bf16 %v4178_v47, %v4176_v23  ;;  %v4300_v39 = vld [vmem:[#allocation7 + $0xe8] sm:$0xff]  ;;  %v7337_v23 = vpack.c.bf16 %v4282_v11, %v4281_v52 }
 0xd79   :  { %v5076_v52 = vld [vmem:[%s12493_s6 + $0x238] sm:$0xff] }
 0xd7a   :  { %7266 = vmatpush1.bf16.msra.mxu0 %v7265_v37  ;;  %v4177_v37 = vld [vmem:[#allocation6 + $0x1b0] sm:$0xff] }
 0xd7b   :  { %7268 = vmatprep.subr.bf16.mxu0 %v7267_v63  ;;  %v4180_v63 = vld [vmem:[#allocation6 + $0x1c8] sm:$0xff]  ;;  %v7305_v8 = vpack.c.bf16 %v4177_v37, %v4175_v59 }
 0xd7c   :  { %v7307_v14 = vpack.c.bf16 %v4182_v62, %v4180_v63  ;;  %v3939_v62 = vld [vmem:[#allocation2 + $0x97] ss:$8 sm:$0xf] }
 0xd7e   :  { %7270 = vmatpush1.bf16.msra.mxu0 %v7269_v0  ;;  %v4181_v0 = vld [vmem:[#allocation6 + $0x1d0] sm:$0xff] }
 0xd7f   :  { %7272 = vmatprep.subr.bf16.mxu0 %v7271_v57  ;;  %v4184_v57 = vld [vmem:[#allocation6 + $0x1e8] sm:$0xff]  ;;  %v7309_v16 = vpack.c.bf16 %v4181_v0, %v4179_v56 }
 0xd80   :  { %v7311_v19 = vpack.c.bf16 %v4186_v12, %v4184_v57 }
 0xd82   :  { %7274 = vmatpush1.bf16.msra.mxu0 %v7273_v21  ;;  %v4185_v21 = vld [vmem:[#allocation6 + $0x1f0] sm:$0xff] }
 0xd83   :  { %7276 = vmatprep.subr.bf16.mxu0 %v7275_v9  ;;  %v7313_v9 = vpack.c.bf16 %v4185_v21, %v4183_v30 }
 0xd86   :  { %7278 = vmatpush1.bf16.msra.mxu0 %v7277_v40  ;;  %v7315_v40 = vpack.c.bf16 %v4288_v28, %v4287_v5 }
 0xd87   :  { %7280 = vmatprep.subr.bf16.mxu0 %v7279_v13  ;;  %v4272_v13 = vld [vmem:[#allocation7 + $0x8] sm:$0xff] }
 0xd88   :  { %7316 = vmatprep.subr.bf16.mxu1 %v7315_v40 }
 0xd8a   :  { %7282 = vmatpush1.bf16.msra.mxu0 %v7281_v54  ;;  %v7317_v54 = vpack.c.bf16 %v4272_v13, %v4271_v32 }
 0xd8b   :  { %7284 = vmatprep.subr.bf16.mxu0 %v7283_v31  ;;  %v4274_v31 = vld [vmem:[#allocation7 + $0x18] sm:$0xff] }
 0xd8c   :  { %7318 = vmatpush3.bf16.msra.mxu1 %v7317_v54 }
 0xd8d   :  { %7320 = vmatprep.subr.bf16.mxu1 %v7319_v43 }
 0xd8e   :  { %7286 = vmatpush1.bf16.msra.mxu0 %v7285_v27  ;;  %v7321_v27 = vpack.c.bf16 %v4274_v31, %v4273_v18 }
 0xd8f   :  { %7288 = vmatprep.subr.bf16.mxu0 %v7287_v26  ;;  %v4276_v26 = vld [vmem:[#allocation7 + $0x28] sm:$0xff] }
 0xd90   :  { %7322 = vmatpush3.bf16.msra.mxu1 %v7321_v27 }
 0xd91   :  { %7324 = vmatprep.subr.bf16.mxu1 %v7323_v10 }
 0xd92   :  { %7290 = vmatpush1.bf16.msra.mxu0 %v7289_v46  ;;  %v7325_v46 = vpack.c.bf16 %v4276_v26, %v4275_v53 }
 0xd93   :  { %7292 = vmatprep.subr.bf16.mxu0 %v7291_v41  ;;  %v4278_v41 = vld [vmem:[#allocation7 + $0x38] sm:$0xff] }
 0xd94   :  { %7326 = vmatpush3.bf16.msra.mxu1 %v7325_v46  ;;  %v7343_v46 = vpack.c.bf16 %v4302_v15, %v4301_v7  ;;  %v5085_v15 = vld [vmem:[%s12493_s6 + $0x280] sm:$0xff] }
 0xd95   :  { %7328 = vmatprep.subr.bf16.mxu1 %v7327_v20  ;;  %v4285_v20 = vld [vmem:[#allocation7 + $0x70] sm:$0xff] }
 0xd96   :  { %7294 = vmatpush1.bf16.msra.mxu0 %v7293_v1  ;;  %v7329_v1 = vpack.c.bf16 %v4278_v41, %v4277_v3  ;;  %v4286_v3 = vld [vmem:[#allocation7 + $0x78] sm:$0xff] }
 0xd97   :  { %7296 = vmatprep.subr.bf16.mxu0 %v7295_v49  ;;  %v4280_v49 = vld [vmem:[#allocation7 + $0x48] sm:$0xff]  ;;  %v7345_v41 = vpack.c.bf16 %v4286_v3, %v4285_v20  ;;  %v5087_v3 = vld [vmem:[%s12493_s6 + $0x290] sm:$0xff] }
 0xd98   :  { %7330 = vmatpush3.bf16.msra.mxu1 %v7329_v1  ;;  %v5071_v1 = vld [vmem:[%s12493_s6 + $0x210] sm:$0xff] }
 0xd99   :  { %7332 = vmatprep.subr.bf16.mxu1 %v7331_v42  ;;  %v7348_v42 = vpack.c.bf16 %v5070_v61, %v5069_v35  ;;  %v5089_v61 = vld [vmem:[%s12493_s6 + $0x2a0] sm:$0xff] }
 0xd9a   :  { %7298 = vmatpush1.bf16.msra.mxu0 %v7297_v25  ;;  %v7333_v25 = vpack.c.bf16 %v4280_v49, %v4279_v6  ;;  %v5072_v6 = vld [vmem:[%s12493_s6 + $0x218] sm:$0xff] }
 0xd9b   :  { %7300 = vmatprep.subr.bf16.mxu0 %v7299_v36  ;;  %v4299_v36 = vld [vmem:[#allocation7 + $0xe0] sm:$0xff]  ;;  %v7351_v49 = vpack.c.bf16 %v5072_v6, %v5071_v1  ;;  %v5090_v1 = vld [vmem:[%s12493_s6 + $0x2a8] sm:$0xff] }
 0xd9c   :  { %7334 = vmatpush3.bf16.msra.mxu1 %v7333_v25  ;;  %v7339_v47 = vpack.c.bf16 %v4300_v39, %v4299_v36  ;;  %v7354_v25 = vpack.c.bf16 %v5074_v34, %v5073_v24  ;;  %v5077_v36 = vld [vmem:[%s12493_s6 + $0x240] sm:$0xff]  ;;  %v5078_v39 = vld [vmem:[%s12493_s6 + $0x248] sm:$0xff]  ;;  %v5091_v6 = vld [vmem:[%s12493_s6 + $0x2b0] sm:$0xff] }
 0xd9d   :  { %7336 = vmatprep.subr.bf16.mxu1 %v7335_v33  ;;  %v5075_v33 = vld [vmem:[%s12493_s6 + $0x230] sm:$0xff]  ;;  %v5093_v34 = vld [vmem:[%s12493_s6 + $0x2c0] sm:$0xff] }
 0xd9e   :  { %7302 = vmatpush1.bf16.msra.mxu0 %v7301_v55  ;;  %v4283_v55 = vld [vmem:[#allocation7 + $0x60] sm:$0xff]  ;;  %v7357_v11 = vpack.c.bf16 %v5076_v52, %v5075_v33 }
 0xd9f   :  { %7304 = vmatprep.subr.bf16.mxu0 %v7303_v58  ;;  %v4284_v58 = vld [vmem:[#allocation7 + $0x68] sm:$0xff]  ;;  %v5095_v52 = vld [vmem:[%s12493_s6 + $0x2d0] sm:$0xff] }
 0xda0   :  { %7338 = vmatpush3.bf16.msra.mxu1 %v7337_v23  ;;  %v7341_v59 = vpack.c.bf16 %v4284_v58, %v4283_v55  ;;  %v7360_v23 = vpack.c.bf16 %v5078_v39, %v5077_v36  ;;  %v5097_v39 = vld [vmem:[%s12493_s6 + $0x2e0] sm:$0xff] }
 0xda1   :  { %7340 = vmatprep.subr.bf16.mxu1 %v7339_v47  ;;  %v4188_v47 = vld [vmem:[#allocation2 + $0xc0] ss:$8 sm:$0x3] }
 0xda2   :  { %7306 = vmatpush1.bf16.msra.mxu0 %v7305_v8  ;;  %v3952_v8 = vrot.slane %v3939_v62, %v12763_v22  ;;  %v3944_v22 = vrot.slane %v3939_v62, %v12761_v44  ;;  %v4197_v55 = vrot.slane %v4188_v47, %v12760_v2  ;;  %v4193_v58 = vrot.slane %v4188_v47, %v12761_v44 }
 0xda3   :  { %7308 = vmatprep.subr.bf16.mxu0 %v7307_v14  ;;  %v3956_v14 = vrot.slane %v3939_v62, %v12762_v48  ;;  %v3948_v48 = vrot.slane %v3939_v62, %v12760_v2  ;;  %v5104_v2 = vld [vmem:[%s12493_s6 + $0x318] sm:$0xff] }
 0xda4   :  { %7342 = vmatpush3.bf16.msra.mxu1 %v7341_v59  ;;  %v5101_v59 = vld [vmem:[%s12493_s6 + $0x300] sm:$0xff] }
 0xda5   :  { %7344 = vmatprep.subr.bf16.mxu1 %v7343_v46  ;;  %v5086_v46 = vld [vmem:[%s12493_s6 + $0x288] sm:$0xff] }
 0xda6   :  { %7310 = vmatpush1.bf16.msra.mxu0 %v7309_v16  ;;  %v7396_v20 = vpack.c.bf16 %v5086_v46, %v5085_v15  ;;  %v130_v15 = vld [vmem:[#allocation2 + $0x60] ss:$0 sm:$0xff]  ;;  %v4397_v46 = vld [vmem:[#allocation2 + $0x64] ss:$0 sm:$0xff] }
 0xda7   :  { %7312 = vmatprep.subr.bf16.mxu0 %v7311_v19 }
 0xda8   :  { %7346 = vmatpush3.bf16.msra.mxu1 %v7345_v41  ;;  %v5088_v41 = vld [vmem:[%s12493_s6 + $0x298] sm:$0xff] }
 0xda9   :  { %7371 = vmatprep.subr.bf16.mxu1 %v12765_v60  ;;  %v7399_v35 = vpack.c.bf16 %v5088_v41, %v5087_v3 }
 0xdaa   :  { %7314 = vmatpush1.bf16.msra.mxu0 %v7313_v9 }
 0xdab   :  { %7347 = vmatprep.subr.bf16.mxu0 %v12765_v60 }
 0xe06   :  { %v4027_v37 = vpop.f32.mrb[18].mxu1 }
 0xe07   :  { %v4029_v63 = vpop.f32.mrb[19].mxu1  ;;  %v4028_v45 = vadd.f32 %v4027_v37, %v3944_v22  ;;  %v5102_v37 = vld [vmem:[%s12493_s6 + $0x308] sm:$0xff]  ;;  %v5113_v22 = vld [vmem:[%s12493_s6 + $0x360] sm:$0xff] }
 0xe08   :  { %v4030_v27 = vadd.f32 %v4029_v63, %v3948_v48 }
 0xe46   :  { %v4098_v56 = vpop.f32.mrb[20].mxu1 }
 0xe47   :  { %v4099_v0 = vadd.f32 %v4098_v56, %v3952_v8  ;;  %v4100_v57 = vpop.f32.mrb[21].mxu1 }
 0xe48   :  { %v4101_v12 = vadd.f32 %v4100_v57, %v3956_v14  ;;  %v7372_v14 = vpack.c.bf16 %v5102_v37, %v5101_v59  ;;  %v5105_v57 = vld [vmem:[%s12493_s6 + $0x320] sm:$0xff] }
 0xe49   :  { %v4105_v16 = vmul.f32 0.044715, %v4099_v0  ;;  %v4103_v54 = vmul.f32 0.5, %v4099_v0 }
 0xe4a   :  { %v4106_v19 = vmul.f32 0.044715, %v4101_v12  ;;  %v4104_v18 = vmul.f32 0.5, %v4101_v12 }
 0xe4b   :  { %v4107_v30 = vmul.f32 %v4105_v16, %v4099_v0 }
 0xe4c   :  { %v4108_v21 = vmul.f32 %v4106_v19, %v4101_v12  ;;  %v5107_v19 = vld [vmem:[%s12493_s6 + $0x330] sm:$0xff] }
 0xe4d   :  { %v4109_v9 = vmul.f32 %v4107_v30, %v4099_v0  ;;  %v5108_v30 = vld [vmem:[%s12493_s6 + $0x338] sm:$0xff] }
 0xe4e   :  { %v4110_v5 = vmul.f32 %v4108_v21, %v4101_v12  ;;  %v7381_v21 = vpack.c.bf16 %v5108_v30, %v5107_v19 }
 0xe4f   :  { %v4111_v28 = vadd.f32 %v4109_v9, %v4099_v0  ;;  %v5103_v0 = vld [vmem:[%s12493_s6 + $0x310] sm:$0xff]  ;;  %v5109_v9 = vld [vmem:[%s12493_s6 + $0x340] sm:$0xff] }
 0xe50   :  { %v4112_v32 = vadd.f32 %v4110_v5, %v4101_v12  ;;  %v7375_v44 = vpack.c.bf16 %v5104_v2, %v5103_v0  ;;  %v5106_v12 = vld [vmem:[%s12493_s6 + $0x328] sm:$0xff]  ;;  %v4377_v2 = vld [vmem:[#allocation2 + $0x37] ss:$0 sm:$0xff] }
 0xe51   :  { %v4113_v40 = vmul.f32 0.7978846, %v4111_v28  ;;  %v7378_v16 = vpack.c.bf16 %v5106_v12, %v5105_v57  ;;  %v5110_v5 = vld [vmem:[%s12493_s6 + $0x348] sm:$0xff]  ;;  %v5118_v57 = vld [vmem:[%s12493_s6 + $0x380] sm:$0xff] }
 0xe52   :  { %v4114_v13 = vmul.f32 0.7978846, %v4112_v32  ;;  %v7384_v28 = vpack.c.bf16 %v5110_v5, %v5109_v9  ;;  %v5111_v32 = vld [vmem:[%s12493_s6 + $0x350] sm:$0xff]  ;;  %v5119_v12 = vld [vmem:[%s12493_s6 + $0x388] sm:$0xff]  ;;  %v5122_v5 = vld [vmem:[%s12493_s6 + $0x3a0] sm:$0xff] }
 0xe53   :  { %7527 = vtanh.f32 %v4113_v40  ;;  %v5112_v40 = vld [vmem:[%s12493_s6 + $0x358] sm:$0xff]  ;;  %v7420_v19 = vpack.c.bf16 %v5119_v12, %v5118_v57 }
 0xe54   :  { %7529 = vtanh.f32 %v4114_v13  ;;  %v7387_v13 = vpack.c.bf16 %v5112_v40, %v5111_v32  ;;  %v5124_v40 = vld [vmem:[%s12493_s6 + $0x3b0] sm:$0xff] }
 0xe5d   :  { %v7528_v17 = vpop.eup %7527 }
 0xe5e   :  { %v7530_v4 = vpop.eup %7529  ;;  %v4117_v43 = vadd.f32 1.0, %v7528_v17  ;;  %v5114_v17 = vld [vmem:[%s12493_s6 + $0x368] sm:$0xff] }
 0xe5f   :  { %v4118_v31 = vadd.f32 1.0, %v7530_v4  ;;  %v7390_v48 = vpack.c.bf16 %v5114_v17, %v5113_v22  ;;  %v5115_v4 = vld [vmem:[%s12493_s6 + $0x370] sm:$0xff]  ;;  %v5126_v17 = vld [vmem:[%s12493_s6 + $0x3c0] sm:$0xff] }
 0xe60   :  { %v4119_v29 = vmul.f32 %v4117_v43, %v4103_v54  ;;  %v5116_v54 = vld [vmem:[%s12493_s6 + $0x378] sm:$0xff] }
 0xe61   :  { %v4120_v10 = vmul.f32 %v4118_v31, %v4104_v18  ;;  %v7393_v43 = vpack.c.bf16 %v5116_v54, %v5115_v4  ;;  %v5079_v18 = vld [vmem:[%s12493_s6 + $0x250] sm:$0xff]  ;;  %v5080_v31 = vld [vmem:[%s12493_s6 + $0x258] sm:$0xff] }
 0xe62   :  { %v4121_v53 = vmul.f32 %v4119_v29, %v4028_v45  ;;  %v7363_v45 = vpack.c.bf16 %v5080_v31, %v5079_v18  ;;  %v5081_v29 = vld [vmem:[%s12493_s6 + $0x260] sm:$0xff]  ;;  %v5128_v54 = vld [vmem:[%s12493_s6 + $0x3d0] sm:$0xff] }
 0xe63   :  { %v4122_v26 = vmul.f32 %v4120_v10, %v4030_v27  ;;  %v5082_v27 = vld [vmem:[%s12493_s6 + $0x268] sm:$0xff] }
 0xe64   :  { %v7366_v10 = vpack.c.bf16 %v5082_v27, %v5081_v29  ;;  %v5131_v29 = vld [vmem:[%s12493_s6 + $0x3e8] sm:$0xff] }
 0xe65   :  { %4264 = vmatprep.mubr.f32.mxu0 %v4122_v26  ;;  %v5084_v26 = vld [vmem:[%s12493_s6 + $0x278] sm:$0xff] }
 0xe66   :  { %4265 = vmatmul.mubr.f32.vlgmr.msra.gmra.mrb[20].mxu0 %v4121_v53  ;;  %v5083_v53 = vld [vmem:[%s12493_s6 + $0x270] sm:$0xff] }
 0xe67   :  { %5564 = vmatprep.mubr.msk.f32.mxu0 %vm7640_vm0, %v12764_v51  ;;  %7349 = vmatpush3.bf16.msra.mxu0 %v7348_v42  ;;  %v7369_v7 = vpack.c.bf16 %v5084_v26, %v5083_v53  ;;  %v7402_v42 = vpack.c.bf16 %v5090_v1, %v5089_v61  ;;  %v5132_v53 = vld [vmem:[%s12493_s6 + $0x3f0] sm:$0xff]  ;;  %v5133_v26 = vld [vmem:[%s12493_s6 + $0x3f8] sm:$0xff]  ;;  %v4643_v61 = vld [vmem:[#allocation2 + $0xc2] ss:$0 sm:$0xff] }
 0xe68   :  { %7350 = vmatprep.subr.bf16.mxu0 %v12765_v60 }
 0xe6b   :  { %7352 = vmatpush3.bf16.msra.mxu0 %v7351_v49  ;;  %v5092_v49 = vld [vmem:[%s12493_s6 + $0x2b8] sm:$0xff] }
 0xe6c   :  { %7353 = vmatprep.subr.bf16.mxu0 %v12765_v60  ;;  %v7405_v24 = vpack.c.bf16 %v5092_v49, %v5091_v6 }
 0xe6f   :  { %7355 = vmatpush3.bf16.msra.mxu0 %v7354_v25  ;;  %v5094_v25 = vld [vmem:[%s12493_s6 + $0x2c8] sm:$0xff] }
 0xe70   :  { %7356 = vmatprep.subr.bf16.mxu0 %v12765_v60  ;;  %v7408_v33 = vpack.c.bf16 %v5094_v25, %v5093_v34 }
 0xe73   :  { %7358 = vmatpush3.bf16.msra.mxu0 %v7357_v11  ;;  %v5096_v11 = vld [vmem:[%s12493_s6 + $0x2d8] sm:$0xff] }
 0xe74   :  { %7359 = vmatprep.subr.bf16.mxu0 %v12765_v60  ;;  %v7411_v36 = vpack.c.bf16 %v5096_v11, %v5095_v52 }
 0xe77   :  { %7361 = vmatpush3.bf16.msra.mxu0 %v7360_v23  ;;  %v5098_v23 = vld [vmem:[%s12493_s6 + $0x2e8] sm:$0xff] }
 0xe78   :  { %7362 = vmatprep.subr.bf16.mxu0 %v12765_v60  ;;  %v7414_v47 = vpack.c.bf16 %v5098_v23, %v5097_v39 }
 0xe7b   :  { %7364 = vmatpush3.bf16.msra.mxu0 %v7363_v45  ;;  %v5130_v45 = vld [vmem:[%s12493_s6 + $0x3e0] sm:$0xff] }
 0xe7c   :  { %7365 = vmatprep.subr.bf16.mxu0 %v12765_v60 }
 0xe7f   :  { %7367 = vmatpush3.bf16.msra.mxu0 %v7366_v10  ;;  %v7438_v10 = vpack.c.bf16 %v5131_v29, %v5130_v45 }
 0xe80   :  { %7368 = vmatprep.subr.bf16.mxu0 %v12765_v60 }
 0xe83   :  { %7370 = vmatpush3.bf16.msra.mxu0 %v7369_v7  ;;  %v7441_v7 = vpack.c.bf16 %v5133_v26, %v5132_v53 }
 0xe84   :  { %7419 = vmatprep.subr.bf16.mxu0 %v12765_v60 }
 0xf39   :  { %v4266_v63 = vpop.f32.mrb[20].mxu0 }
 0xf3a   :  { %v4268_v62 = vpop.f32.mrb[21].mxu0  ;;  %v4267_v56 = vadd.f32 %v4266_v63, %v4193_v58  ;;  %v5100_v58 = vld [vmem:[%s12493_s6 + $0x2f8] sm:$0xff]  ;;  %v4303_v63 = vld [vmem:[#allocation2 + $0xc1] ss:$0 sm:$0xff] }
 0xf3b   :  { %v4269_v8 = vadd.f32 %v4268_v62, %v4197_v55  ;;  %v5099_v55 = vld [vmem:[%s12493_s6 + $0x2f0] sm:$0xff] }
 0xf3c   :  { %v7417_v59 = vpack.c.bf16 %v5100_v58, %v5099_v55 }
 0xf3d   :  { %4368 = vmatprep.mubr.f32.mxu1 %v4269_v8 }
 0xf3e   :  { %4369 = vmatmul.mubr.f32.vlgmr.msra.gmra.mrb[22].mxu1 %v4267_v56  ;;  %v4375_v56 = vld [vmem:[#allocation2 + $0x36] ss:$0 sm:$0xff] }
 0xf3f   :  { %7373 = vmatpush3.bf16.msra.mxu1 %v7372_v14  ;;  %5599 = vmatprep.mubr.msk.f32.mxu1 %vm7640_vm0, %v12764_v51 }
 0xf40   :  { %7374 = vmatprep.subr.bf16.mxu1 %v12765_v60 }
 0xf43   :  { %7376 = vmatpush3.bf16.msra.mxu1 %v7375_v44 }
 0xf44   :  { %7377 = vmatprep.subr.bf16.mxu1 %v12765_v60 }
 0xf47   :  { %7379 = vmatpush3.bf16.msra.mxu1 %v7378_v16 }
 0xf48   :  { %7380 = vmatprep.subr.bf16.mxu1 %v12765_v60 }
 0xf4b   :  { %7382 = vmatpush3.bf16.msra.mxu1 %v7381_v21  ;;  %v5120_v21 = vld [vmem:[%s12493_s6 + $0x390] sm:$0xff] }
 0xf4c   :  { %7383 = vmatprep.subr.bf16.mxu1 %v12765_v60 }
 0xf4f   :  { %7385 = vmatpush3.bf16.msra.mxu1 %v7384_v28  ;;  %v5123_v28 = vld [vmem:[%s12493_s6 + $0x3a8] sm:$0xff] }
 0xf50   :  { %7386 = vmatprep.subr.bf16.mxu1 %v12765_v60  ;;  %v7426_v32 = vpack.c.bf16 %v5123_v28, %v5122_v5 }
 0xf53   :  { %7388 = vmatpush3.bf16.msra.mxu1 %v7387_v13  ;;  %v5125_v13 = vld [vmem:[%s12493_s6 + $0x3b8] sm:$0xff] }
 0xf54   :  { %7389 = vmatprep.subr.bf16.mxu1 %v12765_v60  ;;  %v7429_v22 = vpack.c.bf16 %v5125_v13, %v5124_v40 }
 0xf57   :  { %7391 = vmatpush3.bf16.msra.mxu1 %v7390_v48  ;;  %v5127_v48 = vld [vmem:[%s12493_s6 + $0x3c8] sm:$0xff] }
 0xf58   :  { %7392 = vmatprep.subr.bf16.mxu1 %v12765_v60  ;;  %v7432_v4 = vpack.c.bf16 %v5127_v48, %v5126_v17 }
 0xf5b   :  { %7394 = vmatpush3.bf16.msra.mxu1 %v7393_v43  ;;  %v5129_v43 = vld [vmem:[%s12493_s6 + $0x3d8] sm:$0xff] }
 0xf5c   :  { %7395 = vmatprep.subr.bf16.mxu1 %v12765_v60  ;;  %v7435_v18 = vpack.c.bf16 %v5129_v43, %v5128_v54 }
 0xf5e   :  { %5600 = vmatmul.mubr.f32.vlgmr.msra.gmra.mrb[24].mxu1 %v10001_v38 }
 0xf5f   :  { %5634 = vmatprep.mubr.msk.f32.mxu1 %vm7640_vm0, %v12764_v51  ;;  %7397 = vmatpush3.bf16.msra.mxu1 %v7396_v20  ;;  %v7467_v20 = vadd.f32 %v4397_v46, %v130_v15 }
 0xf60   :  { %7398 = vmatprep.subr.bf16.mxu1 %v12765_v60 }
 0xf63   :  { %7400 = vmatpush3.bf16.msra.mxu1 %v7399_v35 }
 0xf64   :  { %7401 = vmatprep.subr.bf16.mxu1 %v12765_v60 }
 0xf67   :  { %7403 = vmatpush3.bf16.msra.mxu1 %v7402_v42 }
 0xf68   :  { %7404 = vmatprep.subr.bf16.mxu1 %v12765_v60 }
 0xf6b   :  { %7406 = vmatpush3.bf16.msra.mxu1 %v7405_v24 }
 0xf6c   :  { %7407 = vmatprep.subr.bf16.mxu1 %v12765_v60 }
 0xf6f   :  { %7409 = vmatpush3.bf16.msra.mxu1 %v7408_v33 }
 0xf70   :  { %7410 = vmatprep.subr.bf16.mxu1 %v12765_v60 }
 0xf73   :  { %7412 = vmatpush3.bf16.msra.mxu1 %v7411_v36 }
 0xf74   :  { %7413 = vmatprep.subr.bf16.mxu1 %v12765_v60 }
 0xf77   :  { %7415 = vmatpush3.bf16.msra.mxu1 %v7414_v47 }
 0xf78   :  { %7416 = vmatprep.subr.bf16.mxu1 %v12765_v60 }
 0xf7b   :  { %7418 = vmatpush3.bf16.msra.mxu1 %v7417_v59 }
 0xf7c   :  { %7443 = vmatprep.subr.bf16.mxu1 %v12765_v60 }
0x1011   :  { %v5304_v37 = vpop.f32.mrb[22].mxu1 }
0x1012   :  { %v5305_v62 = vpop.f32.mrb[23].mxu1 }
0x1013   :  { %v5306_v8 = vadd.f32 %v5305_v62, %v5304_v37 }
0x1015   :  { %v4371_v14 = vadd.f32 %v5306_v8, %v4303_v63 }
0x1017   :  { %v4374_v0 = vadd.f32 %v4371_v14, %v10014_v50  ;;  %v5121_v50 = vld [vmem:[%s12493_s6 + $0x398] sm:$0xff] }
0x1018   :  { %v7423_v9 = vpack.c.bf16 %v5121_v50, %v5120_v21 }
0x1019   :  { %v4376_v44 = vmul.f32 %v4375_v56, %v4374_v0 }
0x101b   :  { %v4378_v16 = vadd.f32 %v4377_v2, %v4376_v44 }
0x101d   :  { %v4379_v30 = vmax.f32 %v4378_v16, 0.0 }
0x101f   :  { %5565 = vmatmul.mubr.f32.vlgmr.msra.gmra.mrb[0].mxu0 %v4379_v30 }
0x1020   :  { %7421 = vmatpush3.bf16.msra.mxu0 %v7420_v19  ;;  %5669 = vmatprep.mubr.msk.f32.mxu0 %vm7640_vm0, %v12764_v51 }
0x1021   :  { %7422 = vmatprep.subr.bf16.mxu0 %v12765_v60 }
0x1024   :  { %7424 = vmatpush3.bf16.msra.mxu0 %v7423_v9 }
0x1025   :  { %7425 = vmatprep.subr.bf16.mxu0 %v12765_v60 }
0x1028   :  { %7427 = vmatpush3.bf16.msra.mxu0 %v7426_v32 }
0x1029   :  { %7428 = vmatprep.subr.bf16.mxu0 %v12765_v60 }
0x102c   :  { %7430 = vmatpush3.bf16.msra.mxu0 %v7429_v22 }
0x102d   :  { %7431 = vmatprep.subr.bf16.mxu0 %v12765_v60 }
0x1030   :  { %7433 = vmatpush3.bf16.msra.mxu0 %v7432_v4 }
0x1031   :  { %v4569_v31 = vpop.f32.mrb[24].mxu1  ;;  %7434 = vmatprep.subr.bf16.mxu0 %v12765_v60 }
0x1032   :  { %v5601_v27 = vpop.f32.mrb[25].mxu1 }
0x1034   :  { %7436 = vmatpush3.bf16.msra.mxu0 %v7435_v18 }
0x1035   :  { %7437 = vmatprep.subr.bf16.mxu0 %v12765_v60 }
0x1038   :  { %7439 = vmatpush3.bf16.msra.mxu0 %v7438_v10 }
0x1039   :  { %7440 = vmatprep.subr.bf16.mxu0 %v12765_v60 }
0x103c   :  { %7442 = vmatpush3.bf16.msra.mxu0 %v7441_v7 }
0x10f2   :  { %v4464_v3 = vpop.f32.mrb[0].mxu0 }
0x10f3   :  { %v7468_v41 = vadd.f32 %v7467_v20, %v4464_v3  ;;  %v5566_v35 = vpop.f32.mrb[1].mxu0 }
0x10f5   :  { %5635 = vmatmul.mubr.f32.vlgmr.msra.gmra.mrb[26].mxu1 %v7468_v41  ;;  %5670 = vmatmul.mubr.f32.vlgmr.msra.gmra.mrb[22].mxu0 %v7468_v41 }
0x10f6   :  { %7445 = vmatpush3.bf16.msra.mxu1 %v7420_v19  ;;  %5704 = vmatprep.mubr.msk.f32.mxu1 %vm7640_vm0, %v12764_v51 }
0x10f7   :  { %7446 = vmatprep.subr.bf16.mxu1 %v12765_v60 }
0x10fa   :  { %7448 = vmatpush3.bf16.msra.mxu1 %v7423_v9 }
0x10fb   :  { %7449 = vmatprep.subr.bf16.mxu1 %v12765_v60 }
0x10fe   :  { %7451 = vmatpush3.bf16.msra.mxu1 %v7426_v32 }
0x10ff   :  { %7452 = vmatprep.subr.bf16.mxu1 %v12765_v60 }
0x1102   :  { %7454 = vmatpush3.bf16.msra.mxu1 %v7429_v22 }
0x1103   :  { %7455 = vmatprep.subr.bf16.mxu1 %v12765_v60 }
0x1106   :  { %7457 = vmatpush3.bf16.msra.mxu1 %v7432_v4 }
0x1107   :  { %7458 = vmatprep.subr.bf16.mxu1 %v12765_v60 }
0x110a   :  { %7460 = vmatpush3.bf16.msra.mxu1 %v7435_v18 }
0x110b   :  { %7461 = vmatprep.subr.bf16.mxu1 %v12765_v60 }
0x110e   :  { %7463 = vmatpush3.bf16.msra.mxu1 %v7438_v10 }
0x110f   :  { %7464 = vmatprep.subr.bf16.mxu1 %v12765_v60 }
0x1112   :  { %7466 = vmatpush3.bf16.msra.mxu1 %v7441_v7 }
0x1115   :  { %5705 = vmatmul.mubr.f32.vlgmr.msra.gmra.mrb[28].mxu1 %v10001_v38 }
0x11c8   :  { %v4639_v51 = vpop.f32.mrb[26].mxu1  ;;  %v4734_v1 = vpop.f32.mrb[22].mxu0 }
0x11c9   :  { %v4640_v42 = vadd.f32 %v4639_v51, %v4569_v31  ;;  %v5636_v6 = vpop.f32.mrb[27].mxu1  ;;  %v5671_v49 = vpop.f32.mrb[23].mxu0 }
0x11cb   :  { %v4644_v24 = vadd.f32 %v4643_v61, %v4640_v42 }
0x11cd   :  { %v5117_v34 = vmul.f32 -1.442695, %v4644_v24 }
0x11cf   :  { %7531 = vpow2.f32 %v5117_v34 }
0x11d9   :  { %v7532_v25 = vpop.eup %7531 }
0x11da   :  { %v4648_v33 = vadd.f32 1.0, %v7532_v25 }
0x11dc   :  { %7533 = vrcp.f32 %v4648_v33 }
0x11e6   :  { %v7534_v52 = vpop.eup %7533 }
0x11e7   :  { %v4808_v11 = vmul.f32 %v7534_v52, %v4734_v1  ;;  %v4809_v36 = vsub.f32 1.0, %v7534_v52 }
0x11e8   :  { %v4804_v39 = vpop.f32.mrb[28].mxu1 }
0x11e9   :  { %v4810_v60 = vmul.f32 %v4809_v36, %v4804_v39  ;;  %4813 = vst [vmem:[%s12505_s18] sm:$0x3] %v4804_v39  ;;  %v5706_v38 = vpop.f32.mrb[29].mxu1 }
0x11eb   :  { %v4811_v23 = vadd.f32 %v4810_v60, %v4808_v11 }
0x11ed   :  { %4812 = vst [vmem:[%s12504_s17] sm:$0x3] %v4811_v23 }
0x11ee   :  { %4822 = vsyncpa [#allocation3], 1 }
0x11ef   :  { %4823 = vsyncpa [#allocation5], 1 }
0x11f0   :  { %4824 = vsyncpa [#allocation8], 1 }

</bundles_post_ra>
